<compile_context>
chip_gen: v6e
topology: v6e:2x2x1
jax: 0.10.0
libtpu: 0.0.40
codegen_flags: <defaults>
</compile_context>

<pallas_src>
import functools

import jax
import jax.numpy as jnp
from jax.experimental import pallas as pl
from jax.experimental.pallas import tpu as pltpu


# ----------------------------------------------------------------------------
# helpers
# ----------------------------------------------------------------------------
def _row_block(m, target=256):
    """Largest row block <= target that divides m and is a multiple of 8."""
    if m <= target:
        return m
    blk = target - (target % 8)
    while blk >= 8:
        if m % blk == 0:
            return blk
        blk -= 8
    return m


# ----------------------------------------------------------------------------
# Conv2d: im2col formed in VMEM, MXU matmul + bias + optional ReLU fused
# ----------------------------------------------------------------------------
def _conv_mxu_kernel(x_ref, w_ref, b_ref, o_ref, *, kh, kw, dil, ho, wo, cin, relu):
    # x_ref: (Hp, Wp, Cin) padded NHWC slab of one batch element (f32)
    # w_ref: (kh*kw*Cin, Cout) bf16     b_ref: (1, Cout) f32
    # o_ref: (Ho*Wo, Cout) f32
    acc = None
    for t in range(kh * kw):
        i, j = divmod(t, kw)
        patch = x_ref[i * dil:i * dil + ho, j * dil:j * dil + wo, :]   # (Ho, Wo, Cin)
        a = patch.reshape(ho * wo, cin).astype(jnp.bfloat16)
        wk = w_ref[t * cin:(t + 1) * cin, :]                           # (Cin, Cout)
        part = jnp.dot(a, wk, preferred_element_type=jnp.float32)
        acc = part if acc is None else acc + part
    acc = acc + b_ref[...]
    if relu:
        acc = jnp.maximum(acc, 0.0)
    o_ref[...] = acc.astype(o_ref.dtype)


def conv2d(x, w, b, padding=0, dilation=1, relu=False):
    """Stride-1 conv. x:(N,H,W,Cin) f32, w:(kh,kw,Cin,Cout), b:(Cout,).
    Matches PyTorch Conv2d(padding, dilation) zero-padding semantics.
    (All convs in this network are stride-1; pooling does the downsampling.)"""
    n, h, wd, cin = x.shape
    kh, kw, _, cout = w.shape
    xp = jnp.pad(x, ((0, 0), (padding, padding), (padding, padding), (0, 0)))
    hp, wp = h + 2 * padding, wd + 2 * padding
    ho = hp - dilation * (kh - 1)
    wo = wp - dilation * (kw - 1)
    w2 = w.reshape(kh * kw * cin, cout).astype(jnp.bfloat16)
    b2 = b.reshape(1, cout).astype(jnp.float32)

    out = pl.pallas_call(
        functools.partial(_conv_mxu_kernel, kh=kh, kw=kw, dil=dilation,
                          ho=ho, wo=wo, cin=cin, relu=relu),
        out_shape=jax.ShapeDtypeStruct((n, ho * wo, cout), jnp.float32),
        grid=(n,),
        in_specs=[
            pl.BlockSpec((None, hp, wp, cin), lambda i: (i, 0, 0, 0)),
            pl.BlockSpec((kh * kw * cin, cout), lambda i: (0, 0)),
            pl.BlockSpec((1, cout), lambda i: (0, 0)),
        ],
        out_specs=pl.BlockSpec((None, ho * wo, cout), lambda i: (i, 0, 0)),
        compiler_params=pltpu.CompilerParams(dimension_semantics=("parallel",)),
    )(xp, w2, b2)
    return out.reshape(n, ho, wo, cout)


# ----------------------------------------------------------------------------
# FPN merge: lateral + nearest-2x-upsample(coarse), upsample done in VMEM
# ----------------------------------------------------------------------------
def _fpn_merge_kernel(lat_ref, coarse_ref, o_ref):
    c = coarse_ref[...]                                      # (H/2, W/2, C)
    up = jnp.repeat(jnp.repeat(c, 2, axis=0), 2, axis=1)     # 2x NN upsample in VMEM
    o_ref[...] = lat_ref[...] + up


def fpn_merge(lat, coarse):
    n, h, wd, c = lat.shape
    h2, w2 = coarse.shape[1], coarse.shape[2]
    return pl.pallas_call(
        _fpn_merge_kernel,
        out_shape=jax.ShapeDtypeStruct((n, h, wd, c), jnp.float32),
        grid=(n,),
        in_specs=[pl.BlockSpec((None, h, wd, c), lambda i: (i, 0, 0, 0)),
                  pl.BlockSpec((None, h2, w2, c), lambda i: (i, 0, 0, 0))],
        out_specs=pl.BlockSpec((None, h, wd, c), lambda i: (i, 0, 0, 0)),
        compiler_params=pltpu.CompilerParams(dimension_semantics=("parallel",)),
    )(lat, coarse)


# ----------------------------------------------------------------------------
# Elementwise residual combine (RFB shortcut): a*scale + b (+ReLU), row-tiled
# ----------------------------------------------------------------------------
def _scale_add_act_kernel(a_ref, b_ref, o_ref, *, scale, relu):
    y = a_ref[...] * scale + b_ref[...]
    if relu:
        y = jnp.maximum(y, 0.0)
    o_ref[...] = y


def scale_add_act(a, b, scale=1.0, relu=False):
    shp = a.shape
    a2 = a.reshape(-1, shp[-1])
    b2 = b.reshape(-1, shp[-1])
    m, c = a2.shape
    blk = _row_block(m, 256)
    out = pl.pallas_call(
        functools.partial(_scale_add_act_kernel, scale=scale, relu=relu),
        out_shape=jax.ShapeDtypeStruct((m, c), jnp.float32),
        grid=(m // blk,),
        in_specs=[pl.BlockSpec((blk, c), lambda i: (i, 0)),
                  pl.BlockSpec((blk, c), lambda i: (i, 0))],
        out_specs=pl.BlockSpec((blk, c), lambda i: (i, 0)),
        compiler_params=pltpu.CompilerParams(dimension_semantics=("parallel",)),
    )(a2, b2)
    return out.reshape(shp)


# ----------------------------------------------------------------------------
# Test-phase softmax over the class dimension, row-tiled
# ----------------------------------------------------------------------------
def _softmax_kernel(x_ref, o_ref):
    x = x_ref[...]
    m = jnp.max(x, axis=-1, keepdims=True)
    e = jnp.exp(x - m)
    o_ref[...] = e / jnp.sum(e, axis=-1, keepdims=True)


def softmax_lastdim(x):
    # TODO(synk): num_classes=4 uses only 4 of 128 lanes; a further step is a
    #             per-anchor segmented softmax fused into the conf-head epilogue.
    r, c = x.shape
    blk = _row_block(r, 256)
    return pl.pallas_call(
        _softmax_kernel,
        out_shape=jax.ShapeDtypeStruct((r, c), jnp.float32),
        grid=(r // blk,),
        in_specs=[pl.BlockSpec((blk, c), lambda i: (i, 0))],
        out_specs=pl.BlockSpec((blk, c), lambda i: (i, 0)),
        compiler_params=pltpu.CompilerParams(dimension_semantics=("parallel",)),
    )(x)


# ----------------------------------------------------------------------------
# Plain-JAX glue (not hot paths)
# ----------------------------------------------------------------------------
def maxpool2(x):
    # 2x2 / stride-2 max pool; spatial sizes in this config are always even.
    n, h, w, c = x.shape
    return x.reshape(n, h // 2, 2, w // 2, 2, c).max(axis=(2, 4))


# ----------------------------------------------------------------------------
# Deterministic parameter construction (weights bf16, biases f32)
# ----------------------------------------------------------------------------
def init_conv(key, kh, kw, cin, cout, wscale=0.05):
    kw_, kb_ = jax.random.split(key)
    return {
        "w": (wscale * jax.random.normal(kw_, (kh, kw, cin, cout), jnp.float32)
              ).astype(jnp.bfloat16),
        "b": 0.01 * jax.random.normal(kb_, (cout,), jnp.float32),
    }


def build_ssd_params(key, num_classes=4, num_anchors=6, fpn_ch=32):
    keys = iter(jax.random.split(key, 64))
    p = {"num_classes": num_classes, "num_anchors": num_anchors}

    # VGG-ish backbone convs
    p["base"] = {
        "c0": init_conv(next(keys), 3, 3, 3, 16),
        "c1": init_conv(next(keys), 3, 3, 16, 16),
        "c2": init_conv(next(keys), 3, 3, 16, 32),
        "c3": init_conv(next(keys), 3, 3, 32, 32),
        "c4": init_conv(next(keys), 3, 3, 32, 48),
        "c5": init_conv(next(keys), 3, 3, 48, 48),
        "c6": init_conv(next(keys), 1, 1, 48, 48),
        "c7": init_conv(next(keys), 3, 3, 48, 64),
        "c8": init_conv(next(keys), 3, 3, 64, 64),
    }

    # FPN neck: lateral 1x1 + 3x3 smoothing, all -> fpn_ch channels
    p["fpn"] = {
        "lat0": init_conv(next(keys), 1, 1, 32, fpn_ch),
        "lat1": init_conv(next(keys), 1, 1, 48, fpn_ch),
        "lat2": init_conv(next(keys), 1, 1, 64, fpn_ch),
        "smooth0": init_conv(next(keys), 3, 3, fpn_ch, fpn_ch),
        "smooth1": init_conv(next(keys), 3, 3, fpn_ch, fpn_ch),
        "smooth2": init_conv(next(keys), 3, 3, fpn_ch, fpn_ch),
    }

    # BasicRFB(fpn_ch, fpn_ch, stride=1, scale=1.0): inter = fpn_ch // 8
    inter = fpn_ch // 8
    p["rfb"] = {
        "b0_0": init_conv(next(keys), 1, 1, fpn_ch, 2 * inter),
        "b0_1": init_conv(next(keys), 3, 3, 2 * inter, 2 * inter),
        "b1_0": init_conv(next(keys), 1, 1, fpn_ch, inter),
        "b1_1": init_conv(next(keys), 3, 3, inter, 2 * inter),
        "b1_2": init_conv(next(keys), 3, 3, 2 * inter, 2 * inter),
        "b2_0": init_conv(next(keys), 1, 1, fpn_ch, inter),
        "b2_1": init_conv(next(keys), 3, 3, inter, (inter // 2) * 3),
        "b2_2": init_conv(next(keys), 3, 3, (inter // 2) * 3, 2 * inter),
        "b2_3": init_conv(next(keys), 3, 3, 2 * inter, 2 * inter),
        "linear": init_conv(next(keys), 1, 1, 6 * inter, fpn_ch),
        "shortcut": init_conv(next(keys), 1, 1, fpn_ch, fpn_ch),
    }

    # multibox heads (one loc + one conf conv per pyramid level)
    p["loc"] = [init_conv(next(keys), 3, 3, fpn_ch, num_anchors * 4) for _ in range(3)]
    p["conf"] = [init_conv(next(keys), 3, 3, fpn_ch, num_anchors * num_classes)
                 for _ in range(3)]
    return p


# ----------------------------------------------------------------------------
# Network pieces
# ----------------------------------------------------------------------------
def backbone_forward(bp, x):
    """VGG-ish base with ReLU fused into the conv kernels.  Source taps match
    the PyTorch ModuleList splits (after base[8], base[14], end)."""
    x = conv2d(x, bp["c0"]["w"], bp["c0"]["b"], padding=1, relu=True)
    x = conv2d(x, bp["c1"]["w"], bp["c1"]["b"], padding=1, relu=True)
    x = maxpool2(x)
    x = conv2d(x, bp["c2"]["w"], bp["c2"]["b"], padding=1, relu=True)
    x = conv2d(x, bp["c3"]["w"], bp["c3"]["b"], padding=1, relu=True)
    s0 = x                                              # base[0..8]  : 16x16, 32ch
    x = maxpool2(x)
    x = conv2d(x, bp["c4"]["w"], bp["c4"]["b"], padding=1, relu=True)
    x = conv2d(x, bp["c5"]["w"], bp["c5"]["b"], padding=1, relu=True)
    x = conv2d(x, bp["c6"]["w"], bp["c6"]["b"])         # 1x1, no ReLU before split
    s1 = x                                              # base[9..14] : 8x8, 48ch
    x = maxpool2(x)
    x = conv2d(x, bp["c7"]["w"], bp["c7"]["b"], padding=1, relu=True)
    x = conv2d(x, bp["c8"]["w"], bp["c8"]["b"], padding=1, relu=True)
    s2 = x                                              # base[15..]  : 4x4, 64ch
    return [s0, s1, s2]


def fpn_neck(fp, sources):
    lats = [conv2d(s, fp[f"lat{i}"]["w"], fp[f"lat{i}"]["b"])
            for i, s in enumerate(sources)]
    p2 = lats[2]
    p1 = fpn_merge(lats[1], p2)      # upsample folded into the merge kernel
    p0 = fpn_merge(lats[0], p1)
    merged = [p0, p1, p2]
    # padding=1 keeps pyramid spatial sizes (16/8/4) -- this fixes the prior-count bug.
    return [conv2d(m, fp[f"smooth{i}"]["w"], fp[f"smooth{i}"]["b"], padding=1)
            for i, m in enumerate(merged)]


def basic_rfb(rp, x, scale=1.0):
    # TODO(synk): BatchNorm inside BasicConv is folded as identity (eval mode,
    #             default running stats), so only conv + ReLU are materialized.
    def c(name, inp, **kw):
        return conv2d(inp, rp[name]["w"], rp[name]["b"], **kw)

    # Fused branch-entry 1x1 convs (b0_0 | b1_0 | b2_0): one MXU call, split after.
    w_in = jnp.concatenate([rp["b0_0"]["w"], rp["b1_0"]["w"], rp["b2_0"]["w"]], axis=-1)
    b_in = jnp.concatenate([rp["b0_0"]["b"], rp["b1_0"]["b"], rp["b2_0"]["b"]], axis=0)
    c0o = rp["b0_0"]["w"].shape[-1]
    c1o = rp["b1_0"]["w"].shape[-1]
    y = conv2d(x, w_in, b_in, relu=True)
    y0, y1, y2 = y[..., :c0o], y[..., c0o:c0o + c1o], y[..., c0o + c1o:]

    b0 = c("b0_1", y0, padding=1)
    b1 = c("b1_2", c("b1_1", y1, padding=1, relu=True), padding=2, dilation=2)
    b2 = c("b2_3",
           c("b2_2", c("b2_1", y2, padding=1, relu=True), padding=1, relu=True),
           padding=3, dilation=3)
    cat = jnp.concatenate([b0, b1, b2], axis=-1)
    lin = c("linear", cat)
    short = c("shortcut", x)
    return scale_add_act(lin, short, scale=scale, relu=True)


def multibox_heads(features, loc_params, conf_params, num_anchors):
    """loc and conf convs are fused per level (weights concatenated along Cout)."""
    nl = num_anchors * 4
    loc_list, conf_list = [], []
    for f, lp, cp in zip(features, loc_params, conf_params):
        w = jnp.concatenate([lp["w"], cp["w"]], axis=-1)
        b = jnp.concatenate([lp["b"], cp["b"]], axis=0)
        out = conv2d(f, w, b, padding=1)     # NHWC == PyTorch's .permute(0,2,3,1)
        l, c = out[..., :nl], out[..., nl:]
        loc_list.append(l.reshape(l.shape[0], -1))
        conf_list.append(c.reshape(c.shape[0], -1))
    return jnp.concatenate(loc_list, axis=1), jnp.concatenate(conf_list, axis=1)


def ssd_forward(params, x_nchw, phase="test"):
    num_classes = params["num_classes"]
    x = jnp.transpose(x_nchw, (0, 2, 3, 1))   # NCHW (PyTorch) -> NHWC (kernel layout)

    fpn_sources = backbone_forward(params["base"], x)
    features = fpn_neck(params["fpn"], fpn_sources)
    features[0] = basic_rfb(params["rfb"], features[0], scale=1.0)

    loc, conf = multibox_heads(features, params["loc"], params["conf"],
                               params["num_anchors"])

    b = loc.shape[0]
    if phase == "test":
        return (loc.reshape(b, -1, 4),
                softmax_lastdim(conf.reshape(-1, num_classes)))
    return (loc.reshape(b, -1, 4), conf.reshape(b, -1, num_classes))


# ----------------------------------------------------------------------------
if __name__ == "__main__":
    key = jax.random.PRNGKey(0)
    pkey, xkey = jax.random.split(key)

    num_classes, num_anchors = 4, 6
    params = build_ssd_params(pkey, num_classes=num_classes, num_anchors=num_anchors)

    # input like the PyTorch module (NCHW), small spatial size
    x = jax.random.normal(xkey, (2, 3, 32, 32), jnp.float32)

    loc, conf = ssd_forward(params, x, phase="test")
    jax.block_until_ready((loc, conf))

    # priors = (16*16 + 8*8 + 4*4) * num_anchors = 2016
    assert loc.shape == (2, 2016, 4), loc.shape
    assert conf.shape == (2 * 2016, num_classes), conf.shape
    assert bool(jnp.all(jnp.isfinite(loc))) and bool(jnp.all(jnp.isfinite(conf)))
    assert bool(jnp.allclose(conf.sum(axis=-1), 1.0, atol=1e-5))

    print("KERNEL_OK")
</pallas_src>

<mosaic_0001>
module attributes {stable_mosaic.version = 11 : i64} {
  func.func @_conv_mxu_kernel(%arg0: i32, %arg1: memref<1x34x34x3xf32, #tpu.memory_space<vmem>>, %arg2: memref<27x16xbf16, #tpu.memory_space<vmem>>, %arg3: memref<1x16xf32, #tpu.memory_space<vmem>>, %arg4: memref<1x1024x16xf32, #tpu.memory_space<vmem>>) attributes {dimension_semantics = [#tpu.dimension_semantics<parallel>], iteration_bounds = array<i64: 2>, scalar_prefetch = 0 : i64, scratch_operands = 0 : i64, tpu.core_type = #tpu.core_type<tc>, window_params = [{transform_indices = @transform_0, window_bounds = array<i64: 1, 34, 34, 3>}, {pipeline_mode = #tpu.pipeline_mode<synchronous>, transform_indices = @transform_1, window_bounds = array<i64: 27, 16>}, {pipeline_mode = #tpu.pipeline_mode<synchronous>, transform_indices = @transform_2, window_bounds = array<i64: 1, 16>}, {transform_indices = @transform_3, window_bounds = array<i64: 1, 1024, 16>}]} {
    %c0 = arith.constant 0 : index
    %c0_0 = arith.constant 0 : index
    %c0_1 = arith.constant 0 : index
    %c0_2 = arith.constant 0 : index
    %0 = vector.load %arg1[%c0, %c0_0, %c0_1, %c0_2] : memref<1x34x34x3xf32, #tpu.memory_space<vmem>>, vector<1x32x32x3xf32>
    %1 = vector.shape_cast %0 : vector<1x32x32x3xf32> to vector<32x32x3xf32>
    %2 = vector.shape_cast %1 : vector<32x32x3xf32> to vector<1024x3xf32>
    %3 = arith.truncf %2 : vector<1024x3xf32> to vector<1024x3xbf16>
    %c0_3 = arith.constant 0 : index
    %c0_4 = arith.constant 0 : index
    %4 = vector.load %arg2[%c0_3, %c0_4] : memref<27x16xbf16, #tpu.memory_space<vmem>>, vector<3x16xbf16>
    %cst = arith.constant dense<0.000000e+00> : vector<1024x16xf32>
    %5 = tpu.matmul %3, %4, %cst {dimension_numbers = #tpu.dot_dimension_numbers<[1], [0], [0], [1], [0, 0, 1, 1], [], []>} : vector<1024x3xbf16>, vector<3x16xbf16>, vector<1024x16xf32> -> vector<1024x16xf32>
    %c0_5 = arith.constant 0 : index
    %c0_6 = arith.constant 0 : index
    %c1 = arith.constant 1 : index
    %c0_7 = arith.constant 0 : index
    %6 = vector.load %arg1[%c0_5, %c0_6, %c1, %c0_7] : memref<1x34x34x3xf32, #tpu.memory_space<vmem>>, vector<1x32x32x3xf32>
    %7 = vector.shape_cast %6 : vector<1x32x32x3xf32> to vector<32x32x3xf32>
    %8 = vector.shape_cast %7 : vector<32x32x3xf32> to vector<1024x3xf32>
    %9 = arith.truncf %8 : vector<1024x3xf32> to vector<1024x3xbf16>
    %c3 = arith.constant 3 : index
    %c0_8 = arith.constant 0 : index
    %10 = vector.load %arg2[%c3, %c0_8] : memref<27x16xbf16, #tpu.memory_space<vmem>>, vector<3x16xbf16>
    %cst_9 = arith.constant dense<0.000000e+00> : vector<1024x16xf32>
    %11 = tpu.matmul %9, %10, %cst_9 {dimension_numbers = #tpu.dot_dimension_numbers<[1], [0], [0], [1], [0, 0, 1, 1], [], []>} : vector<1024x3xbf16>, vector<3x16xbf16>, vector<1024x16xf32> -> vector<1024x16xf32>
    %12 = arith.addf %5, %11 : vector<1024x16xf32>
    %c0_10 = arith.constant 0 : index
    %c0_11 = arith.constant 0 : index
    %c2 = arith.constant 2 : index
    %c0_12 = arith.constant 0 : index
    %13 = vector.load %arg1[%c0_10, %c0_11, %c2, %c0_12] : memref<1x34x34x3xf32, #tpu.memory_space<vmem>>, vector<1x32x32x3xf32>
    %14 = vector.shape_cast %13 : vector<1x32x32x3xf32> to vector<32x32x3xf32>
    %15 = vector.shape_cast %14 : vector<32x32x3xf32> to vector<1024x3xf32>
    %16 = arith.truncf %15 : vector<1024x3xf32> to vector<1024x3xbf16>
    %c6 = arith.constant 6 : index
    %c0_13 = arith.constant 0 : index
    %17 = vector.load %arg2[%c6, %c0_13] : memref<27x16xbf16, #tpu.memory_space<vmem>>, vector<3x16xbf16>
    %cst_14 = arith.constant dense<0.000000e+00> : vector<1024x16xf32>
    %18 = tpu.matmul %16, %17, %cst_14 {dimension_numbers = #tpu.dot_dimension_numbers<[1], [0], [0], [1], [0, 0, 1, 1], [], []>} : vector<1024x3xbf16>, vector<3x16xbf16>, vector<1024x16xf32> -> vector<1024x16xf32>
    %19 = arith.addf %12, %18 : vector<1024x16xf32>
    %c0_15 = arith.constant 0 : index
    %c1_16 = arith.constant 1 : index
    %c0_17 = arith.constant 0 : index
    %c0_18 = arith.constant 0 : index
    %20 = vector.load %arg1[%c0_15, %c1_16, %c0_17, %c0_18] : memref<1x34x34x3xf32, #tpu.memory_space<vmem>>, vector<1x32x32x3xf32>
    %21 = vector.shape_cast %20 : vector<1x32x32x3xf32> to vector<32x32x3xf32>
    %22 = vector.shape_cast %21 : vector<32x32x3xf32> to vector<1024x3xf32>
    %23 = arith.truncf %22 : vector<1024x3xf32> to vector<1024x3xbf16>
    %c9 = arith.constant 9 : index
    %c0_19 = arith.constant 0 : index
    %24 = vector.load %arg2[%c9, %c0_19] : memref<27x16xbf16, #tpu.memory_space<vmem>>, vector<3x16xbf16>
    %cst_20 = arith.constant dense<0.000000e+00> : vector<1024x16xf32>
    %25 = tpu.matmul %23, %24, %cst_20 {dimension_numbers = #tpu.dot_dimension_numbers<[1], [0], [0], [1], [0, 0, 1, 1], [], []>} : vector<1024x3xbf16>, vector<3x16xbf16>, vector<1024x16xf32> -> vector<1024x16xf32>
    %26 = arith.addf %19, %25 : vector<1024x16xf32>
    %c0_21 = arith.constant 0 : index
    %c1_22 = arith.constant 1 : index
    %c1_23 = arith.constant 1 : index
    %c0_24 = arith.constant 0 : index
    %27 = vector.load %arg1[%c0_21, %c1_22, %c1_23, %c0_24] : memref<1x34x34x3xf32, #tpu.memory_space<vmem>>, vector<1x32x32x3xf32>
    %28 = vector.shape_cast %27 : vector<1x32x32x3xf32> to vector<32x32x3xf32>
    %29 = vector.shape_cast %28 : vector<32x32x3xf32> to vector<1024x3xf32>
    %30 = arith.truncf %29 : vector<1024x3xf32> to vector<1024x3xbf16>
    %c12 = arith.constant 12 : index
    %c0_25 = arith.constant 0 : index
    %31 = vector.load %arg2[%c12, %c0_25] : memref<27x16xbf16, #tpu.memory_space<vmem>>, vector<3x16xbf16>
    %cst_26 = arith.constant dense<0.000000e+00> : vector<1024x16xf32>
    %32 = tpu.matmul %30, %31, %cst_26 {dimension_numbers = #tpu.dot_dimension_numbers<[1], [0], [0], [1], [0, 0, 1, 1], [], []>} : vector<1024x3xbf16>, vector<3x16xbf16>, vector<1024x16xf32> -> vector<1024x16xf32>
    %33 = arith.addf %26, %32 : vector<1024x16xf32>
    %c0_27 = arith.constant 0 : index
    %c1_28 = arith.constant 1 : index
    %c2_29 = arith.constant 2 : index
    %c0_30 = arith.constant 0 : index
    %34 = vector.load %arg1[%c0_27, %c1_28, %c2_29, %c0_30] : memref<1x34x34x3xf32, #tpu.memory_space<vmem>>, vector<1x32x32x3xf32>
    %35 = vector.shape_cast %34 : vector<1x32x32x3xf32> to vector<32x32x3xf32>
    %36 = vector.shape_cast %35 : vector<32x32x3xf32> to vector<1024x3xf32>
    %37 = arith.truncf %36 : vector<1024x3xf32> to vector<1024x3xbf16>
    %c15 = arith.constant 15 : index
    %c0_31 = arith.constant 0 : index
    %38 = vector.load %arg2[%c15, %c0_31] : memref<27x16xbf16, #tpu.memory_space<vmem>>, vector<3x16xbf16>
    %cst_32 = arith.constant dense<0.000000e+00> : vector<1024x16xf32>
    %39 = tpu.matmul %37, %38, %cst_32 {dimension_numbers = #tpu.dot_dimension_numbers<[1], [0], [0], [1], [0, 0, 1, 1], [], []>} : vector<1024x3xbf16>, vector<3x16xbf16>, vector<1024x16xf32> -> vector<1024x16xf32>
    %40 = arith.addf %33, %39 : vector<1024x16xf32>
    %c0_33 = arith.constant 0 : index
    %c2_34 = arith.constant 2 : index
    %c0_35 = arith.constant 0 : index
    %c0_36 = arith.constant 0 : index
    %41 = vector.load %arg1[%c0_33, %c2_34, %c0_35, %c0_36] : memref<1x34x34x3xf32, #tpu.memory_space<vmem>>, vector<1x32x32x3xf32>
    %42 = vector.shape_cast %41 : vector<1x32x32x3xf32> to vector<32x32x3xf32>
    %43 = vector.shape_cast %42 : vector<32x32x3xf32> to vector<1024x3xf32>
    %44 = arith.truncf %43 : vector<1024x3xf32> to vector<1024x3xbf16>
    %c18 = arith.constant 18 : index
    %c0_37 = arith.constant 0 : index
    %45 = vector.load %arg2[%c18, %c0_37] : memref<27x16xbf16, #tpu.memory_space<vmem>>, vector<3x16xbf16>
    %cst_38 = arith.constant dense<0.000000e+00> : vector<1024x16xf32>
    %46 = tpu.matmul %44, %45, %cst_38 {dimension_numbers = #tpu.dot_dimension_numbers<[1], [0], [0], [1], [0, 0, 1, 1], [], []>} : vector<1024x3xbf16>, vector<3x16xbf16>, vector<1024x16xf32> -> vector<1024x16xf32>
    %47 = arith.addf %40, %46 : vector<1024x16xf32>
    %c0_39 = arith.constant 0 : index
    %c2_40 = arith.constant 2 : index
    %c1_41 = arith.constant 1 : index
    %c0_42 = arith.constant 0 : index
    %48 = vector.load %arg1[%c0_39, %c2_40, %c1_41, %c0_42] : memref<1x34x34x3xf32, #tpu.memory_space<vmem>>, vector<1x32x32x3xf32>
    %49 = vector.shape_cast %48 : vector<1x32x32x3xf32> to vector<32x32x3xf32>
    %50 = vector.shape_cast %49 : vector<32x32x3xf32> to vector<1024x3xf32>
    %51 = arith.truncf %50 : vector<1024x3xf32> to vector<1024x3xbf16>
    %c21 = arith.constant 21 : index
    %c0_43 = arith.constant 0 : index
    %52 = vector.load %arg2[%c21, %c0_43] : memref<27x16xbf16, #tpu.memory_space<vmem>>, vector<3x16xbf16>
    %cst_44 = arith.constant dense<0.000000e+00> : vector<1024x16xf32>
    %53 = tpu.matmul %51, %52, %cst_44 {dimension_numbers = #tpu.dot_dimension_numbers<[1], [0], [0], [1], [0, 0, 1, 1], [], []>} : vector<1024x3xbf16>, vector<3x16xbf16>, vector<1024x16xf32> -> vector<1024x16xf32>
    %54 = arith.addf %47, %53 : vector<1024x16xf32>
    %c0_45 = arith.constant 0 : index
    %c2_46 = arith.constant 2 : index
    %c2_47 = arith.constant 2 : index
    %c0_48 = arith.constant 0 : index
    %55 = vector.load %arg1[%c0_45, %c2_46, %c2_47, %c0_48] : memref<1x34x34x3xf32, #tpu.memory_space<vmem>>, vector<1x32x32x3xf32>
    %56 = vector.shape_cast %55 : vector<1x32x32x3xf32> to vector<32x32x3xf32>
    %57 = vector.shape_cast %56 : vector<32x32x3xf32> to vector<1024x3xf32>
    %58 = arith.truncf %57 : vector<1024x3xf32> to vector<1024x3xbf16>
    %c24 = arith.constant 24 : index
    %c0_49 = arith.constant 0 : index
    %59 = vector.load %arg2[%c24, %c0_49] : memref<27x16xbf16, #tpu.memory_space<vmem>>, vector<3x16xbf16>
    %cst_50 = arith.constant dense<0.000000e+00> : vector<1024x16xf32>
    %60 = tpu.matmul %58, %59, %cst_50 {dimension_numbers = #tpu.dot_dimension_numbers<[1], [0], [0], [1], [0, 0, 1, 1], [], []>} : vector<1024x3xbf16>, vector<3x16xbf16>, vector<1024x16xf32> -> vector<1024x16xf32>
    %61 = arith.addf %54, %60 : vector<1024x16xf32>
    %c0_51 = arith.constant 0 : index
    %c0_52 = arith.constant 0 : index
    %62 = vector.load %arg3[%c0_51, %c0_52] : memref<1x16xf32, #tpu.memory_space<vmem>>, vector<1x16xf32>
    %63 = vector.broadcast %62 : vector<1x16xf32> to vector<1024x16xf32>
    %64 = arith.addf %61, %63 : vector<1024x16xf32>
    %cst_53 = arith.constant 0.000000e+00 : f32
    %65 = vector.broadcast %cst_53 : f32 to vector<1024x16xf32>
    %66 = arith.maximumf %64, %65 : vector<1024x16xf32>
    %c0_54 = arith.constant 0 : index
    %c0_55 = arith.constant 0 : index
    %c0_56 = arith.constant 0 : index
    %67 = vector.load %arg4[%c0_54, %c0_55, %c0_56] : memref<1x1024x16xf32, #tpu.memory_space<vmem>>, vector<1x1024x16xf32>
    %68 = vector.shape_cast %67 : vector<1x1024x16xf32> to vector<1024x16xf32>
    %69 = vector.shape_cast %66 : vector<1024x16xf32> to vector<1x1024x16xf32>
    tpu.vector_store %arg4[%c0_54, %c0_55, %c0_56], %69 {strides = array<i32>} : memref<1x1024x16xf32, #tpu.memory_space<vmem>>, vector<1x1024x16xf32>,
    return
  }
  func.func @transform_0(%arg0: i32) -> (i32, i32, i32, i32) {
    %c0_i32 = arith.constant 0 : i32
    %c0_i32_0 = arith.constant 0 : i32
    %c0_i32_1 = arith.constant 0 : i32
    %c0_i32_2 = arith.constant 0 : i32
    return %arg0, %c0_i32, %c0_i32_0, %c0_i32_1 : i32, i32, i32, i32
  }
  func.func @transform_1(%arg0: i32) -> (i32, i32) {
    %c0_i32 = arith.constant 0 : i32
    %c0_i32_0 = arith.constant 0 : i32
    %c0_i32_1 = arith.constant 0 : i32
    return %c0_i32, %c0_i32_0 : i32, i32
  }
  func.func @transform_2(%arg0: i32) -> (i32, i32) {
    %c0_i32 = arith.constant 0 : i32
    %c0_i32_0 = arith.constant 0 : i32
    %c0_i32_1 = arith.constant 0 : i32
    return %c0_i32, %c0_i32_0 : i32, i32
  }
  func.func @transform_3(%arg0: i32) -> (i32, i32, i32) {
    %c0_i32 = arith.constant 0 : i32
    %c0_i32_0 = arith.constant 0 : i32
    %c0_i32_1 = arith.constant 0 : i32
    return %arg0, %c0_i32, %c0_i32_0 : i32, i32, i32
  }
}

</mosaic_0001>

<bundles_post_ra>
// kernel: tpu_custom_call.1
= control target key start
LH: loop header
LB: loop body
LE: loop exit
PB: predicated region body
PF: predicated region fallthrough
CT: control target
= control target key end

     0   :  { %s13147_s12 = smov 0   ;;  %s16892_s0 = inlined_call_operand.vmem [shape: f32[2,34,34,3], index: 0, kind: input, shape index: {}]   ;;  %s16893_s1 = inlined_call_operand.vmem [shape: bf16[27,16], index: 1, kind: input, shape index: {}]   ;;  %s16894_s2 = inlined_call_operand.vmem [shape: f32[1,16], index: 2, kind: input, shape index: {}]   ;;  %s16895_s3 = inlined_call_operand.vmem [shape: f32[2,1024,16], index: 3, kind: output, shape index: {}]  }
   0x1 LB: > { %s9980_s13 = sadd.s32 4294967295, %s13124_s12   ;;  %p9984_p0 = scmp.ge.s32.totalorder %s13124_s12, 1  ;;  %s13124_s12 = sphi %s13147_s12, %s13_s12  }
   0x2   : > { %p137_p1 = scmp.lt.s32.totalorder %s13124_s12, 3 }
   0x4   : > { %p138_p2 = pnand %p9984_p0, %p137_p1 }
   0x6   : > { %141 = sbr.rel (%p138_p2) target bundleno = 1376 (0x560), region = 32 }
   0xb   : > { %v13110_v0 = vld [vmem:[%s16893_s1] ss:$0 sps:$4 sm:$0x66]   ;;  %vm762_vm0 = vcmask 1040384   ;;  %vm763_vm1 = vcmask 1041408   ;;  %p161_p3 = scmp.lt.s32.totalorder %s9980_s13, 1 }
   0xc   : > { %v562_v1 = vshrl.u32 %v13110_v0, 16  ;;  %v565_v2 = vshll.u32 %v13110_v0, 16  ;;  %v13126_v3 = vmov 65535   ;;  %v13111_v6 = vld [vmem:[%s16893_s1] sm:$0x18]   ;;  %vm569_vm2 = vcmask 23552  }
   0xd   : > { %v764_v4 = vsel %vm762_vm0, 4294967295, %v13126_v3  ;;  %s17599_s13 = smov (!%p161_p3, %s9980_s13), 1  ;;  %v2253_v9 = vrot.slane %v13111_v6, 3  ;;  %v364_v11 = vld [vmem:[%s16893_s1] sm:$0x3]  ;;  %vm9796_vm3 = vcmask 130048  }
   0xe   : > { %v13158_v5 = vsel %vm763_vm1, %v764_v4, 0  ;;  %v564_v7 = vrot.slane %v562_v1, 1  ;;  %v567_v8 = vrot.slane %v565_v2, 2  ;;  %s13100_s18 = smul.u32 1360, %s17599_s13  ;;  %s11342_s11 = sshll.u32 %s17599_s13, 10 }
   0xf   : > { %16898 = vst [vmem:[#allocation2_spill] sm:$0xff] %v13158_v5  ;;  %v1507_v20 = vand.u32 %v13158_v5, %v364_v11  ;;  %v2447_v21 = vand.u32 %v2253_v9, %v13158_v5  ;;  %s16304_s13 = scalar_lea.vmem %s16895_s3, %s11342_s11 }
  0x10   : > { %v568_v10 = vor.u32 %v567_v8, %v564_v7  ;;  %s13172_s23 = scalar_lea.vmem %s16892_s0, %s13100_s18 }
  0x11   : > { %v365_v13 = vld [vmem:[%s13172_s23 + $0x1] sm:$0xff]  ;;  %v366_v14 = vld [vmem:[%s13172_s23 + $0x9] sm:$0xff]  ;;  %v367_v18 = vld [vmem:[%s13172_s23 + $0x11] sm:$0xff] }
  0x12   : > { %v767_v12 = vand.u32 %v13158_v5, %v568_v10  ;;  %v429_v15 = vld [vmem:[%s13172_s23 + $0x281] sm:$0xff]  ;;  %v493_v16 = vpack.c.bf16 %v366_v14, %v365_v13  ;;  %v430_v17 = vld [vmem:[%s13172_s23 + $0x289] sm:$0xff]  ;;  %v368_v19 = vld [vmem:[%s13172_s23 + $0x19] sm:$0xff] }
  0x13   : > { %v525_v22 = vpack.c.bf16 %v430_v17, %v429_v15  ;;  %v494_v23 = vpack.c.bf16 %v368_v19, %v367_v18  ;;  %v431_v24 = vld [vmem:[%s13172_s23 + $0x291] sm:$0xff]  ;;  %v432_v25 = vld [vmem:[%s13172_s23 + $0x299] sm:$0xff]  ;;  %v369_v26 = vld [vmem:[%s13172_s23 + $0x29] sm:$0xff] }
  0x14   : > { %11928 = vmatprep.subr.bf16.mxu0 %v767_v12  ;;  %13098 = vmatprep.subr.bf16.mxu1 %v767_v12  ;;  %v526_v27 = vpack.c.bf16 %v432_v25, %v431_v24  ;;  %v370_v28 = vld [vmem:[%s13172_s23 + $0x31] sm:$0xff]  ;;  %v433_v29 = vld [vmem:[%s13172_s23 + $0x2a9] sm:$0xff]  ;;  %v371_v33 = vld [vmem:[%s13172_s23 + $0x39] sm:$0xff] }
  0x15   : > { %11929 = vmatpush3.bf16.msra.mxu0 %v767_v12  ;;  %13099 = vmatpush3.bf16.msra.mxu1 %v767_v12  ;;  %v434_v30 = vld [vmem:[%s13172_s23 + $0x2b1] sm:$0xff]  ;;  %v495_v31 = vpack.c.bf16 %v370_v28, %v369_v26  ;;  %v372_v34 = vld [vmem:[%s13172_s23 + $0x41] sm:$0xff]  ;;  %v435_v35 = vld [vmem:[%s13172_s23 + $0x2b9] sm:$0xff] }
  0x16   : > { %11930 = vmatprep.mubr.msk.bf16.mxu0 %vm569_vm2, %v493_v16  ;;  %11994 = vmatprep.mubr.msk.bf16.mxu1 %vm569_vm2, %v525_v22  ;;  %v527_v32 = vpack.c.bf16 %v434_v30, %v433_v29  ;;  %v436_v36 = vld [vmem:[%s13172_s23 + $0x2c1] sm:$0xff]  ;;  %v373_v37 = vld [vmem:[%s13172_s23 + $0x51] sm:$0xff]  ;;  %v374_v38 = vld [vmem:[%s13172_s23 + $0x59] sm:$0xff]  ;;  %v496_v41 = vpack.c.bf16 %v372_v34, %v371_v33 }
  0x17   : > { %12058 = vmatprep.subr.bf16.mxu1 %v1507_v20  ;;  %12188 = vmatprep.subr.bf16.mxu0 %v2447_v21  ;;  %v437_v39 = vld [vmem:[%s13172_s23 + $0x2d1] sm:$0xff]  ;;  %v438_v40 = vld [vmem:[%s13172_s23 + $0x2d9] sm:$0xff]  ;;  %v528_v42 = vpack.c.bf16 %v436_v36, %v435_v35  ;;  %v497_v43 = vpack.c.bf16 %v374_v38, %v373_v37  ;;  %v375_v45 = vld [vmem:[%s13172_s23 + $0x61] sm:$0xff] }
  0x18   : > { %11931 = vmatmul.mubr.msk.bf16.vlgmr.msra.gmra.mxu0 %vm569_vm2, %v494_v23  ;;  %11995 = vmatmul.mubr.msk.bf16.vlgmr.msra.gmra.mxu1 %vm569_vm2, %v526_v27  ;;  %v529_v44 = vpack.c.bf16 %v438_v40, %v437_v39  ;;  %v376_v46 = vld [vmem:[%s13172_s23 + $0x69] sm:$0xff]  ;;  %v439_v47 = vld [vmem:[%s13172_s23 + $0x2e1] sm:$0xff]  ;;  %v377_v49 = vld [vmem:[%s13172_s23 + $0x79] sm:$0xff] }
  0x19   : > { %12059 = vmatpush3.bf16.msra.mxu1 %v1507_v20  ;;  %12189 = vmatpush3.bf16.msra.mxu0 %v2447_v21  ;;  %v440_v48 = vld [vmem:[%s13172_s23 + $0x2e9] sm:$0xff]  ;;  %v378_v50 = vld [vmem:[%s13172_s23 + $0x81] sm:$0xff]  ;;  %v441_v51 = vld [vmem:[%s13172_s23 + $0x2f9] sm:$0xff]  ;;  %v498_v53 = vpack.c.bf16 %v376_v46, %v375_v45 }
  0x1a   : > { %11934 = vmatprep.mubr.msk.bf16.mxu0 %vm569_vm2, %v495_v31  ;;  %11998 = vmatprep.mubr.msk.bf16.mxu1 %vm569_vm2, %v527_v32  ;;  %v442_v52 = vld [vmem:[%s13172_s23 + $0x301] sm:$0xff]  ;;  %v530_v54 = vpack.c.bf16 %v440_v48, %v439_v47  ;;  %v499_v55 = vpack.c.bf16 %v378_v50, %v377_v49  ;;  %v379_v57 = vld [vmem:[%s13172_s23 + $0x89] sm:$0xff]  ;;  %v380_v58 = vld [vmem:[%s13172_s23 + $0x91] sm:$0xff] }
  0x1b   : > { %v531_v56 = vpack.c.bf16 %v442_v52, %v441_v51  ;;  %v443_v59 = vld [vmem:[%s13172_s23 + $0x309] sm:$0xff]  ;;  %v444_v60 = vld [vmem:[%s13172_s23 + $0x311] sm:$0xff]  ;;  %v381_v61 = vld [vmem:[%s13172_s23 + $0xa1] sm:$0xff]  ;;  %v500_v1 = vpack.c.bf16 %v380_v58, %v379_v57 }
  0x1c   : > { %v382_v62 = vld [vmem:[%s13172_s23 + $0xa9] sm:$0xff]  ;;  %v445_v63 = vld [vmem:[%s13172_s23 + $0x321] sm:$0xff]  ;;  %v532_v2 = vpack.c.bf16 %v444_v60, %v443_v59  ;;  %v383_v6 = vld [vmem:[%s13172_s23 + $0xb1] sm:$0xff] }
  0x1d   : > { %v446_v0 = vld [vmem:[%s13172_s23 + $0x329] sm:$0xff]  ;;  %v501_v3 = vpack.c.bf16 %v382_v62, %v381_v61  ;;  %v384_v7 = vld [vmem:[%s13172_s23 + $0xb9] sm:$0xff]  ;;  %v447_v8 = vld [vmem:[%s13172_s23 + $0x331] sm:$0xff] }
  0x1e   : > { %v533_v4 = vpack.c.bf16 %v446_v0, %v445_v63  ;;  %v448_v9 = vld [vmem:[%s13172_s23 + $0x339] sm:$0xff]  ;;  %v385_v10 = vld [vmem:[%s13172_s23 + $0xc9] sm:$0xff]  ;;  %v386_v11 = vld [vmem:[%s13172_s23 + $0xd1] sm:$0xff]  ;;  %v502_v14 = vpack.c.bf16 %v384_v7, %v383_v6 }
  0x1f   : > { %v449_v12 = vld [vmem:[%s13172_s23 + $0x349] sm:$0xff]  ;;  %v450_v13 = vld [vmem:[%s13172_s23 + $0x351] sm:$0xff]  ;;  %v534_v15 = vpack.c.bf16 %v448_v9, %v447_v8  ;;  %v503_v16 = vpack.c.bf16 %v386_v11, %v385_v10  ;;  %v387_v18 = vld [vmem:[%s13172_s23 + $0xd9] sm:$0xff] }
  0x20   : > { %11935 = vmatmul.mubr.msk.bf16.gmra.mxu0 %vm569_vm2, %v496_v41  ;;  %11999 = vmatmul.mubr.msk.bf16.gmra.mxu1 %vm569_vm2, %v528_v42  ;;  %v535_v17 = vpack.c.bf16 %v450_v13, %v449_v12  ;;  %v388_v19 = vld [vmem:[%s13172_s23 + $0xe1] sm:$0xff]  ;;  %v451_v20 = vld [vmem:[%s13172_s23 + $0x359] sm:$0xff]  ;;  %v389_v22 = vld [vmem:[%s13172_s23 + $0xf1] sm:$0xff] }
  0x21   : > { %11938 = vmatprep.mubr.msk.bf16.mxu0 %vm569_vm2, %v497_v43  ;;  %12002 = vmatprep.mubr.msk.bf16.mxu1 %vm569_vm2, %v529_v44  ;;  %v452_v21 = vld [vmem:[%s13172_s23 + $0x361] sm:$0xff]  ;;  %v390_v23 = vld [vmem:[%s13172_s23 + $0xf9] sm:$0xff]  ;;  %v453_v24 = vld [vmem:[%s13172_s23 + $0x371] sm:$0xff]  ;;  %v504_v26 = vpack.c.bf16 %v388_v19, %v387_v18 }
  0x22   : > { %v454_v25 = vld [vmem:[%s13172_s23 + $0x379] sm:$0xff]  ;;  %v536_v27 = vpack.c.bf16 %v452_v21, %v451_v20  ;;  %v505_v28 = vpack.c.bf16 %v390_v23, %v389_v22  ;;  %v13112_v30 = vld [vmem:[%s16893_s1 + $0x4] ss:$0 sps:$4 sm:$0x33]   ;;  %v392_v32 = vld [vmem:[%s13172_s23 + $0x109] sm:$0xff] }
  0x23   : > { %v537_v29 = vpack.c.bf16 %v454_v25, %v453_v24  ;;  %v391_v31 = vld [vmem:[%s13172_s23 + $0x101] sm:$0xff]  ;;  %v456_v35 = vld [vmem:[%s13172_s23 + $0x389] sm:$0xff]  ;;  %v393_v36 = vld [vmem:[%s13172_s23 + $0x119] sm:$0xff]  ;;  %v3320_v37 = vshrl.u32 %v13112_v30, 16  ;;  %v3322_v38 = vshll.u32 %v13112_v30, 16 }
  0x24   : > { %v13113_v33 = vld [vmem:[%s16893_s1 + $0x4] ss:$0 sps:$4 sm:$0xcc]   ;;  %v457_v40 = vld [vmem:[%s13172_s23 + $0x399] sm:$0xff]  ;;  %v506_v44 = vpack.c.bf16 %v392_v32, %v391_v31  ;;  %v395_v51 = vld [vmem:[%s13172_s23 + $0x129] sm:$0xff] }
  0x25   : > { %v455_v34 = vld [vmem:[%s13172_s23 + $0x381] sm:$0xff]  ;;  %v4390_v42 = vrot.slane %v13113_v33, 2  ;;  %v3324_v43 = vrot.slane %v3322_v38, 1  ;;  %v396_v52 = vld [vmem:[%s13172_s23 + $0x131] sm:$0xff]  ;;  %v462_v58 = vld [vmem:[%s13172_s23 + $0x3c9] sm:$0xff] }
  0x26   : > { %v394_v39 = vld [vmem:[%s13172_s23 + $0x121] sm:$0xff]  ;;  %v538_v45 = vpack.c.bf16 %v456_v35, %v455_v34  ;;  %v508_v59 = vpack.c.bf16 %v396_v52, %v395_v51  ;;  %v399_v63 = vld [vmem:[%s13172_s23 + $0x151] sm:$0xff]  ;;  %v400_v0 = vld [vmem:[%s13172_s23 + $0x159] sm:$0xff] }
  0x27   : > { %v458_v41 = vld [vmem:[%s13172_s23 + $0x3a1] sm:$0xff]  ;;  %v13270_v46 = vand.u32 %v4390_v42, %v13158_v5  ;;  %v507_v47 = vpack.c.bf16 %v394_v39, %v393_v36  ;;  %v3325_v49 = vor.u32 %v3324_v43, %v3320_v37  ;;  %v465_v6 = vld [vmem:[%s13172_s23 + $0x3e9] sm:$0xff]  ;;  %v466_v7 = vld [vmem:[%s13172_s23 + $0x3f1] sm:$0xff]  ;;  %v510_v8 = vpack.c.bf16 %v400_v0, %v399_v63 }
  0x28   : > { %11939 = vmatmul.mubr.msk.bf16.gmra.mxu0 %vm569_vm2, %v498_v53  ;;  %12003 = vmatmul.mubr.msk.bf16.gmra.mxu1 %vm569_vm2, %v530_v54  ;;  %v539_v48 = vpack.c.bf16 %v458_v41, %v457_v40  ;;  %v459_v53 = vld [vmem:[%s13172_s23 + $0x3a9] sm:$0xff]  ;;  %v460_v54 = vld [vmem:[%s13172_s23 + $0x3b1] sm:$0xff]  ;;  %v461_v57 = vld [vmem:[%s13172_s23 + $0x3c1] sm:$0xff]  ;;  %v543_v11 = vpack.c.bf16 %v466_v7, %v465_v6 }
  0x29   : > { %11942 = vmatprep.mubr.msk.bf16.mxu0 %vm569_vm2, %v499_v55  ;;  %12006 = vmatprep.mubr.msk.bf16.mxu1 %vm569_vm2, %v531_v56  ;;  %v13274_v50 = vand.u32 %v3325_v49, %v13158_v5  ;;  %v397_v55 = vld [vmem:[%s13172_s23 + $0x141] sm:$0xff]  ;;  %v398_v56 = vld [vmem:[%s13172_s23 + $0x149] sm:$0xff]  ;;  %v540_v60 = vpack.c.bf16 %v460_v54, %v459_v53  ;;  %v541_v62 = vpack.c.bf16 %v462_v58, %v461_v57  ;;  %v403_v12 = vld [vmem:[%s13172_s23 + $0x179] sm:$0xff] }
  0x2a   : > { %12448 = vmatprep.subr.bf16.mxu0 %v13270_v46  ;;  %v509_v61 = vpack.c.bf16 %v398_v56, %v397_v55  ;;  %v404_v13 = vld [vmem:[%s13172_s23 + $0x181] sm:$0xff]  ;;  %v469_v18 = vld [vmem:[%s13172_s23 + $0x411] sm:$0xff]  ;;  %v470_v19 = vld [vmem:[%s13172_s23 + $0x419] sm:$0xff] }
  0x2b   : > { %12318 = vmatprep.subr.bf16.mxu1 %v13274_v50  ;;  %v512_v20 = vpack.c.bf16 %v404_v13, %v403_v12  ;;  %v545_v23 = vpack.c.bf16 %v470_v19, %v469_v18  ;;  %v407_v24 = vld [vmem:[%s13172_s23 + $0x1a1] sm:$0xff]  ;;  %v408_v25 = vld [vmem:[%s13172_s23 + $0x1a9] sm:$0xff]  ;;  %v473_v30 = vld [vmem:[%s13172_s23 + $0x439] sm:$0xff] }
  0x2c   : > { %v474_v31 = vld [vmem:[%s13172_s23 + $0x441] sm:$0xff]  ;;  %v514_v32 = vpack.c.bf16 %v408_v25, %v407_v24  ;;  %v411_v36 = vld [vmem:[%s13172_s23 + $0x1c9] sm:$0xff]  ;;  %v412_v37 = vld [vmem:[%s13172_s23 + $0x1d1] sm:$0xff] }
  0x2d   : > { %v547_v35 = vpack.c.bf16 %v474_v31, %v473_v30  ;;  %v475_v38 = vld [vmem:[%s13172_s23 + $0x449] sm:$0xff]  ;;  %v476_v39 = vld [vmem:[%s13172_s23 + $0x451] sm:$0xff]  ;;  %v413_v40 = vld [vmem:[%s13172_s23 + $0x1e1] sm:$0xff] }
  0x2e   : > { %v414_v41 = vld [vmem:[%s13172_s23 + $0x1e9] sm:$0xff]  ;;  %v477_v42 = vld [vmem:[%s13172_s23 + $0x461] sm:$0xff]  ;;  %v415_v49 = vld [vmem:[%s13172_s23 + $0x1f1] sm:$0xff] }
  0x2f   : > { %v478_v43 = vld [vmem:[%s13172_s23 + $0x469] sm:$0xff]  ;;  %v416_v51 = vld [vmem:[%s13172_s23 + $0x1f9] sm:$0xff]  ;;  %v479_v52 = vld [vmem:[%s13172_s23 + $0x471] sm:$0xff] }
  0x30   : > { %11943 = vmatmul.mubr.msk.bf16.gmra.mxu0 %vm569_vm2, %v500_v1  ;;  %12007 = vmatmul.mubr.msk.bf16.gmra.mxu1 %vm569_vm2, %v532_v2  ;;  %v463_v1 = vld [vmem:[%s13172_s23 + $0x3d1] sm:$0xff]  ;;  %v464_v2 = vld [vmem:[%s13172_s23 + $0x3d9] sm:$0xff]  ;;  %v417_v54 = vld [vmem:[%s13172_s23 + $0x209] sm:$0xff]  ;;  %v518_v58 = vpack.c.bf16 %v416_v51, %v415_v49 }
  0x31   : > { %11946 = vmatprep.mubr.msk.bf16.mxu0 %vm569_vm2, %v501_v3  ;;  %12010 = vmatprep.mubr.msk.bf16.mxu1 %vm569_vm2, %v533_v4  ;;  %v401_v3 = vld [vmem:[%s13172_s23 + $0x169] sm:$0xff]  ;;  %v402_v4 = vld [vmem:[%s13172_s23 + $0x171] sm:$0xff]  ;;  %v542_v9 = vpack.c.bf16 %v464_v2, %v463_v1  ;;  %v480_v53 = vld [vmem:[%s13172_s23 + $0x479] sm:$0xff] }
  0x32   : > { %v511_v10 = vpack.c.bf16 %v402_v4, %v401_v3  ;;  %v418_v55 = vld [vmem:[%s13172_s23 + $0x211] sm:$0xff]  ;;  %v481_v56 = vld [vmem:[%s13172_s23 + $0x489] sm:$0xff]  ;;  %v420_v63 = vld [vmem:[%s13172_s23 + $0x221] sm:$0xff] }
  0x33   : > { %v482_v57 = vld [vmem:[%s13172_s23 + $0x491] sm:$0xff]  ;;  %v483_v0 = vld [vmem:[%s13172_s23 + $0x499] sm:$0xff]  ;;  %v484_v1 = vld [vmem:[%s13172_s23 + $0x4a1] sm:$0xff] }
  0x34   : > { %v421_v2 = vld [vmem:[%s13172_s23 + $0x231] sm:$0xff]  ;;  %v422_v3 = vld [vmem:[%s13172_s23 + $0x239] sm:$0xff]  ;;  %v424_v12 = vld [vmem:[%s13172_s23 + $0x249] sm:$0xff] }
  0x35   : > { %v485_v4 = vld [vmem:[%s13172_s23 + $0x4b1] sm:$0xff]  ;;  %v486_v6 = vld [vmem:[%s13172_s23 + $0x4b9] sm:$0xff]  ;;  %v487_v13 = vld [vmem:[%s13172_s23 + $0x4c1] sm:$0xff] }
  0x36   : > { %v490_v18 = vld [vmem:[%s13172_s23 + $0x4e1] sm:$0xff]  ;;  %v428_v24 = vld [vmem:[%s13172_s23 + $0x271] sm:$0xff]  ;;  %v491_v25 = vld [vmem:[%s13172_s23 + $0x4e9] sm:$0xff] }
  0x37   : > { %v2055_v30 = vld [vmem:[%s13172_s23 + $0xa] sm:$0xff]  ;;  %v179_v49 = vld [vmem:[%s13172_s23 + $0x40] sm:$0xff] }
  0x38   : > { %11947 = vmatmul.mubr.msk.bf16.gmra.mxu0 %vm569_vm2, %v502_v14  ;;  %12011 = vmatmul.mubr.msk.bf16.gmra.mxu1 %vm569_vm2, %v534_v15  ;;  %v467_v14 = vld [vmem:[%s13172_s23 + $0x3f9] sm:$0xff]  ;;  %v468_v15 = vld [vmem:[%s13172_s23 + $0x401] sm:$0xff] }
  0x39   : > { %11950 = vmatprep.mubr.msk.bf16.mxu0 %vm569_vm2, %v503_v16  ;;  %12014 = vmatprep.mubr.msk.bf16.mxu1 %vm569_vm2, %v535_v17  ;;  %v405_v16 = vld [vmem:[%s13172_s23 + $0x191] sm:$0xff]  ;;  %v406_v17 = vld [vmem:[%s13172_s23 + $0x199] sm:$0xff]  ;;  %v544_v21 = vpack.c.bf16 %v468_v15, %v467_v14  ;;  %v488_v14 = vld [vmem:[%s13172_s23 + $0x4c9] sm:$0xff] }
  0x3a   : > { %v513_v22 = vpack.c.bf16 %v406_v17, %v405_v16  ;;  %v425_v15 = vld [vmem:[%s13172_s23 + $0x259] sm:$0xff]  ;;  %v426_v16 = vld [vmem:[%s13172_s23 + $0x261] sm:$0xff] }
  0x3b   : > { %v489_v17 = vld [vmem:[%s13172_s23 + $0x4d9] sm:$0xff] }
  0x3c   : > { %v2060_v51 = vld [vmem:[%s13172_s23 + $0x3a] sm:$0xff] }
  0x40   : > { %11951 = vmatmul.mubr.msk.bf16.gmra.mxu0 %vm569_vm2, %v504_v26  ;;  %12015 = vmatmul.mubr.msk.bf16.gmra.mxu1 %vm569_vm2, %v536_v27  ;;  %v471_v26 = vld [vmem:[%s13172_s23 + $0x421] sm:$0xff]  ;;  %v472_v27 = vld [vmem:[%s13172_s23 + $0x429] sm:$0xff] }
  0x41   : > { %11954 = vmatprep.mubr.msk.bf16.mxu0 %vm569_vm2, %v505_v28  ;;  %12018 = vmatprep.mubr.msk.bf16.mxu1 %vm569_vm2, %v537_v29  ;;  %v409_v28 = vld [vmem:[%s13172_s23 + $0x1b9] sm:$0xff]  ;;  %v410_v29 = vld [vmem:[%s13172_s23 + $0x1c1] sm:$0xff]  ;;  %v546_v33 = vpack.c.bf16 %v472_v27, %v471_v26  ;;  %v492_v26 = vld [vmem:[%s13172_s23 + $0x4f1] sm:$0xff] }
  0x42   : > { %v515_v34 = vpack.c.bf16 %v410_v29, %v409_v28  ;;  %v172_v27 = vld [vmem:[%s13172_s23] sm:$0xff]  ;;  %v173_v28 = vld [vmem:[%s13172_s23 + $0x8] sm:$0xff] }
  0x43   : > { %v2054_v29 = vld [vmem:[%s13172_s23 + $0x2] sm:$0xff] }
  0x48   : > { %11955 = vmatmul.mubr.msk.bf16.gmra.mxu0 %vm569_vm2, %v506_v44  ;;  %12019 = vmatmul.mubr.msk.bf16.gmra.mxu1 %vm569_vm2, %v538_v45  ;;  %v516_v44 = vpack.c.bf16 %v412_v37, %v411_v36  ;;  %v548_v45 = vpack.c.bf16 %v476_v39, %v475_v38  ;;  %v175_v36 = vld [vmem:[%s13172_s23 + $0x18] sm:$0xff]  ;;  %v176_v39 = vld [vmem:[%s13172_s23 + $0x28] sm:$0xff] }
  0x49   : > { %11958 = vmatprep.mubr.msk.bf16.mxu0 %vm569_vm2, %v507_v47  ;;  %12022 = vmatprep.mubr.msk.bf16.mxu1 %vm569_vm2, %v539_v48  ;;  %v517_v47 = vpack.c.bf16 %v414_v41, %v413_v40  ;;  %v549_v48 = vpack.c.bf16 %v478_v43, %v477_v42  ;;  %v2056_v37 = vld [vmem:[%s13172_s23 + $0x12] sm:$0xff]  ;;  %v2057_v38 = vld [vmem:[%s13172_s23 + $0x1a] sm:$0xff]  ;;  %v2058_v41 = vld [vmem:[%s13172_s23 + $0x2a] sm:$0xff] }
  0x4a   : > { %v177_v40 = vld [vmem:[%s13172_s23 + $0x30] sm:$0xff] }
  0x4b   : > { %v2059_v42 = vld [vmem:[%s13172_s23 + $0x32] sm:$0xff] }
  0x50   : > { %11959 = vmatmul.mubr.msk.bf16.gmra.mxu0 %vm569_vm2, %v508_v59  ;;  %12023 = vmatmul.mubr.msk.bf16.gmra.mxu1 %vm569_vm2, %v540_v60  ;;  %v550_v59 = vpack.c.bf16 %v480_v53, %v479_v52  ;;  %v519_v60 = vpack.c.bf16 %v418_v55, %v417_v54  ;;  %v2061_v52 = vld [vmem:[%s13172_s23 + $0x42] sm:$0xff]  ;;  %v180_v53 = vld [vmem:[%s13172_s23 + $0x50] sm:$0xff]  ;;  %v181_v54 = vld [vmem:[%s13172_s23 + $0x58] sm:$0xff] }
  0x51   : > { %11962 = vmatprep.mubr.msk.bf16.mxu0 %vm569_vm2, %v509_v61  ;;  %12026 = vmatprep.mubr.msk.bf16.mxu1 %vm569_vm2, %v541_v62  ;;  %v551_v61 = vpack.c.bf16 %v482_v57, %v481_v56  ;;  %v419_v62 = vld [vmem:[%s13172_s23 + $0x219] sm:$0xff]  ;;  %v2185_v57 = vpack.c.bf16 %v2061_v52, %v2060_v51 }
  0x52   : > { %v520_v7 = vpack.c.bf16 %v420_v63, %v419_v62  ;;  %v2062_v55 = vld [vmem:[%s13172_s23 + $0x52] sm:$0xff]  ;;  %v2063_v56 = vld [vmem:[%s13172_s23 + $0x5a] sm:$0xff]  ;;  %v2065_v62 = vld [vmem:[%s13172_s23 + $0x6a] sm:$0xff] }
  0x53   : > { %v184_v63 = vld [vmem:[%s13172_s23 + $0x78] sm:$0xff]  ;;  %v201_v51 = vld [vmem:[%s13172_s23 + $0x120] sm:$0xff] }
  0x54   : > { %v2082_v52 = vld [vmem:[%s13172_s23 + $0x11a] sm:$0xff] }
  0x58   : > { %11963 = vmatmul.mubr.msk.bf16.gmra.mxu0 %vm569_vm2, %v510_v8  ;;  %12027 = vmatmul.mubr.msk.bf16.gmra.mxu1 %vm569_vm2, %v542_v9  ;;  %v552_v8 = vpack.c.bf16 %v484_v1, %v483_v0  ;;  %v521_v9 = vpack.c.bf16 %v422_v3, %v421_v2  ;;  %v185_v0 = vld [vmem:[%s13172_s23 + $0x80] sm:$0xff] }
  0x59   : > { %11966 = vmatprep.mubr.msk.bf16.mxu0 %vm569_vm2, %v511_v10  ;;  %12030 = vmatprep.mubr.msk.bf16.mxu1 %vm569_vm2, %v543_v11  ;;  %v553_v10 = vpack.c.bf16 %v486_v6, %v485_v4  ;;  %v423_v11 = vld [vmem:[%s13172_s23 + $0x241] sm:$0xff]  ;;  %v306_v6 = vpack.c.bf16 %v185_v0, %v184_v63  ;;  %v2087_v63 = vld [vmem:[%s13172_s23 + $0x14a] sm:$0xff] }
  0x5a   : > { %v522_v19 = vpack.c.bf16 %v424_v12, %v423_v11  ;;  %v2066_v1 = vld [vmem:[%s13172_s23 + $0x7a] sm:$0xff]  ;;  %v2067_v2 = vld [vmem:[%s13172_s23 + $0x82] sm:$0xff]  ;;  %v2069_v11 = vld [vmem:[%s13172_s23 + $0x92] sm:$0xff] }
  0x5b   : > { %v188_v12 = vld [vmem:[%s13172_s23 + $0xa0] sm:$0xff] }
  0x60   : > { %11967 = vmatmul.mubr.msk.bf16.gmra.mxu0 %vm569_vm2, %v512_v20  ;;  %12031 = vmatmul.mubr.msk.bf16.gmra.mxu1 %vm569_vm2, %v544_v21  ;;  %v554_v20 = vpack.c.bf16 %v488_v14, %v487_v13  ;;  %v523_v21 = vpack.c.bf16 %v426_v16, %v425_v15  ;;  %v189_v13 = vld [vmem:[%s13172_s23 + $0xa8] sm:$0xff] }
  0x61   : > { %11970 = vmatprep.mubr.msk.bf16.mxu0 %vm569_vm2, %v513_v22  ;;  %12034 = vmatprep.mubr.msk.bf16.mxu1 %vm569_vm2, %v545_v23  ;;  %v555_v22 = vpack.c.bf16 %v490_v18, %v489_v17  ;;  %v427_v23 = vld [vmem:[%s13172_s23 + $0x269] sm:$0xff]  ;;  %v308_v18 = vpack.c.bf16 %v189_v13, %v188_v12  ;;  %v2091_v12 = vld [vmem:[%s13172_s23 + $0x172] sm:$0xff] }
  0x62   : > { %v524_v31 = vpack.c.bf16 %v428_v24, %v427_v23  ;;  %v2070_v14 = vld [vmem:[%s13172_s23 + $0xa2] sm:$0xff]  ;;  %v2071_v15 = vld [vmem:[%s13172_s23 + $0xaa] sm:$0xff]  ;;  %v2073_v23 = vld [vmem:[%s13172_s23 + $0xba] sm:$0xff] }
  0x63   : > { %v192_v24 = vld [vmem:[%s13172_s23 + $0xc8] sm:$0xff] }
  0x68   : > { %11971 = vmatmul.mubr.msk.bf16.gmra.mxu0 %vm569_vm2, %v514_v32  ;;  %12035 = vmatmul.mubr.msk.bf16.gmra.mxu1 %vm569_vm2, %v546_v33  ;;  %v556_v32 = vpack.c.bf16 %v492_v26, %v491_v25  ;;  %v300_v33 = vpack.c.bf16 %v173_v28, %v172_v27  ;;  %v193_v25 = vld [vmem:[%s13172_s23 + $0xd0] sm:$0xff] }
  0x69   : > { %11974 = vmatprep.mubr.msk.bf16.mxu0 %vm569_vm2, %v515_v34  ;;  %12038 = vmatprep.mubr.msk.bf16.mxu1 %vm569_vm2, %v547_v35  ;;  %v2182_v34 = vpack.c.bf16 %v2055_v30, %v2054_v29  ;;  %v174_v35 = vld [vmem:[%s13172_s23 + $0x10] sm:$0xff]  ;;  %v310_v30 = vpack.c.bf16 %v193_v25, %v192_v24 }
  0x6a   : > { %v301_v43 = vpack.c.bf16 %v175_v36, %v174_v35  ;;  %v2074_v26 = vld [vmem:[%s13172_s23 + $0xca] sm:$0xff]  ;;  %v2075_v27 = vld [vmem:[%s13172_s23 + $0xd2] sm:$0xff]  ;;  %v2077_v35 = vld [vmem:[%s13172_s23 + $0xe2] sm:$0xff] }
  0x6b   : > { %v196_v36 = vld [vmem:[%s13172_s23 + $0xf0] sm:$0xff] }
  0x70   : > { %11975 = vmatmul.mubr.msk.bf16.gmra.mxu0 %vm569_vm2, %v516_v44  ;;  %12039 = vmatmul.mubr.msk.bf16.gmra.mxu1 %vm569_vm2, %v548_v45  ;;  %v2183_v44 = vpack.c.bf16 %v2057_v38, %v2056_v37  ;;  %v302_v45 = vpack.c.bf16 %v177_v40, %v176_v39  ;;  %v197_v37 = vld [vmem:[%s13172_s23 + $0xf8] sm:$0xff] }
  0x71   : > { %11978 = vmatprep.mubr.msk.bf16.mxu0 %vm569_vm2, %v517_v47  ;;  %12042 = vmatprep.mubr.msk.bf16.mxu1 %vm569_vm2, %v549_v48  ;;  %v2184_v47 = vpack.c.bf16 %v2059_v42, %v2058_v41  ;;  %v178_v48 = vld [vmem:[%s13172_s23 + $0x38] sm:$0xff]  ;;  %v312_v42 = vpack.c.bf16 %v197_v37, %v196_v36 }
  0x72   : > { %v2078_v38 = vld [vmem:[%s13172_s23 + $0xf2] sm:$0xff]  ;;  %v2079_v39 = vld [vmem:[%s13172_s23 + $0xfa] sm:$0xff] }
  0x78   : > { %11979 = vmatmul.mubr.msk.bf16.gmra.mxu0 %vm569_vm2, %v518_v58  ;;  %12043 = vmatmul.mubr.msk.bf16.gmra.mxu1 %vm569_vm2, %v550_v59  ;;  %v2186_v58 = vpack.c.bf16 %v2063_v56, %v2062_v55  ;;  %v182_v59 = vld [vmem:[%s13172_s23 + $0x60] sm:$0xff] }
  0x79   : > { %11982 = vmatprep.mubr.msk.bf16.mxu0 %vm569_vm2, %v519_v60  ;;  %12046 = vmatprep.mubr.msk.bf16.mxu1 %vm569_vm2, %v551_v61  ;;  %v183_v60 = vld [vmem:[%s13172_s23 + $0x68] sm:$0xff] }
  0x7a   : > { %v2064_v61 = vld [vmem:[%s13172_s23 + $0x62] sm:$0xff]  ;;  %v305_v3 = vpack.c.bf16 %v183_v60, %v182_v59  ;;  %v2085_v59 = vld [vmem:[%s13172_s23 + $0x132] sm:$0xff] }
  0x7b   : > { %v2187_v4 = vpack.c.bf16 %v2065_v62, %v2064_v61  ;;  %v204_v60 = vld [vmem:[%s13172_s23 + $0x140] sm:$0xff]  ;;  %v205_v61 = vld [vmem:[%s13172_s23 + $0x148] sm:$0xff] }
  0x7c   : > { %v2086_v62 = vld [vmem:[%s13172_s23 + $0x142] sm:$0xff] }
  0x80   : > { %11983 = vmatmul.mubr.msk.bf16.gmra.mxu0 %vm569_vm2, %v520_v7  ;;  %12047 = vmatmul.mubr.msk.bf16.gmra.mxu1 %vm569_vm2, %v552_v8  ;;  %v2188_v7 = vpack.c.bf16 %v2067_v2, %v2066_v1  ;;  %v186_v8 = vld [vmem:[%s13172_s23 + $0x88] sm:$0xff]  ;;  %v316_v2 = vpack.c.bf16 %v205_v61, %v204_v60  ;;  %v219_v60 = vld [vmem:[%s13172_s23 + $0x1d0] sm:$0xff] }
  0x81   : > { %11986 = vmatprep.mubr.msk.bf16.mxu0 %vm569_vm2, %v521_v9  ;;  %12050 = vmatprep.mubr.msk.bf16.mxu1 %vm569_vm2, %v553_v10  ;;  %v187_v9 = vld [vmem:[%s13172_s23 + $0x90] sm:$0xff] }
  0x82   : > { %v2068_v10 = vld [vmem:[%s13172_s23 + $0x8a] sm:$0xff]  ;;  %v307_v16 = vpack.c.bf16 %v187_v9, %v186_v8  ;;  %v2089_v8 = vld [vmem:[%s13172_s23 + $0x15a] sm:$0xff] }
  0x83   : > { %v2189_v17 = vpack.c.bf16 %v2069_v11, %v2068_v10  ;;  %v208_v9 = vld [vmem:[%s13172_s23 + $0x168] sm:$0xff]  ;;  %v209_v10 = vld [vmem:[%s13172_s23 + $0x170] sm:$0xff] }
  0x84   : > { %v2090_v11 = vld [vmem:[%s13172_s23 + $0x16a] sm:$0xff] }
  0x85   : > { %v2100_v61 = vld [vmem:[%s13172_s23 + $0x1ca] sm:$0xff] }
  0x88   : > { %11987 = vmatmul.mubr.msk.bf16.gmra.mxu0 %vm569_vm2, %v522_v19  ;;  %12051 = vmatmul.mubr.msk.bf16.gmra.mxu1 %vm569_vm2, %v554_v20  ;;  %v2190_v19 = vpack.c.bf16 %v2071_v15, %v2070_v14  ;;  %v190_v20 = vld [vmem:[%s13172_s23 + $0xb0] sm:$0xff]  ;;  %v318_v15 = vpack.c.bf16 %v209_v10, %v208_v9 }
  0x89   : > { %11990 = vmatprep.mubr.msk.bf16.mxu0 %vm569_vm2, %v523_v21  ;;  %12054 = vmatprep.mubr.msk.bf16.mxu1 %vm569_vm2, %v555_v22  ;;  %v191_v21 = vld [vmem:[%s13172_s23 + $0xb8] sm:$0xff] }
  0x8a   : > { %v2072_v22 = vld [vmem:[%s13172_s23 + $0xb2] sm:$0xff]  ;;  %v309_v28 = vpack.c.bf16 %v191_v21, %v190_v20  ;;  %v211_v20 = vld [vmem:[%s13172_s23 + $0x180] sm:$0xff] }
  0x8b   : > { %v2191_v29 = vpack.c.bf16 %v2073_v23, %v2072_v22  ;;  %v2092_v21 = vld [vmem:[%s13172_s23 + $0x17a] sm:$0xff]  ;;  %v2093_v22 = vld [vmem:[%s13172_s23 + $0x182] sm:$0xff]  ;;  %v212_v23 = vld [vmem:[%s13172_s23 + $0x190] sm:$0xff] }
  0x90   : > { %11991 = vmatmul.mubr.msk.bf16.gmra.mxu0 %vm569_vm2, %v524_v31  ;;  %12055 = vmatmul.mubr.msk.bf16.gmra.mxu1 %vm569_vm2, %v556_v32  ;;  %v2192_v31 = vpack.c.bf16 %v2075_v27, %v2074_v26  ;;  %v194_v32 = vld [vmem:[%s13172_s23 + $0xd8] sm:$0xff] }
  0x91   : > { %12060 = vmatprep.mubr.msk.bf16.mxu1 %vm569_vm2, %v300_v33  ;;  %12190 = vmatprep.mubr.msk.bf16.mxu0 %vm569_vm2, %v2182_v34  ;;  %v195_v33 = vld [vmem:[%s13172_s23 + $0xe0] sm:$0xff]  ;;  %v213_v26 = vld [vmem:[%s13172_s23 + $0x198] sm:$0xff] }
  0x92   : > { %v2076_v34 = vld [vmem:[%s13172_s23 + $0xda] sm:$0xff]  ;;  %v311_v40 = vpack.c.bf16 %v195_v33, %v194_v32  ;;  %v2094_v27 = vld [vmem:[%s13172_s23 + $0x192] sm:$0xff]  ;;  %v2201_v32 = vpack.c.bf16 %v2093_v22, %v2092_v21  ;;  %v320_v33 = vpack.c.bf16 %v213_v26, %v212_v23  ;;  %v224_v22 = vld [vmem:[%s13172_s23 + $0x208] sm:$0xff] }
  0x93   : > { %v2193_v41 = vpack.c.bf16 %v2077_v35, %v2076_v34  ;;  %v2105_v21 = vld [vmem:[%s13172_s23 + $0x1fa] sm:$0xff] }
  0x98   : > { %12061 = vmatmul.mubr.msk.bf16.vlgmr.msra.gmra.mxu1 %vm569_vm2, %v301_v43  ;;  %12191 = vmatmul.mubr.msk.bf16.vlgmr.msra.gmra.mxu0 %vm569_vm2, %v2183_v44  ;;  %v2194_v43 = vpack.c.bf16 %v2079_v39, %v2078_v38  ;;  %v198_v44 = vld [vmem:[%s13172_s23 + $0x100] sm:$0xff] }
  0x99   : > { %12319 = vmatpush3.bf16.msra.mxu1 %v13274_v50  ;;  %12449 = vmatpush3.bf16.msra.mxu0 %v13270_v46  ;;  %v303_v50 = vpack.c.bf16 %v179_v49, %v178_v48  ;;  %v304_v46 = vpack.c.bf16 %v181_v54, %v180_v53  ;;  %v2081_v48 = vld [vmem:[%s13172_s23 + $0x10a] sm:$0xff]  ;;  %v200_v49 = vld [vmem:[%s13172_s23 + $0x118] sm:$0xff]  ;;  %v2083_v53 = vld [vmem:[%s13172_s23 + $0x122] sm:$0xff] }
  0x9a   : > { %12064 = vmatprep.mubr.msk.bf16.mxu1 %vm569_vm2, %v302_v45  ;;  %12194 = vmatprep.mubr.msk.bf16.mxu0 %vm569_vm2, %v2184_v47  ;;  %v199_v45 = vld [vmem:[%s13172_s23 + $0x108] sm:$0xff]  ;;  %v314_v56 = vpack.c.bf16 %v201_v51, %v200_v49  ;;  %v214_v39 = vld [vmem:[%s13172_s23 + $0x1a0] sm:$0xff] }
  0x9b   : > { %v2080_v47 = vld [vmem:[%s13172_s23 + $0x102] sm:$0xff]  ;;  %v313_v54 = vpack.c.bf16 %v199_v45, %v198_v44 }
  0x9c   : > { %v2195_v55 = vpack.c.bf16 %v2081_v48, %v2080_v47  ;;  %v217_v47 = vld [vmem:[%s13172_s23 + $0x1c0] sm:$0xff] }
  0x9d   : > { %v2098_v48 = vld [vmem:[%s13172_s23 + $0x1ba] sm:$0xff]  ;;  %v2099_v49 = vld [vmem:[%s13172_s23 + $0x1c2] sm:$0xff] }
  0xa0   : > { %12065 = vmatmul.mubr.msk.bf16.gmra.mxu1 %vm569_vm2, %v303_v50  ;;  %12195 = vmatmul.mubr.msk.bf16.gmra.mxu0 %vm569_vm2, %v2185_v57  ;;  %v2196_v50 = vpack.c.bf16 %v2083_v53, %v2082_v52  ;;  %v202_v57 = vld [vmem:[%s13172_s23 + $0x128] sm:$0xff] }
  0xa1   : > { %12068 = vmatprep.mubr.msk.bf16.mxu1 %vm569_vm2, %v304_v46  ;;  %12198 = vmatprep.mubr.msk.bf16.mxu0 %vm569_vm2, %v2186_v58  ;;  %v203_v46 = vld [vmem:[%s13172_s23 + $0x130] sm:$0xff] }
  0xa2   : > { %v2084_v58 = vld [vmem:[%s13172_s23 + $0x12a] sm:$0xff]  ;;  %v315_v0 = vpack.c.bf16 %v203_v46, %v202_v57 }
  0xa3   : > { %v2197_v1 = vpack.c.bf16 %v2085_v59, %v2084_v58  ;;  %v218_v59 = vld [vmem:[%s13172_s23 + $0x1c8] sm:$0xff] }
  0xa8   : > { %12069 = vmatmul.mubr.msk.bf16.gmra.mxu1 %vm569_vm2, %v305_v3  ;;  %12199 = vmatmul.mubr.msk.bf16.gmra.mxu0 %vm569_vm2, %v2187_v4  ;;  %v2198_v3 = vpack.c.bf16 %v2087_v63, %v2086_v62  ;;  %v206_v4 = vld [vmem:[%s13172_s23 + $0x150] sm:$0xff]  ;;  %v220_v63 = vld [vmem:[%s13172_s23 + $0x1e0] sm:$0xff] }
  0xa9   : > { %12072 = vmatprep.mubr.msk.bf16.mxu1 %vm569_vm2, %v306_v6  ;;  %12202 = vmatprep.mubr.msk.bf16.mxu0 %vm569_vm2, %v2188_v7  ;;  %v207_v6 = vld [vmem:[%s13172_s23 + $0x158] sm:$0xff] }
  0xaa   : > { %v2088_v7 = vld [vmem:[%s13172_s23 + $0x152] sm:$0xff]  ;;  %v317_v13 = vpack.c.bf16 %v207_v6, %v206_v4  ;;  %v2103_v4 = vld [vmem:[%s13172_s23 + $0x1ea] sm:$0xff] }
  0xab   : > { %v2199_v14 = vpack.c.bf16 %v2089_v8, %v2088_v7  ;;  %v2101_v62 = vld [vmem:[%s13172_s23 + $0x1d2] sm:$0xff]  ;;  %v323_v8 = vpack.c.bf16 %v219_v60, %v218_v59 }
  0xac   : > { %v2205_v9 = vpack.c.bf16 %v2101_v62, %v2100_v61  ;;  %v229_v61 = vld [vmem:[%s13172_s23 + $0x238] sm:$0xff] }
  0xad   : > { %v2110_v62 = vld [vmem:[%s13172_s23 + $0x232] sm:$0xff] }
  0xb0   : > { %12073 = vmatmul.mubr.msk.bf16.gmra.mxu1 %vm569_vm2, %v307_v16  ;;  %12203 = vmatmul.mubr.msk.bf16.gmra.mxu0 %vm569_vm2, %v2189_v17  ;;  %v2200_v16 = vpack.c.bf16 %v2091_v12, %v2090_v11 }
  0xb1   : > { %12076 = vmatprep.mubr.msk.bf16.mxu1 %vm569_vm2, %v308_v18  ;;  %12206 = vmatprep.mubr.msk.bf16.mxu0 %vm569_vm2, %v2190_v19  ;;  %v210_v19 = vld [vmem:[%s13172_s23 + $0x178] sm:$0xff] }
  0xb8   : > { %12077 = vmatmul.mubr.msk.bf16.gmra.mxu1 %vm569_vm2, %v309_v28  ;;  %12207 = vmatmul.mubr.msk.bf16.gmra.mxu0 %vm569_vm2, %v2191_v29  ;;  %v2095_v28 = vld [vmem:[%s13172_s23 + $0x19a] sm:$0xff] }
  0xb9   : > { %12080 = vmatprep.mubr.msk.bf16.mxu1 %vm569_vm2, %v310_v30  ;;  %12210 = vmatprep.mubr.msk.bf16.mxu0 %vm569_vm2, %v2192_v31  ;;  %v319_v31 = vpack.c.bf16 %v211_v20, %v210_v19  ;;  %v2202_v34 = vpack.c.bf16 %v2095_v28, %v2094_v27  ;;  %v223_v19 = vld [vmem:[%s13172_s23 + $0x1f8] sm:$0xff]  ;;  %v225_v27 = vld [vmem:[%s13172_s23 + $0x210] sm:$0xff] }
  0xba   : > { %v2104_v20 = vld [vmem:[%s13172_s23 + $0x1f2] sm:$0xff]  ;;  %v2106_v28 = vld [vmem:[%s13172_s23 + $0x20a] sm:$0xff] }
  0xc0   : > { %12081 = vmatmul.mubr.msk.bf16.gmra.mxu1 %vm569_vm2, %v311_v40  ;;  %12211 = vmatmul.mubr.msk.bf16.gmra.mxu0 %vm569_vm2, %v2193_v41  ;;  %v215_v40 = vld [vmem:[%s13172_s23 + $0x1a8] sm:$0xff] }
  0xc1   : > { %12084 = vmatprep.mubr.msk.bf16.mxu1 %vm569_vm2, %v312_v42  ;;  %12214 = vmatprep.mubr.msk.bf16.mxu0 %vm569_vm2, %v2194_v43  ;;  %v2096_v41 = vld [vmem:[%s13172_s23 + $0x1a2] sm:$0xff]  ;;  %v2097_v42 = vld [vmem:[%s13172_s23 + $0x1aa] sm:$0xff]  ;;  %v216_v43 = vld [vmem:[%s13172_s23 + $0x1b8] sm:$0xff]  ;;  %v321_v53 = vpack.c.bf16 %v215_v40, %v214_v39  ;;  %v2207_v39 = vpack.c.bf16 %v2105_v21, %v2104_v20  ;;  %v326_v40 = vpack.c.bf16 %v225_v27, %v224_v22 }
  0xc2   : > { %v230_v21 = vld [vmem:[%s13172_s23 + $0x240] sm:$0xff]  ;;  %v231_v22 = vld [vmem:[%s13172_s23 + $0x248] sm:$0xff] }
  0xc3   : > { %v2112_v27 = vld [vmem:[%s13172_s23 + $0x242] sm:$0xff] }
  0xc8   : > { %12085 = vmatmul.mubr.msk.bf16.gmra.mxu1 %vm569_vm2, %v313_v54  ;;  %12215 = vmatmul.mubr.msk.bf16.gmra.mxu0 %vm569_vm2, %v2195_v55  ;;  %v2203_v54 = vpack.c.bf16 %v2097_v42, %v2096_v41  ;;  %v322_v55 = vpack.c.bf16 %v217_v47, %v216_v43 }
  0xc9   : > { %12088 = vmatprep.mubr.msk.bf16.mxu1 %vm569_vm2, %v314_v56  ;;  %12218 = vmatprep.mubr.msk.bf16.mxu0 %vm569_vm2, %v2196_v50  ;;  %v2204_v56 = vpack.c.bf16 %v2099_v49, %v2098_v48  ;;  %v226_v49 = vld [vmem:[%s13172_s23 + $0x218] sm:$0xff] }
  0xd0   : > { %12089 = vmatmul.mubr.msk.bf16.gmra.mxu1 %vm569_vm2, %v315_v0  ;;  %12219 = vmatmul.mubr.msk.bf16.gmra.mxu0 %vm569_vm2, %v2197_v1 }
  0xd1   : > { %12092 = vmatprep.mubr.msk.bf16.mxu1 %vm569_vm2, %v316_v2  ;;  %12222 = vmatprep.mubr.msk.bf16.mxu0 %vm569_vm2, %v2198_v3  ;;  %v221_v2 = vld [vmem:[%s13172_s23 + $0x1e8] sm:$0xff] }
  0xd2   : > { %v2102_v3 = vld [vmem:[%s13172_s23 + $0x1e2] sm:$0xff]  ;;  %v324_v10 = vpack.c.bf16 %v221_v2, %v220_v63  ;;  %v2111_v63 = vld [vmem:[%s13172_s23 + $0x23a] sm:$0xff] }
  0xd3   : > { %v2206_v11 = vpack.c.bf16 %v2103_v4, %v2102_v3 }
  0xd8   : > { %v13495_v17 = vpop.f32.mrf.mxu0  ;;  %v13497_v18 = vpop.f32.mrf.mxu1  ;;  %12093 = vmatmul.mubr.msk.bf16.gmra.mxu1 %vm569_vm2, %v317_v13  ;;  %12223 = vmatmul.mubr.msk.bf16.gmra.mxu0 %vm569_vm2, %v2199_v14 }
  0xd9   : > { %16899 = vst [vmem:[#allocation3_spill] sm:$0xff] %v13497_v18  ;;  %12096 = vmatprep.mubr.msk.bf16.mxu1 %vm569_vm2, %v318_v15  ;;  %12226 = vmatprep.mubr.msk.bf16.mxu0 %vm569_vm2, %v2200_v16  ;;  %v222_v16 = vld [vmem:[%s13172_s23 + $0x1f0] sm:$0xff] }
  0xda   : > { %v13508_v24 = vpop.f32.mrf.mxu0  ;;  %v13510_v25 = vpop.f32.mrf.mxu1 }
  0xdb   : > { %16900 = vst [vmem:[#allocation4_spill] sm:$0xff] %v13510_v25 }
  0xdc   : > { %v13515_v29 = vpop.f32.mrf.mxu0  ;;  %v13517_v30 = vpop.f32.mrf.mxu1 }
  0xdd   : > { %16901 = vst [vmem:[#allocation5_spill] sm:$0xff] %v13517_v30 }
  0xde   : > { %v13519_v35 = vpop.f32.mrf.mxu0  ;;  %v13521_v36 = vpop.f32.mrf.mxu1 }
  0xdf   : > { %16902 = vst [vmem:[#allocation6_spill] sm:$0xff] %v13521_v36 }
  0xe0   : > { %v13523_v37 = vpop.f32.mrf.mxu0  ;;  %v13525_v38 = vpop.f32.mrf.mxu1  ;;  %12097 = vmatmul.mubr.msk.bf16.gmra.mxu1 %vm569_vm2, %v319_v31  ;;  %12227 = vmatmul.mubr.msk.bf16.gmra.mxu0 %vm569_vm2, %v2201_v32  ;;  %v2107_v31 = vld [vmem:[%s13172_s23 + $0x212] sm:$0xff] }
  0xe1   : > { %16903 = vst [vmem:[#allocation7_spill] sm:$0xff] %v13525_v38  ;;  %12100 = vmatprep.mubr.msk.bf16.mxu1 %vm569_vm2, %v320_v33  ;;  %12230 = vmatprep.mubr.msk.bf16.mxu0 %vm569_vm2, %v2202_v34  ;;  %v325_v34 = vpack.c.bf16 %v223_v19, %v222_v16  ;;  %v2208_v41 = vpack.c.bf16 %v2107_v31, %v2106_v28  ;;  %v2113_v28 = vld [vmem:[%s13172_s23 + $0x24a] sm:$0xff]  ;;  %v232_v31 = vld [vmem:[%s13172_s23 + $0x258] sm:$0xff] }
  0xe2   : > { %v13536_v44 = vpop.f32.mrf.mxu0  ;;  %v13538_v45 = vpop.f32.mrf.mxu1 }
  0xe3   : > { %16904 = vst [vmem:[#allocation8_spill] sm:$0xff] %v13538_v45 }
  0xe4   : > { %v13543_v51 = vpop.f32.mrf.mxu0  ;;  %v13545_v52 = vpop.f32.mrf.mxu1 }
  0xe5   : > { %16905 = vst [vmem:[#allocation9_spill] sm:$0xff] %v13545_v52 }
  0xe6   : > { %v13547_v50 = vpop.f32.mrf.mxu0  ;;  %v13549_v57 = vpop.f32.mrf.mxu1 }
  0xe7   : > { %16906 = vst [vmem:[#allocation10_spill] sm:$0xff] %v13549_v57 }
  0xe8   : > { %v13551_v46 = vpop.f32.mrf.mxu0  ;;  %v13553_v58 = vpop.f32.mrf.mxu1  ;;  %12101 = vmatmul.mubr.msk.bf16.gmra.mxu1 %vm569_vm2, %v321_v53  ;;  %12231 = vmatmul.mubr.msk.bf16.gmra.mxu0 %vm569_vm2, %v2203_v54  ;;  %v227_v53 = vld [vmem:[%s13172_s23 + $0x220] sm:$0xff] }
  0xe9   : > { %16907 = vst [vmem:[#allocation11_spill] sm:$0xff] %v13553_v58  ;;  %12104 = vmatprep.mubr.msk.bf16.mxu1 %vm569_vm2, %v322_v55  ;;  %12234 = vmatprep.mubr.msk.bf16.mxu0 %vm569_vm2, %v2204_v56  ;;  %v2108_v54 = vld [vmem:[%s13172_s23 + $0x21a] sm:$0xff]  ;;  %v2109_v55 = vld [vmem:[%s13172_s23 + $0x222] sm:$0xff]  ;;  %v228_v56 = vld [vmem:[%s13172_s23 + $0x230] sm:$0xff]  ;;  %v327_v4 = vpack.c.bf16 %v227_v53, %v226_v49 }
  0xea   : > { %v13564_v0 = vpop.f32.mrf.mxu0  ;;  %v13566_v1 = vpop.f32.mrf.mxu1  ;;  %v2115_v49 = vld [vmem:[%s13172_s23 + $0x262] sm:$0xff] }
  0xeb   : > { %16908 = vst [vmem:[#allocation12_spill] sm:$0xff] %v13566_v1 }
  0xec   : > { %v13571_v6 = vpop.f32.mrf.mxu0  ;;  %v13573_v7 = vpop.f32.mrf.mxu1 }
  0xed   : > { %16909 = vst [vmem:[#allocation13_spill] sm:$0xff] %v13573_v7 }
  0xee   : > { %v13575_v12 = vpop.f32.mrf.mxu0  ;;  %v13577_v13 = vpop.f32.mrf.mxu1 }
  0xef   : > { %16910 = vst [vmem:[#allocation14_spill] sm:$0xff] %v13577_v13  ;;  %v13115_v13 = vld [vmem:[%s16893_s1 + $0x8] ss:$0 sps:$4 sm:$0x66]  }
  0xf0   : > { %v13579_v14 = vpop.f32.mrf.mxu0  ;;  %v13581_v15 = vpop.f32.mrf.mxu1  ;;  %12105 = vmatmul.mubr.msk.bf16.gmra.mxu1 %vm569_vm2, %v323_v8  ;;  %12235 = vmatmul.mubr.msk.bf16.gmra.mxu0 %vm569_vm2, %v2205_v9  ;;  %v2209_v8 = vpack.c.bf16 %v2109_v55, %v2108_v54  ;;  %v328_v9 = vpack.c.bf16 %v229_v61, %v228_v56  ;;  %v329_v55 = vpack.c.bf16 %v231_v22, %v230_v21  ;;  %v235_v21 = vld [vmem:[%s13172_s23 + $0x270] sm:$0xff] }
  0xf1   : > { %16911 = vst [vmem:[#allocation15_spill] sm:$0xff] %v13581_v15  ;;  %12108 = vmatprep.mubr.msk.bf16.mxu1 %vm569_vm2, %v324_v10  ;;  %12238 = vmatprep.mubr.msk.bf16.mxu0 %vm569_vm2, %v2206_v11  ;;  %v2210_v10 = vpack.c.bf16 %v2111_v63, %v2110_v62  ;;  %v2211_v56 = vpack.c.bf16 %v2113_v28, %v2112_v27  ;;  %v2116_v22 = vld [vmem:[%s13172_s23 + $0x26a] sm:$0xff]  ;;  %v2117_v27 = vld [vmem:[%s13172_s23 + $0x272] sm:$0xff]  ;;  %v236_v28 = vld [vmem:[%s13172_s23 + $0x280] sm:$0xff] }
  0xf2   : > { %v13592_v23 = vpop.f32.mrf.mxu0  ;;  %v13594_v26 = vpop.f32.mrf.mxu1 }
  0xf3   : > { %16912 = vst [vmem:[#allocation16_spill] sm:$0xff] %v13594_v26 }
  0xf4   : > { %v13599_v32 = vpop.f32.mrf.mxu0  ;;  %v13601_v33 = vpop.f32.mrf.mxu1 }
  0xf5   : > { %16913 = vst [vmem:[#allocation17_spill] sm:$0xff] %v13601_v33 }
  0xf6   : > { %v13603_v42 = vpop.f32.mrf.mxu0  ;;  %v13605_v43 = vpop.f32.mrf.mxu1 }
  0xf7   : > { %16914 = vst [vmem:[#allocation18_spill] sm:$0xff] %v13605_v43 }
  0xf8   : > { %v13607_v47 = vpop.f32.mrf.mxu0  ;;  %v13609_v48 = vpop.f32.mrf.mxu1  ;;  %12109 = vmatmul.mubr.msk.bf16.gmra.mxu1 %vm569_vm2, %v325_v34  ;;  %12239 = vmatmul.mubr.msk.bf16.gmra.mxu0 %vm569_vm2, %v2207_v39 }
  0xf9   : > { %16915 = vst [vmem:[#allocation19_spill] sm:$0xff] %v13609_v48  ;;  %12112 = vmatprep.mubr.msk.bf16.mxu1 %vm569_vm2, %v326_v40  ;;  %12242 = vmatprep.mubr.msk.bf16.mxu0 %vm569_vm2, %v2208_v41  ;;  %v233_v40 = vld [vmem:[%s13172_s23 + $0x260] sm:$0xff] }
  0xfa   : > { %v13620_v59 = vpop.f32.mrf.mxu0  ;;  %v13622_v60 = vpop.f32.mrf.mxu1  ;;  %v2114_v41 = vld [vmem:[%s13172_s23 + $0x25a] sm:$0xff]  ;;  %v330_v61 = vpack.c.bf16 %v233_v40, %v232_v31 }
  0xfb   : > { %16916 = vst [vmem:[#allocation20_spill] sm:$0xff] %v13622_v60  ;;  %v2212_v62 = vpack.c.bf16 %v2115_v49, %v2114_v41  ;;  %v237_v41 = vld [vmem:[%s13172_s23 + $0x288] sm:$0xff] }
  0xfc   : > { %v13627_v2 = vpop.f32.mrf.mxu0  ;;  %v13629_v3 = vpop.f32.mrf.mxu1  ;;  %v2118_v49 = vld [vmem:[%s13172_s23 + $0x282] sm:$0xff] }
  0xfd   : > { %16917 = vst [vmem:[#allocation21_spill] sm:$0xff] %v13629_v3 }
  0xfe   : > { %v13631_v11 = vpop.f32.mrf.mxu0  ;;  %v13633_v16 = vpop.f32.mrf.mxu1 }
  0xff   : > { %16918 = vst [vmem:[#allocation22_spill] sm:$0xff] %v13633_v16 }
 0x100   : > { %v13635_v19 = vpop.f32.mrf.mxu0  ;;  %v13637_v20 = vpop.f32.mrf.mxu1  ;;  %12113 = vmatmul.mubr.msk.bf16.gmra.mxu1 %vm569_vm2, %v327_v4  ;;  %12243 = vmatmul.mubr.msk.bf16.gmra.mxu0 %vm569_vm2, %v2209_v8 }
 0x101   : > { %16919 = vst [vmem:[#allocation23_spill] sm:$0xff] %v13637_v20  ;;  %12116 = vmatprep.mubr.msk.bf16.mxu1 %vm569_vm2, %v328_v9  ;;  %12246 = vmatprep.mubr.msk.bf16.mxu0 %vm569_vm2, %v2210_v10  ;;  %v234_v10 = vld [vmem:[%s13172_s23 + $0x268] sm:$0xff] }
 0x102   : > { %v13648_v34 = vpop.f32.mrf.mxu0  ;;  %v13650_v39 = vpop.f32.mrf.mxu1 }
 0x103   : > { %16920 = vst [vmem:[#allocation24_spill] sm:$0xff] %v13650_v39 }
 0x104   : > { %v13655_v53 = vpop.f32.mrf.mxu0  ;;  %v13657_v54 = vpop.f32.mrf.mxu1 }
 0x105   : > { %16921 = vst [vmem:[#allocation25_spill] sm:$0xff] %v13657_v54 }
 0x106   : > { %v13659_v63 = vpop.f32.mrf.mxu0  ;;  %v13661_v4 = vpop.f32.mrf.mxu1 }
 0x107   : > { %16922 = vst [vmem:[#allocation26_spill] sm:$0xff] %v13661_v4  ;;  %v332_v4 = vpack.c.bf16 %v237_v41, %v236_v28  ;;  %v240_v28 = vld [vmem:[%s13172_s23 + $0x2a8] sm:$0xff] }
 0x108   : > { %v13663_v8 = vpop.f32.mrf.mxu0  ;;  %v13665_v9 = vpop.f32.mrf.mxu1  ;;  %12117 = vmatmul.mubr.msk.bf16.gmra.mxu1 %vm569_vm2, %v329_v55  ;;  %12247 = vmatmul.mubr.msk.bf16.gmra.mxu0 %vm569_vm2, %v2211_v56  ;;  %v2119_v55 = vld [vmem:[%s13172_s23 + $0x28a] sm:$0xff] }
 0x109   : > { %16923 = vst [vmem:[#allocation27_spill] sm:$0xff] %v13665_v9  ;;  %12120 = vmatprep.mubr.msk.bf16.mxu1 %vm569_vm2, %v330_v61  ;;  %12250 = vmatprep.mubr.msk.bf16.mxu0 %vm569_vm2, %v2212_v62  ;;  %v331_v61 = vpack.c.bf16 %v235_v21, %v234_v10  ;;  %v2213_v62 = vpack.c.bf16 %v2117_v27, %v2116_v22  ;;  %v238_v10 = vld [vmem:[%s13172_s23 + $0x290] sm:$0xff]  ;;  %v239_v21 = vld [vmem:[%s13172_s23 + $0x298] sm:$0xff] }
 0x10a   : > { %v13676_v31 = vpop.f32.mrf.mxu0  ;;  %v13678_v40 = vpop.f32.mrf.mxu1  ;;  %v2214_v54 = vpack.c.bf16 %v2119_v55, %v2118_v49  ;;  %v2120_v22 = vld [vmem:[%s13172_s23 + $0x292] sm:$0xff]  ;;  %v2121_v27 = vld [vmem:[%s13172_s23 + $0x29a] sm:$0xff] }
 0x10b   : > { %16924 = vst [vmem:[#allocation28_spill] sm:$0xff] %v13678_v40  ;;  %v241_v55 = vld [vmem:[%s13172_s23 + $0x2b0] sm:$0xff] }
 0x10c   : > { %v13683_v9 = vpop.f32.mrf.mxu0  ;;  %v13685_v56 = vpop.f32.mrf.mxu1 }
 0x10d   : > { %16925 = vst [vmem:[#allocation29_spill] sm:$0xff] %v13685_v56  ;;  %v334_v56 = vpack.c.bf16 %v241_v55, %v240_v28 }
 0x10e   : > { %v13687_v39 = vpop.f32.mrf.mxu0  ;;  %v13689_v40 = vpop.f32.mrf.mxu1 }
 0x10f   : > { %16926 = vst [vmem:[#allocation30_spill] sm:$0xff] %v13689_v40 }
 0x110   : > { %v13691_v20 = vpop.f32.mrf.mxu0  ;;  %v13693_v16 = vpop.f32.mrf.mxu1  ;;  %12121 = vmatmul.mubr.msk.bf16.gmra.mxu1 %vm569_vm2, %v331_v61  ;;  %12251 = vmatmul.mubr.msk.bf16.gmra.mxu0 %vm569_vm2, %v2213_v62  ;;  %v2123_v61 = vld [vmem:[%s13172_s23 + $0x2b2] sm:$0xff] }
 0x111   : > { %16927 = vst [vmem:[#allocation31_spill] sm:$0xff] %v13693_v16  ;;  %12124 = vmatprep.mubr.msk.bf16.mxu1 %vm569_vm2, %v332_v4  ;;  %12254 = vmatprep.mubr.msk.bf16.mxu0 %vm569_vm2, %v2214_v54  ;;  %v2122_v16 = vld [vmem:[%s13172_s23 + $0x2aa] sm:$0xff]  ;;  %v333_v4 = vpack.c.bf16 %v239_v21, %v238_v10  ;;  %v2215_v54 = vpack.c.bf16 %v2121_v27, %v2120_v22  ;;  %v242_v10 = vld [vmem:[%s13172_s23 + $0x2b8] sm:$0xff]  ;;  %v243_v21 = vld [vmem:[%s13172_s23 + $0x2c0] sm:$0xff] }
 0x112   : > { %v13704_v41 = vpop.f32.mrf.mxu0  ;;  %v13706_v49 = vpop.f32.mrf.mxu1  ;;  %v2216_v3 = vpack.c.bf16 %v2123_v61, %v2122_v16  ;;  %v2124_v16 = vld [vmem:[%s13172_s23 + $0x2ba] sm:$0xff]  ;;  %v2125_v22 = vld [vmem:[%s13172_s23 + $0x2c2] sm:$0xff]  ;;  %v244_v27 = vld [vmem:[%s13172_s23 + $0x2d0] sm:$0xff] }
 0x113   : > { %16928 = vst [vmem:[#allocation32_spill] sm:$0xff] %v13706_v49  ;;  %v245_v61 = vld [vmem:[%s13172_s23 + $0x2d8] sm:$0xff] }
 0x114   : > { %v13711_v40 = vpop.f32.mrf.mxu0  ;;  %v13713_v62 = vpop.f32.mrf.mxu1  ;;  %v336_v33 = vpack.c.bf16 %v245_v61, %v244_v27  ;;  %v2129_v27 = vld [vmem:[%s13172_s23 + $0x2ea] sm:$0xff] }
 0x115   : > { %16929 = vst [vmem:[#allocation33_spill] sm:$0xff] %v13713_v62 }
 0x116   : > { %v13715_v60 = vpop.f32.mrf.mxu0  ;;  %v13717_v49 = vpop.f32.mrf.mxu1 }
 0x117   : > { %16930 = vst [vmem:[#allocation34_spill] sm:$0xff] %v13717_v49  ;;  %v2126_v49 = vld [vmem:[%s13172_s23 + $0x2d2] sm:$0xff] }
 0x118   : > { %v13719_v48 = vpop.f32.mrf.mxu0  ;;  %v13721_v43 = vpop.f32.mrf.mxu1  ;;  %12125 = vmatmul.mubr.msk.bf16.gmra.mxu1 %vm569_vm2, %v333_v4  ;;  %12255 = vmatmul.mubr.msk.bf16.gmra.mxu0 %vm569_vm2, %v2215_v54  ;;  %v13114_v4 = vld [vmem:[%s16893_s1 + $0x4] sm:$0x18]  }
 0x119   : > { %16931 = vst [vmem:[#allocation35_spill] sm:$0xff] %v13721_v43  ;;  %12128 = vmatprep.mubr.msk.bf16.mxu1 %vm569_vm2, %v334_v56  ;;  %12258 = vmatprep.mubr.msk.bf16.mxu0 %vm569_vm2, %v2216_v3  ;;  %v2127_v43 = vld [vmem:[%s13172_s23 + $0x2da] sm:$0xff]  ;;  %v335_v56 = vpack.c.bf16 %v243_v21, %v242_v10  ;;  %v2217_v3 = vpack.c.bf16 %v2125_v22, %v2124_v16  ;;  %v5459_v15 = vshrl.u32 %v13114_v4, 16  ;;  %v6531_v21 = vrot.slane %v13115_v13, 1  ;;  %v247_v22 = vld [vmem:[%s13172_s23 + $0x2e8] sm:$0xff] }
 0x11a   : > { %v13732_v28 = vpop.f32.mrf.mxu0  ;;  %v13734_v55 = vpop.f32.mrf.mxu1  ;;  %v2218_v26 = vpack.c.bf16 %v2127_v43, %v2126_v49  ;;  %v246_v49 = vld [vmem:[%s13172_s23 + $0x2e0] sm:$0xff]  ;;  %v248_v13 = vld [vmem:[%s13172_s23 + $0x2f8] sm:$0xff] }
 0x11b   : > { %16932 = vst [vmem:[#allocation36_spill] sm:$0xff] %v13734_v55  ;;  %v5462_v55 = vshll.u32 %v13114_v4, 16  ;;  %v13767_v61 = vand.u32 %v6531_v21, %v13158_v5 }
 0x11c   : > { %v13742_v54 = vpop.f32.mrf.mxu0  ;;  %v13744_v62 = vpop.f32.mrf.mxu1 }
 0x11d   : > { %16933 = vst [vmem:[#allocation37_spill] sm:$0xff] %v13744_v62  ;;  %v5461_v62 = vrot.slane %v5459_v15, 3  ;;  %v5464_v10 = vrot.slane %v5462_v55, 4  ;;  %v2128_v15 = vld [vmem:[%s13172_s23 + $0x2e2] sm:$0xff]  ;;  %12708 = vmatprep.subr.bf16.mxu0 %v13767_v61 }
 0x11e   : > { %v13749_v7 = vpop.f32.mrf.mxu0  ;;  %v13751_v1 = vpop.f32.mrf.mxu1 }
 0x11f   : > { %16934 = vst [vmem:[#allocation38_spill] sm:$0xff] %v13751_v1  ;;  %v5465_v55 = vor.u32 %v5464_v10, %v5461_v62  ;;  %v2130_v1 = vld [vmem:[%s13172_s23 + $0x2fa] sm:$0xff]  ;;  %v337_v62 = vpack.c.bf16 %v247_v22, %v246_v49  ;;  %v2219_v10 = vpack.c.bf16 %v2129_v27, %v2128_v15  ;;  %v250_v49 = vld [vmem:[%s13172_s23 + $0x308] sm:$0xff]  ;;  %v251_v22 = vld [vmem:[%s13172_s23 + $0x310] sm:$0xff] }
 0x120   : > { %v13753_v16 = vpop.f32.mrf.mxu0  ;;  %v13755_v43 = vpop.f32.mrf.mxu1  ;;  %12129 = vmatmul.mubr.msk.bf16.gmra.mxu1 %vm569_vm2, %v335_v56  ;;  %12259 = vmatmul.mubr.msk.bf16.gmra.mxu0 %vm569_vm2, %v2217_v3  ;;  %v249_v56 = vld [vmem:[%s13172_s23 + $0x300] sm:$0xff]  ;;  %v2133_v15 = vld [vmem:[%s13172_s23 + $0x312] sm:$0xff] }
 0x121   : > { %16935 = vst [vmem:[#allocation39_spill] sm:$0xff] %v13755_v43  ;;  %12132 = vmatprep.mubr.msk.bf16.mxu1 %vm569_vm2, %v336_v33  ;;  %12262 = vmatprep.mubr.msk.bf16.mxu0 %vm569_vm2, %v2218_v26  ;;  %v2131_v3 = vld [vmem:[%s13172_s23 + $0x302] sm:$0xff]  ;;  %v13777_v58 = vand.u32 %v5465_v55, %v13158_v5  ;;  %v338_v21 = vpack.c.bf16 %v249_v56, %v248_v13 }
 0x122   : > { %v13769_v4 = vpop.f32.mrf.mxu0  ;;  %v13771_v43 = vpop.f32.mrf.mxu1  ;;  %v252_v27 = vld [vmem:[%s13172_s23 + $0x320] sm:$0xff] }
 0x123   : > { %16936 = vst [vmem:[#allocation40_spill] sm:$0xff] %v13771_v43  ;;  %v2220_v43 = vpack.c.bf16 %v2131_v3, %v2130_v1  ;;  %12578 = vmatprep.subr.bf16.mxu1 %v13777_v58  ;;  %v2132_v1 = vld [vmem:[%s13172_s23 + $0x30a] sm:$0xff] }
 0x124   : > { %v13780_v26 = vpop.f32.mrf.mxu0  ;;  %v13782_v33 = vpop.f32.mrf.mxu1  ;;  %v253_v3 = vld [vmem:[%s13172_s23 + $0x328] sm:$0xff] }
 0x125   : > { %16937 = vst [vmem:[#allocation41_spill] sm:$0xff] %v13782_v33  ;;  %v340_v33 = vpack.c.bf16 %v253_v3, %v252_v27 }
 0x126   : > { %v13785_v57 = vpop.f32.mrf.mxu0  ;;  %v13787_v55 = vpop.f32.mrf.mxu1 }
 0x127   : > { %16938 = vst [vmem:[#allocation42_spill] sm:$0xff] %v13787_v55 }
 0x128   : > { %v13789_v5 = vpop.f32.mrf.mxu0  ;;  %v13791_v52 = vpop.f32.mrf.mxu1  ;;  %12133 = vmatmul.mubr.msk.bf16.gmra.mxu1 %vm569_vm2, %v337_v62  ;;  %12263 = vmatmul.mubr.msk.bf16.gmra.mxu0 %vm569_vm2, %v2219_v10  ;;  %v2135_v62 = vld [vmem:[%s13172_s23 + $0x32a] sm:$0xff] }
 0x129   : > { %16939 = vst [vmem:[#allocation43_spill] sm:$0xff] %v13789_v5  ;;  %16940 = vst [vmem:[#allocation44_spill] sm:$0xff] %v13791_v52  ;;  %12136 = vmatprep.mubr.msk.bf16.mxu1 %vm569_vm2, %v338_v21  ;;  %12266 = vmatprep.mubr.msk.bf16.mxu0 %vm569_vm2, %v2220_v43  ;;  %v2134_v52 = vld [vmem:[%s13172_s23 + $0x322] sm:$0xff]  ;;  %v339_v21 = vpack.c.bf16 %v251_v22, %v250_v49  ;;  %v2221_v43 = vpack.c.bf16 %v2133_v15, %v2132_v1  ;;  %v254_v49 = vld [vmem:[%s13172_s23 + $0x330] sm:$0xff] }
 0x12a   : > { %v13802_v13 = vpop.f32.mrf.mxu0  ;;  %v13804_v56 = vpop.f32.mrf.mxu1  ;;  %v2222_v45 = vpack.c.bf16 %v2135_v62, %v2134_v52  ;;  %v255_v22 = vld [vmem:[%s13172_s23 + $0x338] sm:$0xff]  ;;  %v256_v15 = vld [vmem:[%s13172_s23 + $0x348] sm:$0xff]  ;;  %v257_v62 = vld [vmem:[%s13172_s23 + $0x350] sm:$0xff] }
 0x12b   : > { %16941 = vst [vmem:[#allocation45_spill] sm:$0xff] %v13802_v13  ;;  %16942 = vst [vmem:[#allocation46_spill] sm:$0xff] %v13804_v56  ;;  %v2136_v52 = vld [vmem:[%s13172_s23 + $0x332] sm:$0xff]  ;;  %v2137_v1 = vld [vmem:[%s13172_s23 + $0x33a] sm:$0xff] }
 0x12c   : > { %v13809_v55 = vpop.f32.mrf.mxu0  ;;  %v13811_v10 = vpop.f32.mrf.mxu1 }
 0x12d   : > { %16943 = vst [vmem:[#allocation47_spill] sm:$0xff] %v13809_v55  ;;  %16944 = vst [vmem:[#allocation48_spill] sm:$0xff] %v13811_v10  ;;  %v342_v10 = vpack.c.bf16 %v257_v62, %v256_v15 }
 0x12e   : > { %v13813_v38 = vpop.f32.mrf.mxu0  ;;  %v13815_v56 = vpop.f32.mrf.mxu1 }
 0x12f   : > { %16945 = vst [vmem:[#allocation49_spill] sm:$0xff] %v13813_v38  ;;  %16946 = vst [vmem:[#allocation50_spill] sm:$0xff] %v13815_v56 }
 0x130   : > { %v13817_v36 = vpop.f32.mrf.mxu0  ;;  %v13819_v30 = vpop.f32.mrf.mxu1  ;;  %12137 = vmatmul.mubr.msk.bf16.gmra.mxu1 %vm569_vm2, %v339_v21  ;;  %12267 = vmatmul.mubr.msk.bf16.gmra.mxu0 %vm569_vm2, %v2221_v43  ;;  %v2139_v21 = vld [vmem:[%s13172_s23 + $0x352] sm:$0xff] }
 0x131   : > { %16947 = vst [vmem:[#allocation51_spill] sm:$0xff] %v13817_v36  ;;  %16948 = vst [vmem:[#allocation52_spill] sm:$0xff] %v13819_v30  ;;  %12140 = vmatprep.mubr.msk.bf16.mxu1 %vm569_vm2, %v340_v33  ;;  %12270 = vmatprep.mubr.msk.bf16.mxu0 %vm569_vm2, %v2222_v45  ;;  %v2138_v30 = vld [vmem:[%s13172_s23 + $0x34a] sm:$0xff]  ;;  %v341_v33 = vpack.c.bf16 %v255_v22, %v254_v49  ;;  %v2223_v45 = vpack.c.bf16 %v2137_v1, %v2136_v52  ;;  %v258_v49 = vld [vmem:[%s13172_s23 + $0x358] sm:$0xff] }
 0x132   : > { %v13830_v27 = vpop.f32.mrf.mxu0  ;;  %v13832_v3 = vpop.f32.mrf.mxu1  ;;  %v2224_v25 = vpack.c.bf16 %v2139_v21, %v2138_v30  ;;  %v259_v22 = vld [vmem:[%s13172_s23 + $0x360] sm:$0xff]  ;;  %v260_v1 = vld [vmem:[%s13172_s23 + $0x370] sm:$0xff]  ;;  %v261_v21 = vld [vmem:[%s13172_s23 + $0x378] sm:$0xff] }
 0x133   : > { %16949 = vst [vmem:[#allocation53_spill] sm:$0xff] %v13830_v27  ;;  %16950 = vst [vmem:[#allocation54_spill] sm:$0xff] %v13832_v3  ;;  %v2140_v30 = vld [vmem:[%s13172_s23 + $0x35a] sm:$0xff]  ;;  %v2141_v52 = vld [vmem:[%s13172_s23 + $0x362] sm:$0xff] }
 0x134   : > { %v13837_v56 = vpop.f32.mrf.mxu0  ;;  %v13839_v43 = vpop.f32.mrf.mxu1 }
 0x135   : > { %16951 = vst [vmem:[#allocation55_spill] sm:$0xff] %v13837_v56  ;;  %16952 = vst [vmem:[#allocation56_spill] sm:$0xff] %v13839_v43  ;;  %v344_v43 = vpack.c.bf16 %v261_v21, %v260_v1 }
 0x136   : > { %v13841_v18 = vpop.f32.mrf.mxu0  ;;  %v13843_v3 = vpop.f32.mrf.mxu1 }
 0x137   : > { %16953 = vst [vmem:[#allocation57_spill] sm:$0xff] %v13841_v18  ;;  %16954 = vst [vmem:[#allocation58_spill] sm:$0xff] %v13843_v3 }
 0x138   : > { %v13845_v27 = vpop.f32.mrf.mxu0  ;;  %v13847_v36 = vpop.f32.mrf.mxu1  ;;  %12141 = vmatmul.mubr.msk.bf16.gmra.mxu1 %vm569_vm2, %v341_v33  ;;  %12271 = vmatmul.mubr.msk.bf16.gmra.mxu0 %vm569_vm2, %v2223_v45  ;;  %v2143_v33 = vld [vmem:[%s13172_s23 + $0x37a] sm:$0xff] }
 0x139   : > { %16955 = vst [vmem:[#allocation59_spill] sm:$0xff] %v13845_v27  ;;  %16956 = vst [vmem:[#allocation60_spill] sm:$0xff] %v13847_v36  ;;  %12144 = vmatprep.mubr.msk.bf16.mxu1 %vm569_vm2, %v342_v10  ;;  %12274 = vmatprep.mubr.msk.bf16.mxu0 %vm569_vm2, %v2224_v25  ;;  %v2142_v36 = vld [vmem:[%s13172_s23 + $0x372] sm:$0xff]  ;;  %v343_v10 = vpack.c.bf16 %v259_v22, %v258_v49  ;;  %v2225_v25 = vpack.c.bf16 %v2141_v52, %v2140_v30  ;;  %v262_v49 = vld [vmem:[%s13172_s23 + $0x380] sm:$0xff] }
 0x13a   : > { %v13858_v15 = vpop.f32.mrf.mxu0  ;;  %v13860_v62 = vpop.f32.mrf.mxu1  ;;  %v2226_v27 = vpack.c.bf16 %v2143_v33, %v2142_v36  ;;  %v263_v22 = vld [vmem:[%s13172_s23 + $0x388] sm:$0xff]  ;;  %v264_v52 = vld [vmem:[%s13172_s23 + $0x398] sm:$0xff]  ;;  %v265_v33 = vld [vmem:[%s13172_s23 + $0x3a0] sm:$0xff] }
 0x13b   : > { %16957 = vst [vmem:[#allocation61_spill] sm:$0xff] %v13858_v15  ;;  %16958 = vst [vmem:[#allocation62_spill] sm:$0xff] %v13860_v62  ;;  %v2144_v36 = vld [vmem:[%s13172_s23 + $0x382] sm:$0xff]  ;;  %v2145_v30 = vld [vmem:[%s13172_s23 + $0x38a] sm:$0xff] }
 0x13c   : > { %v13865_v3 = vpop.f32.mrf.mxu0  ;;  %v13867_v45 = vpop.f32.mrf.mxu1 }
 0x13d   : > { %16959 = vst [vmem:[#allocation63_spill] sm:$0xff] %v13865_v3  ;;  %16960 = vst [vmem:[#allocation64_spill] sm:$0xff] %v13867_v45  ;;  %v346_v45 = vpack.c.bf16 %v265_v33, %v264_v52 }
 0x13e   : > { %v13869_v15 = vpop.f32.mrf.mxu0  ;;  %v13871_v62 = vpop.f32.mrf.mxu1 }
 0x13f   : > { %16961 = vst [vmem:[#allocation65_spill] sm:$0xff] %v13869_v15  ;;  %16962 = vst [vmem:[#allocation66_spill] sm:$0xff] %v13871_v62 }
 0x140   : > { %v13873_v18 = vpop.f32.mrf.mxu0  ;;  %v13875_v56 = vpop.f32.mrf.mxu1  ;;  %12145 = vmatmul.mubr.msk.bf16.gmra.mxu1 %vm569_vm2, %v343_v10  ;;  %12275 = vmatmul.mubr.msk.bf16.gmra.mxu0 %vm569_vm2, %v2225_v25  ;;  %v2147_v10 = vld [vmem:[%s13172_s23 + $0x3a2] sm:$0xff] }
 0x141   : > { %16963 = vst [vmem:[#allocation67_spill] sm:$0xff] %v13873_v18  ;;  %16964 = vst [vmem:[#allocation68_spill] sm:$0xff] %v13875_v56  ;;  %12148 = vmatprep.mubr.msk.bf16.mxu1 %vm569_vm2, %v344_v43  ;;  %12278 = vmatprep.mubr.msk.bf16.mxu0 %vm569_vm2, %v2226_v27  ;;  %v2146_v56 = vld [vmem:[%s13172_s23 + $0x39a] sm:$0xff]  ;;  %v345_v43 = vpack.c.bf16 %v263_v22, %v262_v49  ;;  %v2227_v27 = vpack.c.bf16 %v2145_v30, %v2144_v36  ;;  %v266_v49 = vld [vmem:[%s13172_s23 + $0x3a8] sm:$0xff] }
 0x142   : > { %v13886_v1 = vpop.f32.mrf.mxu0  ;;  %v13888_v21 = vpop.f32.mrf.mxu1  ;;  %v2228_v18 = vpack.c.bf16 %v2147_v10, %v2146_v56  ;;  %v267_v22 = vld [vmem:[%s13172_s23 + $0x3b0] sm:$0xff]  ;;  %v268_v30 = vld [vmem:[%s13172_s23 + $0x3c0] sm:$0xff]  ;;  %v269_v10 = vld [vmem:[%s13172_s23 + $0x3c8] sm:$0xff] }
 0x143   : > { %16965 = vst [vmem:[#allocation69_spill] sm:$0xff] %v13886_v1  ;;  %16966 = vst [vmem:[#allocation70_spill] sm:$0xff] %v13888_v21  ;;  %v2148_v56 = vld [vmem:[%s13172_s23 + $0x3aa] sm:$0xff]  ;;  %v2149_v36 = vld [vmem:[%s13172_s23 + $0x3b2] sm:$0xff] }
 0x144   : > { %v13893_v62 = vpop.f32.mrf.mxu0  ;;  %v13895_v25 = vpop.f32.mrf.mxu1 }
 0x145   : > { %16967 = vst [vmem:[#allocation71_spill] sm:$0xff] %v13893_v62  ;;  %16968 = vst [vmem:[#allocation72_spill] sm:$0xff] %v13895_v25  ;;  %v348_v25 = vpack.c.bf16 %v269_v10, %v268_v30 }
 0x146   : > { %v13897_v1 = vpop.f32.mrf.mxu0  ;;  %v13899_v21 = vpop.f32.mrf.mxu1 }
 0x147   : > { %16969 = vst [vmem:[#allocation73_spill] sm:$0xff] %v13897_v1  ;;  %16970 = vst [vmem:[#allocation74_spill] sm:$0xff] %v13899_v21 }
 0x148   : > { %v13901_v15 = vpop.f32.mrf.mxu0  ;;  %v13903_v3 = vpop.f32.mrf.mxu1  ;;  %12149 = vmatmul.mubr.msk.bf16.gmra.mxu1 %vm569_vm2, %v345_v43  ;;  %12279 = vmatmul.mubr.msk.bf16.gmra.mxu0 %vm569_vm2, %v2227_v27  ;;  %v2151_v43 = vld [vmem:[%s13172_s23 + $0x3ca] sm:$0xff] }
 0x149   : > { %16971 = vst [vmem:[#allocation75_spill] sm:$0xff] %v13901_v15  ;;  %16972 = vst [vmem:[#allocation76_spill] sm:$0xff] %v13903_v3  ;;  %12152 = vmatprep.mubr.msk.bf16.mxu1 %vm569_vm2, %v346_v45  ;;  %12282 = vmatprep.mubr.msk.bf16.mxu0 %vm569_vm2, %v2228_v18  ;;  %v2150_v3 = vld [vmem:[%s13172_s23 + $0x3c2] sm:$0xff]  ;;  %v347_v45 = vpack.c.bf16 %v267_v22, %v266_v49  ;;  %v2229_v18 = vpack.c.bf16 %v2149_v36, %v2148_v56  ;;  %v270_v49 = vld [vmem:[%s13172_s23 + $0x3d0] sm:$0xff] }
 0x14a   : > { %v13914_v52 = vpop.f32.mrf.mxu0  ;;  %v13916_v33 = vpop.f32.mrf.mxu1  ;;  %v2230_v15 = vpack.c.bf16 %v2151_v43, %v2150_v3  ;;  %v271_v22 = vld [vmem:[%s13172_s23 + $0x3d8] sm:$0xff]  ;;  %v272_v36 = vld [vmem:[%s13172_s23 + $0x3e8] sm:$0xff]  ;;  %v273_v43 = vld [vmem:[%s13172_s23 + $0x3f0] sm:$0xff] }
 0x14b   : > { %16973 = vst [vmem:[#allocation77_spill] sm:$0xff] %v13914_v52  ;;  %16974 = vst [vmem:[#allocation78_spill] sm:$0xff] %v13916_v33  ;;  %v2152_v3 = vld [vmem:[%s13172_s23 + $0x3d2] sm:$0xff]  ;;  %v2153_v56 = vld [vmem:[%s13172_s23 + $0x3da] sm:$0xff] }
 0x14c   : > { %v13921_v21 = vpop.f32.mrf.mxu0  ;;  %v13923_v27 = vpop.f32.mrf.mxu1 }
 0x14d   : > { %16975 = vst [vmem:[#allocation79_spill] sm:$0xff] %v13921_v21  ;;  %16976 = vst [vmem:[#allocation80_spill] sm:$0xff] %v13923_v27  ;;  %v350_v27 = vpack.c.bf16 %v273_v43, %v272_v36 }
 0x14e   : > { %v13925_v52 = vpop.f32.mrf.mxu0  ;;  %v13927_v33 = vpop.f32.mrf.mxu1 }
 0x14f   : > { %16977 = vst [vmem:[#allocation81_spill] sm:$0xff] %v13925_v52  ;;  %16978 = vst [vmem:[#allocation82_spill] sm:$0xff] %v13927_v33 }
 0x150   : > { %v13929_v1 = vpop.f32.mrf.mxu0  ;;  %v13931_v62 = vpop.f32.mrf.mxu1  ;;  %12153 = vmatmul.mubr.msk.bf16.gmra.mxu1 %vm569_vm2, %v347_v45  ;;  %12283 = vmatmul.mubr.msk.bf16.gmra.mxu0 %vm569_vm2, %v2229_v18  ;;  %v2155_v45 = vld [vmem:[%s13172_s23 + $0x3f2] sm:$0xff] }
 0x151   : > { %16979 = vst [vmem:[#allocation83_spill] sm:$0xff] %v13929_v1  ;;  %16980 = vst [vmem:[#allocation84_spill] sm:$0xff] %v13931_v62  ;;  %12156 = vmatprep.mubr.msk.bf16.mxu1 %vm569_vm2, %v348_v25  ;;  %12286 = vmatprep.mubr.msk.bf16.mxu0 %vm569_vm2, %v2230_v15  ;;  %v2154_v62 = vld [vmem:[%s13172_s23 + $0x3ea] sm:$0xff]  ;;  %v349_v25 = vpack.c.bf16 %v271_v22, %v270_v49  ;;  %v2231_v15 = vpack.c.bf16 %v2153_v56, %v2152_v3  ;;  %v275_v49 = vld [vmem:[%s13172_s23 + $0x400] sm:$0xff] }
 0x152   : > { %v13942_v30 = vpop.f32.mrf.mxu0  ;;  %v13944_v10 = vpop.f32.mrf.mxu1  ;;  %v2232_v1 = vpack.c.bf16 %v2155_v45, %v2154_v62  ;;  %v2156_v62 = vld [vmem:[%s13172_s23 + $0x3fa] sm:$0xff]  ;;  %v2157_v3 = vld [vmem:[%s13172_s23 + $0x402] sm:$0xff]  ;;  %v276_v56 = vld [vmem:[%s13172_s23 + $0x410] sm:$0xff] }
 0x153   : > { %16981 = vst [vmem:[#allocation85_spill] sm:$0xff] %v13942_v30  ;;  %16982 = vst [vmem:[#allocation86_spill] sm:$0xff] %v13944_v10  ;;  %v277_v45 = vld [vmem:[%s13172_s23 + $0x418] sm:$0xff] }
 0x154   : > { %v13949_v33 = vpop.f32.mrf.mxu0  ;;  %v13951_v18 = vpop.f32.mrf.mxu1  ;;  %v352_v55 = vpack.c.bf16 %v277_v45, %v276_v56  ;;  %v2162_v56 = vld [vmem:[%s13172_s23 + $0x43a] sm:$0xff] }
 0x155   : > { %16983 = vst [vmem:[#allocation87_spill] sm:$0xff] %v13949_v33  ;;  %16984 = vst [vmem:[#allocation88_spill] sm:$0xff] %v13951_v18  ;;  %v274_v18 = vld [vmem:[%s13172_s23 + $0x3f8] sm:$0xff] }
 0x156   : > { %v13953_v52 = vpop.f32.mrf.mxu0  ;;  %v13955_v10 = vpop.f32.mrf.mxu1 }
 0x157   : > { %16985 = vst [vmem:[#allocation89_spill] sm:$0xff] %v13953_v52  ;;  %16986 = vst [vmem:[#allocation90_spill] sm:$0xff] %v13955_v10  ;;  %v2158_v10 = vld [vmem:[%s13172_s23 + $0x412] sm:$0xff]  ;;  %v2159_v52 = vld [vmem:[%s13172_s23 + $0x41a] sm:$0xff] }
 0x158   : > { %v12062_v30 = vpop.f32.mrf.mxu1  ;;  %12157 = vmatmul.mubr.msk.bf16.gmra.mxu1 %vm569_vm2, %v349_v25  ;;  %v12192_v33 = vpop.f32.mrf.mxu0  ;;  %12287 = vmatmul.mubr.msk.bf16.gmra.mxu0 %vm569_vm2, %v2231_v15  ;;  %v2234_v13 = vpack.c.bf16 %v2159_v52, %v2158_v10 }
 0x159   : > { %v1552_v22 = vadd.f32 %v12062_v30, %v13495_v17  ;;  %12160 = vmatprep.mubr.msk.bf16.mxu1 %vm569_vm2, %v350_v27  ;;  %12290 = vmatprep.mubr.msk.bf16.mxu0 %vm569_vm2, %v2232_v1  ;;  %v351_v17 = vpack.c.bf16 %v275_v49, %v274_v18  ;;  %v2233_v27 = vpack.c.bf16 %v2157_v3, %v2156_v62  ;;  %v281_v3 = vld [vmem:[%s13172_s23 + $0x440] sm:$0xff] }
 0x15a   : > { %v1543_v36 = vpop.f32.mrf.mxu1  ;;  %v2483_v43 = vpop.f32.mrf.mxu0 }
 0x15b   : > { %v13970_v25 = vadd.f32 %v12192_v33, %v1552_v22  ;;  %v1544_v15 = vadd.f32 %v1543_v36, %v13508_v24 }
 0x15c   : > { %v12063_v21 = vpop.f32.mrf.mxu1  ;;  %v12193_v38 = vpop.f32.mrf.mxu0 }
 0x15d   : > { %v13973_v30 = vadd.f32 %v2483_v43, %v1544_v15  ;;  %v1555_v1 = vadd.f32 %v12063_v21, %v13515_v29  ;;  %v278_v29 = vld [vmem:[%s13172_s23 + $0x420] sm:$0xff]  ;;  %v279_v21 = vld [vmem:[%s13172_s23 + $0x428] sm:$0xff] }
 0x15e   : > { %v1546_v5 = vpop.f32.mrf.mxu1  ;;  %v2486_v33 = vpop.f32.mrf.mxu0  ;;  %v2163_v43 = vld [vmem:[%s13172_s23 + $0x442] sm:$0xff] }
 0x15f   : > { %v13976_v22 = vadd.f32 %v12193_v38, %v1555_v1  ;;  %v1547_v24 = vadd.f32 %v1546_v5, %v13519_v35  ;;  %v2160_v5 = vld [vmem:[%s13172_s23 + $0x422] sm:$0xff]  ;;  %v2161_v35 = vld [vmem:[%s13172_s23 + $0x42a] sm:$0xff]  ;;  %v280_v38 = vld [vmem:[%s13172_s23 + $0x438] sm:$0xff] }
 0x160   : > { %v12066_v36 = vpop.f32.mrf.mxu1  ;;  %12161 = vmatmul.mubr.msk.bf16.gmra.mxu1 %vm569_vm2, %v351_v17  ;;  %v12196_v18 = vpop.f32.mrf.mxu0  ;;  %12291 = vmatmul.mubr.msk.bf16.gmra.mxu0 %vm569_vm2, %v2233_v27 }
 0x161   : > { %v13983_v52 = vadd.f32 %v2486_v33, %v1547_v24  ;;  %v1568_v10 = vadd.f32 %v12066_v36, %v13523_v37  ;;  %12164 = vmatprep.mubr.msk.bf16.mxu1 %vm569_vm2, %v352_v55  ;;  %12294 = vmatprep.mubr.msk.bf16.mxu0 %vm569_vm2, %v2234_v13  ;;  %v353_v37 = vpack.c.bf16 %v279_v21, %v278_v29  ;;  %v283_v21 = vld [vmem:[%s13172_s23 + $0x450] sm:$0xff] }
 0x162   : > { %v1559_v49 = vpop.f32.mrf.mxu1  ;;  %v2499_v62 = vpop.f32.mrf.mxu0  ;;  %v2235_v55 = vpack.c.bf16 %v2161_v35, %v2160_v5  ;;  %v354_v33 = vpack.c.bf16 %v281_v3, %v280_v38  ;;  %v2236_v24 = vpack.c.bf16 %v2163_v43, %v2162_v56  ;;  %v2165_v38 = vld [vmem:[%s13172_s23 + $0x452] sm:$0xff]  ;;  %v285_v43 = vld [vmem:[%s13172_s23 + $0x468] sm:$0xff] }
 0x163   : > { %v13994_v45 = vadd.f32 %v12196_v18, %v1568_v10  ;;  %v1560_v15 = vadd.f32 %v1559_v49, %v13536_v44 }
 0x164   : > { %v12067_v17 = vpop.f32.mrf.mxu1  ;;  %v12197_v27 = vpop.f32.mrf.mxu0 }
 0x165   : > { %v13997_v1 = vadd.f32 %v2499_v62, %v1560_v15  ;;  %v1571_v13 = vadd.f32 %v12067_v17, %v13543_v51  ;;  %v282_v51 = vld [vmem:[%s13172_s23 + $0x448] sm:$0xff]  ;;  %v284_v62 = vld [vmem:[%s13172_s23 + $0x460] sm:$0xff] }
 0x166   : > { %v1562_v36 = vpop.f32.mrf.mxu1  ;;  %v2502_v18 = vpop.f32.mrf.mxu0  ;;  %v2166_v15 = vld [vmem:[%s13172_s23 + $0x462] sm:$0xff]  ;;  %v2167_v17 = vld [vmem:[%s13172_s23 + $0x46a] sm:$0xff] }
 0x167   : > { %v14000_v10 = vadd.f32 %v12197_v27, %v1571_v13  ;;  %v1563_v44 = vadd.f32 %v1562_v36, %v13547_v50  ;;  %v2164_v50 = vld [vmem:[%s13172_s23 + $0x44a] sm:$0xff] }
 0x168   : > { %v12070_v49 = vpop.f32.mrf.mxu1  ;;  %12165 = vmatmul.mubr.msk.bf16.gmra.mxu1 %vm569_vm2, %v353_v37  ;;  %v12200_v29 = vpop.f32.mrf.mxu0  ;;  %12295 = vmatmul.mubr.msk.bf16.gmra.mxu0 %vm569_vm2, %v2235_v55 }
 0x169   : > { %v14007_v5 = vadd.f32 %v2502_v18, %v1563_v44  ;;  %v1584_v35 = vadd.f32 %v12070_v49, %v13551_v46  ;;  %12168 = vmatprep.mubr.msk.bf16.mxu1 %vm569_vm2, %v354_v33  ;;  %12298 = vmatprep.mubr.msk.bf16.mxu0 %vm569_vm2, %v2236_v24  ;;  %v355_v46 = vpack.c.bf16 %v283_v21, %v282_v51  ;;  %v287_v21 = vld [vmem:[%s13172_s23 + $0x478] sm:$0xff] }
 0x16a   : > { %v1575_v3 = vpop.f32.mrf.mxu1  ;;  %v2515_v56 = vpop.f32.mrf.mxu0  ;;  %v2237_v33 = vpack.c.bf16 %v2165_v38, %v2164_v50  ;;  %v356_v18 = vpack.c.bf16 %v285_v43, %v284_v62  ;;  %v2238_v44 = vpack.c.bf16 %v2167_v17, %v2166_v15  ;;  %v2169_v62 = vld [vmem:[%s13172_s23 + $0x47a] sm:$0xff]  ;;  %v289_v17 = vld [vmem:[%s13172_s23 + $0x490] sm:$0xff] }
 0x16b   : > { %v14018_v27 = vadd.f32 %v12200_v29, %v1584_v35  ;;  %v1576_v37 = vadd.f32 %v1575_v3, %v13564_v0 }
 0x16c   : > { %v12071_v55 = vpop.f32.mrf.mxu1  ;;  %v12201_v13 = vpop.f32.mrf.mxu0 }
 0x16d   : > { %v14021_v36 = vadd.f32 %v2515_v56, %v1576_v37  ;;  %v1587_v24 = vadd.f32 %v12071_v55, %v13571_v6  ;;  %v286_v6 = vld [vmem:[%s13172_s23 + $0x470] sm:$0xff]  ;;  %v288_v56 = vld [vmem:[%s13172_s23 + $0x488] sm:$0xff] }
 0x16e   : > { %v1578_v49 = vpop.f32.mrf.mxu1  ;;  %v2518_v29 = vpop.f32.mrf.mxu0  ;;  %v2170_v37 = vld [vmem:[%s13172_s23 + $0x48a] sm:$0xff]  ;;  %v2171_v55 = vld [vmem:[%s13172_s23 + $0x492] sm:$0xff] }
 0x16f   : > { %v14024_v35 = vadd.f32 %v12201_v13, %v1587_v24  ;;  %v1579_v0 = vadd.f32 %v1578_v49, %v13575_v12  ;;  %v2168_v12 = vld [vmem:[%s13172_s23 + $0x472] sm:$0xff] }
 0x170   : > { %v12074_v3 = vpop.f32.mrf.mxu1  ;;  %12169 = vmatmul.mubr.msk.bf16.gmra.mxu1 %vm569_vm2, %v355_v46  ;;  %v12204_v51 = vpop.f32.mrf.mxu0  ;;  %12299 = vmatmul.mubr.msk.bf16.gmra.mxu0 %vm569_vm2, %v2237_v33 }
 0x171   : > { %v14031_v50 = vadd.f32 %v2518_v29, %v1579_v0  ;;  %v1600_v38 = vadd.f32 %v12074_v3, %v13579_v14  ;;  %12172 = vmatprep.mubr.msk.bf16.mxu1 %vm569_vm2, %v356_v18  ;;  %12302 = vmatprep.mubr.msk.bf16.mxu0 %vm569_vm2, %v2238_v44  ;;  %v357_v14 = vpack.c.bf16 %v287_v21, %v286_v6  ;;  %v291_v21 = vld [vmem:[%s13172_s23 + $0x4a0] sm:$0xff] }
 0x172   : > { %v1591_v43 = vpop.f32.mrf.mxu1  ;;  %v2531_v15 = vpop.f32.mrf.mxu0  ;;  %v2239_v18 = vpack.c.bf16 %v2169_v62, %v2168_v12  ;;  %v358_v29 = vpack.c.bf16 %v289_v17, %v288_v56  ;;  %v2240_v0 = vpack.c.bf16 %v2171_v55, %v2170_v37  ;;  %v2173_v56 = vld [vmem:[%s13172_s23 + $0x4a2] sm:$0xff]  ;;  %v293_v55 = vld [vmem:[%s13172_s23 + $0x4b8] sm:$0xff] }
 0x173   : > { %v14042_v13 = vadd.f32 %v12204_v51, %v1600_v38  ;;  %v1592_v46 = vadd.f32 %v1591_v43, %v13592_v23 }
 0x174   : > { %v12075_v33 = vpop.f32.mrf.mxu1  ;;  %v12205_v24 = vpop.f32.mrf.mxu0 }
 0x175   : > { %v14045_v49 = vadd.f32 %v2531_v15, %v1592_v46  ;;  %v1603_v44 = vadd.f32 %v12075_v33, %v13599_v32  ;;  %v290_v32 = vld [vmem:[%s13172_s23 + $0x498] sm:$0xff]  ;;  %v292_v15 = vld [vmem:[%s13172_s23 + $0x4b0] sm:$0xff] }
 0x176   : > { %v1594_v3 = vpop.f32.mrf.mxu1  ;;  %v2534_v51 = vpop.f32.mrf.mxu0  ;;  %v2174_v46 = vld [vmem:[%s13172_s23 + $0x4b2] sm:$0xff]  ;;  %v2175_v33 = vld [vmem:[%s13172_s23 + $0x4ba] sm:$0xff] }
 0x177   : > { %v14048_v38 = vadd.f32 %v12205_v24, %v1603_v44  ;;  %v1595_v23 = vadd.f32 %v1594_v3, %v13603_v42  ;;  %v2172_v42 = vld [vmem:[%s13172_s23 + $0x49a] sm:$0xff] }
 0x178   : > { %v12078_v43 = vpop.f32.mrf.mxu1  ;;  %12173 = vmatmul.mubr.msk.bf16.gmra.mxu1 %vm569_vm2, %v357_v14  ;;  %v12208_v6 = vpop.f32.mrf.mxu0  ;;  %12303 = vmatmul.mubr.msk.bf16.gmra.mxu0 %vm569_vm2, %v2239_v18 }
 0x179   : > { %v14055_v12 = vadd.f32 %v2534_v51, %v1595_v23  ;;  %v1616_v62 = vadd.f32 %v12078_v43, %v13607_v47  ;;  %12176 = vmatprep.mubr.msk.bf16.mxu1 %vm569_vm2, %v358_v29  ;;  %12306 = vmatprep.mubr.msk.bf16.mxu0 %vm569_vm2, %v2240_v0  ;;  %v359_v47 = vpack.c.bf16 %v291_v21, %v290_v32  ;;  %v295_v21 = vld [vmem:[%s13172_s23 + $0x4c8] sm:$0xff] }
 0x17a   : > { %v1607_v17 = vpop.f32.mrf.mxu1  ;;  %v2547_v37 = vpop.f32.mrf.mxu0  ;;  %v2241_v29 = vpack.c.bf16 %v2173_v56, %v2172_v42  ;;  %v360_v51 = vpack.c.bf16 %v293_v55, %v292_v15  ;;  %v2242_v23 = vpack.c.bf16 %v2175_v33, %v2174_v46  ;;  %v2177_v15 = vld [vmem:[%s13172_s23 + $0x4ca] sm:$0xff]  ;;  %v297_v33 = vld [vmem:[%s13172_s23 + $0x4e0] sm:$0xff] }
 0x17b   : > { %v14066_v24 = vadd.f32 %v12208_v6, %v1616_v62  ;;  %v1608_v14 = vadd.f32 %v1607_v17, %v13620_v59 }
 0x17c   : > { %v12079_v18 = vpop.f32.mrf.mxu1  ;;  %v12209_v44 = vpop.f32.mrf.mxu0 }
 0x17d   : > { %v14069_v3 = vadd.f32 %v2547_v37, %v1608_v14  ;;  %v1619_v0 = vadd.f32 %v12079_v18, %v13627_v2  ;;  %v294_v2 = vld [vmem:[%s13172_s23 + $0x4c0] sm:$0xff]  ;;  %v296_v37 = vld [vmem:[%s13172_s23 + $0x4d8] sm:$0xff] }
 0x17e   : > { %v1610_v43 = vpop.f32.mrf.mxu1  ;;  %v2550_v6 = vpop.f32.mrf.mxu0  ;;  %v2178_v14 = vld [vmem:[%s13172_s23 + $0x4da] sm:$0xff]  ;;  %v2179_v18 = vld [vmem:[%s13172_s23 + $0x4e2] sm:$0xff] }
 0x17f   : > { %v14072_v62 = vadd.f32 %v12209_v44, %v1619_v0  ;;  %v1611_v59 = vadd.f32 %v1610_v43, %v13631_v11  ;;  %v2176_v11 = vld [vmem:[%s13172_s23 + $0x4c2] sm:$0xff] }
 0x180   : > { %v12082_v17 = vpop.f32.mrf.mxu1  ;;  %12177 = vmatmul.mubr.msk.bf16.gmra.mxu1 %vm569_vm2, %v359_v47  ;;  %v12212_v32 = vpop.f32.mrf.mxu0  ;;  %12307 = vmatmul.mubr.msk.bf16.gmra.mxu0 %vm569_vm2, %v2241_v29 }
 0x181   : > { %v14079_v42 = vadd.f32 %v2550_v6, %v1611_v59  ;;  %v1632_v56 = vadd.f32 %v12082_v17, %v13635_v19  ;;  %12180 = vmatprep.mubr.msk.bf16.mxu1 %vm569_vm2, %v360_v51  ;;  %12310 = vmatprep.mubr.msk.bf16.mxu0 %vm569_vm2, %v2242_v23  ;;  %v361_v19 = vpack.c.bf16 %v295_v21, %v294_v2  ;;  %v299_v21 = vld [vmem:[%s13172_s23 + $0x4f0] sm:$0xff] }
 0x182   : > { %v1623_v55 = vpop.f32.mrf.mxu1  ;;  %v2563_v46 = vpop.f32.mrf.mxu0  ;;  %v2243_v51 = vpack.c.bf16 %v2177_v15, %v2176_v11  ;;  %v362_v6 = vpack.c.bf16 %v297_v33, %v296_v37  ;;  %v2244_v59 = vpack.c.bf16 %v2179_v18, %v2178_v14  ;;  %v2181_v37 = vld [vmem:[%s13172_s23 + $0x4f2] sm:$0xff] }
 0x183   : > { %v14090_v44 = vadd.f32 %v12212_v32, %v1632_v56  ;;  %v1624_v47 = vadd.f32 %v1623_v55, %v13648_v34  ;;  %v10183_v18 = vld [vmem:[%s13172_s23 + $0x30] sm:$0xff] }
 0x184   : > { %v12083_v29 = vpop.f32.mrf.mxu1  ;;  %v12213_v0 = vpop.f32.mrf.mxu0 }
 0x185   : > { %v14093_v43 = vadd.f32 %v2563_v46, %v1624_v47  ;;  %v1635_v23 = vadd.f32 %v12083_v29, %v13655_v53  ;;  %v298_v53 = vld [vmem:[%s13172_s23 + $0x4e8] sm:$0xff]  ;;  %v10376_v29 = vld [vmem:[%s13172_s23 + $0x31] sm:$0xff] }
 0x186   : > { %v1626_v17 = vpop.f32.mrf.mxu1  ;;  %v2566_v32 = vpop.f32.mrf.mxu0  ;;  %v10182_v46 = vld [vmem:[%s13172_s23 + $0x28] sm:$0xff] }
 0x187   : > { %v14096_v56 = vadd.f32 %v12213_v0, %v1635_v23  ;;  %v1627_v34 = vadd.f32 %v1626_v17, %v13659_v63  ;;  %v2180_v63 = vld [vmem:[%s13172_s23 + $0x4ea] sm:$0xff] }
 0x188   : > { %v12086_v55 = vpop.f32.mrf.mxu1  ;;  %12181 = vmatmul.mubr.msk.bf16.gmra.mxu1 %vm569_vm2, %v361_v19  ;;  %v12216_v2 = vpop.f32.mrf.mxu0  ;;  %12311 = vmatmul.mubr.msk.bf16.gmra.mxu0 %vm569_vm2, %v2243_v51  ;;  %v10375_v47 = vld [vmem:[%s13172_s23 + $0x29] sm:$0xff]  ;;  %v2245_v17 = vpack.c.bf16 %v2181_v37, %v2180_v63  ;;  %v10185_v37 = vld [vmem:[%s13172_s23 + $0x40] sm:$0xff] }
 0x189   : > { %v14103_v11 = vadd.f32 %v2566_v32, %v1627_v34  ;;  %v1648_v15 = vadd.f32 %v12086_v55, %v13663_v8  ;;  %12184 = vmatprep.mubr.msk.bf16.mxu1 %vm569_vm2, %v362_v6  ;;  %12314 = vmatprep.mubr.msk.bf16.mxu0 %vm569_vm2, %v2244_v59  ;;  %v363_v8 = vpack.c.bf16 %v299_v21, %v298_v53 }
 0x18a   : > { %v1639_v33 = vpop.f32.mrf.mxu1  ;;  %v2579_v14 = vpop.f32.mrf.mxu0  ;;  %v3251_v32 = vpack.c.bf16 %v10183_v18, %v10182_v46  ;;  %v4322_v34 = vpack.c.bf16 %v10376_v29, %v10375_v47  ;;  %v10378_v46 = vld [vmem:[%s13172_s23 + $0x41] sm:$0xff]  ;;  %v10186_v18 = vld [vmem:[%s13172_s23 + $0x50] sm:$0xff] }
 0x18b   : > { %16987 = vst [vmem:[#allocation91_spill] sm:$0xff] %v14103_v11  ;;  %v14114_v0 = vadd.f32 %v12216_v2, %v1648_v15  ;;  %v1640_v19 = vadd.f32 %v1639_v33, %v13676_v31 }
 0x18c   : > { %v12087_v51 = vpop.f32.mrf.mxu1  ;;  %v12217_v23 = vpop.f32.mrf.mxu0 }
 0x18d   : > { %v14117_v6 = vadd.f32 %v2579_v14, %v1640_v19  ;;  %v1651_v59 = vadd.f32 %v12087_v51, %v13683_v9  ;;  %v10184_v9 = vld [vmem:[%s13172_s23 + $0x38] sm:$0xff] }
 0x18e   : > { %v1642_v55 = vpop.f32.mrf.mxu1  ;;  %v2582_v11 = vpop.f32.mrf.mxu0  ;;  %v10187_v19 = vld [vmem:[%s13172_s23 + $0x58] sm:$0xff] }
 0x18f   : > { %v14120_v2 = vadd.f32 %v12217_v23, %v1651_v59  ;;  %v1643_v31 = vadd.f32 %v1642_v55, %v13687_v39  ;;  %v10377_v39 = vld [vmem:[%s13172_s23 + $0x39] sm:$0xff]  ;;  %v10379_v51 = vld [vmem:[%s13172_s23 + $0x51] sm:$0xff] }
 0x190   : > { %v12090_v15 = vpop.f32.mrf.mxu1  ;;  %12185 = vmatmul.mubr.msk.bf16.gmra.mxu1 %vm569_vm2, %v363_v8  ;;  %v12220_v53 = vpop.f32.mrf.mxu0  ;;  %12315 = vmatmul.mubr.msk.bf16.gmra.mxu0 %vm569_vm2, %v2245_v17  ;;  %v3252_v8 = vpack.c.bf16 %v10185_v37, %v10184_v9  ;;  %v4323_v17 = vpack.c.bf16 %v10378_v46, %v10377_v39  ;;  %v10189_v9 = vld [vmem:[%s13172_s23 + $0x68] sm:$0xff] }
 0x191   : > { %v14126_v21 = vadd.f32 %v2582_v11, %v1643_v31  ;;  %v1664_v63 = vadd.f32 %v12090_v15, %v13691_v20  ;;  %12320 = vmatprep.mubr.msk.bf16.mxu1 %vm569_vm2, %v3251_v32  ;;  %12450 = vmatprep.mubr.msk.bf16.mxu0 %vm569_vm2, %v4322_v34  ;;  %v10380_v11 = vld [vmem:[%s13172_s23 + $0x59] sm:$0xff]  ;;  %v3253_v31 = vpack.c.bf16 %v10187_v19, %v10186_v18  ;;  %v10382_v46 = vld [vmem:[%s13172_s23 + $0x69] sm:$0xff] }
 0x192   : > { %v1655_v33 = vpop.f32.mrf.mxu1  ;;  %v2595_v14 = vpop.f32.mrf.mxu0  ;;  %v10191_v19 = vld [vmem:[%s13172_s23 + $0x80] sm:$0xff] }
 0x193   : > { %v14135_v47 = vadd.f32 %v12220_v53, %v1664_v63  ;;  %v1656_v29 = vadd.f32 %v1655_v33, %v13704_v41  ;;  %v4324_v41 = vpack.c.bf16 %v10380_v11, %v10379_v51  ;;  %v10383_v51 = vld [vmem:[%s13172_s23 + $0x79] sm:$0xff]  ;;  %v10384_v11 = vld [vmem:[%s13172_s23 + $0x81] sm:$0xff] }
 0x194   : > { %v12091_v23 = vpop.f32.mrf.mxu1  ;;  %v12221_v20 = vpop.f32.mrf.mxu0 }
 0x195   : > { %v14141_v59 = vadd.f32 %v2595_v14, %v1656_v29  ;;  %v1667_v32 = vadd.f32 %v12091_v23, %v13711_v40  ;;  %v10188_v40 = vld [vmem:[%s13172_s23 + $0x60] sm:$0xff]  ;;  %v10190_v14 = vld [vmem:[%s13172_s23 + $0x78] sm:$0xff] }
 0x196   : > { %v1658_v34 = vpop.f32.mrf.mxu1  ;;  %v2598_v55 = vpop.f32.mrf.mxu0 }
 0x197   : > { %v14144_v15 = vadd.f32 %v12221_v20, %v1667_v32  ;;  %v1659_v53 = vadd.f32 %v1658_v34, %v13715_v60  ;;  %v10381_v60 = vld [vmem:[%s13172_s23 + $0x61] sm:$0xff]  ;;  %v3255_v34 = vpack.c.bf16 %v10191_v19, %v10190_v14 }
 0x198   : > { %v12094_v63 = vpop.f32.mrf.mxu1  ;;  %v12224_v33 = vpop.f32.mrf.mxu0  ;;  %12321 = vmatmul.mubr.msk.bf16.vlgmr.msra.gmra.mxu1 %vm569_vm2, %v3252_v8  ;;  %12451 = vmatmul.mubr.msk.bf16.vlgmr.msra.gmra.mxu0 %vm569_vm2, %v4323_v17  ;;  %v4325_v8 = vpack.c.bf16 %v10382_v46, %v10381_v60  ;;  %v10386_v60 = vld [vmem:[%s13172_s23 + $0x91] sm:$0xff]  ;;  %v10194_v46 = vld [vmem:[%s13172_s23 + $0xa0] sm:$0xff] }
 0x199   : > { %v14151_v37 = vadd.f32 %v2598_v55, %v1659_v53  ;;  %v1680_v39 = vadd.f32 %v12094_v63, %v13719_v48  ;;  %12579 = vmatpush3.bf16.msra.mxu1 %v13777_v58  ;;  %12709 = vmatpush3.bf16.msra.mxu0 %v13767_v61  ;;  %v3254_v61 = vpack.c.bf16 %v10189_v9, %v10188_v40  ;;  %v10193_v40 = vld [vmem:[%s13172_s23 + $0x90] sm:$0xff]  ;;  %v10387_v19 = vld [vmem:[%s13172_s23 + $0xa1] sm:$0xff] }
 0x19a   : > { %v1671_v18 = vpop.f32.mrf.mxu1  ;;  %v2611_v29 = vpop.f32.mrf.mxu0  ;;  %12324 = vmatprep.mubr.msk.bf16.mxu1 %vm569_vm2, %v3253_v31  ;;  %12454 = vmatprep.mubr.msk.bf16.mxu0 %vm569_vm2, %v4324_v41  ;;  %v4326_v55 = vpack.c.bf16 %v10384_v11, %v10383_v51  ;;  %v10388_v51 = vld [vmem:[%s13172_s23 + $0xa9] sm:$0xff] }
 0x19b   : > { %v14164_v23 = vadd.f32 %v12224_v33, %v1680_v39  ;;  %v1672_v48 = vadd.f32 %v1671_v18, %v13732_v28 }
 0x19c   : > { %v12095_v20 = vpop.f32.mrf.mxu1  ;;  %v12225_v58 = vpop.f32.mrf.mxu0 }
 0x19d   : > { %v14167_v17 = vadd.f32 %v2611_v29, %v1672_v48  ;;  %v1683_v32 = vadd.f32 %v12095_v20, %v13742_v54  ;;  %v10192_v54 = vld [vmem:[%s13172_s23 + $0x88] sm:$0xff] }
 0x19e   : > { %v1674_v31 = vpop.f32.mrf.mxu1  ;;  %v2614_v41 = vpop.f32.mrf.mxu0  ;;  %v10195_v29 = vld [vmem:[%s13172_s23 + $0xa8] sm:$0xff] }
 0x19f   : > { %v14170_v53 = vadd.f32 %v12225_v58, %v1683_v32  ;;  %v1675_v28 = vadd.f32 %v1674_v31, %v13749_v7  ;;  %v10385_v7 = vld [vmem:[%s13172_s23 + $0x89] sm:$0xff] }
 0x1a0   : > { %v12098_v63 = vpop.f32.mrf.mxu1  ;;  %v12228_v33 = vpop.f32.mrf.mxu0  ;;  %12325 = vmatmul.mubr.msk.bf16.gmra.mxu1 %vm569_vm2, %v3254_v61  ;;  %12455 = vmatmul.mubr.msk.bf16.gmra.mxu0 %vm569_vm2, %v4325_v8  ;;  %v4327_v61 = vpack.c.bf16 %v10386_v60, %v10385_v7  ;;  %v10390_v60 = vld [vmem:[%s13172_s23 + $0xb9] sm:$0xff] }
 0x1a1   : > { %v14177_v9 = vadd.f32 %v2614_v41, %v1675_v28  ;;  %v1696_v39 = vadd.f32 %v12098_v63, %v13753_v16  ;;  %12328 = vmatprep.mubr.msk.bf16.mxu1 %vm569_vm2, %v3255_v34  ;;  %12458 = vmatprep.mubr.msk.bf16.mxu0 %vm569_vm2, %v4326_v55  ;;  %v3256_v16 = vpack.c.bf16 %v10193_v40, %v10192_v54  ;;  %v10197_v54 = vld [vmem:[%s13172_s23 + $0xb8] sm:$0xff] }
 0x1a2   : > { %v1687_v14 = vpop.f32.mrf.mxu1  ;;  %v2627_v18 = vpop.f32.mrf.mxu0  ;;  %v3257_v34 = vpack.c.bf16 %v10195_v29, %v10194_v46  ;;  %v4328_v55 = vpack.c.bf16 %v10388_v51, %v10387_v19  ;;  %v10198_v46 = vld [vmem:[%s13172_s23 + $0xc8] sm:$0xff]  ;;  %v10199_v29 = vld [vmem:[%s13172_s23 + $0xd0] sm:$0xff] }
 0x1a3   : > { %v14188_v11 = vadd.f32 %v12228_v33, %v1696_v39  ;;  %v1688_v48 = vadd.f32 %v1687_v14, %v13769_v4  ;;  %v16991_v39 = vld [vmem:[#allocation43_spill] sm:$0xff]  ;;  %v10392_v51 = vld [vmem:[%s13172_s23 + $0xd1] sm:$0xff] }
 0x1a4   : > { %v12099_v20 = vpop.f32.mrf.mxu1  ;;  %v12229_v58 = vpop.f32.mrf.mxu0  ;;  %v10391_v19 = vld [vmem:[%s13172_s23 + $0xc9] sm:$0xff] }
 0x1a5   : > { %v14191_v8 = vadd.f32 %v2627_v18, %v1688_v48  ;;  %v1699_v32 = vadd.f32 %v12099_v20, %v13780_v26  ;;  %v10196_v26 = vld [vmem:[%s13172_s23 + $0xb0] sm:$0xff]  ;;  %v16993_v20 = vld [vmem:[#allocation45_spill] sm:$0xff] }
 0x1a6   : > { %v1690_v31 = vpop.f32.mrf.mxu1  ;;  %v2630_v41 = vpop.f32.mrf.mxu0 }
 0x1a7   : > { %16988 = vst [vmem:[#allocation92_spill] sm:$0xff] %v14191_v8  ;;  %v14194_v28 = vadd.f32 %v12229_v58, %v1699_v32  ;;  %v1691_v4 = vadd.f32 %v1690_v31, %v13785_v57  ;;  %v10389_v57 = vld [vmem:[%s13172_s23 + $0xb1] sm:$0xff]  ;;  %v3258_v32 = vpack.c.bf16 %v10197_v54, %v10196_v26 }
 0x1a8   : > { %v12102_v63 = vpop.f32.mrf.mxu1  ;;  %v12232_v33 = vpop.f32.mrf.mxu0  ;;  %12329 = vmatmul.mubr.msk.bf16.gmra.mxu1 %vm569_vm2, %v3256_v16  ;;  %12459 = vmatmul.mubr.msk.bf16.gmra.mxu0 %vm569_vm2, %v4327_v61  ;;  %v10200_v54 = vld [vmem:[%s13172_s23 + $0xd8] sm:$0xff] }
 0x1a9   : > { %16989 = vst [vmem:[#allocation93_spill] sm:$0xff] %v14194_v28  ;;  %v14201_v40 = vadd.f32 %v2630_v41, %v1691_v4  ;;  %v1712_v7 = vadd.f32 %v12102_v63, %v16991_v39  ;;  %12332 = vmatprep.mubr.msk.bf16.mxu1 %vm569_vm2, %v3257_v34  ;;  %12462 = vmatprep.mubr.msk.bf16.mxu0 %vm569_vm2, %v4328_v55  ;;  %v16995_v55 = vld [vmem:[#allocation47_spill] sm:$0xff] }
 0x1aa   : > { %v1703_v14 = vpop.f32.mrf.mxu1  ;;  %v2643_v18 = vpop.f32.mrf.mxu0  ;;  %v4329_v34 = vpack.c.bf16 %v10390_v60, %v10389_v57  ;;  %v3259_v4 = vpack.c.bf16 %v10199_v29, %v10198_v46  ;;  %v4330_v63 = vpack.c.bf16 %v10392_v51, %v10391_v19  ;;  %v10201_v57 = vld [vmem:[%s13172_s23 + $0xe0] sm:$0xff]  ;;  %v16999_v46 = vld [vmem:[#allocation51_spill] sm:$0xff]  ;;  %v10202_v51 = vld [vmem:[%s13172_s23 + $0xf0] sm:$0xff] }
 0x1ab   : > { %16990 = vst [vmem:[#allocation94_spill] sm:$0xff] %v14201_v40  ;;  %v14212_v48 = vadd.f32 %v12232_v33, %v1712_v7  ;;  %v1704_v58 = vadd.f32 %v1703_v14, %v16993_v20  ;;  %v16997_v14 = vld [vmem:[#allocation49_spill] sm:$0xff]  ;;  %v10394_v19 = vld [vmem:[%s13172_s23 + $0xe1] sm:$0xff] }
 0x1ac   : > { %v12103_v16 = vpop.f32.mrf.mxu1  ;;  %v12233_v61 = vpop.f32.mrf.mxu0  ;;  %v10393_v29 = vld [vmem:[%s13172_s23 + $0xd9] sm:$0xff] }
 0x1ad   : > { %16992 = vst [vmem:[#allocation43_spill] sm:$0xff] %v14212_v48  ;;  %v14215_v31 = vadd.f32 %v2643_v18, %v1704_v58  ;;  %v1715_v41 = vadd.f32 %v12103_v16, %v16995_v55  ;;  %v10395_v55 = vld [vmem:[%s13172_s23 + $0xf1] sm:$0xff] }
 0x1ae   : > { %v1706_v39 = vpop.f32.mrf.mxu1  ;;  %v2646_v33 = vpop.f32.mrf.mxu0 }
 0x1af   : > { %16994 = vst [vmem:[#allocation45_spill] sm:$0xff] %v14215_v31  ;;  %v14218_v7 = vadd.f32 %v12233_v61, %v1715_v41  ;;  %v1707_v20 = vadd.f32 %v1706_v39, %v16997_v14  ;;  %v10203_v61 = vld [vmem:[%s13172_s23 + $0xf8] sm:$0xff] }
 0x1b0   : > { %v12106_v48 = vpop.f32.mrf.mxu1  ;;  %v12236_v26 = vpop.f32.mrf.mxu0  ;;  %12333 = vmatmul.mubr.msk.bf16.gmra.mxu1 %vm569_vm2, %v3258_v32  ;;  %12463 = vmatmul.mubr.msk.bf16.gmra.mxu0 %vm569_vm2, %v4329_v34  ;;  %v10396_v32 = vld [vmem:[%s13172_s23 + $0xf9] sm:$0xff] }
 0x1b1   : > { %16996 = vst [vmem:[#allocation47_spill] sm:$0xff] %v14218_v7  ;;  %v14225_v60 = vadd.f32 %v2646_v33, %v1707_v20  ;;  %v1728_v18 = vadd.f32 %v12106_v48, %v16999_v46  ;;  %12336 = vmatprep.mubr.msk.bf16.mxu1 %vm569_vm2, %v3259_v4  ;;  %12466 = vmatprep.mubr.msk.bf16.mxu0 %vm569_vm2, %v4330_v63  ;;  %v17001_v34 = vld [vmem:[#allocation53_spill] sm:$0xff]  ;;  %v17003_v63 = vld [vmem:[#allocation55_spill] sm:$0xff] }
 0x1b2   : > { %v1719_v58 = vpop.f32.mrf.mxu1  ;;  %v2659_v16 = vpop.f32.mrf.mxu0  ;;  %v3260_v48 = vpack.c.bf16 %v10201_v57, %v10200_v54  ;;  %v4331_v4 = vpack.c.bf16 %v10394_v19, %v10393_v29  ;;  %v4332_v7 = vpack.c.bf16 %v10396_v32, %v10395_v55  ;;  %v10204_v57 = vld [vmem:[%s13172_s23 + $0x100] sm:$0xff]  ;;  %v10205_v29 = vld [vmem:[%s13172_s23 + $0x108] sm:$0xff]  ;;  %v10206_v55 = vld [vmem:[%s13172_s23 + $0x118] sm:$0xff] }
 0x1b3   : > { %16998 = vst [vmem:[#allocation49_spill] sm:$0xff] %v14225_v60  ;;  %v14236_v41 = vadd.f32 %v12236_v26, %v1728_v18  ;;  %v1720_v39 = vadd.f32 %v1719_v58, %v17001_v34  ;;  %v3261_v60 = vpack.c.bf16 %v10203_v61, %v10202_v51  ;;  %v17005_v58 = vld [vmem:[#allocation57_spill] sm:$0xff]  ;;  %v17007_v51 = vld [vmem:[#allocation59_spill] sm:$0xff] }
 0x1b4   : > { %v12107_v33 = vpop.f32.mrf.mxu1  ;;  %v12237_v14 = vpop.f32.mrf.mxu0  ;;  %v10398_v61 = vld [vmem:[%s13172_s23 + $0x109] sm:$0xff] }
 0x1b5   : > { %17000 = vst [vmem:[#allocation51_spill] sm:$0xff] %v14236_v41  ;;  %v14239_v20 = vadd.f32 %v2659_v16, %v1720_v39  ;;  %v1731_v46 = vadd.f32 %v12107_v33, %v17003_v63  ;;  %v10207_v33 = vld [vmem:[%s13172_s23 + $0x120] sm:$0xff] }
 0x1b6   : > { %v1722_v31 = vpop.f32.mrf.mxu1  ;;  %v2662_v26 = vpop.f32.mrf.mxu0 }
 0x1b7   : > { %17002 = vst [vmem:[#allocation53_spill] sm:$0xff] %v14239_v20  ;;  %v14242_v18 = vadd.f32 %v12237_v14, %v1731_v46  ;;  %v1723_v34 = vadd.f32 %v1722_v31, %v17005_v58  ;;  %v10397_v31 = vld [vmem:[%s13172_s23 + $0x101] sm:$0xff]  ;;  %v10399_v14 = vld [vmem:[%s13172_s23 + $0x119] sm:$0xff] }
 0x1b8   : > { %v12110_v41 = vpop.f32.mrf.mxu1  ;;  %v12240_v54 = vpop.f32.mrf.mxu0  ;;  %12337 = vmatmul.mubr.msk.bf16.gmra.mxu1 %vm569_vm2, %v3260_v48  ;;  %12467 = vmatmul.mubr.msk.bf16.gmra.mxu0 %vm569_vm2, %v4331_v4  ;;  %v10400_v48 = vld [vmem:[%s13172_s23 + $0x121] sm:$0xff]  ;;  %v17009_v4 = vld [vmem:[#allocation61_spill] sm:$0xff] }
 0x1b9   : > { %17004 = vst [vmem:[#allocation55_spill] sm:$0xff] %v14242_v18  ;;  %v14249_v19 = vadd.f32 %v2662_v26, %v1723_v34  ;;  %v1744_v16 = vadd.f32 %v12110_v41, %v17007_v51  ;;  %12340 = vmatprep.mubr.msk.bf16.mxu1 %vm569_vm2, %v3261_v60  ;;  %12470 = vmatprep.mubr.msk.bf16.mxu0 %vm569_vm2, %v4332_v7  ;;  %v17011_v7 = vld [vmem:[#allocation63_spill] sm:$0xff] }
 0x1ba   : > { %v1735_v32 = vpop.f32.mrf.mxu1  ;;  %v2675_v39 = vpop.f32.mrf.mxu0  ;;  %v3262_v41 = vpack.c.bf16 %v10205_v29, %v10204_v57  ;;  %v4333_v60 = vpack.c.bf16 %v10398_v61, %v10397_v31  ;;  %v4334_v18 = vpack.c.bf16 %v10400_v48, %v10399_v14  ;;  %v10208_v29 = vld [vmem:[%s13172_s23 + $0x128] sm:$0xff]  ;;  %v10209_v31 = vld [vmem:[%s13172_s23 + $0x130] sm:$0xff]  ;;  %v10210_v14 = vld [vmem:[%s13172_s23 + $0x140] sm:$0xff] }
 0x1bb   : > { %17006 = vst [vmem:[#allocation57_spill] sm:$0xff] %v14249_v19  ;;  %v14260_v63 = vadd.f32 %v12240_v54, %v1744_v16  ;;  %v1736_v46 = vadd.f32 %v1735_v32, %v17009_v4  ;;  %v3263_v19 = vpack.c.bf16 %v10207_v33, %v10206_v55  ;;  %v17013_v32 = vld [vmem:[#allocation65_spill] sm:$0xff]  ;;  %v17015_v55 = vld [vmem:[#allocation67_spill] sm:$0xff] }
 0x1bc   : > { %v12111_v26 = vpop.f32.mrf.mxu1  ;;  %v12241_v58 = vpop.f32.mrf.mxu0  ;;  %v10402_v33 = vld [vmem:[%s13172_s23 + $0x131] sm:$0xff] }
 0x1bd   : > { %17008 = vst [vmem:[#allocation59_spill] sm:$0xff] %v14260_v63  ;;  %v14263_v34 = vadd.f32 %v2675_v39, %v1736_v46  ;;  %v1747_v51 = vadd.f32 %v12111_v26, %v17011_v7  ;;  %v10211_v26 = vld [vmem:[%s13172_s23 + $0x148] sm:$0xff] }
 0x1be   : > { %v1738_v20 = vpop.f32.mrf.mxu1  ;;  %v2678_v54 = vpop.f32.mrf.mxu0 }
 0x1bf   : > { %17010 = vst [vmem:[#allocation61_spill] sm:$0xff] %v14263_v34  ;;  %v14266_v16 = vadd.f32 %v12241_v58, %v1747_v51  ;;  %v1739_v4 = vadd.f32 %v1738_v20, %v17013_v32  ;;  %v10401_v20 = vld [vmem:[%s13172_s23 + $0x129] sm:$0xff]  ;;  %v10403_v58 = vld [vmem:[%s13172_s23 + $0x141] sm:$0xff] }
 0x1c0   : > { %v12114_v63 = vpop.f32.mrf.mxu1  ;;  %v12244_v57 = vpop.f32.mrf.mxu0  ;;  %12341 = vmatmul.mubr.msk.bf16.gmra.mxu1 %vm569_vm2, %v3262_v41  ;;  %12471 = vmatmul.mubr.msk.bf16.gmra.mxu0 %vm569_vm2, %v4333_v60  ;;  %v10404_v41 = vld [vmem:[%s13172_s23 + $0x149] sm:$0xff]  ;;  %v17017_v60 = vld [vmem:[#allocation69_spill] sm:$0xff] }
 0x1c1   : > { %17012 = vst [vmem:[#allocation63_spill] sm:$0xff] %v14266_v16  ;;  %v14273_v61 = vadd.f32 %v2678_v54, %v1739_v4  ;;  %v1760_v39 = vadd.f32 %v12114_v63, %v17015_v55  ;;  %12344 = vmatprep.mubr.msk.bf16.mxu1 %vm569_vm2, %v3263_v19  ;;  %12474 = vmatprep.mubr.msk.bf16.mxu0 %vm569_vm2, %v4334_v18  ;;  %v17019_v18 = vld [vmem:[#allocation71_spill] sm:$0xff] }
 0x1c2   : > { %v1751_v48 = vpop.f32.mrf.mxu1  ;;  %v2691_v46 = vpop.f32.mrf.mxu0  ;;  %v3264_v63 = vpack.c.bf16 %v10209_v31, %v10208_v29  ;;  %v4335_v19 = vpack.c.bf16 %v10402_v33, %v10401_v20  ;;  %v4336_v16 = vpack.c.bf16 %v10404_v41, %v10403_v58  ;;  %v10212_v31 = vld [vmem:[%s13172_s23 + $0x150] sm:$0xff]  ;;  %v10213_v20 = vld [vmem:[%s13172_s23 + $0x158] sm:$0xff]  ;;  %v10214_v58 = vld [vmem:[%s13172_s23 + $0x168] sm:$0xff] }
 0x1c3   : > { %17014 = vst [vmem:[#allocation65_spill] sm:$0xff] %v14273_v61  ;;  %v14284_v7 = vadd.f32 %v12244_v57, %v1760_v39  ;;  %v1752_v51 = vadd.f32 %v1751_v48, %v17017_v60  ;;  %v3265_v61 = vpack.c.bf16 %v10211_v26, %v10210_v14  ;;  %v17021_v48 = vld [vmem:[#allocation73_spill] sm:$0xff]  ;;  %v17023_v14 = vld [vmem:[#allocation75_spill] sm:$0xff] }
 0x1c4   : > { %v12115_v54 = vpop.f32.mrf.mxu1  ;;  %v12245_v32 = vpop.f32.mrf.mxu0  ;;  %v10406_v26 = vld [vmem:[%s13172_s23 + $0x159] sm:$0xff] }
 0x1c5   : > { %17016 = vst [vmem:[#allocation67_spill] sm:$0xff] %v14284_v7  ;;  %v14287_v4 = vadd.f32 %v2691_v46, %v1752_v51  ;;  %v1763_v55 = vadd.f32 %v12115_v54, %v17019_v18  ;;  %v10215_v54 = vld [vmem:[%s13172_s23 + $0x170] sm:$0xff] }
 0x1c6   : > { %v1754_v34 = vpop.f32.mrf.mxu1  ;;  %v2694_v57 = vpop.f32.mrf.mxu0 }
 0x1c7   : > { %17018 = vst [vmem:[#allocation69_spill] sm:$0xff] %v14287_v4  ;;  %v14290_v39 = vadd.f32 %v12245_v32, %v1763_v55  ;;  %v1755_v60 = vadd.f32 %v1754_v34, %v17021_v48  ;;  %v10405_v34 = vld [vmem:[%s13172_s23 + $0x151] sm:$0xff]  ;;  %v10407_v32 = vld [vmem:[%s13172_s23 + $0x169] sm:$0xff] }
 0x1c8   : > { %v12118_v7 = vpop.f32.mrf.mxu1  ;;  %v12248_v29 = vpop.f32.mrf.mxu0  ;;  %12345 = vmatmul.mubr.msk.bf16.gmra.mxu1 %vm569_vm2, %v3264_v63  ;;  %12475 = vmatmul.mubr.msk.bf16.gmra.mxu0 %vm569_vm2, %v4335_v19  ;;  %v10408_v63 = vld [vmem:[%s13172_s23 + $0x171] sm:$0xff] }
 0x1c9   : > { %17020 = vst [vmem:[#allocation71_spill] sm:$0xff] %v14290_v39  ;;  %v14297_v33 = vadd.f32 %v2694_v57, %v1755_v60  ;;  %v1776_v46 = vadd.f32 %v12118_v7, %v17023_v14  ;;  %12348 = vmatprep.mubr.msk.bf16.mxu1 %vm569_vm2, %v3265_v61  ;;  %12478 = vmatprep.mubr.msk.bf16.mxu0 %vm569_vm2, %v4336_v16  ;;  %v17025_v19 = vld [vmem:[#allocation77_spill] sm:$0xff]  ;;  %v17027_v16 = vld [vmem:[#allocation79_spill] sm:$0xff] }
 0x1ca   : > { %v1767_v41 = vpop.f32.mrf.mxu1  ;;  %v2707_v51 = vpop.f32.mrf.mxu0  ;;  %v3266_v7 = vpack.c.bf16 %v10213_v20, %v10212_v31  ;;  %v4337_v61 = vpack.c.bf16 %v10406_v26, %v10405_v34  ;;  %v4338_v39 = vpack.c.bf16 %v10408_v63, %v10407_v32  ;;  %v10216_v20 = vld [vmem:[%s13172_s23 + $0x178] sm:$0xff]  ;;  %v10217_v34 = vld [vmem:[%s13172_s23 + $0x180] sm:$0xff]  ;;  %v10218_v32 = vld [vmem:[%s13172_s23 + $0x190] sm:$0xff] }
 0x1cb   : > { %17022 = vst [vmem:[#allocation73_spill] sm:$0xff] %v14297_v33  ;;  %v14308_v18 = vadd.f32 %v12248_v29, %v1776_v46  ;;  %v1768_v55 = vadd.f32 %v1767_v41, %v17025_v19  ;;  %v3267_v33 = vpack.c.bf16 %v10215_v54, %v10214_v58  ;;  %v17029_v41 = vld [vmem:[#allocation81_spill] sm:$0xff]  ;;  %v17031_v58 = vld [vmem:[#allocation83_spill] sm:$0xff] }
 0x1cc   : > { %v12119_v57 = vpop.f32.mrf.mxu1  ;;  %v12249_v48 = vpop.f32.mrf.mxu0  ;;  %v10410_v54 = vld [vmem:[%s13172_s23 + $0x181] sm:$0xff] }
 0x1cd   : > { %17024 = vst [vmem:[#allocation75_spill] sm:$0xff] %v14308_v18  ;;  %v14311_v60 = vadd.f32 %v2707_v51, %v1768_v55  ;;  %v1779_v14 = vadd.f32 %v12119_v57, %v17027_v16  ;;  %v10219_v57 = vld [vmem:[%s13172_s23 + $0x198] sm:$0xff] }
 0x1ce   : > { %v1770_v4 = vpop.f32.mrf.mxu1  ;;  %v2710_v29 = vpop.f32.mrf.mxu0 }
 0x1cf   : > { %17026 = vst [vmem:[#allocation77_spill] sm:$0xff] %v14311_v60  ;;  %v14314_v46 = vadd.f32 %v12249_v48, %v1779_v14  ;;  %v1771_v19 = vadd.f32 %v1770_v4, %v17029_v41  ;;  %v10409_v4 = vld [vmem:[%s13172_s23 + $0x179] sm:$0xff]  ;;  %v10411_v48 = vld [vmem:[%s13172_s23 + $0x191] sm:$0xff] }
 0x1d0   : > { %v12122_v18 = vpop.f32.mrf.mxu1  ;;  %v12252_v31 = vpop.f32.mrf.mxu0  ;;  %12349 = vmatmul.mubr.msk.bf16.gmra.mxu1 %vm569_vm2, %v3266_v7  ;;  %12479 = vmatmul.mubr.msk.bf16.gmra.mxu0 %vm569_vm2, %v4337_v61  ;;  %v10412_v7 = vld [vmem:[%s13172_s23 + $0x199] sm:$0xff] }
 0x1d1   : > { %17028 = vst [vmem:[#allocation79_spill] sm:$0xff] %v14314_v46  ;;  %v14321_v26 = vadd.f32 %v2710_v29, %v1771_v19  ;;  %v1792_v51 = vadd.f32 %v12122_v18, %v17031_v58  ;;  %12352 = vmatprep.mubr.msk.bf16.mxu1 %vm569_vm2, %v3267_v33  ;;  %12482 = vmatprep.mubr.msk.bf16.mxu0 %vm569_vm2, %v4338_v39  ;;  %v17033_v61 = vld [vmem:[#allocation85_spill] sm:$0xff]  ;;  %v17035_v39 = vld [vmem:[#allocation87_spill] sm:$0xff] }
 0x1d2   : > { %v1783_v63 = vpop.f32.mrf.mxu1  ;;  %v2723_v55 = vpop.f32.mrf.mxu0  ;;  %v3268_v18 = vpack.c.bf16 %v10217_v34, %v10216_v20  ;;  %v4339_v33 = vpack.c.bf16 %v10410_v54, %v10409_v4  ;;  %v4340_v46 = vpack.c.bf16 %v10412_v7, %v10411_v48  ;;  %v10220_v34 = vld [vmem:[%s13172_s23 + $0x1a0] sm:$0xff]  ;;  %v10221_v4 = vld [vmem:[%s13172_s23 + $0x1a8] sm:$0xff]  ;;  %v10222_v48 = vld [vmem:[%s13172_s23 + $0x1b8] sm:$0xff] }
 0x1d3   : > { %17030 = vst [vmem:[#allocation81_spill] sm:$0xff] %v14321_v26  ;;  %v14332_v16 = vadd.f32 %v12252_v31, %v1792_v51  ;;  %v1784_v14 = vadd.f32 %v1783_v63, %v17033_v61  ;;  %v3269_v26 = vpack.c.bf16 %v10219_v57, %v10218_v32  ;;  %v17037_v63 = vld [vmem:[#allocation89_spill] sm:$0xff]  ;;  %v17039_v32 = vld [vmem:[#allocation3_spill] sm:$0xff] }
 0x1d4   : > { %v12123_v29 = vpop.f32.mrf.mxu1  ;;  %v12253_v41 = vpop.f32.mrf.mxu0  ;;  %v10414_v57 = vld [vmem:[%s13172_s23 + $0x1a9] sm:$0xff] }
 0x1d5   : > { %17032 = vst [vmem:[#allocation83_spill] sm:$0xff] %v14332_v16  ;;  %v14335_v19 = vadd.f32 %v2723_v55, %v1784_v14  ;;  %v1795_v58 = vadd.f32 %v12123_v29, %v17035_v39  ;;  %v10223_v29 = vld [vmem:[%s13172_s23 + $0x1c0] sm:$0xff] }
 0x1d6   : > { %v1786_v60 = vpop.f32.mrf.mxu1  ;;  %v2726_v31 = vpop.f32.mrf.mxu0 }
 0x1d7   : > { %17034 = vst [vmem:[#allocation85_spill] sm:$0xff] %v14335_v19  ;;  %v14338_v51 = vadd.f32 %v12253_v41, %v1795_v58  ;;  %v1787_v61 = vadd.f32 %v1786_v60, %v17037_v63  ;;  %v10413_v60 = vld [vmem:[%s13172_s23 + $0x1a1] sm:$0xff]  ;;  %v10415_v41 = vld [vmem:[%s13172_s23 + $0x1b9] sm:$0xff] }
 0x1d8   : > { %v12126_v16 = vpop.f32.mrf.mxu1  ;;  %v12256_v20 = vpop.f32.mrf.mxu0  ;;  %12353 = vmatmul.mubr.msk.bf16.gmra.mxu1 %vm569_vm2, %v3268_v18  ;;  %12483 = vmatmul.mubr.msk.bf16.gmra.mxu0 %vm569_vm2, %v4339_v33  ;;  %v10416_v18 = vld [vmem:[%s13172_s23 + $0x1c1] sm:$0xff]  ;;  %v17041_v33 = vld [vmem:[#allocation4_spill] sm:$0xff] }
 0x1d9   : > { %17036 = vst [vmem:[#allocation87_spill] sm:$0xff] %v14338_v51  ;;  %v14345_v54 = vadd.f32 %v2726_v31, %v1787_v61  ;;  %v1808_v55 = vadd.f32 %v12126_v16, %v17039_v32  ;;  %12356 = vmatprep.mubr.msk.bf16.mxu1 %vm569_vm2, %v3269_v26  ;;  %12486 = vmatprep.mubr.msk.bf16.mxu0 %vm569_vm2, %v4340_v46  ;;  %v17043_v46 = vld [vmem:[#allocation5_spill] sm:$0xff] }
 0x1da   : > { %v1799_v7 = vpop.f32.mrf.mxu1  ;;  %v2739_v14 = vpop.f32.mrf.mxu0  ;;  %v3270_v16 = vpack.c.bf16 %v10221_v4, %v10220_v34  ;;  %v4341_v26 = vpack.c.bf16 %v10414_v57, %v10413_v60  ;;  %v4342_v51 = vpack.c.bf16 %v10416_v18, %v10415_v41  ;;  %v10224_v4 = vld [vmem:[%s13172_s23 + $0x1c8] sm:$0xff]  ;;  %v10225_v60 = vld [vmem:[%s13172_s23 + $0x1d0] sm:$0xff]  ;;  %v10226_v41 = vld [vmem:[%s13172_s23 + $0x1e0] sm:$0xff] }
 0x1db   : > { %17038 = vst [vmem:[#allocation89_spill] sm:$0xff] %v14345_v54  ;;  %v14356_v39 = vadd.f32 %v12256_v20, %v1808_v55  ;;  %v1800_v58 = vadd.f32 %v1799_v7, %v17041_v33  ;;  %v3271_v54 = vpack.c.bf16 %v10223_v29, %v10222_v48  ;;  %v17045_v7 = vld [vmem:[#allocation6_spill] sm:$0xff]  ;;  %v17047_v48 = vld [vmem:[#allocation7_spill] sm:$0xff]  ;;  %v10418_v29 = vld [vmem:[%s13172_s23 + $0x1d1] sm:$0xff] }
 0x1dc   : > { %v12127_v31 = vpop.f32.mrf.mxu1  ;;  %v12257_v63 = vpop.f32.mrf.mxu0 }
 0x1dd   : > { %17040 = vst [vmem:[#allocation3_spill] sm:$0xff] %v14356_v39  ;;  %v14359_v61 = vadd.f32 %v2739_v14, %v1800_v58  ;;  %v1811_v32 = vadd.f32 %v12127_v31, %v17043_v46  ;;  %v10227_v31 = vld [vmem:[%s13172_s23 + $0x1e8] sm:$0xff] }
 0x1de   : > { %v1802_v19 = vpop.f32.mrf.mxu1  ;;  %v2742_v20 = vpop.f32.mrf.mxu0 }
 0x1df   : > { %17042 = vst [vmem:[#allocation4_spill] sm:$0xff] %v14359_v61  ;;  %v14362_v55 = vadd.f32 %v12257_v63, %v1811_v32  ;;  %v1803_v33 = vadd.f32 %v1802_v19, %v17045_v7  ;;  %v10417_v19 = vld [vmem:[%s13172_s23 + $0x1c9] sm:$0xff]  ;;  %v10419_v63 = vld [vmem:[%s13172_s23 + $0x1e1] sm:$0xff] }
 0x1e0   : > { %v12130_v39 = vpop.f32.mrf.mxu1  ;;  %v12260_v34 = vpop.f32.mrf.mxu0  ;;  %12357 = vmatmul.mubr.msk.bf16.gmra.mxu1 %vm569_vm2, %v3270_v16  ;;  %12487 = vmatmul.mubr.msk.bf16.gmra.mxu0 %vm569_vm2, %v4341_v26  ;;  %v10420_v16 = vld [vmem:[%s13172_s23 + $0x1e9] sm:$0xff] }
 0x1e1   : > { %17044 = vst [vmem:[#allocation5_spill] sm:$0xff] %v14362_v55  ;;  %v14369_v57 = vadd.f32 %v2742_v20, %v1803_v33  ;;  %v1824_v14 = vadd.f32 %v12130_v39, %v17047_v48  ;;  %12360 = vmatprep.mubr.msk.bf16.mxu1 %vm569_vm2, %v3271_v54  ;;  %12490 = vmatprep.mubr.msk.bf16.mxu0 %vm569_vm2, %v4342_v51  ;;  %v17049_v26 = vld [vmem:[#allocation8_spill] sm:$0xff]  ;;  %v17051_v51 = vld [vmem:[#allocation9_spill] sm:$0xff] }
 0x1e2   : > { %v1815_v18 = vpop.f32.mrf.mxu1  ;;  %v2755_v58 = vpop.f32.mrf.mxu0  ;;  %v3272_v39 = vpack.c.bf16 %v10225_v60, %v10224_v4  ;;  %v4343_v54 = vpack.c.bf16 %v10418_v29, %v10417_v19  ;;  %v4344_v55 = vpack.c.bf16 %v10420_v16, %v10419_v63  ;;  %v10228_v60 = vld [vmem:[%s13172_s23 + $0x1f0] sm:$0xff]  ;;  %v10229_v19 = vld [vmem:[%s13172_s23 + $0x1f8] sm:$0xff]  ;;  %v10230_v63 = vld [vmem:[%s13172_s23 + $0x208] sm:$0xff] }
 0x1e3   : > { %17046 = vst [vmem:[#allocation6_spill] sm:$0xff] %v14369_v57  ;;  %v14380_v46 = vadd.f32 %v12260_v34, %v1824_v14  ;;  %v1816_v32 = vadd.f32 %v1815_v18, %v17049_v26  ;;  %v3273_v57 = vpack.c.bf16 %v10227_v31, %v10226_v41  ;;  %v17053_v18 = vld [vmem:[#allocation10_spill] sm:$0xff]  ;;  %v17055_v41 = vld [vmem:[#allocation11_spill] sm:$0xff] }
 0x1e4   : > { %v12131_v20 = vpop.f32.mrf.mxu1  ;;  %v12261_v7 = vpop.f32.mrf.mxu0  ;;  %v10422_v31 = vld [vmem:[%s13172_s23 + $0x1f9] sm:$0xff] }
 0x1e5   : > { %17048 = vst [vmem:[#allocation7_spill] sm:$0xff] %v14380_v46  ;;  %v14383_v33 = vadd.f32 %v2755_v58, %v1816_v32  ;;  %v1827_v48 = vadd.f32 %v12131_v20, %v17051_v51  ;;  %v10231_v20 = vld [vmem:[%s13172_s23 + $0x210] sm:$0xff] }
 0x1e6   : > { %v1818_v61 = vpop.f32.mrf.mxu1  ;;  %v2758_v34 = vpop.f32.mrf.mxu0 }
 0x1e7   : > { %17050 = vst [vmem:[#allocation8_spill] sm:$0xff] %v14383_v33  ;;  %v14386_v14 = vadd.f32 %v12261_v7, %v1827_v48  ;;  %v1819_v26 = vadd.f32 %v1818_v61, %v17053_v18  ;;  %v10421_v61 = vld [vmem:[%s13172_s23 + $0x1f1] sm:$0xff]  ;;  %v10423_v7 = vld [vmem:[%s13172_s23 + $0x209] sm:$0xff] }
 0x1e8   : > { %v12134_v46 = vpop.f32.mrf.mxu1  ;;  %v12264_v4 = vpop.f32.mrf.mxu0  ;;  %12361 = vmatmul.mubr.msk.bf16.gmra.mxu1 %vm569_vm2, %v3272_v39  ;;  %12491 = vmatmul.mubr.msk.bf16.gmra.mxu0 %vm569_vm2, %v4343_v54  ;;  %v10424_v39 = vld [vmem:[%s13172_s23 + $0x211] sm:$0xff] }
 0x1e9   : > { %17052 = vst [vmem:[#allocation9_spill] sm:$0xff] %v14386_v14  ;;  %v14393_v29 = vadd.f32 %v2758_v34, %v1819_v26  ;;  %v1840_v58 = vadd.f32 %v12134_v46, %v17055_v41  ;;  %12364 = vmatprep.mubr.msk.bf16.mxu1 %vm569_vm2, %v3273_v57  ;;  %12494 = vmatprep.mubr.msk.bf16.mxu0 %vm569_vm2, %v4344_v55  ;;  %v17057_v54 = vld [vmem:[#allocation12_spill] sm:$0xff]  ;;  %v17059_v55 = vld [vmem:[#allocation13_spill] sm:$0xff] }
 0x1ea   : > { %v1831_v16 = vpop.f32.mrf.mxu1  ;;  %v2771_v32 = vpop.f32.mrf.mxu0  ;;  %v3274_v46 = vpack.c.bf16 %v10229_v19, %v10228_v60  ;;  %v4345_v57 = vpack.c.bf16 %v10422_v31, %v10421_v61  ;;  %v4346_v14 = vpack.c.bf16 %v10424_v39, %v10423_v7  ;;  %v10232_v19 = vld [vmem:[%s13172_s23 + $0x218] sm:$0xff]  ;;  %v10233_v61 = vld [vmem:[%s13172_s23 + $0x220] sm:$0xff]  ;;  %v10234_v7 = vld [vmem:[%s13172_s23 + $0x230] sm:$0xff] }
 0x1eb   : > { %17054 = vst [vmem:[#allocation10_spill] sm:$0xff] %v14393_v29  ;;  %v14404_v51 = vadd.f32 %v12264_v4, %v1840_v58  ;;  %v1832_v48 = vadd.f32 %v1831_v16, %v17057_v54  ;;  %v3275_v29 = vpack.c.bf16 %v10231_v20, %v10230_v63  ;;  %v17061_v16 = vld [vmem:[#allocation14_spill] sm:$0xff]  ;;  %v17063_v63 = vld [vmem:[#allocation15_spill] sm:$0xff] }
 0x1ec   : > { %v12135_v34 = vpop.f32.mrf.mxu1  ;;  %v12265_v18 = vpop.f32.mrf.mxu0  ;;  %v10426_v20 = vld [vmem:[%s13172_s23 + $0x221] sm:$0xff] }
 0x1ed   : > { %17056 = vst [vmem:[#allocation11_spill] sm:$0xff] %v14404_v51  ;;  %v14407_v26 = vadd.f32 %v2771_v32, %v1832_v48  ;;  %v1843_v41 = vadd.f32 %v12135_v34, %v17059_v55  ;;  %v10235_v34 = vld [vmem:[%s13172_s23 + $0x238] sm:$0xff] }
 0x1ee   : > { %v1834_v33 = vpop.f32.mrf.mxu1  ;;  %v2774_v4 = vpop.f32.mrf.mxu0 }
 0x1ef   : > { %17058 = vst [vmem:[#allocation12_spill] sm:$0xff] %v14407_v26  ;;  %v14410_v58 = vadd.f32 %v12265_v18, %v1843_v41  ;;  %v1835_v54 = vadd.f32 %v1834_v33, %v17061_v16  ;;  %v10425_v33 = vld [vmem:[%s13172_s23 + $0x219] sm:$0xff]  ;;  %v10427_v18 = vld [vmem:[%s13172_s23 + $0x231] sm:$0xff] }
 0x1f0   : > { %v12138_v51 = vpop.f32.mrf.mxu1  ;;  %v12268_v60 = vpop.f32.mrf.mxu0  ;;  %12365 = vmatmul.mubr.msk.bf16.gmra.mxu1 %vm569_vm2, %v3274_v46  ;;  %12495 = vmatmul.mubr.msk.bf16.gmra.mxu0 %vm569_vm2, %v4345_v57  ;;  %v10428_v46 = vld [vmem:[%s13172_s23 + $0x239] sm:$0xff]  ;;  %v17065_v57 = vld [vmem:[#allocation16_spill] sm:$0xff] }
 0x1f1   : > { %17060 = vst [vmem:[#allocation13_spill] sm:$0xff] %v14410_v58  ;;  %v14417_v31 = vadd.f32 %v2774_v4, %v1835_v54  ;;  %v1856_v32 = vadd.f32 %v12138_v51, %v17063_v63  ;;  %12368 = vmatprep.mubr.msk.bf16.mxu1 %vm569_vm2, %v3275_v29  ;;  %12498 = vmatprep.mubr.msk.bf16.mxu0 %vm569_vm2, %v4346_v14  ;;  %v17067_v14 = vld [vmem:[#allocation17_spill] sm:$0xff] }
 0x1f2   : > { %v1847_v39 = vpop.f32.mrf.mxu1  ;;  %v2787_v48 = vpop.f32.mrf.mxu0  ;;  %v3276_v51 = vpack.c.bf16 %v10233_v61, %v10232_v19  ;;  %v4347_v29 = vpack.c.bf16 %v10426_v20, %v10425_v33  ;;  %v4348_v58 = vpack.c.bf16 %v10428_v46, %v10427_v18  ;;  %v10236_v61 = vld [vmem:[%s13172_s23 + $0x240] sm:$0xff]  ;;  %v10237_v33 = vld [vmem:[%s13172_s23 + $0x248] sm:$0xff]  ;;  %v10238_v18 = vld [vmem:[%s13172_s23 + $0x258] sm:$0xff] }
 0x1f3   : > { %17062 = vst [vmem:[#allocation14_spill] sm:$0xff] %v14417_v31  ;;  %v14428_v55 = vadd.f32 %v12268_v60, %v1856_v32  ;;  %v1848_v41 = vadd.f32 %v1847_v39, %v17065_v57  ;;  %v3277_v31 = vpack.c.bf16 %v10235_v34, %v10234_v7  ;;  %v17069_v39 = vld [vmem:[#allocation18_spill] sm:$0xff]  ;;  %v17071_v7 = vld [vmem:[#allocation19_spill] sm:$0xff] }
 0x1f4   : > { %v12139_v4 = vpop.f32.mrf.mxu1  ;;  %v12269_v16 = vpop.f32.mrf.mxu0  ;;  %v10430_v34 = vld [vmem:[%s13172_s23 + $0x249] sm:$0xff] }
 0x1f5   : > { %17064 = vst [vmem:[#allocation15_spill] sm:$0xff] %v14428_v55  ;;  %v14431_v54 = vadd.f32 %v2787_v48, %v1848_v41  ;;  %v1859_v63 = vadd.f32 %v12139_v4, %v17067_v14  ;;  %v10239_v4 = vld [vmem:[%s13172_s23 + $0x260] sm:$0xff] }
 0x1f6   : > { %v1850_v26 = vpop.f32.mrf.mxu1  ;;  %v2790_v60 = vpop.f32.mrf.mxu0 }
 0x1f7   : > { %17066 = vst [vmem:[#allocation16_spill] sm:$0xff] %v14431_v54  ;;  %v14434_v32 = vadd.f32 %v12269_v16, %v1859_v63  ;;  %v1851_v57 = vadd.f32 %v1850_v26, %v17069_v39  ;;  %v10429_v26 = vld [vmem:[%s13172_s23 + $0x241] sm:$0xff]  ;;  %v10431_v16 = vld [vmem:[%s13172_s23 + $0x259] sm:$0xff] }
 0x1f8   : > { %v12142_v55 = vpop.f32.mrf.mxu1  ;;  %v12272_v19 = vpop.f32.mrf.mxu0  ;;  %12369 = vmatmul.mubr.msk.bf16.gmra.mxu1 %vm569_vm2, %v3276_v51  ;;  %12499 = vmatmul.mubr.msk.bf16.gmra.mxu0 %vm569_vm2, %v4347_v29  ;;  %v10432_v51 = vld [vmem:[%s13172_s23 + $0x261] sm:$0xff]  ;;  %v17073_v29 = vld [vmem:[#allocation20_spill] sm:$0xff] }
 0x1f9   : > { %17068 = vst [vmem:[#allocation17_spill] sm:$0xff] %v14434_v32  ;;  %v14441_v20 = vadd.f32 %v2790_v60, %v1851_v57  ;;  %v1872_v48 = vadd.f32 %v12142_v55, %v17071_v7  ;;  %12372 = vmatprep.mubr.msk.bf16.mxu1 %vm569_vm2, %v3277_v31  ;;  %12502 = vmatprep.mubr.msk.bf16.mxu0 %vm569_vm2, %v4348_v58  ;;  %v17075_v58 = vld [vmem:[#allocation21_spill] sm:$0xff] }
 0x1fa   : > { %v1863_v46 = vpop.f32.mrf.mxu1  ;;  %v2803_v41 = vpop.f32.mrf.mxu0  ;;  %v3278_v55 = vpack.c.bf16 %v10237_v33, %v10236_v61  ;;  %v4349_v31 = vpack.c.bf16 %v10430_v34, %v10429_v26  ;;  %v4350_v32 = vpack.c.bf16 %v10432_v51, %v10431_v16  ;;  %v10240_v33 = vld [vmem:[%s13172_s23 + $0x268] sm:$0xff]  ;;  %v10241_v26 = vld [vmem:[%s13172_s23 + $0x270] sm:$0xff]  ;;  %v10242_v16 = vld [vmem:[%s13172_s23 + $0x280] sm:$0xff] }
 0x1fb   : > { %17070 = vst [vmem:[#allocation18_spill] sm:$0xff] %v14441_v20  ;;  %v14452_v14 = vadd.f32 %v12272_v19, %v1872_v48  ;;  %v1864_v63 = vadd.f32 %v1863_v46, %v17073_v29  ;;  %v3279_v20 = vpack.c.bf16 %v10239_v4, %v10238_v18  ;;  %v17077_v46 = vld [vmem:[#allocation22_spill] sm:$0xff]  ;;  %v17079_v18 = vld [vmem:[#allocation23_spill] sm:$0xff]  ;;  %v10434_v4 = vld [vmem:[%s13172_s23 + $0x271] sm:$0xff] }
 0x1fc   : > { %v12143_v60 = vpop.f32.mrf.mxu1  ;;  %v12273_v39 = vpop.f32.mrf.mxu0 }
 0x1fd   : > { %17072 = vst [vmem:[#allocation19_spill] sm:$0xff] %v14452_v14  ;;  %v14455_v57 = vadd.f32 %v2803_v41, %v1864_v63  ;;  %v1875_v7 = vadd.f32 %v12143_v60, %v17075_v58  ;;  %v10243_v60 = vld [vmem:[%s13172_s23 + $0x288] sm:$0xff] }
 0x1fe   : > { %v1866_v54 = vpop.f32.mrf.mxu1  ;;  %v2806_v19 = vpop.f32.mrf.mxu0 }
 0x1ff   : > { %17074 = vst [vmem:[#allocation20_spill] sm:$0xff] %v14455_v57  ;;  %v14458_v48 = vadd.f32 %v12273_v39, %v1875_v7  ;;  %v1867_v29 = vadd.f32 %v1866_v54, %v17077_v46  ;;  %v10433_v54 = vld [vmem:[%s13172_s23 + $0x269] sm:$0xff]  ;;  %v10435_v39 = vld [vmem:[%s13172_s23 + $0x281] sm:$0xff] }
 0x200   : > { %v12146_v14 = vpop.f32.mrf.mxu1  ;;  %v12276_v61 = vpop.f32.mrf.mxu0  ;;  %12373 = vmatmul.mubr.msk.bf16.gmra.mxu1 %vm569_vm2, %v3278_v55  ;;  %12503 = vmatmul.mubr.msk.bf16.gmra.mxu0 %vm569_vm2, %v4349_v31  ;;  %v10436_v55 = vld [vmem:[%s13172_s23 + $0x289] sm:$0xff] }
 0x201   : > { %17076 = vst [vmem:[#allocation21_spill] sm:$0xff] %v14458_v48  ;;  %v14465_v34 = vadd.f32 %v2806_v19, %v1867_v29  ;;  %v1888_v41 = vadd.f32 %v12146_v14, %v17079_v18  ;;  %12376 = vmatprep.mubr.msk.bf16.mxu1 %vm569_vm2, %v3279_v20  ;;  %12506 = vmatprep.mubr.msk.bf16.mxu0 %vm569_vm2, %v4350_v32  ;;  %v17081_v31 = vld [vmem:[#allocation24_spill] sm:$0xff]  ;;  %v17083_v32 = vld [vmem:[#allocation25_spill] sm:$0xff] }
 0x202   : > { %v1879_v51 = vpop.f32.mrf.mxu1  ;;  %v2819_v63 = vpop.f32.mrf.mxu0  ;;  %v3280_v14 = vpack.c.bf16 %v10241_v26, %v10240_v33  ;;  %v4351_v20 = vpack.c.bf16 %v10434_v4, %v10433_v54  ;;  %v4352_v48 = vpack.c.bf16 %v10436_v55, %v10435_v39  ;;  %v10244_v26 = vld [vmem:[%s13172_s23 + $0x290] sm:$0xff]  ;;  %v10245_v54 = vld [vmem:[%s13172_s23 + $0x298] sm:$0xff]  ;;  %v10246_v39 = vld [vmem:[%s13172_s23 + $0x2a8] sm:$0xff] }
 0x203   : > { %17078 = vst [vmem:[#allocation22_spill] sm:$0xff] %v14465_v34  ;;  %v14476_v58 = vadd.f32 %v12276_v61, %v1888_v41  ;;  %v1880_v7 = vadd.f32 %v1879_v51, %v17081_v31  ;;  %v3281_v34 = vpack.c.bf16 %v10243_v60, %v10242_v16  ;;  %v17085_v51 = vld [vmem:[#allocation26_spill] sm:$0xff]  ;;  %v17087_v16 = vld [vmem:[#allocation27_spill] sm:$0xff] }
 0x204   : > { %v12147_v19 = vpop.f32.mrf.mxu1  ;;  %v12277_v46 = vpop.f32.mrf.mxu0  ;;  %v10438_v60 = vld [vmem:[%s13172_s23 + $0x299] sm:$0xff] }
 0x205   : > { %17080 = vst [vmem:[#allocation23_spill] sm:$0xff] %v14476_v58  ;;  %v14479_v29 = vadd.f32 %v2819_v63, %v1880_v7  ;;  %v1891_v18 = vadd.f32 %v12147_v19, %v17083_v32  ;;  %v10247_v19 = vld [vmem:[%s13172_s23 + $0x2b0] sm:$0xff] }
 0x206   : > { %v1882_v57 = vpop.f32.mrf.mxu1  ;;  %v2822_v61 = vpop.f32.mrf.mxu0 }
 0x207   : > { %17082 = vst [vmem:[#allocation24_spill] sm:$0xff] %v14479_v29  ;;  %v14482_v41 = vadd.f32 %v12277_v46, %v1891_v18  ;;  %v1883_v31 = vadd.f32 %v1882_v57, %v17085_v51  ;;  %v10437_v57 = vld [vmem:[%s13172_s23 + $0x291] sm:$0xff]  ;;  %v10439_v46 = vld [vmem:[%s13172_s23 + $0x2a9] sm:$0xff] }
 0x208   : > { %v12150_v58 = vpop.f32.mrf.mxu1  ;;  %v12280_v33 = vpop.f32.mrf.mxu0  ;;  %12377 = vmatmul.mubr.msk.bf16.gmra.mxu1 %vm569_vm2, %v3280_v14  ;;  %12507 = vmatmul.mubr.msk.bf16.gmra.mxu0 %vm569_vm2, %v4351_v20  ;;  %v10440_v14 = vld [vmem:[%s13172_s23 + $0x2b1] sm:$0xff] }
 0x209   : > { %17084 = vst [vmem:[#allocation25_spill] sm:$0xff] %v14482_v41  ;;  %v14489_v4 = vadd.f32 %v2822_v61, %v1883_v31  ;;  %v1904_v63 = vadd.f32 %v12150_v58, %v17087_v16  ;;  %12380 = vmatprep.mubr.msk.bf16.mxu1 %vm569_vm2, %v3281_v34  ;;  %12510 = vmatprep.mubr.msk.bf16.mxu0 %vm569_vm2, %v4352_v48  ;;  %v17089_v20 = vld [vmem:[#allocation28_spill] sm:$0xff]  ;;  %v17091_v48 = vld [vmem:[#allocation29_spill] sm:$0xff] }
 0x20a   : > { %v1895_v55 = vpop.f32.mrf.mxu1  ;;  %v2835_v7 = vpop.f32.mrf.mxu0  ;;  %v3282_v58 = vpack.c.bf16 %v10245_v54, %v10244_v26  ;;  %v4353_v34 = vpack.c.bf16 %v10438_v60, %v10437_v57  ;;  %v4354_v41 = vpack.c.bf16 %v10440_v14, %v10439_v46  ;;  %v10248_v54 = vld [vmem:[%s13172_s23 + $0x2b8] sm:$0xff]  ;;  %v10249_v57 = vld [vmem:[%s13172_s23 + $0x2c0] sm:$0xff]  ;;  %v10250_v46 = vld [vmem:[%s13172_s23 + $0x2d0] sm:$0xff] }
 0x20b   : > { %17086 = vst [vmem:[#allocation26_spill] sm:$0xff] %v14489_v4  ;;  %v14500_v32 = vadd.f32 %v12280_v33, %v1904_v63  ;;  %v1896_v18 = vadd.f32 %v1895_v55, %v17089_v20  ;;  %v3283_v4 = vpack.c.bf16 %v10247_v19, %v10246_v39  ;;  %v17093_v55 = vld [vmem:[#allocation30_spill] sm:$0xff]  ;;  %v17095_v39 = vld [vmem:[#allocation31_spill] sm:$0xff] }
 0x20c   : > { %v12151_v61 = vpop.f32.mrf.mxu1  ;;  %v12281_v51 = vpop.f32.mrf.mxu0  ;;  %v10442_v19 = vld [vmem:[%s13172_s23 + $0x2c1] sm:$0xff] }
 0x20d   : > { %17088 = vst [vmem:[#allocation27_spill] sm:$0xff] %v14500_v32  ;;  %v14503_v31 = vadd.f32 %v2835_v7, %v1896_v18  ;;  %v1907_v16 = vadd.f32 %v12151_v61, %v17091_v48  ;;  %v10251_v61 = vld [vmem:[%s13172_s23 + $0x2d8] sm:$0xff]  ;;  %v17097_v48 = vld [vmem:[#allocation32_spill] sm:$0xff] }
 0x20e   : > { %v1898_v29 = vpop.f32.mrf.mxu1  ;;  %v2838_v33 = vpop.f32.mrf.mxu0 }
 0x20f   : > { %17090 = vst [vmem:[#allocation28_spill] sm:$0xff] %v14503_v31  ;;  %v14506_v63 = vadd.f32 %v12281_v51, %v1907_v16  ;;  %v1899_v20 = vadd.f32 %v1898_v29, %v17093_v55  ;;  %v10441_v29 = vld [vmem:[%s13172_s23 + $0x2b9] sm:$0xff]  ;;  %v10443_v51 = vld [vmem:[%s13172_s23 + $0x2d1] sm:$0xff]  ;;  %v3284_v55 = vpack.c.bf16 %v10249_v57, %v10248_v54  ;;  %v10253_v57 = vld [vmem:[%s13172_s23 + $0x2e8] sm:$0xff] }
 0x210   : > { %v12154_v32 = vpop.f32.mrf.mxu1  ;;  %v12284_v26 = vpop.f32.mrf.mxu0  ;;  %12381 = vmatmul.mubr.msk.bf16.gmra.mxu1 %vm569_vm2, %v3282_v58  ;;  %12511 = vmatmul.mubr.msk.bf16.gmra.mxu0 %vm569_vm2, %v4353_v34  ;;  %v10444_v58 = vld [vmem:[%s13172_s23 + $0x2d9] sm:$0xff] }
 0x211   : > { %17092 = vst [vmem:[#allocation29_spill] sm:$0xff] %v14506_v63  ;;  %v14513_v60 = vadd.f32 %v2838_v33, %v1899_v20  ;;  %v1920_v7 = vadd.f32 %v12154_v32, %v17095_v39  ;;  %12384 = vmatprep.mubr.msk.bf16.mxu1 %vm569_vm2, %v3283_v4  ;;  %12514 = vmatprep.mubr.msk.bf16.mxu0 %vm569_vm2, %v4354_v41  ;;  %v17099_v20 = vld [vmem:[#allocation33_spill] sm:$0xff]  ;;  %v10252_v54 = vld [vmem:[%s13172_s23 + $0x2e0] sm:$0xff] }
 0x212   : > { %v1911_v14 = vpop.f32.mrf.mxu1  ;;  %v2851_v18 = vpop.f32.mrf.mxu0  ;;  %v4355_v4 = vpack.c.bf16 %v10442_v19, %v10441_v29  ;;  %v4356_v63 = vpack.c.bf16 %v10444_v58, %v10443_v51  ;;  %v17103_v58 = vld [vmem:[#allocation35_spill] sm:$0xff] }
 0x213   : > { %17094 = vst [vmem:[#allocation30_spill] sm:$0xff] %v14513_v60  ;;  %v14524_v34 = vadd.f32 %v12284_v26, %v1920_v7  ;;  %v1912_v16 = vadd.f32 %v1911_v14, %v17097_v48  ;;  %v3285_v60 = vpack.c.bf16 %v10251_v61, %v10250_v46  ;;  %v17101_v7 = vld [vmem:[#allocation34_spill] sm:$0xff]  ;;  %v10446_v46 = vld [vmem:[%s13172_s23 + $0x2e9] sm:$0xff]  ;;  %v10254_v61 = vld [vmem:[%s13172_s23 + $0x2f8] sm:$0xff] }
 0x214   : > { %v12155_v33 = vpop.f32.mrf.mxu1  ;;  %v12285_v32 = vpop.f32.mrf.mxu0 }
 0x215   : > { %17096 = vst [vmem:[#allocation31_spill] sm:$0xff] %v14524_v34  ;;  %v14527_v41 = vadd.f32 %v2851_v18, %v1912_v16  ;;  %v1923_v39 = vadd.f32 %v12155_v33, %v17099_v20  ;;  %v10445_v18 = vld [vmem:[%s13172_s23 + $0x2e1] sm:$0xff]  ;;  %v10447_v16 = vld [vmem:[%s13172_s23 + $0x2f9] sm:$0xff] }
 0x216   : > { %v1914_v31 = vpop.f32.mrf.mxu1  ;;  %v2854_v40 = vpop.f32.mrf.mxu0  ;;  %v10448_v33 = vld [vmem:[%s13172_s23 + $0x301] sm:$0xff] }
 0x217   : > { %17098 = vst [vmem:[#allocation32_spill] sm:$0xff] %v14527_v41  ;;  %v14530_v26 = vadd.f32 %v12285_v32, %v1923_v39  ;;  %v1915_v14 = vadd.f32 %v1914_v31, %v17101_v7  ;;  %v10255_v31 = vld [vmem:[%s13172_s23 + $0x300] sm:$0xff] }
 0x218   : > { %v12158_v29 = vpop.f32.mrf.mxu1  ;;  %v12288_v19 = vpop.f32.mrf.mxu0  ;;  %12385 = vmatmul.mubr.msk.bf16.gmra.mxu1 %vm569_vm2, %v3284_v55  ;;  %12515 = vmatmul.mubr.msk.bf16.gmra.mxu0 %vm569_vm2, %v4355_v4  ;;  %v17105_v55 = vld [vmem:[#allocation36_spill] sm:$0xff]  ;;  %v17108_v34 = vld [vmem:[#allocation2_spill] sm:$0xff] }
 0x219   : > { %17100 = vst [vmem:[#allocation33_spill] sm:$0xff] %v14530_v26  ;;  %v14540_v51 = vadd.f32 %v2854_v40, %v1915_v14  ;;  %v1936_v48 = vadd.f32 %v12158_v29, %v17103_v58  ;;  %12388 = vmatprep.mubr.msk.bf16.mxu1 %vm569_vm2, %v3285_v60  ;;  %12518 = vmatprep.mubr.msk.bf16.mxu0 %vm569_vm2, %v4356_v63  ;;  %v13116_v40 = vld [vmem:[%s16893_s1 + $0x8] ss:$0 sps:$4 sm:$0xcc]   ;;  %v17107_v26 = vld [vmem:[#allocation37_spill] sm:$0xff] }
 0x21a   : > { %v1927_v32 = vpop.f32.mrf.mxu1  ;;  %v2867_v20 = vpop.f32.mrf.mxu0  ;;  %v3286_v29 = vpack.c.bf16 %v10253_v57, %v10252_v54  ;;  %v4357_v58 = vpack.c.bf16 %v10446_v46, %v10445_v18  ;;  %v3287_v60 = vpack.c.bf16 %v10255_v31, %v10254_v61  ;;  %v17110_v18 = vld [vmem:[#allocation38_spill] sm:$0xff] }
 0x21b   : > { %17102 = vst [vmem:[#allocation34_spill] sm:$0xff] %v14540_v51  ;;  %v14548_v39 = vadd.f32 %v12288_v19, %v1936_v48  ;;  %v1928_v4 = vadd.f32 %v1927_v32, %v17105_v55  ;;  %v4358_v51 = vpack.c.bf16 %v10448_v33, %v10447_v16  ;;  %v7597_v19 = vshrl.u32 %v13116_v40, 16  ;;  %v8664_v32 = vld [vmem:[%s16893_s1 + $0xc] sm:$0x3] }
 0x21c   : > { %v12159_v7 = vpop.f32.mrf.mxu1  ;;  %v12289_v14 = vpop.f32.mrf.mxu0  ;;  %v7600_v48 = vshll.u32 %v13116_v40, 16  ;;  %v14561_v54 = vand.u32 %v8664_v32, %v17108_v34  ;;  %v10256_v33 = vld [vmem:[%s13172_s23 + $0x308] sm:$0xff] }
 0x21d   : > { %17104 = vst [vmem:[#allocation35_spill] sm:$0xff] %v14548_v39  ;;  %v14554_v63 = vadd.f32 %v2867_v20, %v1928_v4  ;;  %v1939_v41 = vadd.f32 %v12159_v7, %v17107_v26  ;;  %v7599_v26 = vrot.slane %v7597_v19, 2  ;;  %v10257_v20 = vld [vmem:[%s13172_s23 + $0x310] sm:$0xff]  ;;  %v10258_v19 = vld [vmem:[%s13172_s23 + $0x320] sm:$0xff] }
 0x21e   : > { %v1930_v55 = vpop.f32.mrf.mxu1  ;;  %v2870_v39 = vpop.f32.mrf.mxu0  ;;  %v7602_v61 = vrot.slane %v7600_v48, 3  ;;  %v10449_v7 = vld [vmem:[%s13172_s23 + $0x309] sm:$0xff]  ;;  %12968 = vmatprep.subr.bf16.mxu0 %v14561_v54 }
 0x21f   : > { %17106 = vst [vmem:[#allocation36_spill] sm:$0xff] %v14554_v63  ;;  %v14563_v57 = vadd.f32 %v12289_v14, %v1939_v41  ;;  %v1931_v46 = vadd.f32 %v1930_v55, %v17110_v18  ;;  %v17112_v41 = vld [vmem:[#allocation39_spill] sm:$0xff]  ;;  %v10450_v14 = vld [vmem:[%s13172_s23 + $0x311] sm:$0xff] }
 0x220   : > { %v12162_v31 = vpop.f32.mrf.mxu1  ;;  %v12292_v16 = vpop.f32.mrf.mxu0  ;;  %12389 = vmatmul.mubr.msk.bf16.gmra.mxu1 %vm569_vm2, %v3286_v29  ;;  %12519 = vmatmul.mubr.msk.bf16.gmra.mxu0 %vm569_vm2, %v4357_v58  ;;  %v7603_v48 = vor.u32 %v7602_v61, %v7599_v26  ;;  %v10259_v29 = vld [vmem:[%s13172_s23 + $0x328] sm:$0xff]  ;;  %v4359_v26 = vpack.c.bf16 %v10450_v14, %v10449_v7  ;;  %v17119_v14 = vld [vmem:[#allocation44_spill] sm:$0xff] }
 0x221   : > { %17109 = vst [vmem:[#allocation37_spill] sm:$0xff] %v14563_v57  ;;  %v14570_v4 = vadd.f32 %v2870_v39, %v1931_v46  ;;  %v1952_v40 = vadd.f32 %v12162_v31, %v17112_v41  ;;  %12392 = vmatprep.mubr.msk.bf16.mxu1 %vm569_vm2, %v3287_v60  ;;  %12522 = vmatprep.mubr.msk.bf16.mxu0 %vm569_vm2, %v4358_v51  ;;  %v10451_v18 = vld [vmem:[%s13172_s23 + $0x321] sm:$0xff]  ;;  %v10452_v57 = vld [vmem:[%s13172_s23 + $0x329] sm:$0xff] }
 0x222   : > { %v1943_v32 = vpop.f32.mrf.mxu1  ;;  %v2883_v55 = vpop.f32.mrf.mxu0  ;;  %v17113_v39 = vld [vmem:[#allocation40_spill] sm:$0xff]  ;;  %v14586_v31 = vand.u32 %v7603_v48, %v17108_v34  ;;  %v3288_v41 = vpack.c.bf16 %v10257_v20, %v10256_v33  ;;  %v3289_v28 = vpack.c.bf16 %v10259_v29, %v10258_v19  ;;  %v4360_v8 = vpack.c.bf16 %v10452_v57, %v10451_v18  ;;  %v17117_v48 = vld [vmem:[#allocation42_spill] sm:$0xff]  ;;  %v10262_v29 = vld [vmem:[%s13172_s23 + $0x348] sm:$0xff] }
 0x223   : > { %17111 = vst [vmem:[#allocation2_spill] sm:$0xff] %v14570_v4  ;;  %v14582_v58 = vadd.f32 %v12292_v16, %v1952_v40  ;;  %v1944_v46 = vadd.f32 %v1943_v32, %v17113_v39  ;;  %v17115_v4 = vld [vmem:[#allocation41_spill] sm:$0xff]  ;;  %v10260_v57 = vld [vmem:[%s13172_s23 + $0x330] sm:$0xff] }
 0x224   : > { %v12163_v60 = vpop.f32.mrf.mxu1  ;;  %v12293_v51 = vpop.f32.mrf.mxu0  ;;  %12838 = vmatprep.subr.bf16.mxu1 %v14586_v31 }
 0x225   : > { %v14588_v61 = vadd.f32 %v2883_v55, %v1944_v46  ;;  %v1955_v63 = vadd.f32 %v12163_v60, %v17115_v4  ;;  %v10261_v4 = vld [vmem:[%s13172_s23 + $0x338] sm:$0xff]  ;;  %v10263_v46 = vld [vmem:[%s13172_s23 + $0x350] sm:$0xff] }
 0x226   : > { %v1946_v16 = vpop.f32.mrf.mxu1  ;;  %v2886_v34 = vpop.f32.mrf.mxu0  ;;  %v10454_v55 = vld [vmem:[%s13172_s23 + $0x339] sm:$0xff]  ;;  %v10455_v60 = vld [vmem:[%s13172_s23 + $0x349] sm:$0xff] }
 0x227   : > { %17114 = vst [vmem:[#allocation38_spill] sm:$0xff] %v14588_v61  ;;  %v14592_v40 = vadd.f32 %v12293_v51, %v1955_v63  ;;  %v1947_v32 = vadd.f32 %v1946_v16, %v17117_v48  ;;  %v10453_v63 = vld [vmem:[%s13172_s23 + $0x331] sm:$0xff] }
 0x228   : > { %v12166_v33 = vpop.f32.mrf.mxu1  ;;  %v12296_v20 = vpop.f32.mrf.mxu0  ;;  %12393 = vmatmul.mubr.msk.bf16.gmra.mxu1 %vm569_vm2, %v3288_v41  ;;  %12523 = vmatmul.mubr.msk.bf16.gmra.mxu0 %vm569_vm2, %v4359_v26  ;;  %v10456_v51 = vld [vmem:[%s13172_s23 + $0x351] sm:$0xff]  ;;  %v17121_v26 = vld [vmem:[#allocation46_spill] sm:$0xff] }
 0x229   : > { %17116 = vst [vmem:[#allocation39_spill] sm:$0xff] %v14592_v40  ;;  %v14599_v7 = vadd.f32 %v2886_v34, %v1947_v32  ;;  %v1968_v19 = vadd.f32 %v12166_v33, %v17119_v14  ;;  %12396 = vmatprep.mubr.msk.bf16.mxu1 %vm569_vm2, %v3289_v28  ;;  %12526 = vmatprep.mubr.msk.bf16.mxu0 %vm569_vm2, %v4360_v8  ;;  %v17123_v8 = vld [vmem:[#allocation48_spill] sm:$0xff] }
 0x22a   : > { %v1959_v18 = vpop.f32.mrf.mxu1  ;;  %v2899_v39 = vpop.f32.mrf.mxu0  ;;  %v3290_v32 = vpack.c.bf16 %v10261_v4, %v10260_v57  ;;  %v4361_v28 = vpack.c.bf16 %v10454_v55, %v10453_v63  ;;  %v4362_v40 = vpack.c.bf16 %v10456_v51, %v10455_v60  ;;  %v10264_v4 = vld [vmem:[%s13172_s23 + $0x358] sm:$0xff]  ;;  %v10265_v63 = vld [vmem:[%s13172_s23 + $0x360] sm:$0xff]  ;;  %v10266_v60 = vld [vmem:[%s13172_s23 + $0x370] sm:$0xff] }
 0x22b   : > { %17118 = vst [vmem:[#allocation40_spill] sm:$0xff] %v14599_v7  ;;  %v14610_v41 = vadd.f32 %v12296_v20, %v1968_v19  ;;  %v1960_v16 = vadd.f32 %v1959_v18, %v17121_v26  ;;  %v3291_v7 = vpack.c.bf16 %v10263_v46, %v10262_v29  ;;  %v17125_v18 = vld [vmem:[#allocation50_spill] sm:$0xff]  ;;  %v17127_v29 = vld [vmem:[#allocation52_spill] sm:$0xff] }
 0x22c   : > { %v12167_v34 = vpop.f32.mrf.mxu1  ;;  %v12297_v48 = vpop.f32.mrf.mxu0  ;;  %v10458_v46 = vld [vmem:[%s13172_s23 + $0x361] sm:$0xff] }
 0x22d   : > { %17120 = vst [vmem:[#allocation41_spill] sm:$0xff] %v14610_v41  ;;  %v14613_v33 = vadd.f32 %v2899_v39, %v1960_v16  ;;  %v1971_v14 = vadd.f32 %v12167_v34, %v17123_v8  ;;  %v10267_v34 = vld [vmem:[%s13172_s23 + $0x378] sm:$0xff] }
 0x22e   : > { %v1962_v61 = vpop.f32.mrf.mxu1  ;;  %v2902_v20 = vpop.f32.mrf.mxu0 }
 0x22f   : > { %17122 = vst [vmem:[#allocation42_spill] sm:$0xff] %v14613_v33  ;;  %v14616_v19 = vadd.f32 %v12297_v48, %v1971_v14  ;;  %v1963_v26 = vadd.f32 %v1962_v61, %v17125_v18  ;;  %v10457_v61 = vld [vmem:[%s13172_s23 + $0x359] sm:$0xff]  ;;  %v10459_v48 = vld [vmem:[%s13172_s23 + $0x371] sm:$0xff] }
 0x230   : > { %v12170_v41 = vpop.f32.mrf.mxu1  ;;  %v12300_v57 = vpop.f32.mrf.mxu0  ;;  %12397 = vmatmul.mubr.msk.bf16.gmra.mxu1 %vm569_vm2, %v3290_v32  ;;  %12527 = vmatmul.mubr.msk.bf16.gmra.mxu0 %vm569_vm2, %v4361_v28  ;;  %v10460_v32 = vld [vmem:[%s13172_s23 + $0x379] sm:$0xff] }
 0x231   : > { %17124 = vst [vmem:[#allocation44_spill] sm:$0xff] %v14616_v19  ;;  %v14623_v55 = vadd.f32 %v2902_v20, %v1963_v26  ;;  %v1984_v39 = vadd.f32 %v12170_v41, %v17127_v29  ;;  %12400 = vmatprep.mubr.msk.bf16.mxu1 %vm569_vm2, %v3291_v7  ;;  %12530 = vmatprep.mubr.msk.bf16.mxu0 %vm569_vm2, %v4362_v40  ;;  %v17129_v28 = vld [vmem:[#allocation54_spill] sm:$0xff]  ;;  %v17131_v40 = vld [vmem:[#allocation56_spill] sm:$0xff] }
 0x232   : > { %v1975_v51 = vpop.f32.mrf.mxu1  ;;  %v2915_v16 = vpop.f32.mrf.mxu0  ;;  %v3292_v41 = vpack.c.bf16 %v10265_v63, %v10264_v4  ;;  %v4363_v7 = vpack.c.bf16 %v10458_v46, %v10457_v61  ;;  %v4364_v19 = vpack.c.bf16 %v10460_v32, %v10459_v48  ;;  %v10268_v63 = vld [vmem:[%s13172_s23 + $0x380] sm:$0xff]  ;;  %v10269_v61 = vld [vmem:[%s13172_s23 + $0x388] sm:$0xff]  ;;  %v10270_v48 = vld [vmem:[%s13172_s23 + $0x398] sm:$0xff] }
 0x233   : > { %17126 = vst [vmem:[#allocation46_spill] sm:$0xff] %v14623_v55  ;;  %v14634_v8 = vadd.f32 %v12300_v57, %v1984_v39  ;;  %v1976_v14 = vadd.f32 %v1975_v51, %v17129_v28  ;;  %v3293_v55 = vpack.c.bf16 %v10267_v34, %v10266_v60  ;;  %v17133_v51 = vld [vmem:[#allocation58_spill] sm:$0xff]  ;;  %v17135_v60 = vld [vmem:[#allocation60_spill] sm:$0xff] }
 0x234   : > { %v12171_v20 = vpop.f32.mrf.mxu1  ;;  %v12301_v18 = vpop.f32.mrf.mxu0  ;;  %v10462_v34 = vld [vmem:[%s13172_s23 + $0x389] sm:$0xff] }
 0x235   : > { %17128 = vst [vmem:[#allocation48_spill] sm:$0xff] %v14634_v8  ;;  %v14637_v26 = vadd.f32 %v2915_v16, %v1976_v14  ;;  %v1987_v29 = vadd.f32 %v12171_v20, %v17131_v40  ;;  %v10271_v20 = vld [vmem:[%s13172_s23 + $0x3a0] sm:$0xff] }
 0x236   : > { %v1978_v33 = vpop.f32.mrf.mxu1  ;;  %v2918_v57 = vpop.f32.mrf.mxu0 }
 0x237   : > { %17130 = vst [vmem:[#allocation50_spill] sm:$0xff] %v14637_v26  ;;  %v14640_v39 = vadd.f32 %v12301_v18, %v1987_v29  ;;  %v1979_v28 = vadd.f32 %v1978_v33, %v17133_v51  ;;  %v10461_v33 = vld [vmem:[%s13172_s23 + $0x381] sm:$0xff]  ;;  %v10463_v18 = vld [vmem:[%s13172_s23 + $0x399] sm:$0xff] }
 0x238   : > { %v12174_v8 = vpop.f32.mrf.mxu1  ;;  %v12304_v4 = vpop.f32.mrf.mxu0  ;;  %12401 = vmatmul.mubr.msk.bf16.gmra.mxu1 %vm569_vm2, %v3292_v41  ;;  %12531 = vmatmul.mubr.msk.bf16.gmra.mxu0 %vm569_vm2, %v4363_v7  ;;  %v10464_v41 = vld [vmem:[%s13172_s23 + $0x3a1] sm:$0xff] }
 0x239   : > { %17132 = vst [vmem:[#allocation52_spill] sm:$0xff] %v14640_v39  ;;  %v14647_v46 = vadd.f32 %v2918_v57, %v1979_v28  ;;  %v2000_v16 = vadd.f32 %v12174_v8, %v17135_v60  ;;  %12404 = vmatprep.mubr.msk.bf16.mxu1 %vm569_vm2, %v3293_v55  ;;  %12534 = vmatprep.mubr.msk.bf16.mxu0 %vm569_vm2, %v4364_v19  ;;  %v17137_v7 = vld [vmem:[#allocation62_spill] sm:$0xff]  ;;  %v17139_v19 = vld [vmem:[#allocation64_spill] sm:$0xff] }
 0x23a   : > { %v1991_v32 = vpop.f32.mrf.mxu1  ;;  %v2931_v14 = vpop.f32.mrf.mxu0  ;;  %v3294_v8 = vpack.c.bf16 %v10269_v61, %v10268_v63  ;;  %v4365_v55 = vpack.c.bf16 %v10462_v34, %v10461_v33  ;;  %v4366_v39 = vpack.c.bf16 %v10464_v41, %v10463_v18  ;;  %v10272_v61 = vld [vmem:[%s13172_s23 + $0x3a8] sm:$0xff]  ;;  %v10273_v33 = vld [vmem:[%s13172_s23 + $0x3b0] sm:$0xff]  ;;  %v10274_v18 = vld [vmem:[%s13172_s23 + $0x3c0] sm:$0xff] }
 0x23b   : > { %17134 = vst [vmem:[#allocation54_spill] sm:$0xff] %v14647_v46  ;;  %v14658_v40 = vadd.f32 %v12304_v4, %v2000_v16  ;;  %v1992_v29 = vadd.f32 %v1991_v32, %v17137_v7  ;;  %v3295_v46 = vpack.c.bf16 %v10271_v20, %v10270_v48  ;;  %v17141_v32 = vld [vmem:[#allocation66_spill] sm:$0xff]  ;;  %v17143_v48 = vld [vmem:[#allocation68_spill] sm:$0xff] }
 0x23c   : > { %v12175_v57 = vpop.f32.mrf.mxu1  ;;  %v12305_v51 = vpop.f32.mrf.mxu0  ;;  %v10466_v20 = vld [vmem:[%s13172_s23 + $0x3b1] sm:$0xff] }
 0x23d   : > { %17136 = vst [vmem:[#allocation56_spill] sm:$0xff] %v14658_v40  ;;  %v14661_v28 = vadd.f32 %v2931_v14, %v1992_v29  ;;  %v2003_v60 = vadd.f32 %v12175_v57, %v17139_v19  ;;  %v10275_v57 = vld [vmem:[%s13172_s23 + $0x3c8] sm:$0xff] }
 0x23e   : > { %v1994_v26 = vpop.f32.mrf.mxu1  ;;  %v2934_v4 = vpop.f32.mrf.mxu0 }
 0x23f   : > { %17138 = vst [vmem:[#allocation58_spill] sm:$0xff] %v14661_v28  ;;  %v14664_v16 = vadd.f32 %v12305_v51, %v2003_v60  ;;  %v1995_v7 = vadd.f32 %v1994_v26, %v17141_v32  ;;  %v10465_v26 = vld [vmem:[%s13172_s23 + $0x3a9] sm:$0xff]  ;;  %v10467_v51 = vld [vmem:[%s13172_s23 + $0x3c1] sm:$0xff] }
 0x240   : > { %v12178_v40 = vpop.f32.mrf.mxu1  ;;  %v12308_v63 = vpop.f32.mrf.mxu0  ;;  %12405 = vmatmul.mubr.msk.bf16.gmra.mxu1 %vm569_vm2, %v3294_v8  ;;  %12535 = vmatmul.mubr.msk.bf16.gmra.mxu0 %vm569_vm2, %v4365_v55  ;;  %v10468_v8 = vld [vmem:[%s13172_s23 + $0x3c9] sm:$0xff]  ;;  %v17145_v55 = vld [vmem:[#allocation70_spill] sm:$0xff] }
 0x241   : > { %17140 = vst [vmem:[#allocation60_spill] sm:$0xff] %v14664_v16  ;;  %v14671_v34 = vadd.f32 %v2934_v4, %v1995_v7  ;;  %v2016_v14 = vadd.f32 %v12178_v40, %v17143_v48  ;;  %12408 = vmatprep.mubr.msk.bf16.mxu1 %vm569_vm2, %v3295_v46  ;;  %12538 = vmatprep.mubr.msk.bf16.mxu0 %vm569_vm2, %v4366_v39  ;;  %v17147_v39 = vld [vmem:[#allocation72_spill] sm:$0xff] }
 0x242   : > { %v2007_v41 = vpop.f32.mrf.mxu1  ;;  %v2947_v29 = vpop.f32.mrf.mxu0  ;;  %v3296_v40 = vpack.c.bf16 %v10273_v33, %v10272_v61  ;;  %v4367_v46 = vpack.c.bf16 %v10466_v20, %v10465_v26  ;;  %v4368_v16 = vpack.c.bf16 %v10468_v8, %v10467_v51  ;;  %v10276_v33 = vld [vmem:[%s13172_s23 + $0x3d0] sm:$0xff]  ;;  %v10277_v26 = vld [vmem:[%s13172_s23 + $0x3d8] sm:$0xff]  ;;  %v10278_v51 = vld [vmem:[%s13172_s23 + $0x3e8] sm:$0xff] }
 0x243   : > { %17142 = vst [vmem:[#allocation62_spill] sm:$0xff] %v14671_v34  ;;  %v14682_v19 = vadd.f32 %v12308_v63, %v2016_v14  ;;  %v2008_v60 = vadd.f32 %v2007_v41, %v17145_v55  ;;  %v3297_v34 = vpack.c.bf16 %v10275_v57, %v10274_v18  ;;  %v17149_v41 = vld [vmem:[#allocation74_spill] sm:$0xff]  ;;  %v17151_v18 = vld [vmem:[#allocation76_spill] sm:$0xff] }
 0x244   : > { %v12179_v4 = vpop.f32.mrf.mxu1  ;;  %v12309_v32 = vpop.f32.mrf.mxu0  ;;  %v10470_v57 = vld [vmem:[%s13172_s23 + $0x3d9] sm:$0xff] }
 0x245   : > { %17144 = vst [vmem:[#allocation64_spill] sm:$0xff] %v14682_v19  ;;  %v14685_v7 = vadd.f32 %v2947_v29, %v2008_v60  ;;  %v2019_v48 = vadd.f32 %v12179_v4, %v17147_v39  ;;  %v10279_v4 = vld [vmem:[%s13172_s23 + $0x3f0] sm:$0xff] }
 0x246   : > { %v2010_v28 = vpop.f32.mrf.mxu1  ;;  %v2950_v63 = vpop.f32.mrf.mxu0 }
 0x247   : > { %17146 = vst [vmem:[#allocation66_spill] sm:$0xff] %v14685_v7  ;;  %v14688_v14 = vadd.f32 %v12309_v32, %v2019_v48  ;;  %v2011_v55 = vadd.f32 %v2010_v28, %v17149_v41  ;;  %v10469_v28 = vld [vmem:[%s13172_s23 + $0x3d1] sm:$0xff]  ;;  %v10471_v32 = vld [vmem:[%s13172_s23 + $0x3e9] sm:$0xff] }
 0x248   : > { %v12182_v19 = vpop.f32.mrf.mxu1  ;;  %v12312_v61 = vpop.f32.mrf.mxu0  ;;  %12409 = vmatmul.mubr.msk.bf16.gmra.mxu1 %vm569_vm2, %v3296_v40  ;;  %12539 = vmatmul.mubr.msk.bf16.gmra.mxu0 %vm569_vm2, %v4367_v46  ;;  %v10472_v40 = vld [vmem:[%s13172_s23 + $0x3f1] sm:$0xff]  ;;  %v17153_v46 = vld [vmem:[#allocation78_spill] sm:$0xff] }
 0x249   : > { %17148 = vst [vmem:[#allocation68_spill] sm:$0xff] %v14688_v14  ;;  %v14695_v20 = vadd.f32 %v2950_v63, %v2011_v55  ;;  %v2032_v29 = vadd.f32 %v12182_v19, %v17151_v18  ;;  %12412 = vmatprep.mubr.msk.bf16.mxu1 %vm569_vm2, %v3297_v34  ;;  %12542 = vmatprep.mubr.msk.bf16.mxu0 %vm569_vm2, %v4368_v16  ;;  %v17155_v16 = vld [vmem:[#allocation80_spill] sm:$0xff] }
 0x24a   : > { %v2023_v8 = vpop.f32.mrf.mxu1  ;;  %v2963_v60 = vpop.f32.mrf.mxu0  ;;  %v3298_v19 = vpack.c.bf16 %v10277_v26, %v10276_v33  ;;  %v4369_v34 = vpack.c.bf16 %v10470_v57, %v10469_v28  ;;  %v4370_v14 = vpack.c.bf16 %v10472_v40, %v10471_v32  ;;  %v10280_v26 = vld [vmem:[%s13172_s23 + $0x3f8] sm:$0xff]  ;;  %v10281_v28 = vld [vmem:[%s13172_s23 + $0x400] sm:$0xff]  ;;  %v10282_v32 = vld [vmem:[%s13172_s23 + $0x410] sm:$0xff] }
 0x24b   : > { %17150 = vst [vmem:[#allocation70_spill] sm:$0xff] %v14695_v20  ;;  %v14706_v39 = vadd.f32 %v12312_v61, %v2032_v29  ;;  %v2024_v48 = vadd.f32 %v2023_v8, %v17153_v46  ;;  %v3299_v20 = vpack.c.bf16 %v10279_v4, %v10278_v51  ;;  %v17157_v8 = vld [vmem:[#allocation82_spill] sm:$0xff]  ;;  %v17159_v51 = vld [vmem:[#allocation84_spill] sm:$0xff] }
 0x24c   : > { %v12183_v63 = vpop.f32.mrf.mxu1  ;;  %v12313_v41 = vpop.f32.mrf.mxu0  ;;  %v10474_v4 = vld [vmem:[%s13172_s23 + $0x401] sm:$0xff] }
 0x24d   : > { %17152 = vst [vmem:[#allocation72_spill] sm:$0xff] %v14706_v39  ;;  %v14709_v55 = vadd.f32 %v2963_v60, %v2024_v48  ;;  %v2035_v18 = vadd.f32 %v12183_v63, %v17155_v16  ;;  %v10283_v63 = vld [vmem:[%s13172_s23 + $0x418] sm:$0xff] }
 0x24e   : > { %v2026_v7 = vpop.f32.mrf.mxu1  ;;  %v2966_v61 = vpop.f32.mrf.mxu0 }
 0x24f   : > { %17154 = vst [vmem:[#allocation74_spill] sm:$0xff] %v14709_v55  ;;  %v14712_v29 = vadd.f32 %v12313_v41, %v2035_v18  ;;  %v2027_v46 = vadd.f32 %v2026_v7, %v17157_v8  ;;  %v10473_v7 = vld [vmem:[%s13172_s23 + $0x3f9] sm:$0xff]  ;;  %v10475_v41 = vld [vmem:[%s13172_s23 + $0x411] sm:$0xff] }
 0x250   : > { %v12186_v39 = vpop.f32.mrf.mxu1  ;;  %v12316_v33 = vpop.f32.mrf.mxu0  ;;  %12413 = vmatmul.mubr.msk.bf16.gmra.mxu1 %vm569_vm2, %v3298_v19  ;;  %12543 = vmatmul.mubr.msk.bf16.gmra.mxu0 %vm569_vm2, %v4369_v34  ;;  %v10476_v19 = vld [vmem:[%s13172_s23 + $0x419] sm:$0xff] }
 0x251   : > { %17156 = vst [vmem:[#allocation76_spill] sm:$0xff] %v14712_v29  ;;  %v14719_v57 = vadd.f32 %v2966_v61, %v2027_v46  ;;  %v2048_v60 = vadd.f32 %v12186_v39, %v17159_v51  ;;  %12416 = vmatprep.mubr.msk.bf16.mxu1 %vm569_vm2, %v3299_v20  ;;  %12546 = vmatprep.mubr.msk.bf16.mxu0 %vm569_vm2, %v4370_v14  ;;  %v17161_v34 = vld [vmem:[#allocation86_spill] sm:$0xff]  ;;  %v17162_v14 = vld [vmem:[#allocation88_spill] sm:$0xff] }
 0x252   : > { %v2039_v40 = vpop.f32.mrf.mxu1  ;;  %v2979_v48 = vpop.f32.mrf.mxu0  ;;  %v3300_v39 = vpack.c.bf16 %v10281_v28, %v10280_v26  ;;  %v4371_v20 = vpack.c.bf16 %v10474_v4, %v10473_v7  ;;  %v4372_v29 = vpack.c.bf16 %v10476_v19, %v10475_v41  ;;  %v10284_v28 = vld [vmem:[%s13172_s23 + $0x420] sm:$0xff]  ;;  %v10285_v7 = vld [vmem:[%s13172_s23 + $0x428] sm:$0xff] }
 0x253   : > { %17158 = vst [vmem:[#allocation78_spill] sm:$0xff] %v14719_v57  ;;  %v14730_v16 = vadd.f32 %v12316_v33, %v2048_v60  ;;  %v2040_v18 = vadd.f32 %v2039_v40, %v17161_v34  ;;  %v3301_v57 = vpack.c.bf16 %v10283_v63, %v10282_v32  ;;  %v17163_v40 = vld [vmem:[#allocation90_spill] sm:$0xff]  ;;  %v10286_v63 = vld [vmem:[%s13172_s23 + $0x438] sm:$0xff] }
 0x254   : > { %v12187_v61 = vpop.f32.mrf.mxu1  ;;  %v12317_v8 = vpop.f32.mrf.mxu0 }
 0x255   : > { %17160 = vst [vmem:[#allocation80_spill] sm:$0xff] %v14730_v16  ;;  %v14733_v46 = vadd.f32 %v2979_v48, %v2040_v18  ;;  %v2051_v51 = vadd.f32 %v12187_v61, %v17162_v14  ;;  %v10478_v48 = vld [vmem:[%s13172_s23 + $0x429] sm:$0xff]  ;;  %v10287_v18 = vld [vmem:[%s13172_s23 + $0x440] sm:$0xff] }
 0x256   : > { %v2042_v55 = vpop.f32.mrf.mxu1  ;;  %v2982_v33 = vpop.f32.mrf.mxu0  ;;  %v10479_v61 = vld [vmem:[%s13172_s23 + $0x439] sm:$0xff] }
 0x257   : > { %v14736_v60 = vadd.f32 %v12317_v8, %v2051_v51  ;;  %v2043_v34 = vadd.f32 %v2042_v55, %v17163_v40  ;;  %v10477_v55 = vld [vmem:[%s13172_s23 + $0x421] sm:$0xff] }
 0x258   : > { %v12322_v16 = vpop.f32.mrf.mxu1  ;;  %12417 = vmatmul.mubr.msk.bf16.gmra.mxu1 %vm569_vm2, %v3300_v39  ;;  %v12452_v26 = vpop.f32.mrf.mxu0  ;;  %12547 = vmatmul.mubr.msk.bf16.gmra.mxu0 %vm569_vm2, %v4371_v20  ;;  %v10480_v8 = vld [vmem:[%s13172_s23 + $0x441] sm:$0xff] }
 0x259   : > { %v14743_v4 = vadd.f32 %v2982_v33, %v2043_v34  ;;  %v4068_v32 = vadd.f32 %v12322_v16, %v13970_v25  ;;  %12420 = vmatprep.mubr.msk.bf16.mxu1 %vm569_vm2, %v3301_v57  ;;  %12550 = vmatprep.mubr.msk.bf16.mxu0 %vm569_vm2, %v4372_v29  ;;  %v3302_v25 = vpack.c.bf16 %v10285_v7, %v10284_v28  ;;  %v10289_v7 = vld [vmem:[%s13172_s23 + $0x450] sm:$0xff] }
 0x25a   : > { %v3555_v41 = vpop.f32.mrf.mxu1  ;;  %v4620_v19 = vpop.f32.mrf.mxu0  ;;  %v4373_v57 = vpack.c.bf16 %v10478_v48, %v10477_v55  ;;  %v3303_v33 = vpack.c.bf16 %v10287_v18, %v10286_v63  ;;  %v4374_v40 = vpack.c.bf16 %v10480_v8, %v10479_v61  ;;  %v10482_v63 = vld [vmem:[%s13172_s23 + $0x451] sm:$0xff]  ;;  %v10291_v8 = vld [vmem:[%s13172_s23 + $0x468] sm:$0xff] }
 0x25b   : > { %v14754_v39 = vadd.f32 %v12452_v26, %v4068_v32  ;;  %v4066_v20 = vadd.f32 %v3555_v41, %v13973_v30 }
 0x25c   : > { %v12323_v14 = vpop.f32.mrf.mxu1  ;;  %v12453_v51 = vpop.f32.mrf.mxu0 }
 0x25d   : > { %v14757_v16 = vadd.f32 %v4620_v19, %v4066_v20  ;;  %v4069_v29 = vadd.f32 %v12323_v14, %v13976_v22  ;;  %v10288_v22 = vld [vmem:[%s13172_s23 + $0x448] sm:$0xff]  ;;  %v10290_v19 = vld [vmem:[%s13172_s23 + $0x460] sm:$0xff] }
 0x25e   : > { %v3558_v34 = vpop.f32.mrf.mxu1  ;;  %v4623_v26 = vpop.f32.mrf.mxu0  ;;  %v10483_v20 = vld [vmem:[%s13172_s23 + $0x461] sm:$0xff]  ;;  %v10484_v14 = vld [vmem:[%s13172_s23 + $0x469] sm:$0xff] }
 0x25f   : > { %v14760_v32 = vadd.f32 %v12453_v51, %v4069_v29  ;;  %v4067_v30 = vadd.f32 %v3558_v34, %v13983_v52  ;;  %v10481_v52 = vld [vmem:[%s13172_s23 + $0x449] sm:$0xff] }
 0x260   : > { %v12326_v41 = vpop.f32.mrf.mxu1  ;;  %12421 = vmatmul.mubr.msk.bf16.gmra.mxu1 %vm569_vm2, %v3302_v25  ;;  %v12456_v28 = vpop.f32.mrf.mxu0  ;;  %12551 = vmatmul.mubr.msk.bf16.gmra.mxu0 %vm569_vm2, %v4373_v57 }
 0x261   : > { %v14767_v55 = vadd.f32 %v4623_v26, %v4067_v30  ;;  %v4072_v48 = vadd.f32 %v12326_v41, %v13994_v45  ;;  %12424 = vmatprep.mubr.msk.bf16.mxu1 %vm569_vm2, %v3303_v33  ;;  %12554 = vmatprep.mubr.msk.bf16.mxu0 %vm569_vm2, %v4374_v40  ;;  %v3304_v45 = vpack.c.bf16 %v10289_v7, %v10288_v22  ;;  %v10293_v7 = vld [vmem:[%s13172_s23 + $0x478] sm:$0xff] }
 0x262   : > { %v3571_v18 = vpop.f32.mrf.mxu1  ;;  %v4636_v61 = vpop.f32.mrf.mxu0  ;;  %v4375_v33 = vpack.c.bf16 %v10482_v63, %v10481_v52  ;;  %v3305_v26 = vpack.c.bf16 %v10291_v8, %v10290_v19  ;;  %v4376_v30 = vpack.c.bf16 %v10484_v14, %v10483_v20  ;;  %v10486_v19 = vld [vmem:[%s13172_s23 + $0x479] sm:$0xff]  ;;  %v10295_v14 = vld [vmem:[%s13172_s23 + $0x490] sm:$0xff] }
 0x263   : > { %v14778_v51 = vadd.f32 %v12456_v28, %v4072_v48  ;;  %v4070_v25 = vadd.f32 %v3571_v18, %v13997_v1 }
 0x264   : > { %v12327_v57 = vpop.f32.mrf.mxu1  ;;  %v12457_v29 = vpop.f32.mrf.mxu0 }
 0x265   : > { %v14781_v34 = vadd.f32 %v4636_v61, %v4070_v25  ;;  %v4073_v40 = vadd.f32 %v12327_v57, %v14000_v10  ;;  %v10292_v10 = vld [vmem:[%s13172_s23 + $0x470] sm:$0xff]  ;;  %v10294_v61 = vld [vmem:[%s13172_s23 + $0x488] sm:$0xff] }
 0x266   : > { %v3574_v41 = vpop.f32.mrf.mxu1  ;;  %v4639_v28 = vpop.f32.mrf.mxu0  ;;  %v10487_v25 = vld [vmem:[%s13172_s23 + $0x489] sm:$0xff]  ;;  %v10488_v57 = vld [vmem:[%s13172_s23 + $0x491] sm:$0xff] }
 0x267   : > { %v14784_v48 = vadd.f32 %v12457_v29, %v4073_v40  ;;  %v4071_v1 = vadd.f32 %v3574_v41, %v14007_v5  ;;  %v10485_v5 = vld [vmem:[%s13172_s23 + $0x471] sm:$0xff] }
 0x268   : > { %v12330_v18 = vpop.f32.mrf.mxu1  ;;  %12425 = vmatmul.mubr.msk.bf16.gmra.mxu1 %vm569_vm2, %v3304_v45  ;;  %v12460_v22 = vpop.f32.mrf.mxu0  ;;  %12555 = vmatmul.mubr.msk.bf16.gmra.mxu0 %vm569_vm2, %v4375_v33 }
 0x269   : > { %v14791_v52 = vadd.f32 %v4639_v28, %v4071_v1  ;;  %v4076_v63 = vadd.f32 %v12330_v18, %v14018_v27  ;;  %12428 = vmatprep.mubr.msk.bf16.mxu1 %vm569_vm2, %v3305_v26  ;;  %12558 = vmatprep.mubr.msk.bf16.mxu0 %vm569_vm2, %v4376_v30  ;;  %v3306_v27 = vpack.c.bf16 %v10293_v7, %v10292_v10  ;;  %v10297_v7 = vld [vmem:[%s13172_s23 + $0x4a0] sm:$0xff] }
 0x26a   : > { %v3587_v8 = vpop.f32.mrf.mxu1  ;;  %v4652_v20 = vpop.f32.mrf.mxu0  ;;  %v4377_v26 = vpack.c.bf16 %v10486_v19, %v10485_v5  ;;  %v3307_v28 = vpack.c.bf16 %v10295_v14, %v10294_v61  ;;  %v4378_v1 = vpack.c.bf16 %v10488_v57, %v10487_v25  ;;  %v10490_v61 = vld [vmem:[%s13172_s23 + $0x4a1] sm:$0xff]  ;;  %v10299_v57 = vld [vmem:[%s13172_s23 + $0x4b8] sm:$0xff] }
 0x26b   : > { %v14802_v29 = vadd.f32 %v12460_v22, %v4076_v63  ;;  %v4074_v45 = vadd.f32 %v3587_v8, %v14021_v36 }
 0x26c   : > { %v12331_v33 = vpop.f32.mrf.mxu1  ;;  %v12461_v40 = vpop.f32.mrf.mxu0 }
 0x26d   : > { %v14805_v41 = vadd.f32 %v4652_v20, %v4074_v45  ;;  %v4077_v30 = vadd.f32 %v12331_v33, %v14024_v35  ;;  %v10296_v35 = vld [vmem:[%s13172_s23 + $0x498] sm:$0xff]  ;;  %v10298_v20 = vld [vmem:[%s13172_s23 + $0x4b0] sm:$0xff] }
 0x26e   : > { %v3590_v18 = vpop.f32.mrf.mxu1  ;;  %v4655_v22 = vpop.f32.mrf.mxu0  ;;  %v10491_v45 = vld [vmem:[%s13172_s23 + $0x4b1] sm:$0xff]  ;;  %v10492_v33 = vld [vmem:[%s13172_s23 + $0x4b9] sm:$0xff] }
 0x26f   : > { %v14808_v63 = vadd.f32 %v12461_v40, %v4077_v30  ;;  %v4075_v36 = vadd.f32 %v3590_v18, %v14031_v50  ;;  %v10489_v50 = vld [vmem:[%s13172_s23 + $0x499] sm:$0xff] }
 0x270   : > { %v12334_v8 = vpop.f32.mrf.mxu1  ;;  %12429 = vmatmul.mubr.msk.bf16.gmra.mxu1 %vm569_vm2, %v3306_v27  ;;  %v12464_v10 = vpop.f32.mrf.mxu0  ;;  %12559 = vmatmul.mubr.msk.bf16.gmra.mxu0 %vm569_vm2, %v4377_v26 }
 0x271   : > { %v14815_v5 = vadd.f32 %v4655_v22, %v4075_v36  ;;  %v4080_v19 = vadd.f32 %v12334_v8, %v14042_v13  ;;  %12432 = vmatprep.mubr.msk.bf16.mxu1 %vm569_vm2, %v3307_v28  ;;  %12562 = vmatprep.mubr.msk.bf16.mxu0 %vm569_vm2, %v4378_v1  ;;  %v3308_v13 = vpack.c.bf16 %v10297_v7, %v10296_v35  ;;  %v10301_v7 = vld [vmem:[%s13172_s23 + $0x4c8] sm:$0xff] }
 0x272   : > { %v3603_v14 = vpop.f32.mrf.mxu1  ;;  %v4668_v25 = vpop.f32.mrf.mxu0  ;;  %v4379_v28 = vpack.c.bf16 %v10490_v61, %v10489_v50  ;;  %v3309_v22 = vpack.c.bf16 %v10299_v57, %v10298_v20  ;;  %v4380_v36 = vpack.c.bf16 %v10492_v33, %v10491_v45  ;;  %v10494_v20 = vld [vmem:[%s13172_s23 + $0x4c9] sm:$0xff]  ;;  %v10303_v33 = vld [vmem:[%s13172_s23 + $0x4e0] sm:$0xff] }
 0x273   : > { %v14826_v40 = vadd.f32 %v12464_v10, %v4080_v19  ;;  %v4078_v27 = vadd.f32 %v3603_v14, %v14045_v49 }
 0x274   : > { %v12335_v26 = vpop.f32.mrf.mxu1  ;;  %v12465_v30 = vpop.f32.mrf.mxu0 }
 0x275   : > { %v14829_v18 = vadd.f32 %v4668_v25, %v4078_v27  ;;  %v4081_v1 = vadd.f32 %v12335_v26, %v14048_v38  ;;  %v10300_v38 = vld [vmem:[%s13172_s23 + $0x4c0] sm:$0xff]  ;;  %v10302_v25 = vld [vmem:[%s13172_s23 + $0x4d8] sm:$0xff] }
 0x276   : > { %v3606_v8 = vpop.f32.mrf.mxu1  ;;  %v4671_v10 = vpop.f32.mrf.mxu0  ;;  %v10495_v27 = vld [vmem:[%s13172_s23 + $0x4d9] sm:$0xff]  ;;  %v10496_v26 = vld [vmem:[%s13172_s23 + $0x4e1] sm:$0xff] }
 0x277   : > { %v14832_v19 = vadd.f32 %v12465_v30, %v4081_v1  ;;  %v4079_v49 = vadd.f32 %v3606_v8, %v14055_v12  ;;  %v10493_v12 = vld [vmem:[%s13172_s23 + $0x4c1] sm:$0xff] }
 0x278   : > { %v12338_v14 = vpop.f32.mrf.mxu1  ;;  %12433 = vmatmul.mubr.msk.bf16.gmra.mxu1 %vm569_vm2, %v3308_v13  ;;  %v12468_v35 = vpop.f32.mrf.mxu0  ;;  %12563 = vmatmul.mubr.msk.bf16.gmra.mxu0 %vm569_vm2, %v4379_v28 }
 0x279   : > { %v14839_v50 = vadd.f32 %v4671_v10, %v4079_v49  ;;  %v4084_v61 = vadd.f32 %v12338_v14, %v14066_v24  ;;  %12436 = vmatprep.mubr.msk.bf16.mxu1 %vm569_vm2, %v3309_v22  ;;  %12566 = vmatprep.mubr.msk.bf16.mxu0 %vm569_vm2, %v4380_v36  ;;  %v3310_v24 = vpack.c.bf16 %v10301_v7, %v10300_v38  ;;  %v10305_v7 = vld [vmem:[%s13172_s23 + $0x4f0] sm:$0xff] }
 0x27a   : > { %v3619_v57 = vpop.f32.mrf.mxu1  ;;  %v4684_v45 = vpop.f32.mrf.mxu0  ;;  %v4381_v22 = vpack.c.bf16 %v10494_v20, %v10493_v12  ;;  %v3311_v10 = vpack.c.bf16 %v10303_v33, %v10302_v25  ;;  %v4382_v49 = vpack.c.bf16 %v10496_v26, %v10495_v27  ;;  %v10498_v25 = vld [vmem:[%s13172_s23 + $0x4f1] sm:$0xff]  ;;  %v10307_v26 = vld [vmem:[%s13172_s23 + $0x508] sm:$0xff] }
 0x27b   : > { %v14850_v30 = vadd.f32 %v12468_v35, %v4084_v61  ;;  %v4082_v13 = vadd.f32 %v3619_v57, %v14069_v3 }
 0x27c   : > { %v12339_v28 = vpop.f32.mrf.mxu1  ;;  %v12469_v1 = vpop.f32.mrf.mxu0 }
 0x27d   : > { %v14853_v8 = vadd.f32 %v4684_v45, %v4082_v13  ;;  %v4085_v36 = vadd.f32 %v12339_v28, %v14072_v62  ;;  %v10304_v62 = vld [vmem:[%s13172_s23 + $0x4e8] sm:$0xff]  ;;  %v10306_v45 = vld [vmem:[%s13172_s23 + $0x500] sm:$0xff] }
 0x27e   : > { %v3622_v14 = vpop.f32.mrf.mxu1  ;;  %v4687_v35 = vpop.f32.mrf.mxu0  ;;  %v10499_v13 = vld [vmem:[%s13172_s23 + $0x501] sm:$0xff]  ;;  %v10500_v28 = vld [vmem:[%s13172_s23 + $0x509] sm:$0xff] }
 0x27f   : > { %v14856_v61 = vadd.f32 %v12469_v1, %v4085_v36  ;;  %v4083_v3 = vadd.f32 %v3622_v14, %v14079_v42  ;;  %v10497_v42 = vld [vmem:[%s13172_s23 + $0x4e9] sm:$0xff] }
 0x280   : > { %v12342_v57 = vpop.f32.mrf.mxu1  ;;  %12437 = vmatmul.mubr.msk.bf16.gmra.mxu1 %vm569_vm2, %v3310_v24  ;;  %v12472_v38 = vpop.f32.mrf.mxu0  ;;  %12567 = vmatmul.mubr.msk.bf16.gmra.mxu0 %vm569_vm2, %v4381_v22 }
 0x281   : > { %v14863_v12 = vadd.f32 %v4687_v35, %v4083_v3  ;;  %v4088_v20 = vadd.f32 %v12342_v57, %v14090_v44  ;;  %12440 = vmatprep.mubr.msk.bf16.mxu1 %vm569_vm2, %v3311_v10  ;;  %12570 = vmatprep.mubr.msk.bf16.mxu0 %vm569_vm2, %v4382_v49  ;;  %v3312_v44 = vpack.c.bf16 %v10305_v7, %v10304_v62  ;;  %v10309_v7 = vld [vmem:[%s13172_s23 + $0x518] sm:$0xff] }
 0x282   : > { %v3635_v33 = vpop.f32.mrf.mxu1  ;;  %v4700_v27 = vpop.f32.mrf.mxu0  ;;  %v4383_v10 = vpack.c.bf16 %v10498_v25, %v10497_v42  ;;  %v3313_v35 = vpack.c.bf16 %v10307_v26, %v10306_v45  ;;  %v4384_v3 = vpack.c.bf16 %v10500_v28, %v10499_v13  ;;  %v10501_v45 = vld [vmem:[%s13172_s23 + $0x511] sm:$0xff] }
 0x283   : > { %v14874_v1 = vadd.f32 %v12472_v38, %v4088_v20  ;;  %v4086_v24 = vadd.f32 %v3635_v33, %v14093_v43  ;;  %v17165_v43 = vld [vmem:[#allocation91_spill] sm:$0xff] }
 0x284   : > { %v12343_v22 = vpop.f32.mrf.mxu1  ;;  %v12473_v36 = vpop.f32.mrf.mxu0  ;;  %v10568_v26 = vld [vmem:[%s13172_s23 + $0x2a] sm:$0xff] }
 0x285   : > { %17164 = vst [vmem:[#allocation82_spill] sm:$0xff] %v14874_v1  ;;  %v14877_v14 = vadd.f32 %v4700_v27, %v4086_v24  ;;  %v4089_v49 = vadd.f32 %v12343_v22, %v14096_v56  ;;  %v10308_v56 = vld [vmem:[%s13172_s23 + $0x510] sm:$0xff]  ;;  %v10502_v27 = vld [vmem:[%s13172_s23 + $0x519] sm:$0xff] }
 0x286   : > { %v3638_v57 = vpop.f32.mrf.mxu1  ;;  %v4703_v38 = vpop.f32.mrf.mxu0  ;;  %v10569_v24 = vld [vmem:[%s13172_s23 + $0x32] sm:$0xff] }
 0x287   : > { %v14880_v20 = vadd.f32 %v12473_v36, %v4089_v49  ;;  %v4087_v33 = vadd.f32 %v3638_v57, %v17165_v43  ;;  %v10761_v22 = vld [vmem:[%s13172_s23 + $0x50] sm:$0xff]  ;;  %v10762_v36 = vld [vmem:[%s13172_s23 + $0x58] sm:$0xff] }
 0x288   : > { %v12346_v1 = vpop.f32.mrf.mxu1  ;;  %12441 = vmatmul.mubr.msk.bf16.gmra.mxu1 %vm569_vm2, %v3312_v44  ;;  %v12476_v62 = vpop.f32.mrf.mxu0  ;;  %12571 = vmatmul.mubr.msk.bf16.gmra.mxu0 %vm569_vm2, %v4383_v10  ;;  %v6463_v43 = vpack.c.bf16 %v10762_v36, %v10761_v22 }
 0x289   : > { %v14887_v42 = vadd.f32 %v4703_v38, %v4087_v33  ;;  %v4092_v25 = vadd.f32 %v12346_v1, %v14114_v0  ;;  %12444 = vmatprep.mubr.msk.bf16.mxu1 %vm569_vm2, %v3313_v35  ;;  %12574 = vmatprep.mubr.msk.bf16.mxu0 %vm569_vm2, %v4384_v3  ;;  %v3314_v0 = vpack.c.bf16 %v10309_v7, %v10308_v56 }
 0x28a   : > { %v3651_v13 = vpop.f32.mrf.mxu1  ;;  %v4716_v28 = vpop.f32.mrf.mxu0  ;;  %v4385_v1 = vpack.c.bf16 %v10502_v27, %v10501_v45  ;;  %v5387_v38 = vpack.c.bf16 %v10569_v24, %v10568_v26  ;;  %v10571_v27 = vld [vmem:[%s13172_s23 + $0x42] sm:$0xff]  ;;  %v10572_v24 = vld [vmem:[%s13172_s23 + $0x52] sm:$0xff] }
 0x28b   : > { %17166 = vst [vmem:[#allocation84_spill] sm:$0xff] %v14887_v42  ;;  %v14898_v44 = vadd.f32 %v12476_v62, %v4092_v25  ;;  %v4090_v10 = vadd.f32 %v3651_v13, %v14117_v6  ;;  %v10764_v26 = vld [vmem:[%s13172_s23 + $0x68] sm:$0xff] }
 0x28c   : > { %v12347_v49 = vpop.f32.mrf.mxu1  ;;  %v12477_v57 = vpop.f32.mrf.mxu0 }
 0x28d   : > { %v14901_v35 = vadd.f32 %v4716_v28, %v4090_v10  ;;  %v4093_v3 = vadd.f32 %v12347_v49, %v14120_v2  ;;  %v10570_v2 = vld [vmem:[%s13172_s23 + $0x3a] sm:$0xff] }
 0x28e   : > { %v3654_v33 = vpop.f32.mrf.mxu1  ;;  %v4719_v42 = vpop.f32.mrf.mxu0  ;;  %v10573_v10 = vld [vmem:[%s13172_s23 + $0x5a] sm:$0xff] }
 0x28f   : > { %v14904_v62 = vadd.f32 %v12477_v57, %v4093_v3  ;;  %v4091_v6 = vadd.f32 %v3654_v33, %v14126_v21  ;;  %v10763_v21 = vld [vmem:[%s13172_s23 + $0x60] sm:$0xff]  ;;  %v10765_v49 = vld [vmem:[%s13172_s23 + $0x78] sm:$0xff] }
 0x290   : > { %v12350_v25 = vpop.f32.mrf.mxu1  ;;  %12445 = vmatmul.mubr.msk.bf16.gmra.mxu1 %vm569_vm2, %v3314_v0  ;;  %v12480_v56 = vpop.f32.mrf.mxu0  ;;  %12575 = vmatmul.mubr.msk.bf16.gmra.mxu0 %vm569_vm2, %v4385_v1  ;;  %v5388_v0 = vpack.c.bf16 %v10571_v27, %v10570_v2  ;;  %v6464_v1 = vpack.c.bf16 %v10764_v26, %v10763_v21  ;;  %v10575_v2 = vld [vmem:[%s13172_s23 + $0x6a] sm:$0xff] }
 0x291   : > { %v14910_v7 = vadd.f32 %v4719_v42, %v4091_v6  ;;  %v4096_v45 = vadd.f32 %v12350_v25, %v14135_v47  ;;  %12580 = vmatprep.mubr.msk.bf16.mxu1 %vm569_vm2, %v5387_v38  ;;  %12710 = vmatprep.mubr.msk.bf16.mxu0 %vm569_vm2, %v6463_v43  ;;  %v10766_v42 = vld [vmem:[%s13172_s23 + $0x80] sm:$0xff]  ;;  %v5389_v6 = vpack.c.bf16 %v10573_v10, %v10572_v24  ;;  %v10768_v26 = vld [vmem:[%s13172_s23 + $0x90] sm:$0xff] }
 0x292   : > { %v3667_v13 = vpop.f32.mrf.mxu1  ;;  %v4732_v28 = vpop.f32.mrf.mxu0  ;;  %v10577_v10 = vld [vmem:[%s13172_s23 + $0x82] sm:$0xff] }
 0x293   : > { %v14919_v22 = vadd.f32 %v12480_v56, %v4096_v45  ;;  %v4094_v36 = vadd.f32 %v3667_v13, %v14141_v59  ;;  %v6465_v59 = vpack.c.bf16 %v10766_v42, %v10765_v49  ;;  %v10769_v49 = vld [vmem:[%s13172_s23 + $0xa0] sm:$0xff]  ;;  %v10770_v42 = vld [vmem:[%s13172_s23 + $0xa8] sm:$0xff] }
 0x294   : > { %v12351_v57 = vpop.f32.mrf.mxu1  ;;  %v12481_v47 = vpop.f32.mrf.mxu0 }
 0x295   : > { %v14925_v3 = vadd.f32 %v4732_v28, %v4094_v36  ;;  %v4097_v38 = vadd.f32 %v12351_v57, %v14144_v15  ;;  %v10574_v15 = vld [vmem:[%s13172_s23 + $0x62] sm:$0xff]  ;;  %v10576_v28 = vld [vmem:[%s13172_s23 + $0x7a] sm:$0xff] }
 0x296   : > { %v3670_v43 = vpop.f32.mrf.mxu1  ;;  %v4735_v33 = vpop.f32.mrf.mxu0 }
 0x297   : > { %v14928_v25 = vadd.f32 %v12481_v47, %v4097_v38  ;;  %v4095_v56 = vadd.f32 %v3670_v43, %v14151_v37  ;;  %v10767_v37 = vld [vmem:[%s13172_s23 + $0x88] sm:$0xff]  ;;  %v5391_v43 = vpack.c.bf16 %v10577_v10, %v10576_v28 }
 0x298   : > { %v12354_v45 = vpop.f32.mrf.mxu1  ;;  %v12484_v13 = vpop.f32.mrf.mxu0  ;;  %12581 = vmatmul.mubr.msk.bf16.vlgmr.msra.gmra.mxu1 %vm569_vm2, %v5388_v0  ;;  %12711 = vmatmul.mubr.msk.bf16.vlgmr.msra.gmra.mxu0 %vm569_vm2, %v6464_v1  ;;  %v6466_v0 = vpack.c.bf16 %v10768_v26, %v10767_v37  ;;  %v10772_v37 = vld [vmem:[%s13172_s23 + $0xb8] sm:$0xff]  ;;  %v10580_v26 = vld [vmem:[%s13172_s23 + $0xa2] sm:$0xff] }
 0x299   : > { %v14935_v27 = vadd.f32 %v4735_v33, %v4095_v56  ;;  %v4100_v21 = vadd.f32 %v12354_v45, %v14164_v23  ;;  %12839 = vmatpush3.bf16.msra.mxu1 %v14586_v31  ;;  %12969 = vmatpush3.bf16.msra.mxu0 %v14561_v54  ;;  %v5390_v54 = vpack.c.bf16 %v10575_v2, %v10574_v15  ;;  %v10579_v15 = vld [vmem:[%s13172_s23 + $0x92] sm:$0xff]  ;;  %v10773_v10 = vld [vmem:[%s13172_s23 + $0xc8] sm:$0xff] }
 0x29a   : > { %v3683_v24 = vpop.f32.mrf.mxu1  ;;  %v4748_v36 = vpop.f32.mrf.mxu0  ;;  %12584 = vmatprep.mubr.msk.bf16.mxu1 %vm569_vm2, %v5389_v6  ;;  %12714 = vmatprep.mubr.msk.bf16.mxu0 %vm569_vm2, %v6465_v59  ;;  %v6467_v33 = vpack.c.bf16 %v10770_v42, %v10769_v49  ;;  %v10774_v49 = vld [vmem:[%s13172_s23 + $0xd0] sm:$0xff] }
 0x29b   : > { %v14948_v57 = vadd.f32 %v12484_v13, %v4100_v21  ;;  %v4098_v23 = vadd.f32 %v3683_v24, %v14167_v17 }
 0x29c   : > { %v12355_v47 = vpop.f32.mrf.mxu1  ;;  %v12485_v31 = vpop.f32.mrf.mxu0 }
 0x29d   : > { %v14951_v1 = vadd.f32 %v4748_v36, %v4098_v23  ;;  %v4101_v38 = vadd.f32 %v12355_v47, %v14170_v53  ;;  %v10578_v53 = vld [vmem:[%s13172_s23 + $0x8a] sm:$0xff] }
 0x29e   : > { %v3686_v6 = vpop.f32.mrf.mxu1  ;;  %v4751_v59 = vpop.f32.mrf.mxu0  ;;  %v10581_v36 = vld [vmem:[%s13172_s23 + $0xaa] sm:$0xff] }
 0x29f   : > { %v14954_v56 = vadd.f32 %v12485_v31, %v4101_v38  ;;  %v4099_v17 = vadd.f32 %v3686_v6, %v14177_v9  ;;  %v10771_v9 = vld [vmem:[%s13172_s23 + $0xb0] sm:$0xff]  ;;  %v5393_v6 = vpack.c.bf16 %v10581_v36, %v10580_v26  ;;  %v17173_v26 = vld [vmem:[#allocation43_spill] sm:$0xff]  ;;  %v10775_v36 = vld [vmem:[%s13172_s23 + $0xd8] sm:$0xff] }
 0x2a0   : > { %v12358_v45 = vpop.f32.mrf.mxu1  ;;  %v12488_v13 = vpop.f32.mrf.mxu0  ;;  %12585 = vmatmul.mubr.msk.bf16.gmra.mxu1 %vm569_vm2, %v5390_v54  ;;  %12715 = vmatmul.mubr.msk.bf16.gmra.mxu0 %vm569_vm2, %v6466_v0  ;;  %v17167_v23 = vld [vmem:[#allocation92_spill] sm:$0xff]  ;;  %v6468_v0 = vpack.c.bf16 %v10772_v37, %v10771_v9  ;;  %v10583_v9 = vld [vmem:[%s13172_s23 + $0xba] sm:$0xff] }
 0x2a1   : > { %v14961_v2 = vadd.f32 %v4751_v59, %v4099_v17  ;;  %v4104_v21 = vadd.f32 %v12358_v45, %v14188_v11  ;;  %12588 = vmatprep.mubr.msk.bf16.mxu1 %vm569_vm2, %v5391_v43  ;;  %12718 = vmatprep.mubr.msk.bf16.mxu0 %vm569_vm2, %v6467_v33  ;;  %v5392_v11 = vpack.c.bf16 %v10579_v15, %v10578_v53  ;;  %v17169_v43 = vld [vmem:[#allocation93_spill] sm:$0xff] }
 0x2a2   : > { %v3699_v28 = vpop.f32.mrf.mxu1  ;;  %v4764_v24 = vpop.f32.mrf.mxu0  ;;  %v6469_v59 = vpack.c.bf16 %v10774_v49, %v10773_v10  ;;  %v10582_v15 = vld [vmem:[%s13172_s23 + $0xb2] sm:$0xff]  ;;  %v10776_v10 = vld [vmem:[%s13172_s23 + $0xe0] sm:$0xff]  ;;  %v10584_v49 = vld [vmem:[%s13172_s23 + $0xca] sm:$0xff] }
 0x2a3   : > { %v14972_v42 = vadd.f32 %v12488_v13, %v4104_v21  ;;  %v4102_v47 = vadd.f32 %v3699_v28, %v17167_v23  ;;  %v17171_v21 = vld [vmem:[#allocation94_spill] sm:$0xff] }
 0x2a4   : > { %v12359_v31 = vpop.f32.mrf.mxu1  ;;  %v12489_v54 = vpop.f32.mrf.mxu0 }
 0x2a5   : > { %v14975_v38 = vadd.f32 %v4764_v24, %v4102_v47  ;;  %v4105_v33 = vadd.f32 %v12359_v31, %v17169_v43  ;;  %v10777_v43 = vld [vmem:[%s13172_s23 + $0xf0] sm:$0xff] }
 0x2a6   : > { %v3702_v17 = vpop.f32.mrf.mxu1  ;;  %v4767_v45 = vpop.f32.mrf.mxu0 }
 0x2a7   : > { %17168 = vst [vmem:[#allocation86_spill] sm:$0xff] %v14975_v38  ;;  %v14978_v13 = vadd.f32 %v12489_v54, %v4105_v33  ;;  %v4103_v28 = vadd.f32 %v3702_v17, %v17171_v21  ;;  %v10585_v54 = vld [vmem:[%s13172_s23 + $0xd2] sm:$0xff] }
 0x2a8   : > { %v12362_v23 = vpop.f32.mrf.mxu1  ;;  %v12492_v53 = vpop.f32.mrf.mxu0  ;;  %12589 = vmatmul.mubr.msk.bf16.gmra.mxu1 %vm569_vm2, %v5392_v11  ;;  %12719 = vmatmul.mubr.msk.bf16.gmra.mxu0 %vm569_vm2, %v6468_v0  ;;  %v10778_v11 = vld [vmem:[%s13172_s23 + $0xf8] sm:$0xff] }
 0x2a9   : > { %17170 = vst [vmem:[#allocation88_spill] sm:$0xff] %v14978_v13  ;;  %v14985_v37 = vadd.f32 %v4767_v45, %v4103_v28  ;;  %v4108_v24 = vadd.f32 %v12362_v23, %v17173_v26  ;;  %12592 = vmatprep.mubr.msk.bf16.mxu1 %vm569_vm2, %v5393_v6  ;;  %12722 = vmatprep.mubr.msk.bf16.mxu0 %vm569_vm2, %v6469_v59  ;;  %v17175_v0 = vld [vmem:[#allocation45_spill] sm:$0xff]  ;;  %v17177_v59 = vld [vmem:[#allocation47_spill] sm:$0xff] }
 0x2aa   : > { %v3715_v47 = vpop.f32.mrf.mxu1  ;;  %v4780_v31 = vpop.f32.mrf.mxu0  ;;  %v5394_v28 = vpack.c.bf16 %v10583_v9, %v10582_v15  ;;  %v6470_v6 = vpack.c.bf16 %v10776_v10, %v10775_v36  ;;  %v6471_v13 = vpack.c.bf16 %v10778_v11, %v10777_v43  ;;  %v10586_v9 = vld [vmem:[%s13172_s23 + $0xda] sm:$0xff]  ;;  %v10587_v36 = vld [vmem:[%s13172_s23 + $0xe2] sm:$0xff]  ;;  %v10588_v43 = vld [vmem:[%s13172_s23 + $0xf2] sm:$0xff] }
 0x2ab   : > { %17172 = vst [vmem:[#allocation90_spill] sm:$0xff] %v14985_v37  ;;  %v14996_v33 = vadd.f32 %v12492_v53, %v4108_v24  ;;  %v4106_v17 = vadd.f32 %v3715_v47, %v17175_v0  ;;  %v5395_v37 = vpack.c.bf16 %v10585_v54, %v10584_v49  ;;  %v17179_v47 = vld [vmem:[#allocation49_spill] sm:$0xff]  ;;  %v17181_v49 = vld [vmem:[#allocation51_spill] sm:$0xff] }
 0x2ac   : > { %v12363_v45 = vpop.f32.mrf.mxu1  ;;  %v12493_v21 = vpop.f32.mrf.mxu0  ;;  %v10780_v54 = vld [vmem:[%s13172_s23 + $0x108] sm:$0xff] }
 0x2ad   : > { %17174 = vst [vmem:[#allocation91_spill] sm:$0xff] %v14996_v33  ;;  %v14999_v23 = vadd.f32 %v4780_v31, %v4106_v17  ;;  %v4109_v26 = vadd.f32 %v12363_v45, %v17177_v59  ;;  %v10589_v45 = vld [vmem:[%s13172_s23 + $0xfa] sm:$0xff] }
 0x2ae   : > { %v3718_v38 = vpop.f32.mrf.mxu1  ;;  %v4783_v53 = vpop.f32.mrf.mxu0 }
 0x2af   : > { %17176 = vst [vmem:[#allocation92_spill] sm:$0xff] %v14999_v23  ;;  %v15002_v24 = vadd.f32 %v12493_v21, %v4109_v26  ;;  %v4107_v0 = vadd.f32 %v3718_v38, %v17179_v47  ;;  %v10779_v38 = vld [vmem:[%s13172_s23 + $0x100] sm:$0xff]  ;;  %v10781_v21 = vld [vmem:[%s13172_s23 + $0x118] sm:$0xff] }
 0x2b0   : > { %v12366_v33 = vpop.f32.mrf.mxu1  ;;  %v12496_v15 = vpop.f32.mrf.mxu0  ;;  %12593 = vmatmul.mubr.msk.bf16.gmra.mxu1 %vm569_vm2, %v5394_v28  ;;  %12723 = vmatmul.mubr.msk.bf16.gmra.mxu0 %vm569_vm2, %v6470_v6  ;;  %v10782_v28 = vld [vmem:[%s13172_s23 + $0x120] sm:$0xff]  ;;  %v17183_v6 = vld [vmem:[#allocation53_spill] sm:$0xff] }
 0x2b1   : > { %17178 = vst [vmem:[#allocation93_spill] sm:$0xff] %v15002_v24  ;;  %v15009_v10 = vadd.f32 %v4783_v53, %v4107_v0  ;;  %v4112_v31 = vadd.f32 %v12366_v33, %v17181_v49  ;;  %12596 = vmatprep.mubr.msk.bf16.mxu1 %vm569_vm2, %v5395_v37  ;;  %12726 = vmatprep.mubr.msk.bf16.mxu0 %vm569_vm2, %v6471_v13  ;;  %v17185_v13 = vld [vmem:[#allocation55_spill] sm:$0xff] }
 0x2b2   : > { %v3731_v11 = vpop.f32.mrf.mxu1  ;;  %v4796_v17 = vpop.f32.mrf.mxu0  ;;  %v5396_v33 = vpack.c.bf16 %v10587_v36, %v10586_v9  ;;  %v6472_v37 = vpack.c.bf16 %v10780_v54, %v10779_v38  ;;  %v6473_v24 = vpack.c.bf16 %v10782_v28, %v10781_v21  ;;  %v10590_v36 = vld [vmem:[%s13172_s23 + $0x102] sm:$0xff]  ;;  %v10591_v38 = vld [vmem:[%s13172_s23 + $0x10a] sm:$0xff]  ;;  %v10592_v21 = vld [vmem:[%s13172_s23 + $0x11a] sm:$0xff] }
 0x2b3   : > { %17180 = vst [vmem:[#allocation94_spill] sm:$0xff] %v15009_v10  ;;  %v15020_v59 = vadd.f32 %v12496_v15, %v4112_v31  ;;  %v4110_v26 = vadd.f32 %v3731_v11, %v17183_v6  ;;  %v5397_v10 = vpack.c.bf16 %v10589_v45, %v10588_v43  ;;  %v17187_v11 = vld [vmem:[#allocation57_spill] sm:$0xff]  ;;  %v17189_v43 = vld [vmem:[#allocation59_spill] sm:$0xff]  ;;  %v10784_v45 = vld [vmem:[%s13172_s23 + $0x130] sm:$0xff] }
 0x2b4   : > { %v12367_v53 = vpop.f32.mrf.mxu1  ;;  %v12497_v47 = vpop.f32.mrf.mxu0 }
 0x2b5   : > { %17182 = vst [vmem:[#allocation43_spill] sm:$0xff] %v15020_v59  ;;  %v15023_v0 = vadd.f32 %v4796_v17, %v4110_v26  ;;  %v4113_v49 = vadd.f32 %v12367_v53, %v17185_v13  ;;  %v10593_v53 = vld [vmem:[%s13172_s23 + $0x122] sm:$0xff] }
 0x2b6   : > { %v3734_v23 = vpop.f32.mrf.mxu1  ;;  %v4799_v15 = vpop.f32.mrf.mxu0 }
 0x2b7   : > { %17184 = vst [vmem:[#allocation45_spill] sm:$0xff] %v15023_v0  ;;  %v15026_v31 = vadd.f32 %v12497_v47, %v4113_v49  ;;  %v4111_v6 = vadd.f32 %v3734_v23, %v17187_v11  ;;  %v10783_v23 = vld [vmem:[%s13172_s23 + $0x128] sm:$0xff]  ;;  %v10785_v47 = vld [vmem:[%s13172_s23 + $0x140] sm:$0xff] }
 0x2b8   : > { %v12370_v59 = vpop.f32.mrf.mxu1  ;;  %v12500_v9 = vpop.f32.mrf.mxu0  ;;  %12597 = vmatmul.mubr.msk.bf16.gmra.mxu1 %vm569_vm2, %v5396_v33  ;;  %12727 = vmatmul.mubr.msk.bf16.gmra.mxu0 %vm569_vm2, %v6472_v37  ;;  %v10786_v33 = vld [vmem:[%s13172_s23 + $0x148] sm:$0xff]  ;;  %v17191_v37 = vld [vmem:[#allocation61_spill] sm:$0xff] }
 0x2b9   : > { %17186 = vst [vmem:[#allocation47_spill] sm:$0xff] %v15026_v31  ;;  %v15033_v54 = vadd.f32 %v4799_v15, %v4111_v6  ;;  %v4116_v17 = vadd.f32 %v12370_v59, %v17189_v43  ;;  %12600 = vmatprep.mubr.msk.bf16.mxu1 %vm569_vm2, %v5397_v10  ;;  %12730 = vmatprep.mubr.msk.bf16.mxu0 %vm569_vm2, %v6473_v24  ;;  %v17193_v24 = vld [vmem:[#allocation63_spill] sm:$0xff] }
 0x2ba   : > { %v3747_v28 = vpop.f32.mrf.mxu1  ;;  %v4812_v26 = vpop.f32.mrf.mxu0  ;;  %v5398_v59 = vpack.c.bf16 %v10591_v38, %v10590_v36  ;;  %v6474_v10 = vpack.c.bf16 %v10784_v45, %v10783_v23  ;;  %v6475_v31 = vpack.c.bf16 %v10786_v33, %v10785_v47  ;;  %v10594_v38 = vld [vmem:[%s13172_s23 + $0x12a] sm:$0xff]  ;;  %v10595_v23 = vld [vmem:[%s13172_s23 + $0x132] sm:$0xff]  ;;  %v10596_v47 = vld [vmem:[%s13172_s23 + $0x142] sm:$0xff] }
 0x2bb   : > { %17188 = vst [vmem:[#allocation49_spill] sm:$0xff] %v15033_v54  ;;  %v15044_v13 = vadd.f32 %v12500_v9, %v4116_v17  ;;  %v4114_v49 = vadd.f32 %v3747_v28, %v17191_v37  ;;  %v5399_v54 = vpack.c.bf16 %v10593_v53, %v10592_v21  ;;  %v17195_v28 = vld [vmem:[#allocation65_spill] sm:$0xff]  ;;  %v17197_v21 = vld [vmem:[#allocation67_spill] sm:$0xff] }
 0x2bc   : > { %v12371_v15 = vpop.f32.mrf.mxu1  ;;  %v12501_v11 = vpop.f32.mrf.mxu0  ;;  %v10788_v53 = vld [vmem:[%s13172_s23 + $0x158] sm:$0xff] }
 0x2bd   : > { %17190 = vst [vmem:[#allocation51_spill] sm:$0xff] %v15044_v13  ;;  %v15047_v6 = vadd.f32 %v4812_v26, %v4114_v49  ;;  %v4117_v43 = vadd.f32 %v12371_v15, %v17193_v24  ;;  %v10597_v15 = vld [vmem:[%s13172_s23 + $0x14a] sm:$0xff] }
 0x2be   : > { %v3750_v0 = vpop.f32.mrf.mxu1  ;;  %v4815_v9 = vpop.f32.mrf.mxu0 }
 0x2bf   : > { %17192 = vst [vmem:[#allocation53_spill] sm:$0xff] %v15047_v6  ;;  %v15050_v17 = vadd.f32 %v12501_v11, %v4117_v43  ;;  %v4115_v37 = vadd.f32 %v3750_v0, %v17195_v28  ;;  %v10787_v0 = vld [vmem:[%s13172_s23 + $0x150] sm:$0xff]  ;;  %v10789_v11 = vld [vmem:[%s13172_s23 + $0x168] sm:$0xff] }
 0x2c0   : > { %v12374_v13 = vpop.f32.mrf.mxu1  ;;  %v12504_v36 = vpop.f32.mrf.mxu0  ;;  %12601 = vmatmul.mubr.msk.bf16.gmra.mxu1 %vm569_vm2, %v5398_v59  ;;  %12731 = vmatmul.mubr.msk.bf16.gmra.mxu0 %vm569_vm2, %v6474_v10  ;;  %v10790_v59 = vld [vmem:[%s13172_s23 + $0x170] sm:$0xff]  ;;  %v17199_v10 = vld [vmem:[#allocation69_spill] sm:$0xff] }
 0x2c1   : > { %17194 = vst [vmem:[#allocation55_spill] sm:$0xff] %v15050_v17  ;;  %v15057_v45 = vadd.f32 %v4815_v9, %v4115_v37  ;;  %v4120_v26 = vadd.f32 %v12374_v13, %v17197_v21  ;;  %12604 = vmatprep.mubr.msk.bf16.mxu1 %vm569_vm2, %v5399_v54  ;;  %12734 = vmatprep.mubr.msk.bf16.mxu0 %vm569_vm2, %v6475_v31  ;;  %v17201_v31 = vld [vmem:[#allocation71_spill] sm:$0xff] }
 0x2c2   : > { %v3763_v33 = vpop.f32.mrf.mxu1  ;;  %v4828_v49 = vpop.f32.mrf.mxu0  ;;  %v5400_v13 = vpack.c.bf16 %v10595_v23, %v10594_v38  ;;  %v6476_v54 = vpack.c.bf16 %v10788_v53, %v10787_v0  ;;  %v6477_v17 = vpack.c.bf16 %v10790_v59, %v10789_v11  ;;  %v10598_v23 = vld [vmem:[%s13172_s23 + $0x152] sm:$0xff]  ;;  %v10599_v0 = vld [vmem:[%s13172_s23 + $0x15a] sm:$0xff]  ;;  %v10600_v11 = vld [vmem:[%s13172_s23 + $0x16a] sm:$0xff] }
 0x2c3   : > { %17196 = vst [vmem:[#allocation57_spill] sm:$0xff] %v15057_v45  ;;  %v15068_v24 = vadd.f32 %v12504_v36, %v4120_v26  ;;  %v4118_v43 = vadd.f32 %v3763_v33, %v17199_v10  ;;  %v5401_v45 = vpack.c.bf16 %v10597_v15, %v10596_v47  ;;  %v17203_v33 = vld [vmem:[#allocation73_spill] sm:$0xff]  ;;  %v17205_v47 = vld [vmem:[#allocation75_spill] sm:$0xff]  ;;  %v10792_v15 = vld [vmem:[%s13172_s23 + $0x180] sm:$0xff] }
 0x2c4   : > { %v12375_v9 = vpop.f32.mrf.mxu1  ;;  %v12505_v28 = vpop.f32.mrf.mxu0 }
 0x2c5   : > { %17198 = vst [vmem:[#allocation59_spill] sm:$0xff] %v15068_v24  ;;  %v15071_v37 = vadd.f32 %v4828_v49, %v4118_v43  ;;  %v4121_v21 = vadd.f32 %v12375_v9, %v17201_v31  ;;  %v10601_v9 = vld [vmem:[%s13172_s23 + $0x172] sm:$0xff] }
 0x2c6   : > { %v3766_v6 = vpop.f32.mrf.mxu1  ;;  %v4831_v36 = vpop.f32.mrf.mxu0 }
 0x2c7   : > { %17200 = vst [vmem:[#allocation61_spill] sm:$0xff] %v15071_v37  ;;  %v15074_v26 = vadd.f32 %v12505_v28, %v4121_v21  ;;  %v4119_v10 = vadd.f32 %v3766_v6, %v17203_v33  ;;  %v10791_v6 = vld [vmem:[%s13172_s23 + $0x178] sm:$0xff]  ;;  %v10793_v28 = vld [vmem:[%s13172_s23 + $0x190] sm:$0xff] }
 0x2c8   : > { %v12378_v24 = vpop.f32.mrf.mxu1  ;;  %v12508_v38 = vpop.f32.mrf.mxu0  ;;  %12605 = vmatmul.mubr.msk.bf16.gmra.mxu1 %vm569_vm2, %v5400_v13  ;;  %12735 = vmatmul.mubr.msk.bf16.gmra.mxu0 %vm569_vm2, %v6476_v54  ;;  %v10794_v13 = vld [vmem:[%s13172_s23 + $0x198] sm:$0xff] }
 0x2c9   : > { %17202 = vst [vmem:[#allocation63_spill] sm:$0xff] %v15074_v26  ;;  %v15081_v53 = vadd.f32 %v4831_v36, %v4119_v10  ;;  %v4124_v49 = vadd.f32 %v12378_v24, %v17205_v47  ;;  %12608 = vmatprep.mubr.msk.bf16.mxu1 %vm569_vm2, %v5401_v45  ;;  %12738 = vmatprep.mubr.msk.bf16.mxu0 %vm569_vm2, %v6477_v17  ;;  %v17207_v54 = vld [vmem:[#allocation77_spill] sm:$0xff]  ;;  %v17209_v17 = vld [vmem:[#allocation79_spill] sm:$0xff] }
 0x2ca   : > { %v3779_v59 = vpop.f32.mrf.mxu1  ;;  %v4844_v43 = vpop.f32.mrf.mxu0  ;;  %v5402_v24 = vpack.c.bf16 %v10599_v0, %v10598_v23  ;;  %v6478_v45 = vpack.c.bf16 %v10792_v15, %v10791_v6  ;;  %v6479_v26 = vpack.c.bf16 %v10794_v13, %v10793_v28  ;;  %v10602_v0 = vld [vmem:[%s13172_s23 + $0x17a] sm:$0xff]  ;;  %v10603_v6 = vld [vmem:[%s13172_s23 + $0x182] sm:$0xff]  ;;  %v10604_v28 = vld [vmem:[%s13172_s23 + $0x192] sm:$0xff] }
 0x2cb   : > { %17204 = vst [vmem:[#allocation65_spill] sm:$0xff] %v15081_v53  ;;  %v15092_v31 = vadd.f32 %v12508_v38, %v4124_v49  ;;  %v4122_v21 = vadd.f32 %v3779_v59, %v17207_v54  ;;  %v5403_v53 = vpack.c.bf16 %v10601_v9, %v10600_v11  ;;  %v17211_v59 = vld [vmem:[#allocation81_spill] sm:$0xff]  ;;  %v17213_v11 = vld [vmem:[#allocation83_spill] sm:$0xff] }
 0x2cc   : > { %v12379_v36 = vpop.f32.mrf.mxu1  ;;  %v12509_v33 = vpop.f32.mrf.mxu0  ;;  %v10796_v9 = vld [vmem:[%s13172_s23 + $0x1a8] sm:$0xff] }
 0x2cd   : > { %17206 = vst [vmem:[#allocation67_spill] sm:$0xff] %v15092_v31  ;;  %v15095_v10 = vadd.f32 %v4844_v43, %v4122_v21  ;;  %v4125_v47 = vadd.f32 %v12379_v36, %v17209_v17  ;;  %v10605_v36 = vld [vmem:[%s13172_s23 + $0x19a] sm:$0xff] }
 0x2ce   : > { %v3782_v37 = vpop.f32.mrf.mxu1  ;;  %v4847_v38 = vpop.f32.mrf.mxu0 }
 0x2cf   : > { %17208 = vst [vmem:[#allocation69_spill] sm:$0xff] %v15095_v10  ;;  %v15098_v49 = vadd.f32 %v12509_v33, %v4125_v47  ;;  %v4123_v54 = vadd.f32 %v3782_v37, %v17211_v59  ;;  %v10795_v37 = vld [vmem:[%s13172_s23 + $0x1a0] sm:$0xff]  ;;  %v10797_v33 = vld [vmem:[%s13172_s23 + $0x1b8] sm:$0xff] }
 0x2d0   : > { %v12382_v31 = vpop.f32.mrf.mxu1  ;;  %v12512_v23 = vpop.f32.mrf.mxu0  ;;  %12609 = vmatmul.mubr.msk.bf16.gmra.mxu1 %vm569_vm2, %v5402_v24  ;;  %12739 = vmatmul.mubr.msk.bf16.gmra.mxu0 %vm569_vm2, %v6478_v45  ;;  %v10798_v24 = vld [vmem:[%s13172_s23 + $0x1c0] sm:$0xff]  ;;  %v17215_v45 = vld [vmem:[#allocation85_spill] sm:$0xff] }
 0x2d1   : > { %17210 = vst [vmem:[#allocation71_spill] sm:$0xff] %v15098_v49  ;;  %v15105_v15 = vadd.f32 %v4847_v38, %v4123_v54  ;;  %v4128_v43 = vadd.f32 %v12382_v31, %v17213_v11  ;;  %12612 = vmatprep.mubr.msk.bf16.mxu1 %vm569_vm2, %v5403_v53  ;;  %12742 = vmatprep.mubr.msk.bf16.mxu0 %vm569_vm2, %v6479_v26  ;;  %v17217_v26 = vld [vmem:[#allocation87_spill] sm:$0xff] }
 0x2d2   : > { %v3795_v13 = vpop.f32.mrf.mxu1  ;;  %v4860_v21 = vpop.f32.mrf.mxu0  ;;  %v5404_v31 = vpack.c.bf16 %v10603_v6, %v10602_v0  ;;  %v6480_v53 = vpack.c.bf16 %v10796_v9, %v10795_v37  ;;  %v6481_v49 = vpack.c.bf16 %v10798_v24, %v10797_v33  ;;  %v10606_v6 = vld [vmem:[%s13172_s23 + $0x1a2] sm:$0xff]  ;;  %v10607_v37 = vld [vmem:[%s13172_s23 + $0x1aa] sm:$0xff]  ;;  %v10608_v33 = vld [vmem:[%s13172_s23 + $0x1ba] sm:$0xff] }
 0x2d3   : > { %17212 = vst [vmem:[#allocation73_spill] sm:$0xff] %v15105_v15  ;;  %v15116_v17 = vadd.f32 %v12512_v23, %v4128_v43  ;;  %v4126_v47 = vadd.f32 %v3795_v13, %v17215_v45  ;;  %v5405_v15 = vpack.c.bf16 %v10605_v36, %v10604_v28  ;;  %v17219_v13 = vld [vmem:[#allocation89_spill] sm:$0xff]  ;;  %v17221_v28 = vld [vmem:[#allocation3_spill] sm:$0xff]  ;;  %v10800_v36 = vld [vmem:[%s13172_s23 + $0x1d0] sm:$0xff] }
 0x2d4   : > { %v12383_v38 = vpop.f32.mrf.mxu1  ;;  %v12513_v59 = vpop.f32.mrf.mxu0 }
 0x2d5   : > { %17214 = vst [vmem:[#allocation75_spill] sm:$0xff] %v15116_v17  ;;  %v15119_v54 = vadd.f32 %v4860_v21, %v4126_v47  ;;  %v4129_v11 = vadd.f32 %v12383_v38, %v17217_v26  ;;  %v10609_v38 = vld [vmem:[%s13172_s23 + $0x1c2] sm:$0xff] }
 0x2d6   : > { %v3798_v10 = vpop.f32.mrf.mxu1  ;;  %v4863_v23 = vpop.f32.mrf.mxu0 }
 0x2d7   : > { %17216 = vst [vmem:[#allocation77_spill] sm:$0xff] %v15119_v54  ;;  %v15122_v43 = vadd.f32 %v12513_v59, %v4129_v11  ;;  %v4127_v45 = vadd.f32 %v3798_v10, %v17219_v13  ;;  %v10799_v10 = vld [vmem:[%s13172_s23 + $0x1c8] sm:$0xff]  ;;  %v10801_v59 = vld [vmem:[%s13172_s23 + $0x1e0] sm:$0xff] }
 0x2d8   : > { %v12386_v17 = vpop.f32.mrf.mxu1  ;;  %v12516_v0 = vpop.f32.mrf.mxu0  ;;  %12613 = vmatmul.mubr.msk.bf16.gmra.mxu1 %vm569_vm2, %v5404_v31  ;;  %12743 = vmatmul.mubr.msk.bf16.gmra.mxu0 %vm569_vm2, %v6480_v53  ;;  %v10802_v31 = vld [vmem:[%s13172_s23 + $0x1e8] sm:$0xff]  ;;  %v17223_v53 = vld [vmem:[#allocation4_spill] sm:$0xff] }
 0x2d9   : > { %17218 = vst [vmem:[#allocation79_spill] sm:$0xff] %v15122_v43  ;;  %v15129_v9 = vadd.f32 %v4863_v23, %v4127_v45  ;;  %v4132_v21 = vadd.f32 %v12386_v17, %v17221_v28  ;;  %12616 = vmatprep.mubr.msk.bf16.mxu1 %vm569_vm2, %v5405_v15  ;;  %12746 = vmatprep.mubr.msk.bf16.mxu0 %vm569_vm2, %v6481_v49  ;;  %v17225_v49 = vld [vmem:[#allocation5_spill] sm:$0xff] }
 0x2da   : > { %v3811_v24 = vpop.f32.mrf.mxu1  ;;  %v4876_v47 = vpop.f32.mrf.mxu0  ;;  %v5406_v17 = vpack.c.bf16 %v10607_v37, %v10606_v6  ;;  %v6482_v15 = vpack.c.bf16 %v10800_v36, %v10799_v10  ;;  %v6483_v43 = vpack.c.bf16 %v10802_v31, %v10801_v59  ;;  %v10610_v37 = vld [vmem:[%s13172_s23 + $0x1ca] sm:$0xff]  ;;  %v10611_v10 = vld [vmem:[%s13172_s23 + $0x1d2] sm:$0xff]  ;;  %v10612_v59 = vld [vmem:[%s13172_s23 + $0x1e2] sm:$0xff] }
 0x2db   : > { %17220 = vst [vmem:[#allocation81_spill] sm:$0xff] %v15129_v9  ;;  %v15140_v26 = vadd.f32 %v12516_v0, %v4132_v21  ;;  %v4130_v11 = vadd.f32 %v3811_v24, %v17223_v53  ;;  %v5407_v9 = vpack.c.bf16 %v10609_v38, %v10608_v33  ;;  %v17227_v24 = vld [vmem:[#allocation6_spill] sm:$0xff]  ;;  %v17229_v33 = vld [vmem:[#allocation7_spill] sm:$0xff]  ;;  %v10804_v38 = vld [vmem:[%s13172_s23 + $0x1f8] sm:$0xff] }
 0x2dc   : > { %v12387_v23 = vpop.f32.mrf.mxu1  ;;  %v12517_v13 = vpop.f32.mrf.mxu0 }
 0x2dd   : > { %17222 = vst [vmem:[#allocation83_spill] sm:$0xff] %v15140_v26  ;;  %v15143_v45 = vadd.f32 %v4876_v47, %v4130_v11  ;;  %v4133_v28 = vadd.f32 %v12387_v23, %v17225_v49  ;;  %v10613_v23 = vld [vmem:[%s13172_s23 + $0x1ea] sm:$0xff] }
 0x2de   : > { %v3814_v54 = vpop.f32.mrf.mxu1  ;;  %v4879_v0 = vpop.f32.mrf.mxu0 }
 0x2df   : > { %17224 = vst [vmem:[#allocation85_spill] sm:$0xff] %v15143_v45  ;;  %v15146_v21 = vadd.f32 %v12517_v13, %v4133_v28  ;;  %v4131_v53 = vadd.f32 %v3814_v54, %v17227_v24  ;;  %v10803_v54 = vld [vmem:[%s13172_s23 + $0x1f0] sm:$0xff]  ;;  %v10805_v13 = vld [vmem:[%s13172_s23 + $0x208] sm:$0xff] }
 0x2e0   : > { %v12390_v26 = vpop.f32.mrf.mxu1  ;;  %v12520_v6 = vpop.f32.mrf.mxu0  ;;  %12617 = vmatmul.mubr.msk.bf16.gmra.mxu1 %vm569_vm2, %v5406_v17  ;;  %12747 = vmatmul.mubr.msk.bf16.gmra.mxu0 %vm569_vm2, %v6482_v15  ;;  %v10806_v17 = vld [vmem:[%s13172_s23 + $0x210] sm:$0xff] }
 0x2e1   : > { %17226 = vst [vmem:[#allocation87_spill] sm:$0xff] %v15146_v21  ;;  %v15153_v36 = vadd.f32 %v4879_v0, %v4131_v53  ;;  %v4136_v47 = vadd.f32 %v12390_v26, %v17229_v33  ;;  %12620 = vmatprep.mubr.msk.bf16.mxu1 %vm569_vm2, %v5407_v9  ;;  %12750 = vmatprep.mubr.msk.bf16.mxu0 %vm569_vm2, %v6483_v43  ;;  %v17231_v15 = vld [vmem:[#allocation8_spill] sm:$0xff]  ;;  %v17233_v43 = vld [vmem:[#allocation9_spill] sm:$0xff] }
 0x2e2   : > { %v3827_v31 = vpop.f32.mrf.mxu1  ;;  %v4892_v11 = vpop.f32.mrf.mxu0  ;;  %v5408_v26 = vpack.c.bf16 %v10611_v10, %v10610_v37  ;;  %v6484_v9 = vpack.c.bf16 %v10804_v38, %v10803_v54  ;;  %v6485_v21 = vpack.c.bf16 %v10806_v17, %v10805_v13  ;;  %v10614_v10 = vld [vmem:[%s13172_s23 + $0x1f2] sm:$0xff]  ;;  %v10615_v54 = vld [vmem:[%s13172_s23 + $0x1fa] sm:$0xff]  ;;  %v10616_v13 = vld [vmem:[%s13172_s23 + $0x20a] sm:$0xff] }
 0x2e3   : > { %17228 = vst [vmem:[#allocation89_spill] sm:$0xff] %v15153_v36  ;;  %v15164_v49 = vadd.f32 %v12520_v6, %v4136_v47  ;;  %v4134_v28 = vadd.f32 %v3827_v31, %v17231_v15  ;;  %v5409_v36 = vpack.c.bf16 %v10613_v23, %v10612_v59  ;;  %v17235_v31 = vld [vmem:[#allocation10_spill] sm:$0xff]  ;;  %v17237_v59 = vld [vmem:[#allocation11_spill] sm:$0xff] }
 0x2e4   : > { %v12391_v0 = vpop.f32.mrf.mxu1  ;;  %v12521_v24 = vpop.f32.mrf.mxu0  ;;  %v10808_v23 = vld [vmem:[%s13172_s23 + $0x220] sm:$0xff] }
 0x2e5   : > { %17230 = vst [vmem:[#allocation3_spill] sm:$0xff] %v15164_v49  ;;  %v15167_v53 = vadd.f32 %v4892_v11, %v4134_v28  ;;  %v4137_v33 = vadd.f32 %v12391_v0, %v17233_v43  ;;  %v10617_v0 = vld [vmem:[%s13172_s23 + $0x212] sm:$0xff] }
 0x2e6   : > { %v3830_v45 = vpop.f32.mrf.mxu1  ;;  %v4895_v6 = vpop.f32.mrf.mxu0 }
 0x2e7   : > { %17232 = vst [vmem:[#allocation4_spill] sm:$0xff] %v15167_v53  ;;  %v15170_v47 = vadd.f32 %v12521_v24, %v4137_v33  ;;  %v4135_v15 = vadd.f32 %v3830_v45, %v17235_v31  ;;  %v10807_v45 = vld [vmem:[%s13172_s23 + $0x218] sm:$0xff]  ;;  %v10809_v24 = vld [vmem:[%s13172_s23 + $0x230] sm:$0xff] }
 0x2e8   : > { %v12394_v49 = vpop.f32.mrf.mxu1  ;;  %v12524_v37 = vpop.f32.mrf.mxu0  ;;  %12621 = vmatmul.mubr.msk.bf16.gmra.mxu1 %vm569_vm2, %v5408_v26  ;;  %12751 = vmatmul.mubr.msk.bf16.gmra.mxu0 %vm569_vm2, %v6484_v9  ;;  %v10810_v26 = vld [vmem:[%s13172_s23 + $0x238] sm:$0xff]  ;;  %v17239_v9 = vld [vmem:[#allocation12_spill] sm:$0xff] }
 0x2e9   : > { %17234 = vst [vmem:[#allocation5_spill] sm:$0xff] %v15170_v47  ;;  %v15177_v38 = vadd.f32 %v4895_v6, %v4135_v15  ;;  %v4140_v11 = vadd.f32 %v12394_v49, %v17237_v59  ;;  %12624 = vmatprep.mubr.msk.bf16.mxu1 %vm569_vm2, %v5409_v36  ;;  %12754 = vmatprep.mubr.msk.bf16.mxu0 %vm569_vm2, %v6485_v21  ;;  %v17241_v21 = vld [vmem:[#allocation13_spill] sm:$0xff] }
 0x2ea   : > { %v3843_v17 = vpop.f32.mrf.mxu1  ;;  %v4908_v28 = vpop.f32.mrf.mxu0  ;;  %v5410_v49 = vpack.c.bf16 %v10615_v54, %v10614_v10  ;;  %v6486_v36 = vpack.c.bf16 %v10808_v23, %v10807_v45  ;;  %v6487_v47 = vpack.c.bf16 %v10810_v26, %v10809_v24  ;;  %v10618_v54 = vld [vmem:[%s13172_s23 + $0x21a] sm:$0xff]  ;;  %v10619_v45 = vld [vmem:[%s13172_s23 + $0x222] sm:$0xff]  ;;  %v10620_v24 = vld [vmem:[%s13172_s23 + $0x232] sm:$0xff] }
 0x2eb   : > { %17236 = vst [vmem:[#allocation6_spill] sm:$0xff] %v15177_v38  ;;  %v15188_v43 = vadd.f32 %v12524_v37, %v4140_v11  ;;  %v4138_v33 = vadd.f32 %v3843_v17, %v17239_v9  ;;  %v5411_v38 = vpack.c.bf16 %v10617_v0, %v10616_v13  ;;  %v17243_v17 = vld [vmem:[#allocation14_spill] sm:$0xff]  ;;  %v17245_v13 = vld [vmem:[#allocation15_spill] sm:$0xff] }
 0x2ec   : > { %v12395_v6 = vpop.f32.mrf.mxu1  ;;  %v12525_v31 = vpop.f32.mrf.mxu0  ;;  %v10812_v0 = vld [vmem:[%s13172_s23 + $0x248] sm:$0xff] }
 0x2ed   : > { %17238 = vst [vmem:[#allocation7_spill] sm:$0xff] %v15188_v43  ;;  %v15191_v15 = vadd.f32 %v4908_v28, %v4138_v33  ;;  %v4141_v59 = vadd.f32 %v12395_v6, %v17241_v21  ;;  %v10621_v6 = vld [vmem:[%s13172_s23 + $0x23a] sm:$0xff] }
 0x2ee   : > { %v3846_v53 = vpop.f32.mrf.mxu1  ;;  %v4911_v37 = vpop.f32.mrf.mxu0 }
 0x2ef   : > { %17240 = vst [vmem:[#allocation8_spill] sm:$0xff] %v15191_v15  ;;  %v15194_v11 = vadd.f32 %v12525_v31, %v4141_v59  ;;  %v4139_v9 = vadd.f32 %v3846_v53, %v17243_v17  ;;  %v10811_v53 = vld [vmem:[%s13172_s23 + $0x240] sm:$0xff]  ;;  %v10813_v31 = vld [vmem:[%s13172_s23 + $0x258] sm:$0xff] }
 0x2f0   : > { %v12398_v43 = vpop.f32.mrf.mxu1  ;;  %v12528_v10 = vpop.f32.mrf.mxu0  ;;  %12625 = vmatmul.mubr.msk.bf16.gmra.mxu1 %vm569_vm2, %v5410_v49  ;;  %12755 = vmatmul.mubr.msk.bf16.gmra.mxu0 %vm569_vm2, %v6486_v36  ;;  %v10814_v49 = vld [vmem:[%s13172_s23 + $0x260] sm:$0xff]  ;;  %v17247_v36 = vld [vmem:[#allocation16_spill] sm:$0xff] }
 0x2f1   : > { %17242 = vst [vmem:[#allocation9_spill] sm:$0xff] %v15194_v11  ;;  %v15201_v23 = vadd.f32 %v4911_v37, %v4139_v9  ;;  %v4144_v28 = vadd.f32 %v12398_v43, %v17245_v13  ;;  %12628 = vmatprep.mubr.msk.bf16.mxu1 %vm569_vm2, %v5411_v38  ;;  %12758 = vmatprep.mubr.msk.bf16.mxu0 %vm569_vm2, %v6487_v47  ;;  %v17249_v47 = vld [vmem:[#allocation17_spill] sm:$0xff] }
 0x2f2   : > { %v3859_v26 = vpop.f32.mrf.mxu1  ;;  %v4924_v33 = vpop.f32.mrf.mxu0  ;;  %v5412_v43 = vpack.c.bf16 %v10619_v45, %v10618_v54  ;;  %v6488_v38 = vpack.c.bf16 %v10812_v0, %v10811_v53  ;;  %v6489_v11 = vpack.c.bf16 %v10814_v49, %v10813_v31  ;;  %v10622_v45 = vld [vmem:[%s13172_s23 + $0x242] sm:$0xff]  ;;  %v10623_v53 = vld [vmem:[%s13172_s23 + $0x24a] sm:$0xff]  ;;  %v10624_v31 = vld [vmem:[%s13172_s23 + $0x25a] sm:$0xff] }
 0x2f3   : > { %17244 = vst [vmem:[#allocation10_spill] sm:$0xff] %v15201_v23  ;;  %v15212_v21 = vadd.f32 %v12528_v10, %v4144_v28  ;;  %v4142_v59 = vadd.f32 %v3859_v26, %v17247_v36  ;;  %v5413_v23 = vpack.c.bf16 %v10621_v6, %v10620_v24  ;;  %v17251_v26 = vld [vmem:[#allocation18_spill] sm:$0xff]  ;;  %v17253_v24 = vld [vmem:[#allocation19_spill] sm:$0xff]  ;;  %v10816_v6 = vld [vmem:[%s13172_s23 + $0x270] sm:$0xff] }
 0x2f4   : > { %v12399_v37 = vpop.f32.mrf.mxu1  ;;  %v12529_v17 = vpop.f32.mrf.mxu0 }
 0x2f5   : > { %17246 = vst [vmem:[#allocation11_spill] sm:$0xff] %v15212_v21  ;;  %v15215_v9 = vadd.f32 %v4924_v33, %v4142_v59  ;;  %v4145_v13 = vadd.f32 %v12399_v37, %v17249_v47  ;;  %v10625_v37 = vld [vmem:[%s13172_s23 + $0x262] sm:$0xff] }
 0x2f6   : > { %v3862_v15 = vpop.f32.mrf.mxu1  ;;  %v4927_v10 = vpop.f32.mrf.mxu0 }
 0x2f7   : > { %17248 = vst [vmem:[#allocation12_spill] sm:$0xff] %v15215_v9  ;;  %v15218_v28 = vadd.f32 %v12529_v17, %v4145_v13  ;;  %v4143_v36 = vadd.f32 %v3862_v15, %v17251_v26  ;;  %v10815_v15 = vld [vmem:[%s13172_s23 + $0x268] sm:$0xff]  ;;  %v10817_v17 = vld [vmem:[%s13172_s23 + $0x280] sm:$0xff] }
 0x2f8   : > { %v12402_v21 = vpop.f32.mrf.mxu1  ;;  %v12532_v54 = vpop.f32.mrf.mxu0  ;;  %12629 = vmatmul.mubr.msk.bf16.gmra.mxu1 %vm569_vm2, %v5412_v43  ;;  %12759 = vmatmul.mubr.msk.bf16.gmra.mxu0 %vm569_vm2, %v6488_v38  ;;  %v10818_v43 = vld [vmem:[%s13172_s23 + $0x288] sm:$0xff]  ;;  %v17255_v38 = vld [vmem:[#allocation20_spill] sm:$0xff] }
 0x2f9   : > { %17250 = vst [vmem:[#allocation13_spill] sm:$0xff] %v15218_v28  ;;  %v15225_v0 = vadd.f32 %v4927_v10, %v4143_v36  ;;  %v4148_v33 = vadd.f32 %v12402_v21, %v17253_v24  ;;  %12632 = vmatprep.mubr.msk.bf16.mxu1 %vm569_vm2, %v5413_v23  ;;  %12762 = vmatprep.mubr.msk.bf16.mxu0 %vm569_vm2, %v6489_v11  ;;  %v17257_v11 = vld [vmem:[#allocation21_spill] sm:$0xff] }
 0x2fa   : > { %v3875_v49 = vpop.f32.mrf.mxu1  ;;  %v4940_v59 = vpop.f32.mrf.mxu0  ;;  %v5414_v21 = vpack.c.bf16 %v10623_v53, %v10622_v45  ;;  %v6490_v23 = vpack.c.bf16 %v10816_v6, %v10815_v15  ;;  %v6491_v28 = vpack.c.bf16 %v10818_v43, %v10817_v17  ;;  %v10626_v53 = vld [vmem:[%s13172_s23 + $0x26a] sm:$0xff]  ;;  %v10627_v15 = vld [vmem:[%s13172_s23 + $0x272] sm:$0xff]  ;;  %v10628_v17 = vld [vmem:[%s13172_s23 + $0x282] sm:$0xff] }
 0x2fb   : > { %17252 = vst [vmem:[#allocation14_spill] sm:$0xff] %v15225_v0  ;;  %v15236_v47 = vadd.f32 %v12532_v54, %v4148_v33  ;;  %v4146_v13 = vadd.f32 %v3875_v49, %v17255_v38  ;;  %v5415_v0 = vpack.c.bf16 %v10625_v37, %v10624_v31  ;;  %v17259_v49 = vld [vmem:[#allocation22_spill] sm:$0xff]  ;;  %v17261_v31 = vld [vmem:[#allocation23_spill] sm:$0xff]  ;;  %v10820_v37 = vld [vmem:[%s13172_s23 + $0x298] sm:$0xff] }
 0x2fc   : > { %v12403_v10 = vpop.f32.mrf.mxu1  ;;  %v12533_v26 = vpop.f32.mrf.mxu0 }
 0x2fd   : > { %17254 = vst [vmem:[#allocation15_spill] sm:$0xff] %v15236_v47  ;;  %v15239_v36 = vadd.f32 %v4940_v59, %v4146_v13  ;;  %v4149_v24 = vadd.f32 %v12403_v10, %v17257_v11  ;;  %v10629_v10 = vld [vmem:[%s13172_s23 + $0x28a] sm:$0xff] }
 0x2fe   : > { %v3878_v9 = vpop.f32.mrf.mxu1  ;;  %v4943_v54 = vpop.f32.mrf.mxu0 }
 0x2ff   : > { %17256 = vst [vmem:[#allocation16_spill] sm:$0xff] %v15239_v36  ;;  %v15242_v33 = vadd.f32 %v12533_v26, %v4149_v24  ;;  %v4147_v38 = vadd.f32 %v3878_v9, %v17259_v49  ;;  %v10819_v9 = vld [vmem:[%s13172_s23 + $0x290] sm:$0xff]  ;;  %v10821_v26 = vld [vmem:[%s13172_s23 + $0x2a8] sm:$0xff] }
 0x300   : > { %v12406_v47 = vpop.f32.mrf.mxu1  ;;  %v12536_v45 = vpop.f32.mrf.mxu0  ;;  %12633 = vmatmul.mubr.msk.bf16.gmra.mxu1 %vm569_vm2, %v5414_v21  ;;  %12763 = vmatmul.mubr.msk.bf16.gmra.mxu0 %vm569_vm2, %v6490_v23  ;;  %v10822_v21 = vld [vmem:[%s13172_s23 + $0x2b0] sm:$0xff] }
 0x301   : > { %17258 = vst [vmem:[#allocation17_spill] sm:$0xff] %v15242_v33  ;;  %v15249_v6 = vadd.f32 %v4943_v54, %v4147_v38  ;;  %v4152_v59 = vadd.f32 %v12406_v47, %v17261_v31  ;;  %12636 = vmatprep.mubr.msk.bf16.mxu1 %vm569_vm2, %v5415_v0  ;;  %12766 = vmatprep.mubr.msk.bf16.mxu0 %vm569_vm2, %v6491_v28  ;;  %v17263_v23 = vld [vmem:[#allocation24_spill] sm:$0xff]  ;;  %v17265_v28 = vld [vmem:[#allocation25_spill] sm:$0xff] }
 0x302   : > { %v3891_v43 = vpop.f32.mrf.mxu1  ;;  %v4956_v13 = vpop.f32.mrf.mxu0  ;;  %v5416_v47 = vpack.c.bf16 %v10627_v15, %v10626_v53  ;;  %v6492_v0 = vpack.c.bf16 %v10820_v37, %v10819_v9  ;;  %v6493_v33 = vpack.c.bf16 %v10822_v21, %v10821_v26  ;;  %v10630_v15 = vld [vmem:[%s13172_s23 + $0x292] sm:$0xff]  ;;  %v10631_v9 = vld [vmem:[%s13172_s23 + $0x29a] sm:$0xff]  ;;  %v10632_v26 = vld [vmem:[%s13172_s23 + $0x2aa] sm:$0xff] }
 0x303   : > { %17260 = vst [vmem:[#allocation18_spill] sm:$0xff] %v15249_v6  ;;  %v15260_v11 = vadd.f32 %v12536_v45, %v4152_v59  ;;  %v4150_v24 = vadd.f32 %v3891_v43, %v17263_v23  ;;  %v5417_v6 = vpack.c.bf16 %v10629_v10, %v10628_v17  ;;  %v17267_v43 = vld [vmem:[#allocation26_spill] sm:$0xff]  ;;  %v17269_v17 = vld [vmem:[#allocation27_spill] sm:$0xff] }
 0x304   : > { %v12407_v54 = vpop.f32.mrf.mxu1  ;;  %v12537_v49 = vpop.f32.mrf.mxu0  ;;  %v10824_v10 = vld [vmem:[%s13172_s23 + $0x2c0] sm:$0xff] }
 0x305   : > { %17262 = vst [vmem:[#allocation19_spill] sm:$0xff] %v15260_v11  ;;  %v15263_v38 = vadd.f32 %v4956_v13, %v4150_v24  ;;  %v4153_v31 = vadd.f32 %v12407_v54, %v17265_v28  ;;  %v10633_v54 = vld [vmem:[%s13172_s23 + $0x2b2] sm:$0xff] }
 0x306   : > { %v3894_v36 = vpop.f32.mrf.mxu1  ;;  %v4959_v45 = vpop.f32.mrf.mxu0 }
 0x307   : > { %17264 = vst [vmem:[#allocation20_spill] sm:$0xff] %v15263_v38  ;;  %v15266_v59 = vadd.f32 %v12537_v49, %v4153_v31  ;;  %v4151_v23 = vadd.f32 %v3894_v36, %v17267_v43  ;;  %v10823_v36 = vld [vmem:[%s13172_s23 + $0x2b8] sm:$0xff]  ;;  %v10825_v49 = vld [vmem:[%s13172_s23 + $0x2d0] sm:$0xff] }
 0x308   : > { %v12410_v11 = vpop.f32.mrf.mxu1  ;;  %v12540_v53 = vpop.f32.mrf.mxu0  ;;  %12637 = vmatmul.mubr.msk.bf16.gmra.mxu1 %vm569_vm2, %v5416_v47  ;;  %12767 = vmatmul.mubr.msk.bf16.gmra.mxu0 %vm569_vm2, %v6492_v0  ;;  %v10826_v47 = vld [vmem:[%s13172_s23 + $0x2d8] sm:$0xff]  ;;  %v17271_v0 = vld [vmem:[#allocation28_spill] sm:$0xff] }
 0x309   : > { %17266 = vst [vmem:[#allocation21_spill] sm:$0xff] %v15266_v59  ;;  %v15273_v37 = vadd.f32 %v4959_v45, %v4151_v23  ;;  %v4156_v13 = vadd.f32 %v12410_v11, %v17269_v17  ;;  %12640 = vmatprep.mubr.msk.bf16.mxu1 %vm569_vm2, %v5417_v6  ;;  %12770 = vmatprep.mubr.msk.bf16.mxu0 %vm569_vm2, %v6493_v33  ;;  %v17273_v33 = vld [vmem:[#allocation29_spill] sm:$0xff] }
 0x30a   : > { %v3907_v21 = vpop.f32.mrf.mxu1  ;;  %v4972_v24 = vpop.f32.mrf.mxu0  ;;  %v5418_v11 = vpack.c.bf16 %v10631_v9, %v10630_v15  ;;  %v6494_v6 = vpack.c.bf16 %v10824_v10, %v10823_v36  ;;  %v6495_v59 = vpack.c.bf16 %v10826_v47, %v10825_v49  ;;  %v10634_v9 = vld [vmem:[%s13172_s23 + $0x2ba] sm:$0xff]  ;;  %v10635_v36 = vld [vmem:[%s13172_s23 + $0x2c2] sm:$0xff]  ;;  %v10636_v49 = vld [vmem:[%s13172_s23 + $0x2d2] sm:$0xff] }
 0x30b   : > { %17268 = vst [vmem:[#allocation22_spill] sm:$0xff] %v15273_v37  ;;  %v15284_v28 = vadd.f32 %v12540_v53, %v4156_v13  ;;  %v4154_v31 = vadd.f32 %v3907_v21, %v17271_v0  ;;  %v5419_v37 = vpack.c.bf16 %v10633_v54, %v10632_v26  ;;  %v17275_v21 = vld [vmem:[#allocation30_spill] sm:$0xff]  ;;  %v17277_v26 = vld [vmem:[#allocation31_spill] sm:$0xff] }
 0x30c   : > { %v12411_v45 = vpop.f32.mrf.mxu1  ;;  %v12541_v43 = vpop.f32.mrf.mxu0  ;;  %v10828_v54 = vld [vmem:[%s13172_s23 + $0x2e8] sm:$0xff] }
 0x30d   : > { %17270 = vst [vmem:[#allocation23_spill] sm:$0xff] %v15284_v28  ;;  %v15287_v23 = vadd.f32 %v4972_v24, %v4154_v31  ;;  %v4157_v17 = vadd.f32 %v12411_v45, %v17273_v33  ;;  %v10637_v45 = vld [vmem:[%s13172_s23 + $0x2da] sm:$0xff] }
 0x30e   : > { %v3910_v38 = vpop.f32.mrf.mxu1  ;;  %v4975_v53 = vpop.f32.mrf.mxu0 }
 0x30f   : > { %17272 = vst [vmem:[#allocation24_spill] sm:$0xff] %v15287_v23  ;;  %v15290_v13 = vadd.f32 %v12541_v43, %v4157_v17  ;;  %v4155_v0 = vadd.f32 %v3910_v38, %v17275_v21  ;;  %v10827_v38 = vld [vmem:[%s13172_s23 + $0x2e0] sm:$0xff]  ;;  %v10829_v43 = vld [vmem:[%s13172_s23 + $0x2f8] sm:$0xff] }
 0x310   : > { %v12414_v28 = vpop.f32.mrf.mxu1  ;;  %v12544_v15 = vpop.f32.mrf.mxu0  ;;  %12641 = vmatmul.mubr.msk.bf16.gmra.mxu1 %vm569_vm2, %v5418_v11  ;;  %12771 = vmatmul.mubr.msk.bf16.gmra.mxu0 %vm569_vm2, %v6494_v6  ;;  %v10830_v11 = vld [vmem:[%s13172_s23 + $0x300] sm:$0xff]  ;;  %v17279_v6 = vld [vmem:[#allocation32_spill] sm:$0xff] }
 0x311   : > { %17274 = vst [vmem:[#allocation25_spill] sm:$0xff] %v15290_v13  ;;  %v15297_v10 = vadd.f32 %v4975_v53, %v4155_v0  ;;  %v4160_v24 = vadd.f32 %v12414_v28, %v17277_v26  ;;  %12644 = vmatprep.mubr.msk.bf16.mxu1 %vm569_vm2, %v5419_v37  ;;  %12774 = vmatprep.mubr.msk.bf16.mxu0 %vm569_vm2, %v6495_v59  ;;  %v17281_v59 = vld [vmem:[#allocation33_spill] sm:$0xff] }
 0x312   : > { %v3923_v47 = vpop.f32.mrf.mxu1  ;;  %v4988_v31 = vpop.f32.mrf.mxu0  ;;  %v5420_v28 = vpack.c.bf16 %v10635_v36, %v10634_v9  ;;  %v6496_v37 = vpack.c.bf16 %v10828_v54, %v10827_v38  ;;  %v6497_v13 = vpack.c.bf16 %v10830_v11, %v10829_v43  ;;  %v10638_v36 = vld [vmem:[%s13172_s23 + $0x2e2] sm:$0xff]  ;;  %v10639_v38 = vld [vmem:[%s13172_s23 + $0x2ea] sm:$0xff]  ;;  %v10640_v43 = vld [vmem:[%s13172_s23 + $0x2fa] sm:$0xff] }
 0x313   : > { %17276 = vst [vmem:[#allocation26_spill] sm:$0xff] %v15297_v10  ;;  %v15308_v33 = vadd.f32 %v12544_v15, %v4160_v24  ;;  %v4158_v17 = vadd.f32 %v3923_v47, %v17279_v6  ;;  %v5421_v10 = vpack.c.bf16 %v10637_v45, %v10636_v49  ;;  %v17283_v47 = vld [vmem:[#allocation34_spill] sm:$0xff]  ;;  %v17285_v49 = vld [vmem:[#allocation35_spill] sm:$0xff]  ;;  %v10832_v45 = vld [vmem:[%s13172_s23 + $0x310] sm:$0xff] }
 0x314   : > { %v12415_v53 = vpop.f32.mrf.mxu1  ;;  %v12545_v21 = vpop.f32.mrf.mxu0 }
 0x315   : > { %17278 = vst [vmem:[#allocation27_spill] sm:$0xff] %v15308_v33  ;;  %v15311_v0 = vadd.f32 %v4988_v31, %v4158_v17  ;;  %v4161_v26 = vadd.f32 %v12415_v53, %v17281_v59  ;;  %v10641_v53 = vld [vmem:[%s13172_s23 + $0x302] sm:$0xff] }
 0x316   : > { %v3926_v23 = vpop.f32.mrf.mxu1  ;;  %v4991_v15 = vpop.f32.mrf.mxu0 }
 0x317   : > { %17280 = vst [vmem:[#allocation28_spill] sm:$0xff] %v15311_v0  ;;  %v15314_v24 = vadd.f32 %v12545_v21, %v4161_v26  ;;  %v4159_v6 = vadd.f32 %v3926_v23, %v17283_v47  ;;  %v10831_v23 = vld [vmem:[%s13172_s23 + $0x308] sm:$0xff]  ;;  %v10833_v21 = vld [vmem:[%s13172_s23 + $0x320] sm:$0xff] }
 0x318   : > { %v12418_v33 = vpop.f32.mrf.mxu1  ;;  %v12548_v9 = vpop.f32.mrf.mxu0  ;;  %12645 = vmatmul.mubr.msk.bf16.gmra.mxu1 %vm569_vm2, %v5420_v28  ;;  %12775 = vmatmul.mubr.msk.bf16.gmra.mxu0 %vm569_vm2, %v6496_v37  ;;  %v10834_v28 = vld [vmem:[%s13172_s23 + $0x328] sm:$0xff]  ;;  %v17287_v37 = vld [vmem:[#allocation36_spill] sm:$0xff] }
 0x319   : > { %17282 = vst [vmem:[#allocation29_spill] sm:$0xff] %v15314_v24  ;;  %v15321_v54 = vadd.f32 %v4991_v15, %v4159_v6  ;;  %v4164_v31 = vadd.f32 %v12418_v33, %v17285_v49  ;;  %12648 = vmatprep.mubr.msk.bf16.mxu1 %vm569_vm2, %v5421_v10  ;;  %12778 = vmatprep.mubr.msk.bf16.mxu0 %vm569_vm2, %v6497_v13  ;;  %v17288_v13 = vld [vmem:[#allocation37_spill] sm:$0xff] }
 0x31a   : > { %v3939_v11 = vpop.f32.mrf.mxu1  ;;  %v5004_v17 = vpop.f32.mrf.mxu0  ;;  %v5422_v33 = vpack.c.bf16 %v10639_v38, %v10638_v36  ;;  %v6498_v10 = vpack.c.bf16 %v10832_v45, %v10831_v23  ;;  %v6499_v24 = vpack.c.bf16 %v10834_v28, %v10833_v21  ;;  %v10642_v38 = vld [vmem:[%s13172_s23 + $0x30a] sm:$0xff]  ;;  %v10643_v23 = vld [vmem:[%s13172_s23 + $0x312] sm:$0xff] }
 0x31b   : > { %17284 = vst [vmem:[#allocation30_spill] sm:$0xff] %v15321_v54  ;;  %v15332_v59 = vadd.f32 %v12548_v9, %v4164_v31  ;;  %v4162_v26 = vadd.f32 %v3939_v11, %v17287_v37  ;;  %v5423_v54 = vpack.c.bf16 %v10641_v53, %v10640_v43  ;;  %v17290_v11 = vld [vmem:[#allocation2_spill] sm:$0xff] }
 0x31c   : > { %v12419_v15 = vpop.f32.mrf.mxu1  ;;  %v12549_v47 = vpop.f32.mrf.mxu0  ;;  %v10644_v53 = vld [vmem:[%s13172_s23 + $0x322] sm:$0xff] }
 0x31d   : > { %17286 = vst [vmem:[#allocation31_spill] sm:$0xff] %v15332_v59  ;;  %v15335_v6 = vadd.f32 %v5004_v17, %v4162_v26  ;;  %v4165_v49 = vadd.f32 %v12419_v15, %v17288_v13  ;;  %v10836_v17 = vld [vmem:[%s13172_s23 + $0x338] sm:$0xff]  ;;  %v10645_v26 = vld [vmem:[%s13172_s23 + $0x32a] sm:$0xff] }
 0x31e   : > { %v3942_v0 = vpop.f32.mrf.mxu1  ;;  %v5007_v9 = vpop.f32.mrf.mxu0  ;;  %v10837_v15 = vld [vmem:[%s13172_s23 + $0x348] sm:$0xff] }
 0x31f   : > { %v15338_v31 = vadd.f32 %v12549_v47, %v4165_v49  ;;  %v4163_v37 = vadd.f32 %v3942_v0, %v17290_v11  ;;  %v10835_v0 = vld [vmem:[%s13172_s23 + $0x330] sm:$0xff] }
 0x320   : > { %v12422_v59 = vpop.f32.mrf.mxu1  ;;  %v12552_v36 = vpop.f32.mrf.mxu0  ;;  %12649 = vmatmul.mubr.msk.bf16.gmra.mxu1 %vm569_vm2, %v5422_v33  ;;  %12779 = vmatmul.mubr.msk.bf16.gmra.mxu0 %vm569_vm2, %v6498_v10  ;;  %v10838_v47 = vld [vmem:[%s13172_s23 + $0x350] sm:$0xff]  ;;  %v17293_v10 = vld [vmem:[#allocation38_spill] sm:$0xff] }
 0x321   : > { %17289 = vst [vmem:[#allocation32_spill] sm:$0xff] %v15338_v31  ;;  %v15345_v45 = vadd.f32 %v5007_v9, %v4163_v37  ;;  %v4168_v43 = vadd.f32 %v12422_v59, %v14582_v58  ;;  %12652 = vmatprep.mubr.msk.bf16.mxu1 %vm569_vm2, %v5423_v54  ;;  %12782 = vmatprep.mubr.msk.bf16.mxu0 %vm569_vm2, %v6499_v24  ;;  %v17295_v24 = vld [vmem:[#allocation39_spill] sm:$0xff] }
 0x322   : > { %v3955_v21 = vpop.f32.mrf.mxu1  ;;  %v5020_v28 = vpop.f32.mrf.mxu0  ;;  %v5424_v58 = vpack.c.bf16 %v10643_v23, %v10642_v38  ;;  %v6500_v54 = vpack.c.bf16 %v10836_v17, %v10835_v0  ;;  %v5425_v37 = vpack.c.bf16 %v10645_v26, %v10644_v53  ;;  %v10646_v23 = vld [vmem:[%s13172_s23 + $0x332] sm:$0xff]  ;;  %v10647_v0 = vld [vmem:[%s13172_s23 + $0x33a] sm:$0xff] }
 0x323   : > { %17291 = vst [vmem:[#allocation33_spill] sm:$0xff] %v15345_v45  ;;  %v15356_v33 = vadd.f32 %v12552_v36, %v4168_v43  ;;  %v4166_v13 = vadd.f32 %v3955_v21, %v17293_v10  ;;  %v6501_v45 = vpack.c.bf16 %v10838_v47, %v10837_v15  ;;  %v17297_v21 = vld [vmem:[#allocation40_spill] sm:$0xff]  ;;  %v17299_v53 = vld [vmem:[#allocation41_spill] sm:$0xff]  ;;  %v10840_v26 = vld [vmem:[%s13172_s23 + $0x360] sm:$0xff] }
 0x324   : > { %v12423_v49 = vpop.f32.mrf.mxu1  ;;  %v12553_v9 = vpop.f32.mrf.mxu0  ;;  %v10648_v15 = vld [vmem:[%s13172_s23 + $0x34a] sm:$0xff] }
 0x325   : > { %17292 = vst [vmem:[#allocation34_spill] sm:$0xff] %v15356_v33  ;;  %v15359_v59 = vadd.f32 %v5020_v28, %v4166_v13  ;;  %v4169_v11 = vadd.f32 %v12423_v49, %v17295_v24  ;;  %v10649_v49 = vld [vmem:[%s13172_s23 + $0x352] sm:$0xff] }
 0x326   : > { %v3958_v31 = vpop.f32.mrf.mxu1  ;;  %v5023_v36 = vpop.f32.mrf.mxu0 }
 0x327   : > { %17294 = vst [vmem:[#allocation35_spill] sm:$0xff] %v15359_v59  ;;  %v15362_v43 = vadd.f32 %v12553_v9, %v4169_v11  ;;  %v4167_v10 = vadd.f32 %v3958_v31, %v17297_v21  ;;  %v10839_v31 = vld [vmem:[%s13172_s23 + $0x358] sm:$0xff]  ;;  %v10841_v9 = vld [vmem:[%s13172_s23 + $0x370] sm:$0xff] }
 0x328   : > { %v12426_v33 = vpop.f32.mrf.mxu1  ;;  %v12556_v38 = vpop.f32.mrf.mxu0  ;;  %12653 = vmatmul.mubr.msk.bf16.gmra.mxu1 %vm569_vm2, %v5424_v58  ;;  %12783 = vmatmul.mubr.msk.bf16.gmra.mxu0 %vm569_vm2, %v6500_v54  ;;  %v10842_v58 = vld [vmem:[%s13172_s23 + $0x378] sm:$0xff]  ;;  %v17301_v54 = vld [vmem:[#allocation42_spill] sm:$0xff] }
 0x329   : > { %17296 = vst [vmem:[#allocation36_spill] sm:$0xff] %v15362_v43  ;;  %v15369_v17 = vadd.f32 %v5023_v36, %v4167_v10  ;;  %v4172_v28 = vadd.f32 %v12426_v33, %v17299_v53  ;;  %12656 = vmatprep.mubr.msk.bf16.mxu1 %vm569_vm2, %v5425_v37  ;;  %12786 = vmatprep.mubr.msk.bf16.mxu0 %vm569_vm2, %v6501_v45  ;;  %v17303_v45 = vld [vmem:[#allocation44_spill] sm:$0xff] }
 0x32a   : > { %v3971_v47 = vpop.f32.mrf.mxu1  ;;  %v5036_v13 = vpop.f32.mrf.mxu0  ;;  %v5426_v33 = vpack.c.bf16 %v10647_v0, %v10646_v23  ;;  %v6502_v37 = vpack.c.bf16 %v10840_v26, %v10839_v31  ;;  %v6503_v43 = vpack.c.bf16 %v10842_v58, %v10841_v9  ;;  %v10650_v0 = vld [vmem:[%s13172_s23 + $0x35a] sm:$0xff]  ;;  %v10651_v31 = vld [vmem:[%s13172_s23 + $0x362] sm:$0xff]  ;;  %v10652_v9 = vld [vmem:[%s13172_s23 + $0x372] sm:$0xff] }
 0x32b   : > { %17298 = vst [vmem:[#allocation37_spill] sm:$0xff] %v15369_v17  ;;  %v15380_v24 = vadd.f32 %v12556_v38, %v4172_v28  ;;  %v4170_v11 = vadd.f32 %v3971_v47, %v17301_v54  ;;  %v5427_v17 = vpack.c.bf16 %v10649_v49, %v10648_v15  ;;  %v17305_v47 = vld [vmem:[#allocation46_spill] sm:$0xff]  ;;  %v17307_v15 = vld [vmem:[#allocation48_spill] sm:$0xff]  ;;  %v10844_v49 = vld [vmem:[%s13172_s23 + $0x388] sm:$0xff] }
 0x32c   : > { %v12427_v36 = vpop.f32.mrf.mxu1  ;;  %v12557_v21 = vpop.f32.mrf.mxu0 }
 0x32d   : > { %17300 = vst [vmem:[#allocation2_spill] sm:$0xff] %v15380_v24  ;;  %v15383_v10 = vadd.f32 %v5036_v13, %v4170_v11  ;;  %v4173_v53 = vadd.f32 %v12427_v36, %v17303_v45  ;;  %v10653_v36 = vld [vmem:[%s13172_s23 + $0x37a] sm:$0xff] }
 0x32e   : > { %v3974_v59 = vpop.f32.mrf.mxu1  ;;  %v5039_v38 = vpop.f32.mrf.mxu0 }
 0x32f   : > { %17302 = vst [vmem:[#allocation38_spill] sm:$0xff] %v15383_v10  ;;  %v15386_v28 = vadd.f32 %v12557_v21, %v4173_v53  ;;  %v4171_v54 = vadd.f32 %v3974_v59, %v17305_v47  ;;  %v10843_v59 = vld [vmem:[%s13172_s23 + $0x380] sm:$0xff]  ;;  %v10845_v21 = vld [vmem:[%s13172_s23 + $0x398] sm:$0xff] }
 0x330   : > { %v12430_v24 = vpop.f32.mrf.mxu1  ;;  %v12560_v23 = vpop.f32.mrf.mxu0  ;;  %12657 = vmatmul.mubr.msk.bf16.gmra.mxu1 %vm569_vm2, %v5426_v33  ;;  %12787 = vmatmul.mubr.msk.bf16.gmra.mxu0 %vm569_vm2, %v6502_v37  ;;  %v10846_v33 = vld [vmem:[%s13172_s23 + $0x3a0] sm:$0xff] }
 0x331   : > { %17304 = vst [vmem:[#allocation39_spill] sm:$0xff] %v15386_v28  ;;  %v15393_v26 = vadd.f32 %v5039_v38, %v4171_v54  ;;  %v4176_v13 = vadd.f32 %v12430_v24, %v17307_v15  ;;  %12660 = vmatprep.mubr.msk.bf16.mxu1 %vm569_vm2, %v5427_v17  ;;  %12790 = vmatprep.mubr.msk.bf16.mxu0 %vm569_vm2, %v6503_v43  ;;  %v17309_v37 = vld [vmem:[#allocation50_spill] sm:$0xff]  ;;  %v17311_v43 = vld [vmem:[#allocation52_spill] sm:$0xff] }
 0x332   : > { %v3987_v58 = vpop.f32.mrf.mxu1  ;;  %v5052_v11 = vpop.f32.mrf.mxu0  ;;  %v5428_v24 = vpack.c.bf16 %v10651_v31, %v10650_v0  ;;  %v6504_v17 = vpack.c.bf16 %v10844_v49, %v10843_v59  ;;  %v6505_v28 = vpack.c.bf16 %v10846_v33, %v10845_v21  ;;  %v10654_v31 = vld [vmem:[%s13172_s23 + $0x382] sm:$0xff]  ;;  %v10655_v59 = vld [vmem:[%s13172_s23 + $0x38a] sm:$0xff]  ;;  %v10656_v21 = vld [vmem:[%s13172_s23 + $0x39a] sm:$0xff] }
 0x333   : > { %17306 = vst [vmem:[#allocation40_spill] sm:$0xff] %v15393_v26  ;;  %v15404_v45 = vadd.f32 %v12560_v23, %v4176_v13  ;;  %v4174_v53 = vadd.f32 %v3987_v58, %v17309_v37  ;;  %v5429_v26 = vpack.c.bf16 %v10653_v36, %v10652_v9  ;;  %v17313_v58 = vld [vmem:[#allocation54_spill] sm:$0xff]  ;;  %v17315_v9 = vld [vmem:[#allocation56_spill] sm:$0xff] }
 0x334   : > { %v12431_v38 = vpop.f32.mrf.mxu1  ;;  %v12561_v47 = vpop.f32.mrf.mxu0  ;;  %v10848_v36 = vld [vmem:[%s13172_s23 + $0x3b0] sm:$0xff] }
 0x335   : > { %17308 = vst [vmem:[#allocation41_spill] sm:$0xff] %v15404_v45  ;;  %v15407_v54 = vadd.f32 %v5052_v11, %v4174_v53  ;;  %v4177_v15 = vadd.f32 %v12431_v38, %v17311_v43  ;;  %v10657_v38 = vld [vmem:[%s13172_s23 + $0x3a2] sm:$0xff] }
 0x336   : > { %v3990_v10 = vpop.f32.mrf.mxu1  ;;  %v5055_v23 = vpop.f32.mrf.mxu0 }
 0x337   : > { %17310 = vst [vmem:[#allocation42_spill] sm:$0xff] %v15407_v54  ;;  %v15410_v13 = vadd.f32 %v12561_v47, %v4177_v15  ;;  %v4175_v37 = vadd.f32 %v3990_v10, %v17313_v58  ;;  %v10847_v10 = vld [vmem:[%s13172_s23 + $0x3a8] sm:$0xff]  ;;  %v10849_v47 = vld [vmem:[%s13172_s23 + $0x3c0] sm:$0xff] }
 0x338   : > { %v12434_v45 = vpop.f32.mrf.mxu1  ;;  %v12564_v0 = vpop.f32.mrf.mxu0  ;;  %12661 = vmatmul.mubr.msk.bf16.gmra.mxu1 %vm569_vm2, %v5428_v24  ;;  %12791 = vmatmul.mubr.msk.bf16.gmra.mxu0 %vm569_vm2, %v6504_v17  ;;  %v10850_v24 = vld [vmem:[%s13172_s23 + $0x3c8] sm:$0xff]  ;;  %v17317_v17 = vld [vmem:[#allocation58_spill] sm:$0xff] }
 0x339   : > { %17312 = vst [vmem:[#allocation44_spill] sm:$0xff] %v15410_v13  ;;  %v15417_v49 = vadd.f32 %v5055_v23, %v4175_v37  ;;  %v4180_v11 = vadd.f32 %v12434_v45, %v17315_v9  ;;  %12664 = vmatprep.mubr.msk.bf16.mxu1 %vm569_vm2, %v5429_v26  ;;  %12794 = vmatprep.mubr.msk.bf16.mxu0 %vm569_vm2, %v6505_v28  ;;  %v17319_v28 = vld [vmem:[#allocation60_spill] sm:$0xff] }
 0x33a   : > { %v4003_v33 = vpop.f32.mrf.mxu1  ;;  %v5068_v53 = vpop.f32.mrf.mxu0  ;;  %v5430_v45 = vpack.c.bf16 %v10655_v59, %v10654_v31  ;;  %v6506_v26 = vpack.c.bf16 %v10848_v36, %v10847_v10  ;;  %v6507_v13 = vpack.c.bf16 %v10850_v24, %v10849_v47  ;;  %v10658_v59 = vld [vmem:[%s13172_s23 + $0x3aa] sm:$0xff]  ;;  %v10659_v10 = vld [vmem:[%s13172_s23 + $0x3b2] sm:$0xff]  ;;  %v10660_v47 = vld [vmem:[%s13172_s23 + $0x3c2] sm:$0xff] }
 0x33b   : > { %17314 = vst [vmem:[#allocation46_spill] sm:$0xff] %v15417_v49  ;;  %v15428_v43 = vadd.f32 %v12564_v0, %v4180_v11  ;;  %v4178_v15 = vadd.f32 %v4003_v33, %v17317_v17  ;;  %v5431_v49 = vpack.c.bf16 %v10657_v38, %v10656_v21  ;;  %v17321_v33 = vld [vmem:[#allocation62_spill] sm:$0xff]  ;;  %v17323_v21 = vld [vmem:[#allocation64_spill] sm:$0xff]  ;;  %v10852_v38 = vld [vmem:[%s13172_s23 + $0x3d8] sm:$0xff] }
 0x33c   : > { %v12435_v23 = vpop.f32.mrf.mxu1  ;;  %v12565_v58 = vpop.f32.mrf.mxu0 }
 0x33d   : > { %17316 = vst [vmem:[#allocation48_spill] sm:$0xff] %v15428_v43  ;;  %v15431_v37 = vadd.f32 %v5068_v53, %v4178_v15  ;;  %v4181_v9 = vadd.f32 %v12435_v23, %v17319_v28  ;;  %v10661_v23 = vld [vmem:[%s13172_s23 + $0x3ca] sm:$0xff] }
 0x33e   : > { %v4006_v54 = vpop.f32.mrf.mxu1  ;;  %v5071_v0 = vpop.f32.mrf.mxu0 }
 0x33f   : > { %17318 = vst [vmem:[#allocation50_spill] sm:$0xff] %v15431_v37  ;;  %v15434_v11 = vadd.f32 %v12565_v58, %v4181_v9  ;;  %v4179_v17 = vadd.f32 %v4006_v54, %v17321_v33  ;;  %v10851_v54 = vld [vmem:[%s13172_s23 + $0x3d0] sm:$0xff]  ;;  %v10853_v58 = vld [vmem:[%s13172_s23 + $0x3e8] sm:$0xff] }
 0x340   : > { %v12438_v43 = vpop.f32.mrf.mxu1  ;;  %v12568_v31 = vpop.f32.mrf.mxu0  ;;  %12665 = vmatmul.mubr.msk.bf16.gmra.mxu1 %vm569_vm2, %v5430_v45  ;;  %12795 = vmatmul.mubr.msk.bf16.gmra.mxu0 %vm569_vm2, %v6506_v26  ;;  %v10854_v45 = vld [vmem:[%s13172_s23 + $0x3f0] sm:$0xff]  ;;  %v17325_v26 = vld [vmem:[#allocation66_spill] sm:$0xff] }
 0x341   : > { %17320 = vst [vmem:[#allocation52_spill] sm:$0xff] %v15434_v11  ;;  %v15441_v36 = vadd.f32 %v5071_v0, %v4179_v17  ;;  %v4184_v53 = vadd.f32 %v12438_v43, %v17323_v21  ;;  %12668 = vmatprep.mubr.msk.bf16.mxu1 %vm569_vm2, %v5431_v49  ;;  %12798 = vmatprep.mubr.msk.bf16.mxu0 %vm569_vm2, %v6507_v13  ;;  %v17327_v13 = vld [vmem:[#allocation68_spill] sm:$0xff] }
 0x342   : > { %v4019_v24 = vpop.f32.mrf.mxu1  ;;  %v5084_v15 = vpop.f32.mrf.mxu0  ;;  %v5432_v43 = vpack.c.bf16 %v10659_v10, %v10658_v59  ;;  %v6508_v49 = vpack.c.bf16 %v10852_v38, %v10851_v54  ;;  %v6509_v11 = vpack.c.bf16 %v10854_v45, %v10853_v58  ;;  %v10662_v10 = vld [vmem:[%s13172_s23 + $0x3d2] sm:$0xff]  ;;  %v10663_v54 = vld [vmem:[%s13172_s23 + $0x3da] sm:$0xff]  ;;  %v10664_v58 = vld [vmem:[%s13172_s23 + $0x3ea] sm:$0xff] }
 0x343   : > { %17322 = vst [vmem:[#allocation54_spill] sm:$0xff] %v15441_v36  ;;  %v15452_v28 = vadd.f32 %v12568_v31, %v4184_v53  ;;  %v4182_v9 = vadd.f32 %v4019_v24, %v17325_v26  ;;  %v5433_v36 = vpack.c.bf16 %v10661_v23, %v10660_v47  ;;  %v17329_v24 = vld [vmem:[#allocation70_spill] sm:$0xff]  ;;  %v17331_v47 = vld [vmem:[#allocation72_spill] sm:$0xff] }
 0x344   : > { %v12439_v0 = vpop.f32.mrf.mxu1  ;;  %v12569_v33 = vpop.f32.mrf.mxu0  ;;  %v10856_v23 = vld [vmem:[%s13172_s23 + $0x400] sm:$0xff] }
 0x345   : > { %17324 = vst [vmem:[#allocation56_spill] sm:$0xff] %v15452_v28  ;;  %v15455_v17 = vadd.f32 %v5084_v15, %v4182_v9  ;;  %v4185_v21 = vadd.f32 %v12439_v0, %v17327_v13  ;;  %v10665_v0 = vld [vmem:[%s13172_s23 + $0x3f2] sm:$0xff] }
 0x346   : > { %v4022_v37 = vpop.f32.mrf.mxu1  ;;  %v5087_v31 = vpop.f32.mrf.mxu0 }
 0x347   : > { %17326 = vst [vmem:[#allocation58_spill] sm:$0xff] %v15455_v17  ;;  %v15458_v53 = vadd.f32 %v12569_v33, %v4185_v21  ;;  %v4183_v26 = vadd.f32 %v4022_v37, %v17329_v24  ;;  %v10855_v37 = vld [vmem:[%s13172_s23 + $0x3f8] sm:$0xff]  ;;  %v10857_v33 = vld [vmem:[%s13172_s23 + $0x410] sm:$0xff] }
 0x348   : > { %v12442_v28 = vpop.f32.mrf.mxu1  ;;  %v12572_v59 = vpop.f32.mrf.mxu0  ;;  %12669 = vmatmul.mubr.msk.bf16.gmra.mxu1 %vm569_vm2, %v5432_v43  ;;  %12799 = vmatmul.mubr.msk.bf16.gmra.mxu0 %vm569_vm2, %v6508_v49  ;;  %v10858_v43 = vld [vmem:[%s13172_s23 + $0x418] sm:$0xff]  ;;  %v17333_v49 = vld [vmem:[#allocation74_spill] sm:$0xff] }
 0x349   : > { %17328 = vst [vmem:[#allocation60_spill] sm:$0xff] %v15458_v53  ;;  %v15465_v38 = vadd.f32 %v5087_v31, %v4183_v26  ;;  %v4188_v15 = vadd.f32 %v12442_v28, %v17331_v47  ;;  %12672 = vmatprep.mubr.msk.bf16.mxu1 %vm569_vm2, %v5433_v36  ;;  %12802 = vmatprep.mubr.msk.bf16.mxu0 %vm569_vm2, %v6509_v11  ;;  %v17334_v11 = vld [vmem:[#allocation76_spill] sm:$0xff] }
 0x34a   : > { %v4035_v45 = vpop.f32.mrf.mxu1  ;;  %v5100_v9 = vpop.f32.mrf.mxu0  ;;  %v5434_v28 = vpack.c.bf16 %v10663_v54, %v10662_v10  ;;  %v6510_v36 = vpack.c.bf16 %v10856_v23, %v10855_v37  ;;  %v6511_v53 = vpack.c.bf16 %v10858_v43, %v10857_v33  ;;  %v10666_v54 = vld [vmem:[%s13172_s23 + $0x3fa] sm:$0xff]  ;;  %v10667_v37 = vld [vmem:[%s13172_s23 + $0x402] sm:$0xff]  ;;  %v10668_v33 = vld [vmem:[%s13172_s23 + $0x412] sm:$0xff] }
 0x34b   : > { %17330 = vst [vmem:[#allocation62_spill] sm:$0xff] %v15465_v38  ;;  %v15476_v13 = vadd.f32 %v12572_v59, %v4188_v15  ;;  %v4186_v21 = vadd.f32 %v4035_v45, %v17333_v49  ;;  %v5435_v38 = vpack.c.bf16 %v10665_v0, %v10664_v58  ;;  %v17335_v45 = vld [vmem:[#allocation78_spill] sm:$0xff]  ;;  %v17337_v58 = vld [vmem:[#allocation80_spill] sm:$0xff]  ;;  %v10860_v0 = vld [vmem:[%s13172_s23 + $0x428] sm:$0xff] }
 0x34c   : > { %v12443_v31 = vpop.f32.mrf.mxu1  ;;  %v12573_v24 = vpop.f32.mrf.mxu0 }
 0x34d   : > { %17332 = vst [vmem:[#allocation64_spill] sm:$0xff] %v15476_v13  ;;  %v15479_v26 = vadd.f32 %v5100_v9, %v4186_v21  ;;  %v4189_v47 = vadd.f32 %v12443_v31, %v17334_v11  ;;  %v10669_v31 = vld [vmem:[%s13172_s23 + $0x41a] sm:$0xff] }
 0x34e   : > { %v4038_v17 = vpop.f32.mrf.mxu1  ;;  %v5103_v59 = vpop.f32.mrf.mxu0 }
 0x34f   : > { %v15482_v15 = vadd.f32 %v12573_v24, %v4189_v47  ;;  %v4187_v49 = vadd.f32 %v4038_v17, %v17335_v45  ;;  %v10859_v17 = vld [vmem:[%s13172_s23 + $0x420] sm:$0xff]  ;;  %v10861_v24 = vld [vmem:[%s13172_s23 + $0x438] sm:$0xff] }
 0x350   : > { %v12446_v13 = vpop.f32.mrf.mxu1  ;;  %v12576_v10 = vpop.f32.mrf.mxu0  ;;  %12673 = vmatmul.mubr.msk.bf16.gmra.mxu1 %vm569_vm2, %v5434_v28  ;;  %12803 = vmatmul.mubr.msk.bf16.gmra.mxu0 %vm569_vm2, %v6510_v36  ;;  %v10862_v28 = vld [vmem:[%s13172_s23 + $0x440] sm:$0xff] }
 0x351   : > { %v15489_v23 = vadd.f32 %v5103_v59, %v4187_v49  ;;  %v4192_v9 = vadd.f32 %v12446_v13, %v17337_v58  ;;  %12676 = vmatprep.mubr.msk.bf16.mxu1 %vm569_vm2, %v5435_v38  ;;  %12806 = vmatprep.mubr.msk.bf16.mxu0 %vm569_vm2, %v6511_v53  ;;  %v5436_v13 = vpack.c.bf16 %v10667_v37, %v10666_v54  ;;  %v10671_v37 = vld [vmem:[%s13172_s23 + $0x42a] sm:$0xff] }
 0x352   : > { %v4051_v43 = vpop.f32.mrf.mxu1  ;;  %v5116_v21 = vpop.f32.mrf.mxu0  ;;  %v6512_v38 = vpack.c.bf16 %v10860_v0, %v10859_v17  ;;  %v5437_v49 = vpack.c.bf16 %v10669_v31, %v10668_v33  ;;  %v6513_v58 = vpack.c.bf16 %v10862_v28, %v10861_v24  ;;  %v10672_v33 = vld [vmem:[%s13172_s23 + $0x43a] sm:$0xff]  ;;  %v10673_v24 = vld [vmem:[%s13172_s23 + $0x442] sm:$0xff] }
 0x353   : > { %17336 = vst [vmem:[#allocation66_spill] sm:$0xff] %v15489_v23  ;;  %v15500_v11 = vadd.f32 %v12576_v10, %v4192_v9  ;;  %v4190_v36 = vadd.f32 %v4051_v43, %v14733_v46  ;;  %v10865_v28 = vld [vmem:[%s13172_s23 + $0x460] sm:$0xff] }
 0x354   : > { %v12447_v47 = vpop.f32.mrf.mxu1  ;;  %v12577_v59 = vpop.f32.mrf.mxu0 }
 0x355   : > { %v15503_v45 = vadd.f32 %v5116_v21, %v4190_v36  ;;  %v4193_v53 = vadd.f32 %v12447_v47, %v14736_v60  ;;  %v10670_v60 = vld [vmem:[%s13172_s23 + $0x422] sm:$0xff] }
 0x356   : > { %v4054_v23 = vpop.f32.mrf.mxu1  ;;  %v5119_v10 = vpop.f32.mrf.mxu0  ;;  %v10866_v36 = vld [vmem:[%s13172_s23 + $0x468] sm:$0xff] }
 0x357   : > { %v15506_v9 = vadd.f32 %v12577_v59, %v4193_v53  ;;  %v4191_v46 = vadd.f32 %v4054_v23, %v14743_v4  ;;  %v10863_v4 = vld [vmem:[%s13172_s23 + $0x448] sm:$0xff]  ;;  %v10864_v23 = vld [vmem:[%s13172_s23 + $0x450] sm:$0xff] }
 0x358   : > { %v12582_v43 = vpop.f32.mrf.mxu1  ;;  %12677 = vmatmul.mubr.msk.bf16.gmra.mxu1 %vm569_vm2, %v5436_v13  ;;  %v12712_v54 = vpop.f32.mrf.mxu0  ;;  %12807 = vmatmul.mubr.msk.bf16.gmra.mxu0 %vm569_vm2, %v6512_v38  ;;  %v6514_v53 = vpack.c.bf16 %v10864_v23, %v10863_v4 }
 0x359   : > { %v15513_v17 = vadd.f32 %v5119_v10, %v4191_v46  ;;  %v6208_v0 = vadd.f32 %v12582_v43, %v14754_v39  ;;  %12680 = vmatprep.mubr.msk.bf16.mxu1 %vm569_vm2, %v5437_v49  ;;  %12810 = vmatprep.mubr.msk.bf16.mxu0 %vm569_vm2, %v6513_v58  ;;  %v5438_v39 = vpack.c.bf16 %v10671_v37, %v10670_v60  ;;  %v10675_v37 = vld [vmem:[%s13172_s23 + $0x452] sm:$0xff] }
 0x35a   : > { %v5695_v21 = vpop.f32.mrf.mxu1  ;;  %v6761_v31 = vpop.f32.mrf.mxu0  ;;  %v5439_v10 = vpack.c.bf16 %v10673_v24, %v10672_v33  ;;  %v6515_v46 = vpack.c.bf16 %v10866_v36, %v10865_v28  ;;  %v10868_v33 = vld [vmem:[%s13172_s23 + $0x478] sm:$0xff]  ;;  %v10677_v36 = vld [vmem:[%s13172_s23 + $0x46a] sm:$0xff] }
 0x35b   : > { %v15524_v47 = vadd.f32 %v12712_v54, %v6208_v0  ;;  %v6206_v59 = vadd.f32 %v5695_v21, %v14757_v16 }
 0x35c   : > { %v12583_v13 = vpop.f32.mrf.mxu1  ;;  %v12713_v38 = vpop.f32.mrf.mxu0 }
 0x35d   : > { %v15527_v49 = vadd.f32 %v6761_v31, %v6206_v59  ;;  %v6209_v58 = vadd.f32 %v12583_v13, %v14760_v32  ;;  %v10674_v32 = vld [vmem:[%s13172_s23 + $0x44a] sm:$0xff]  ;;  %v10676_v31 = vld [vmem:[%s13172_s23 + $0x462] sm:$0xff] }
 0x35e   : > { %v5698_v43 = vpop.f32.mrf.mxu1  ;;  %v6764_v54 = vpop.f32.mrf.mxu0  ;;  %v10869_v59 = vld [vmem:[%s13172_s23 + $0x488] sm:$0xff]  ;;  %v10870_v13 = vld [vmem:[%s13172_s23 + $0x490] sm:$0xff] }
 0x35f   : > { %v15530_v0 = vadd.f32 %v12713_v38, %v6209_v58  ;;  %v6207_v16 = vadd.f32 %v5698_v43, %v14767_v55  ;;  %v10867_v55 = vld [vmem:[%s13172_s23 + $0x470] sm:$0xff] }
 0x360   : > { %v12586_v21 = vpop.f32.mrf.mxu1  ;;  %12681 = vmatmul.mubr.msk.bf16.gmra.mxu1 %vm569_vm2, %v5438_v39  ;;  %v12716_v60 = vpop.f32.mrf.mxu0  ;;  %12811 = vmatmul.mubr.msk.bf16.gmra.mxu0 %vm569_vm2, %v6514_v53 }
 0x361   : > { %v15537_v4 = vadd.f32 %v6764_v54, %v6207_v16  ;;  %v6212_v23 = vadd.f32 %v12586_v21, %v14778_v51  ;;  %12684 = vmatprep.mubr.msk.bf16.mxu1 %vm569_vm2, %v5439_v10  ;;  %12814 = vmatprep.mubr.msk.bf16.mxu0 %vm569_vm2, %v6515_v46  ;;  %v5440_v51 = vpack.c.bf16 %v10675_v37, %v10674_v32  ;;  %v10679_v37 = vld [vmem:[%s13172_s23 + $0x47a] sm:$0xff] }
 0x362   : > { %v5711_v24 = vpop.f32.mrf.mxu1  ;;  %v6777_v28 = vpop.f32.mrf.mxu0  ;;  %v6516_v10 = vpack.c.bf16 %v10868_v33, %v10867_v55  ;;  %v5441_v54 = vpack.c.bf16 %v10677_v36, %v10676_v31  ;;  %v6517_v16 = vpack.c.bf16 %v10870_v13, %v10869_v59  ;;  %v10872_v31 = vld [vmem:[%s13172_s23 + $0x4a0] sm:$0xff]  ;;  %v10681_v13 = vld [vmem:[%s13172_s23 + $0x492] sm:$0xff] }
 0x363   : > { %v15548_v38 = vadd.f32 %v12716_v60, %v6212_v23  ;;  %v6210_v39 = vadd.f32 %v5711_v24, %v14781_v34 }
 0x364   : > { %v12587_v53 = vpop.f32.mrf.mxu1  ;;  %v12717_v58 = vpop.f32.mrf.mxu0 }
 0x365   : > { %v15551_v43 = vadd.f32 %v6777_v28, %v6210_v39  ;;  %v6213_v46 = vadd.f32 %v12587_v53, %v14784_v48  ;;  %v10678_v48 = vld [vmem:[%s13172_s23 + $0x472] sm:$0xff]  ;;  %v10680_v28 = vld [vmem:[%s13172_s23 + $0x48a] sm:$0xff] }
 0x366   : > { %v5714_v21 = vpop.f32.mrf.mxu1  ;;  %v6780_v60 = vpop.f32.mrf.mxu0  ;;  %v10873_v39 = vld [vmem:[%s13172_s23 + $0x4b0] sm:$0xff]  ;;  %v10874_v53 = vld [vmem:[%s13172_s23 + $0x4b8] sm:$0xff] }
 0x367   : > { %v15554_v23 = vadd.f32 %v12717_v58, %v6213_v46  ;;  %v6211_v34 = vadd.f32 %v5714_v21, %v14791_v52  ;;  %v10871_v52 = vld [vmem:[%s13172_s23 + $0x498] sm:$0xff] }
 0x368   : > { %v12590_v24 = vpop.f32.mrf.mxu1  ;;  %12685 = vmatmul.mubr.msk.bf16.gmra.mxu1 %vm569_vm2, %v5440_v51  ;;  %v12720_v32 = vpop.f32.mrf.mxu0  ;;  %12815 = vmatmul.mubr.msk.bf16.gmra.mxu0 %vm569_vm2, %v6516_v10 }
 0x369   : > { %v15561_v55 = vadd.f32 %v6780_v60, %v6211_v34  ;;  %v6216_v33 = vadd.f32 %v12590_v24, %v14802_v29  ;;  %12688 = vmatprep.mubr.msk.bf16.mxu1 %vm569_vm2, %v5441_v54  ;;  %12818 = vmatprep.mubr.msk.bf16.mxu0 %vm569_vm2, %v6517_v16  ;;  %v5442_v29 = vpack.c.bf16 %v10679_v37, %v10678_v48  ;;  %v10683_v37 = vld [vmem:[%s13172_s23 + $0x4a2] sm:$0xff] }
 0x36a   : > { %v5727_v36 = vpop.f32.mrf.mxu1  ;;  %v6793_v59 = vpop.f32.mrf.mxu0  ;;  %v6518_v54 = vpack.c.bf16 %v10872_v31, %v10871_v52  ;;  %v5443_v60 = vpack.c.bf16 %v10681_v13, %v10680_v28  ;;  %v6519_v34 = vpack.c.bf16 %v10874_v53, %v10873_v39  ;;  %v10876_v28 = vld [vmem:[%s13172_s23 + $0x4c8] sm:$0xff]  ;;  %v10685_v53 = vld [vmem:[%s13172_s23 + $0x4ba] sm:$0xff] }
 0x36b   : > { %v15572_v58 = vadd.f32 %v12720_v32, %v6216_v33  ;;  %v6214_v51 = vadd.f32 %v5727_v36, %v14805_v41 }
 0x36c   : > { %v12591_v10 = vpop.f32.mrf.mxu1  ;;  %v12721_v46 = vpop.f32.mrf.mxu0 }
 0x36d   : > { %v15575_v21 = vadd.f32 %v6793_v59, %v6214_v51  ;;  %v6217_v16 = vadd.f32 %v12591_v10, %v14808_v63  ;;  %v10682_v63 = vld [vmem:[%s13172_s23 + $0x49a] sm:$0xff]  ;;  %v10684_v59 = vld [vmem:[%s13172_s23 + $0x4b2] sm:$0xff] }
 0x36e   : > { %v5730_v24 = vpop.f32.mrf.mxu1  ;;  %v6796_v32 = vpop.f32.mrf.mxu0  ;;  %v10877_v51 = vld [vmem:[%s13172_s23 + $0x4d8] sm:$0xff]  ;;  %v10878_v10 = vld [vmem:[%s13172_s23 + $0x4e0] sm:$0xff] }
 0x36f   : > { %v15578_v33 = vadd.f32 %v12721_v46, %v6217_v16  ;;  %v6215_v41 = vadd.f32 %v5730_v24, %v14815_v5  ;;  %v10875_v5 = vld [vmem:[%s13172_s23 + $0x4c0] sm:$0xff] }
 0x370   : > { %v12594_v36 = vpop.f32.mrf.mxu1  ;;  %12689 = vmatmul.mubr.msk.bf16.gmra.mxu1 %vm569_vm2, %v5442_v29  ;;  %v12724_v48 = vpop.f32.mrf.mxu0  ;;  %12819 = vmatmul.mubr.msk.bf16.gmra.mxu0 %vm569_vm2, %v6518_v54 }
 0x371   : > { %v15585_v52 = vadd.f32 %v6796_v32, %v6215_v41  ;;  %v6220_v31 = vadd.f32 %v12594_v36, %v14826_v40  ;;  %12692 = vmatprep.mubr.msk.bf16.mxu1 %vm569_vm2, %v5443_v60  ;;  %12822 = vmatprep.mubr.msk.bf16.mxu0 %vm569_vm2, %v6519_v34  ;;  %v5444_v40 = vpack.c.bf16 %v10683_v37, %v10682_v63  ;;  %v10687_v37 = vld [vmem:[%s13172_s23 + $0x4ca] sm:$0xff] }
 0x372   : > { %v5743_v13 = vpop.f32.mrf.mxu1  ;;  %v6809_v39 = vpop.f32.mrf.mxu0  ;;  %v6520_v60 = vpack.c.bf16 %v10876_v28, %v10875_v5  ;;  %v5445_v32 = vpack.c.bf16 %v10685_v53, %v10684_v59  ;;  %v6521_v41 = vpack.c.bf16 %v10878_v10, %v10877_v51  ;;  %v10880_v59 = vld [vmem:[%s13172_s23 + $0x4f0] sm:$0xff]  ;;  %v10689_v10 = vld [vmem:[%s13172_s23 + $0x4e2] sm:$0xff] }
 0x373   : > { %v15596_v46 = vadd.f32 %v12724_v48, %v6220_v31  ;;  %v6218_v29 = vadd.f32 %v5743_v13, %v14829_v18 }
 0x374   : > { %v12595_v54 = vpop.f32.mrf.mxu1  ;;  %v12725_v16 = vpop.f32.mrf.mxu0 }
 0x375   : > { %v15599_v24 = vadd.f32 %v6809_v39, %v6218_v29  ;;  %v6221_v34 = vadd.f32 %v12595_v54, %v14832_v19  ;;  %v10686_v19 = vld [vmem:[%s13172_s23 + $0x4c2] sm:$0xff]  ;;  %v10688_v39 = vld [vmem:[%s13172_s23 + $0x4da] sm:$0xff] }
 0x376   : > { %v5746_v36 = vpop.f32.mrf.mxu1  ;;  %v6812_v48 = vpop.f32.mrf.mxu0  ;;  %v10881_v29 = vld [vmem:[%s13172_s23 + $0x500] sm:$0xff]  ;;  %v10882_v54 = vld [vmem:[%s13172_s23 + $0x508] sm:$0xff] }
 0x377   : > { %v15602_v31 = vadd.f32 %v12725_v16, %v6221_v34  ;;  %v6219_v18 = vadd.f32 %v5746_v36, %v14839_v50  ;;  %v10879_v50 = vld [vmem:[%s13172_s23 + $0x4e8] sm:$0xff] }
 0x378   : > { %v12598_v13 = vpop.f32.mrf.mxu1  ;;  %12693 = vmatmul.mubr.msk.bf16.gmra.mxu1 %vm569_vm2, %v5444_v40  ;;  %v12728_v63 = vpop.f32.mrf.mxu0  ;;  %12823 = vmatmul.mubr.msk.bf16.gmra.mxu0 %vm569_vm2, %v6520_v60 }
 0x379   : > { %v15609_v5 = vadd.f32 %v6812_v48, %v6219_v18  ;;  %v6224_v28 = vadd.f32 %v12598_v13, %v14850_v30  ;;  %12696 = vmatprep.mubr.msk.bf16.mxu1 %vm569_vm2, %v5445_v32  ;;  %12826 = vmatprep.mubr.msk.bf16.mxu0 %vm569_vm2, %v6521_v41  ;;  %v5446_v30 = vpack.c.bf16 %v10687_v37, %v10686_v19  ;;  %v10691_v37 = vld [vmem:[%s13172_s23 + $0x4f2] sm:$0xff] }
 0x37a   : > { %v5759_v53 = vpop.f32.mrf.mxu1  ;;  %v6825_v51 = vpop.f32.mrf.mxu0  ;;  %v6522_v32 = vpack.c.bf16 %v10880_v59, %v10879_v50  ;;  %v5447_v48 = vpack.c.bf16 %v10689_v10, %v10688_v39  ;;  %v6523_v18 = vpack.c.bf16 %v10882_v54, %v10881_v29  ;;  %v17339_v59 = vld [vmem:[#allocation82_spill] sm:$0xff] }
 0x37b   : > { %v15620_v16 = vadd.f32 %v12728_v63, %v6224_v28  ;;  %v6222_v40 = vadd.f32 %v5759_v53, %v14853_v8  ;;  %v10692_v10 = vld [vmem:[%s13172_s23 + $0x502] sm:$0xff] }
 0x37c   : > { %v12599_v60 = vpop.f32.mrf.mxu1  ;;  %v12729_v34 = vpop.f32.mrf.mxu0 }
 0x37d   : > { %v15623_v36 = vadd.f32 %v6825_v51, %v6222_v40  ;;  %v6225_v41 = vadd.f32 %v12599_v60, %v14856_v61  ;;  %v10690_v61 = vld [vmem:[%s13172_s23 + $0x4ea] sm:$0xff]  ;;  %v10884_v51 = vld [vmem:[%s13172_s23 + $0x518] sm:$0xff] }
 0x37e   : > { %v5762_v13 = vpop.f32.mrf.mxu1  ;;  %v6828_v63 = vpop.f32.mrf.mxu0  ;;  %v10693_v40 = vld [vmem:[%s13172_s23 + $0x50a] sm:$0xff] }
 0x37f   : > { %v15626_v28 = vadd.f32 %v12729_v34, %v6225_v41  ;;  %v6223_v8 = vadd.f32 %v5762_v13, %v14863_v12  ;;  %v10883_v12 = vld [vmem:[%s13172_s23 + $0x510] sm:$0xff]  ;;  %v10885_v60 = vld [vmem:[%s13172_s23 + $0x528] sm:$0xff] }
 0x380   : > { %v12602_v53 = vpop.f32.mrf.mxu1  ;;  %12697 = vmatmul.mubr.msk.bf16.gmra.mxu1 %vm569_vm2, %v5446_v30  ;;  %v12732_v19 = vpop.f32.mrf.mxu0  ;;  %12827 = vmatmul.mubr.msk.bf16.gmra.mxu0 %vm569_vm2, %v6522_v32  ;;  %v10886_v34 = vld [vmem:[%s13172_s23 + $0x530] sm:$0xff] }
 0x381   : > { %v15633_v50 = vadd.f32 %v6828_v63, %v6223_v8  ;;  %v6228_v39 = vadd.f32 %v12602_v53, %v17339_v59  ;;  %12700 = vmatprep.mubr.msk.bf16.mxu1 %vm569_vm2, %v5447_v48  ;;  %12830 = vmatprep.mubr.msk.bf16.mxu0 %vm569_vm2, %v6523_v18  ;;  %v5448_v63 = vpack.c.bf16 %v10691_v37, %v10690_v61  ;;  %v10695_v37 = vld [vmem:[%s13172_s23 + $0x51a] sm:$0xff] }
 0x382   : > { %v5775_v29 = vpop.f32.mrf.mxu1  ;;  %v6841_v54 = vpop.f32.mrf.mxu0  ;;  %v6524_v48 = vpack.c.bf16 %v10884_v51, %v10883_v12  ;;  %v5449_v53 = vpack.c.bf16 %v10693_v40, %v10692_v10  ;;  %v6525_v59 = vpack.c.bf16 %v10886_v34, %v10885_v60  ;;  %v10888_v10 = vld [vmem:[%s13172_s23 + $0x540] sm:$0xff] }
 0x383   : > { %17338 = vst [vmem:[#allocation68_spill] sm:$0xff] %v15633_v50  ;;  %v15644_v30 = vadd.f32 %v12732_v19, %v6228_v39  ;;  %v6226_v32 = vadd.f32 %v5775_v29, %v14877_v14  ;;  %v17341_v14 = vld [vmem:[#allocation84_spill] sm:$0xff]  ;;  %v10955_v34 = vld [vmem:[%s13172_s23 + $0x59] sm:$0xff] }
 0x384   : > { %v12603_v41 = vpop.f32.mrf.mxu1  ;;  %v12733_v13 = vpop.f32.mrf.mxu0 }
 0x385   : > { %17340 = vst [vmem:[#allocation70_spill] sm:$0xff] %v15644_v30  ;;  %v15647_v8 = vadd.f32 %v6841_v54, %v6226_v32  ;;  %v6229_v18 = vadd.f32 %v12603_v41, %v14880_v20  ;;  %v10694_v20 = vld [vmem:[%s13172_s23 + $0x512] sm:$0xff]  ;;  %v11148_v41 = vld [vmem:[%s13172_s23 + $0x5a] sm:$0xff] }
 0x386   : > { %v5778_v50 = vpop.f32.mrf.mxu1  ;;  %v6844_v19 = vpop.f32.mrf.mxu0  ;;  %v10954_v54 = vld [vmem:[%s13172_s23 + $0x51] sm:$0xff] }
 0x387   : > { %v15650_v39 = vadd.f32 %v12733_v13, %v6229_v18  ;;  %v6227_v29 = vadd.f32 %v5778_v50, %v17341_v14  ;;  %v10887_v50 = vld [vmem:[%s13172_s23 + $0x538] sm:$0xff] }
 0x388   : > { %v12606_v30 = vpop.f32.mrf.mxu1  ;;  %12701 = vmatmul.mubr.msk.bf16.gmra.mxu1 %vm569_vm2, %v5448_v63  ;;  %v12736_v61 = vpop.f32.mrf.mxu0  ;;  %12831 = vmatmul.mubr.msk.bf16.gmra.mxu0 %vm569_vm2, %v6524_v48  ;;  %v11147_v32 = vld [vmem:[%s13172_s23 + $0x52] sm:$0xff] }
 0x389   : > { %v15657_v12 = vadd.f32 %v6844_v19, %v6227_v29  ;;  %v6232_v51 = vadd.f32 %v12606_v30, %v14898_v44  ;;  %12704 = vmatprep.mubr.msk.bf16.mxu1 %vm569_vm2, %v5449_v53  ;;  %12834 = vmatprep.mubr.msk.bf16.mxu0 %vm569_vm2, %v6525_v59  ;;  %v5450_v44 = vpack.c.bf16 %v10695_v37, %v10694_v20  ;;  %v10957_v37 = vld [vmem:[%s13172_s23 + $0x69] sm:$0xff] }
 0x38a   : > { %v5791_v40 = vpop.f32.mrf.mxu1  ;;  %v6857_v60 = vpop.f32.mrf.mxu0  ;;  %v6526_v30 = vpack.c.bf16 %v10888_v10, %v10887_v50  ;;  %v7528_v19 = vpack.c.bf16 %v10955_v34, %v10954_v54  ;;  %v8600_v14 = vpack.c.bf16 %v11148_v41, %v11147_v32  ;;  %v11150_v54 = vld [vmem:[%s13172_s23 + $0x6a] sm:$0xff]  ;;  %v10959_v41 = vld [vmem:[%s13172_s23 + $0x81] sm:$0xff] }
 0x38b   : > { %v15668_v13 = vadd.f32 %v12736_v61, %v6232_v51  ;;  %v6230_v63 = vadd.f32 %v5791_v40, %v14901_v35 }
 0x38c   : > { %v12607_v48 = vpop.f32.mrf.mxu1  ;;  %v12737_v18 = vpop.f32.mrf.mxu0 }
 0x38d   : > { %v15671_v53 = vadd.f32 %v6857_v60, %v6230_v63  ;;  %v6233_v59 = vadd.f32 %v12607_v48, %v14904_v62  ;;  %v10956_v62 = vld [vmem:[%s13172_s23 + $0x61] sm:$0xff]  ;;  %v10958_v60 = vld [vmem:[%s13172_s23 + $0x79] sm:$0xff] }
 0x38e   : > { %v5794_v29 = vpop.f32.mrf.mxu1  ;;  %v6860_v61 = vpop.f32.mrf.mxu0  ;;  %v11151_v63 = vld [vmem:[%s13172_s23 + $0x7a] sm:$0xff]  ;;  %v11152_v48 = vld [vmem:[%s13172_s23 + $0x82] sm:$0xff] }
 0x38f   : > { %v15674_v51 = vadd.f32 %v12737_v18, %v6233_v59  ;;  %v6231_v35 = vadd.f32 %v5794_v29, %v14910_v7  ;;  %v11149_v7 = vld [vmem:[%s13172_s23 + $0x62] sm:$0xff] }
 0x390   : > { %v12610_v40 = vpop.f32.mrf.mxu1  ;;  %12705 = vmatmul.mubr.msk.bf16.gmra.mxu1 %vm569_vm2, %v5450_v44  ;;  %v12740_v20 = vpop.f32.mrf.mxu0  ;;  %12835 = vmatmul.mubr.msk.bf16.gmra.mxu0 %vm569_vm2, %v6526_v30 }
 0x391   : > { %v15681_v50 = vadd.f32 %v6860_v61, %v6231_v35  ;;  %v6236_v10 = vadd.f32 %v12610_v40, %v14919_v22  ;;  %12840 = vmatprep.mubr.msk.bf16.mxu1 %vm569_vm2, %v7528_v19  ;;  %12970 = vmatprep.mubr.msk.bf16.mxu0 %vm569_vm2, %v8600_v14  ;;  %v7529_v22 = vpack.c.bf16 %v10957_v37, %v10956_v62  ;;  %v10961_v37 = vld [vmem:[%s13172_s23 + $0x91] sm:$0xff] }
 0x392   : > { %v5807_v34 = vpop.f32.mrf.mxu1  ;;  %v6873_v32 = vpop.f32.mrf.mxu0  ;;  %v8601_v19 = vpack.c.bf16 %v11150_v54, %v11149_v7  ;;  %v7530_v61 = vpack.c.bf16 %v10959_v41, %v10958_v60  ;;  %v8602_v35 = vpack.c.bf16 %v11152_v48, %v11151_v63  ;;  %v11154_v60 = vld [vmem:[%s13172_s23 + $0x92] sm:$0xff]  ;;  %v10963_v48 = vld [vmem:[%s13172_s23 + $0xa9] sm:$0xff] }
 0x393   : > { %v15692_v18 = vadd.f32 %v12740_v20, %v6236_v10  ;;  %v6234_v44 = vadd.f32 %v5807_v34, %v14925_v3 }
 0x394   : > { %v12611_v30 = vpop.f32.mrf.mxu1  ;;  %v12741_v59 = vpop.f32.mrf.mxu0 }
 0x395   : > { %v15695_v29 = vadd.f32 %v6873_v32, %v6234_v44  ;;  %v6237_v14 = vadd.f32 %v12611_v30, %v14928_v25  ;;  %v10960_v25 = vld [vmem:[%s13172_s23 + $0x89] sm:$0xff]  ;;  %v10962_v32 = vld [vmem:[%s13172_s23 + $0xa1] sm:$0xff] }
 0x396   : > { %v5810_v40 = vpop.f32.mrf.mxu1  ;;  %v6876_v20 = vpop.f32.mrf.mxu0  ;;  %v11155_v44 = vld [vmem:[%s13172_s23 + $0xa2] sm:$0xff]  ;;  %v11156_v30 = vld [vmem:[%s13172_s23 + $0xaa] sm:$0xff] }
 0x397   : > { %v15698_v10 = vadd.f32 %v12741_v59, %v6237_v14  ;;  %v6235_v3 = vadd.f32 %v5810_v40, %v14935_v27  ;;  %v11153_v27 = vld [vmem:[%s13172_s23 + $0x8a] sm:$0xff] }
 0x398   : > { %v12614_v34 = vpop.f32.mrf.mxu1  ;;  %v12744_v62 = vpop.f32.mrf.mxu0  ;;  %12841 = vmatmul.mubr.msk.bf16.vlgmr.msra.gmra.mxu1 %vm569_vm2, %v7529_v22  ;;  %12971 = vmatmul.mubr.msk.bf16.vlgmr.msra.gmra.mxu0 %vm569_vm2, %v8601_v19 }
 0x399   : > { %v15705_v7 = vadd.f32 %v6876_v20, %v6235_v3  ;;  %v6240_v54 = vadd.f32 %v12614_v34, %v14948_v57  ;;  %12844 = vmatprep.mubr.msk.bf16.mxu1 %vm569_vm2, %v7530_v61  ;;  %12974 = vmatprep.mubr.msk.bf16.mxu0 %vm569_vm2, %v8602_v35  ;;  %v7531_v57 = vpack.c.bf16 %v10961_v37, %v10960_v25  ;;  %v10965_v37 = vld [vmem:[%s13172_s23 + $0xb9] sm:$0xff] }
 0x39a   : > { %v5823_v41 = vpop.f32.mrf.mxu1  ;;  %v6889_v63 = vpop.f32.mrf.mxu0  ;;  %v8603_v61 = vpack.c.bf16 %v11154_v60, %v11153_v27  ;;  %v7532_v20 = vpack.c.bf16 %v10963_v48, %v10962_v32  ;;  %v8604_v3 = vpack.c.bf16 %v11156_v30, %v11155_v44  ;;  %v11158_v32 = vld [vmem:[%s13172_s23 + $0xba] sm:$0xff]  ;;  %v10967_v30 = vld [vmem:[%s13172_s23 + $0xd1] sm:$0xff] }
 0x39b   : > { %v15716_v59 = vadd.f32 %v12744_v62, %v6240_v54  ;;  %v6238_v22 = vadd.f32 %v5823_v41, %v14951_v1 }
 0x39c   : > { %v12615_v19 = vpop.f32.mrf.mxu1  ;;  %v12745_v14 = vpop.f32.mrf.mxu0 }
 0x39d   : > { %v15719_v40 = vadd.f32 %v6889_v63, %v6238_v22  ;;  %v6241_v35 = vadd.f32 %v12615_v19, %v14954_v56  ;;  %v10964_v56 = vld [vmem:[%s13172_s23 + $0xb1] sm:$0xff]  ;;  %v10966_v63 = vld [vmem:[%s13172_s23 + $0xc9] sm:$0xff] }
 0x39e   : > { %v5826_v34 = vpop.f32.mrf.mxu1  ;;  %v6892_v62 = vpop.f32.mrf.mxu0  ;;  %v11159_v22 = vld [vmem:[%s13172_s23 + $0xca] sm:$0xff]  ;;  %v11160_v19 = vld [vmem:[%s13172_s23 + $0xd2] sm:$0xff] }
 0x39f   : > { %v15722_v54 = vadd.f32 %v12745_v14, %v6241_v35  ;;  %v6239_v1 = vadd.f32 %v5826_v34, %v14961_v2  ;;  %v11157_v2 = vld [vmem:[%s13172_s23 + $0xb2] sm:$0xff] }
 0x3a0   : > { %v12618_v41 = vpop.f32.mrf.mxu1  ;;  %v12748_v25 = vpop.f32.mrf.mxu0  ;;  %12845 = vmatmul.mubr.msk.bf16.gmra.mxu1 %vm569_vm2, %v7531_v57  ;;  %12975 = vmatmul.mubr.msk.bf16.gmra.mxu0 %vm569_vm2, %v8603_v61  ;;  %v17345_v57 = vld [vmem:[#allocation86_spill] sm:$0xff] }
 0x3a1   : > { %17342 = vst [vmem:[#allocation72_spill] sm:$0xff] %v15722_v54  ;;  %v15729_v27 = vadd.f32 %v6892_v62, %v6239_v1  ;;  %v6244_v60 = vadd.f32 %v12618_v41, %v14972_v42  ;;  %12848 = vmatprep.mubr.msk.bf16.mxu1 %vm569_vm2, %v7532_v20  ;;  %12978 = vmatprep.mubr.msk.bf16.mxu0 %vm569_vm2, %v8604_v3  ;;  %v17347_v3 = vld [vmem:[#allocation88_spill] sm:$0xff] }
 0x3a2   : > { %v5839_v48 = vpop.f32.mrf.mxu1  ;;  %v6905_v44 = vpop.f32.mrf.mxu0  ;;  %v7533_v42 = vpack.c.bf16 %v10965_v37, %v10964_v56  ;;  %v8605_v20 = vpack.c.bf16 %v11158_v32, %v11157_v2  ;;  %v7534_v41 = vpack.c.bf16 %v10967_v30, %v10966_v63  ;;  %v10968_v37 = vld [vmem:[%s13172_s23 + $0xd9] sm:$0xff]  ;;  %v10969_v2 = vld [vmem:[%s13172_s23 + $0xe1] sm:$0xff] }
 0x3a3   : > { %17343 = vst [vmem:[#allocation74_spill] sm:$0xff] %v15729_v27  ;;  %v15740_v14 = vadd.f32 %v12748_v25, %v6244_v60  ;;  %v6242_v61 = vadd.f32 %v5839_v48, %v17345_v57  ;;  %v8606_v27 = vpack.c.bf16 %v11160_v19, %v11159_v22  ;;  %v17349_v48 = vld [vmem:[#allocation90_spill] sm:$0xff]  ;;  %v17351_v63 = vld [vmem:[#allocation91_spill] sm:$0xff]  ;;  %v10970_v22 = vld [vmem:[%s13172_s23 + $0xf1] sm:$0xff] }
 0x3a4   : > { %v12619_v35 = vpop.f32.mrf.mxu1  ;;  %v12749_v34 = vpop.f32.mrf.mxu0  ;;  %v11162_v30 = vld [vmem:[%s13172_s23 + $0xe2] sm:$0xff] }
 0x3a5   : > { %17344 = vst [vmem:[#allocation76_spill] sm:$0xff] %v15740_v14  ;;  %v15743_v62 = vadd.f32 %v6905_v44, %v6242_v61  ;;  %v6245_v1 = vadd.f32 %v12619_v35, %v17347_v3  ;;  %v10971_v35 = vld [vmem:[%s13172_s23 + $0xf9] sm:$0xff] }
 0x3a6   : > { %v5842_v54 = vpop.f32.mrf.mxu1  ;;  %v6908_v25 = vpop.f32.mrf.mxu0 }
 0x3a7   : > { %17346 = vst [vmem:[#allocation78_spill] sm:$0xff] %v15743_v62  ;;  %v15746_v60 = vadd.f32 %v12749_v34, %v6245_v1  ;;  %v6243_v57 = vadd.f32 %v5842_v54, %v17349_v48  ;;  %v11161_v54 = vld [vmem:[%s13172_s23 + $0xda] sm:$0xff]  ;;  %v11163_v34 = vld [vmem:[%s13172_s23 + $0xf2] sm:$0xff] }
 0x3a8   : > { %v12622_v14 = vpop.f32.mrf.mxu1  ;;  %v12752_v56 = vpop.f32.mrf.mxu0  ;;  %12849 = vmatmul.mubr.msk.bf16.gmra.mxu1 %vm569_vm2, %v7533_v42  ;;  %12979 = vmatmul.mubr.msk.bf16.gmra.mxu0 %vm569_vm2, %v8605_v20  ;;  %v11164_v42 = vld [vmem:[%s13172_s23 + $0xfa] sm:$0xff]  ;;  %v17353_v20 = vld [vmem:[#allocation92_spill] sm:$0xff] }
 0x3a9   : > { %17348 = vst [vmem:[#allocation80_spill] sm:$0xff] %v15746_v60  ;;  %v15753_v32 = vadd.f32 %v6908_v25, %v6243_v57  ;;  %v6248_v44 = vadd.f32 %v12622_v14, %v17351_v63  ;;  %12852 = vmatprep.mubr.msk.bf16.mxu1 %vm569_vm2, %v7534_v41  ;;  %12982 = vmatprep.mubr.msk.bf16.mxu0 %vm569_vm2, %v8606_v27  ;;  %v17355_v27 = vld [vmem:[#allocation93_spill] sm:$0xff] }
 0x3aa   : > { %v5855_v19 = vpop.f32.mrf.mxu1  ;;  %v6921_v61 = vpop.f32.mrf.mxu0  ;;  %v7535_v14 = vpack.c.bf16 %v10969_v2, %v10968_v37  ;;  %v8607_v41 = vpack.c.bf16 %v11162_v30, %v11161_v54  ;;  %v8608_v60 = vpack.c.bf16 %v11164_v42, %v11163_v34  ;;  %v10972_v2 = vld [vmem:[%s13172_s23 + $0x101] sm:$0xff]  ;;  %v10973_v54 = vld [vmem:[%s13172_s23 + $0x109] sm:$0xff]  ;;  %v10974_v34 = vld [vmem:[%s13172_s23 + $0x119] sm:$0xff] }
 0x3ab   : > { %17350 = vst [vmem:[#allocation82_spill] sm:$0xff] %v15753_v32  ;;  %v15764_v3 = vadd.f32 %v12752_v56, %v6248_v44  ;;  %v6246_v1 = vadd.f32 %v5855_v19, %v17353_v20  ;;  %v7536_v32 = vpack.c.bf16 %v10971_v35, %v10970_v22  ;;  %v17357_v19 = vld [vmem:[#allocation94_spill] sm:$0xff]  ;;  %v17359_v22 = vld [vmem:[#allocation43_spill] sm:$0xff] }
 0x3ac   : > { %v12623_v25 = vpop.f32.mrf.mxu1  ;;  %v12753_v48 = vpop.f32.mrf.mxu0  ;;  %v11166_v35 = vld [vmem:[%s13172_s23 + $0x10a] sm:$0xff] }
 0x3ad   : > { %17352 = vst [vmem:[#allocation84_spill] sm:$0xff] %v15764_v3  ;;  %v15767_v57 = vadd.f32 %v6921_v61, %v6246_v1  ;;  %v6249_v63 = vadd.f32 %v12623_v25, %v17355_v27  ;;  %v10975_v25 = vld [vmem:[%s13172_s23 + $0x121] sm:$0xff] }
 0x3ae   : > { %v5858_v62 = vpop.f32.mrf.mxu1  ;;  %v6924_v56 = vpop.f32.mrf.mxu0 }
 0x3af   : > { %17354 = vst [vmem:[#allocation86_spill] sm:$0xff] %v15767_v57  ;;  %v15770_v44 = vadd.f32 %v12753_v48, %v6249_v63  ;;  %v6247_v20 = vadd.f32 %v5858_v62, %v17357_v19  ;;  %v11165_v62 = vld [vmem:[%s13172_s23 + $0x102] sm:$0xff]  ;;  %v11167_v48 = vld [vmem:[%s13172_s23 + $0x11a] sm:$0xff] }
 0x3b0   : > { %v12626_v3 = vpop.f32.mrf.mxu1  ;;  %v12756_v37 = vpop.f32.mrf.mxu0  ;;  %12853 = vmatmul.mubr.msk.bf16.gmra.mxu1 %vm569_vm2, %v7535_v14  ;;  %12983 = vmatmul.mubr.msk.bf16.gmra.mxu0 %vm569_vm2, %v8607_v41  ;;  %v11168_v14 = vld [vmem:[%s13172_s23 + $0x122] sm:$0xff]  ;;  %v17361_v41 = vld [vmem:[#allocation45_spill] sm:$0xff] }
 0x3b1   : > { %17356 = vst [vmem:[#allocation88_spill] sm:$0xff] %v15770_v44  ;;  %v15777_v30 = vadd.f32 %v6924_v56, %v6247_v20  ;;  %v6252_v61 = vadd.f32 %v12626_v3, %v17359_v22  ;;  %12856 = vmatprep.mubr.msk.bf16.mxu1 %vm569_vm2, %v7536_v32  ;;  %12986 = vmatprep.mubr.msk.bf16.mxu0 %vm569_vm2, %v8608_v60  ;;  %v17363_v60 = vld [vmem:[#allocation47_spill] sm:$0xff] }
 0x3b2   : > { %v5871_v42 = vpop.f32.mrf.mxu1  ;;  %v6937_v1 = vpop.f32.mrf.mxu0  ;;  %v7537_v3 = vpack.c.bf16 %v10973_v54, %v10972_v2  ;;  %v8609_v32 = vpack.c.bf16 %v11166_v35, %v11165_v62  ;;  %v8610_v44 = vpack.c.bf16 %v11168_v14, %v11167_v48  ;;  %v10976_v54 = vld [vmem:[%s13172_s23 + $0x129] sm:$0xff]  ;;  %v10977_v62 = vld [vmem:[%s13172_s23 + $0x131] sm:$0xff]  ;;  %v10978_v48 = vld [vmem:[%s13172_s23 + $0x141] sm:$0xff] }
 0x3b3   : > { %17358 = vst [vmem:[#allocation90_spill] sm:$0xff] %v15777_v30  ;;  %v15788_v27 = vadd.f32 %v12756_v37, %v6252_v61  ;;  %v6250_v63 = vadd.f32 %v5871_v42, %v17361_v41  ;;  %v7538_v30 = vpack.c.bf16 %v10975_v25, %v10974_v34  ;;  %v17365_v42 = vld [vmem:[#allocation49_spill] sm:$0xff]  ;;  %v17367_v34 = vld [vmem:[#allocation51_spill] sm:$0xff] }
 0x3b4   : > { %v12627_v56 = vpop.f32.mrf.mxu1  ;;  %v12757_v19 = vpop.f32.mrf.mxu0  ;;  %v11170_v25 = vld [vmem:[%s13172_s23 + $0x132] sm:$0xff] }
 0x3b5   : > { %17360 = vst [vmem:[#allocation91_spill] sm:$0xff] %v15788_v27  ;;  %v15791_v20 = vadd.f32 %v6937_v1, %v6250_v63  ;;  %v6253_v22 = vadd.f32 %v12627_v56, %v17363_v60  ;;  %v10979_v56 = vld [vmem:[%s13172_s23 + $0x149] sm:$0xff] }
 0x3b6   : > { %v5874_v57 = vpop.f32.mrf.mxu1  ;;  %v6940_v37 = vpop.f32.mrf.mxu0 }
 0x3b7   : > { %17362 = vst [vmem:[#allocation92_spill] sm:$0xff] %v15791_v20  ;;  %v15794_v61 = vadd.f32 %v12757_v19, %v6253_v22  ;;  %v6251_v41 = vadd.f32 %v5874_v57, %v17365_v42  ;;  %v11169_v57 = vld [vmem:[%s13172_s23 + $0x12a] sm:$0xff]  ;;  %v11171_v19 = vld [vmem:[%s13172_s23 + $0x142] sm:$0xff] }
 0x3b8   : > { %v12630_v27 = vpop.f32.mrf.mxu1  ;;  %v12760_v2 = vpop.f32.mrf.mxu0  ;;  %12857 = vmatmul.mubr.msk.bf16.gmra.mxu1 %vm569_vm2, %v7537_v3  ;;  %12987 = vmatmul.mubr.msk.bf16.gmra.mxu0 %vm569_vm2, %v8609_v32  ;;  %v11172_v3 = vld [vmem:[%s13172_s23 + $0x14a] sm:$0xff]  ;;  %v17369_v32 = vld [vmem:[#allocation53_spill] sm:$0xff] }
 0x3b9   : > { %17364 = vst [vmem:[#allocation93_spill] sm:$0xff] %v15794_v61  ;;  %v15801_v35 = vadd.f32 %v6940_v37, %v6251_v41  ;;  %v6256_v1 = vadd.f32 %v12630_v27, %v17367_v34  ;;  %12860 = vmatprep.mubr.msk.bf16.mxu1 %vm569_vm2, %v7538_v30  ;;  %12990 = vmatprep.mubr.msk.bf16.mxu0 %vm569_vm2, %v8610_v44  ;;  %v17371_v44 = vld [vmem:[#allocation55_spill] sm:$0xff] }
 0x3ba   : > { %v5887_v14 = vpop.f32.mrf.mxu1  ;;  %v6953_v63 = vpop.f32.mrf.mxu0  ;;  %v7539_v27 = vpack.c.bf16 %v10977_v62, %v10976_v54  ;;  %v8611_v30 = vpack.c.bf16 %v11170_v25, %v11169_v57  ;;  %v8612_v61 = vpack.c.bf16 %v11172_v3, %v11171_v19  ;;  %v10980_v62 = vld [vmem:[%s13172_s23 + $0x151] sm:$0xff]  ;;  %v10981_v57 = vld [vmem:[%s13172_s23 + $0x159] sm:$0xff]  ;;  %v10982_v19 = vld [vmem:[%s13172_s23 + $0x169] sm:$0xff] }
 0x3bb   : > { %17366 = vst [vmem:[#allocation94_spill] sm:$0xff] %v15801_v35  ;;  %v15812_v60 = vadd.f32 %v12760_v2, %v6256_v1  ;;  %v6254_v22 = vadd.f32 %v5887_v14, %v17369_v32  ;;  %v7540_v35 = vpack.c.bf16 %v10979_v56, %v10978_v48  ;;  %v17373_v14 = vld [vmem:[#allocation57_spill] sm:$0xff]  ;;  %v17375_v48 = vld [vmem:[#allocation59_spill] sm:$0xff] }
 0x3bc   : > { %v12631_v37 = vpop.f32.mrf.mxu1  ;;  %v12761_v42 = vpop.f32.mrf.mxu0  ;;  %v11174_v56 = vld [vmem:[%s13172_s23 + $0x15a] sm:$0xff] }
 0x3bd   : > { %17368 = vst [vmem:[#allocation43_spill] sm:$0xff] %v15812_v60  ;;  %v15815_v41 = vadd.f32 %v6953_v63, %v6254_v22  ;;  %v6257_v34 = vadd.f32 %v12631_v37, %v17371_v44  ;;  %v10983_v37 = vld [vmem:[%s13172_s23 + $0x171] sm:$0xff] }
 0x3be   : > { %v5890_v20 = vpop.f32.mrf.mxu1  ;;  %v6956_v2 = vpop.f32.mrf.mxu0 }
 0x3bf   : > { %17370 = vst [vmem:[#allocation45_spill] sm:$0xff] %v15815_v41  ;;  %v15818_v1 = vadd.f32 %v12761_v42, %v6257_v34  ;;  %v6255_v32 = vadd.f32 %v5890_v20, %v17373_v14  ;;  %v11173_v20 = vld [vmem:[%s13172_s23 + $0x152] sm:$0xff]  ;;  %v11175_v42 = vld [vmem:[%s13172_s23 + $0x16a] sm:$0xff] }
 0x3c0   : > { %v12634_v60 = vpop.f32.mrf.mxu1  ;;  %v12764_v54 = vpop.f32.mrf.mxu0  ;;  %12861 = vmatmul.mubr.msk.bf16.gmra.mxu1 %vm569_vm2, %v7539_v27  ;;  %12991 = vmatmul.mubr.msk.bf16.gmra.mxu0 %vm569_vm2, %v8611_v30  ;;  %v11176_v27 = vld [vmem:[%s13172_s23 + $0x172] sm:$0xff] }
 0x3c1   : > { %17372 = vst [vmem:[#allocation47_spill] sm:$0xff] %v15818_v1  ;;  %v15825_v25 = vadd.f32 %v6956_v2, %v6255_v32  ;;  %v6260_v63 = vadd.f32 %v12634_v60, %v17375_v48  ;;  %12864 = vmatprep.mubr.msk.bf16.mxu1 %vm569_vm2, %v7540_v35  ;;  %12994 = vmatprep.mubr.msk.bf16.mxu0 %vm569_vm2, %v8612_v61  ;;  %v17377_v30 = vld [vmem:[#allocation61_spill] sm:$0xff]  ;;  %v17379_v61 = vld [vmem:[#allocation63_spill] sm:$0xff] }
 0x3c2   : > { %v5903_v3 = vpop.f32.mrf.mxu1  ;;  %v6969_v22 = vpop.f32.mrf.mxu0  ;;  %v7541_v60 = vpack.c.bf16 %v10981_v57, %v10980_v62  ;;  %v8613_v35 = vpack.c.bf16 %v11174_v56, %v11173_v20  ;;  %v8614_v1 = vpack.c.bf16 %v11176_v27, %v11175_v42  ;;  %v10984_v57 = vld [vmem:[%s13172_s23 + $0x179] sm:$0xff]  ;;  %v10985_v20 = vld [vmem:[%s13172_s23 + $0x181] sm:$0xff]  ;;  %v10986_v42 = vld [vmem:[%s13172_s23 + $0x191] sm:$0xff] }
 0x3c3   : > { %17374 = vst [vmem:[#allocation49_spill] sm:$0xff] %v15825_v25  ;;  %v15836_v44 = vadd.f32 %v12764_v54, %v6260_v63  ;;  %v6258_v34 = vadd.f32 %v5903_v3, %v17377_v30  ;;  %v7542_v25 = vpack.c.bf16 %v10983_v37, %v10982_v19  ;;  %v17381_v3 = vld [vmem:[#allocation65_spill] sm:$0xff]  ;;  %v17383_v19 = vld [vmem:[#allocation67_spill] sm:$0xff] }
 0x3c4   : > { %v12635_v2 = vpop.f32.mrf.mxu1  ;;  %v12765_v14 = vpop.f32.mrf.mxu0  ;;  %v11178_v37 = vld [vmem:[%s13172_s23 + $0x182] sm:$0xff] }
 0x3c5   : > { %17376 = vst [vmem:[#allocation51_spill] sm:$0xff] %v15836_v44  ;;  %v15839_v32 = vadd.f32 %v6969_v22, %v6258_v34  ;;  %v6261_v48 = vadd.f32 %v12635_v2, %v17379_v61  ;;  %v10987_v2 = vld [vmem:[%s13172_s23 + $0x199] sm:$0xff] }
 0x3c6   : > { %v5906_v41 = vpop.f32.mrf.mxu1  ;;  %v6972_v54 = vpop.f32.mrf.mxu0 }
 0x3c7   : > { %17378 = vst [vmem:[#allocation53_spill] sm:$0xff] %v15839_v32  ;;  %v15842_v63 = vadd.f32 %v12765_v14, %v6261_v48  ;;  %v6259_v30 = vadd.f32 %v5906_v41, %v17381_v3  ;;  %v11177_v41 = vld [vmem:[%s13172_s23 + $0x17a] sm:$0xff]  ;;  %v11179_v14 = vld [vmem:[%s13172_s23 + $0x192] sm:$0xff] }
 0x3c8   : > { %v12638_v44 = vpop.f32.mrf.mxu1  ;;  %v12768_v62 = vpop.f32.mrf.mxu0  ;;  %12865 = vmatmul.mubr.msk.bf16.gmra.mxu1 %vm569_vm2, %v7541_v60  ;;  %12995 = vmatmul.mubr.msk.bf16.gmra.mxu0 %vm569_vm2, %v8613_v35  ;;  %v11180_v60 = vld [vmem:[%s13172_s23 + $0x19a] sm:$0xff] }
 0x3c9   : > { %17380 = vst [vmem:[#allocation55_spill] sm:$0xff] %v15842_v63  ;;  %v15849_v56 = vadd.f32 %v6972_v54, %v6259_v30  ;;  %v6264_v22 = vadd.f32 %v12638_v44, %v17383_v19  ;;  %12868 = vmatprep.mubr.msk.bf16.mxu1 %vm569_vm2, %v7542_v25  ;;  %12998 = vmatprep.mubr.msk.bf16.mxu0 %vm569_vm2, %v8614_v1  ;;  %v17385_v35 = vld [vmem:[#allocation69_spill] sm:$0xff]  ;;  %v17387_v1 = vld [vmem:[#allocation71_spill] sm:$0xff] }
 0x3ca   : > { %v5919_v27 = vpop.f32.mrf.mxu1  ;;  %v6985_v34 = vpop.f32.mrf.mxu0  ;;  %v7543_v44 = vpack.c.bf16 %v10985_v20, %v10984_v57  ;;  %v8615_v25 = vpack.c.bf16 %v11178_v37, %v11177_v41  ;;  %v8616_v63 = vpack.c.bf16 %v11180_v60, %v11179_v14  ;;  %v10988_v20 = vld [vmem:[%s13172_s23 + $0x1a1] sm:$0xff]  ;;  %v10989_v41 = vld [vmem:[%s13172_s23 + $0x1a9] sm:$0xff]  ;;  %v10990_v14 = vld [vmem:[%s13172_s23 + $0x1b9] sm:$0xff] }
 0x3cb   : > { %17382 = vst [vmem:[#allocation57_spill] sm:$0xff] %v15849_v56  ;;  %v15860_v61 = vadd.f32 %v12768_v62, %v6264_v22  ;;  %v6262_v48 = vadd.f32 %v5919_v27, %v17385_v35  ;;  %v7544_v56 = vpack.c.bf16 %v10987_v2, %v10986_v42  ;;  %v17389_v27 = vld [vmem:[#allocation73_spill] sm:$0xff]  ;;  %v17391_v42 = vld [vmem:[#allocation75_spill] sm:$0xff] }
 0x3cc   : > { %v12639_v54 = vpop.f32.mrf.mxu1  ;;  %v12769_v3 = vpop.f32.mrf.mxu0  ;;  %v11182_v2 = vld [vmem:[%s13172_s23 + $0x1aa] sm:$0xff] }
 0x3cd   : > { %17384 = vst [vmem:[#allocation59_spill] sm:$0xff] %v15860_v61  ;;  %v15863_v30 = vadd.f32 %v6985_v34, %v6262_v48  ;;  %v6265_v19 = vadd.f32 %v12639_v54, %v17387_v1  ;;  %v10991_v54 = vld [vmem:[%s13172_s23 + $0x1c1] sm:$0xff] }
 0x3ce   : > { %v5922_v32 = vpop.f32.mrf.mxu1  ;;  %v6988_v62 = vpop.f32.mrf.mxu0 }
 0x3cf   : > { %17386 = vst [vmem:[#allocation61_spill] sm:$0xff] %v15863_v30  ;;  %v15866_v22 = vadd.f32 %v12769_v3, %v6265_v19  ;;  %v6263_v35 = vadd.f32 %v5922_v32, %v17389_v27  ;;  %v11181_v32 = vld [vmem:[%s13172_s23 + $0x1a2] sm:$0xff]  ;;  %v11183_v3 = vld [vmem:[%s13172_s23 + $0x1ba] sm:$0xff] }
 0x3d0   : > { %v12642_v61 = vpop.f32.mrf.mxu1  ;;  %v12772_v57 = vpop.f32.mrf.mxu0  ;;  %12869 = vmatmul.mubr.msk.bf16.gmra.mxu1 %vm569_vm2, %v7543_v44  ;;  %12999 = vmatmul.mubr.msk.bf16.gmra.mxu0 %vm569_vm2, %v8615_v25  ;;  %v11184_v44 = vld [vmem:[%s13172_s23 + $0x1c2] sm:$0xff]  ;;  %v17393_v25 = vld [vmem:[#allocation77_spill] sm:$0xff] }
 0x3d1   : > { %17388 = vst [vmem:[#allocation63_spill] sm:$0xff] %v15866_v22  ;;  %v15873_v37 = vadd.f32 %v6988_v62, %v6263_v35  ;;  %v6268_v34 = vadd.f32 %v12642_v61, %v17391_v42  ;;  %12872 = vmatprep.mubr.msk.bf16.mxu1 %vm569_vm2, %v7544_v56  ;;  %13002 = vmatprep.mubr.msk.bf16.mxu0 %vm569_vm2, %v8616_v63  ;;  %v17395_v63 = vld [vmem:[#allocation79_spill] sm:$0xff] }
 0x3d2   : > { %v5935_v60 = vpop.f32.mrf.mxu1  ;;  %v7001_v48 = vpop.f32.mrf.mxu0  ;;  %v7545_v61 = vpack.c.bf16 %v10989_v41, %v10988_v20  ;;  %v8617_v56 = vpack.c.bf16 %v11182_v2, %v11181_v32  ;;  %v8618_v22 = vpack.c.bf16 %v11184_v44, %v11183_v3  ;;  %v10992_v41 = vld [vmem:[%s13172_s23 + $0x1c9] sm:$0xff]  ;;  %v10993_v32 = vld [vmem:[%s13172_s23 + $0x1d1] sm:$0xff]  ;;  %v10994_v3 = vld [vmem:[%s13172_s23 + $0x1e1] sm:$0xff] }
 0x3d3   : > { %17390 = vst [vmem:[#allocation65_spill] sm:$0xff] %v15873_v37  ;;  %v15884_v1 = vadd.f32 %v12772_v57, %v6268_v34  ;;  %v6266_v19 = vadd.f32 %v5935_v60, %v17393_v25  ;;  %v7546_v37 = vpack.c.bf16 %v10991_v54, %v10990_v14  ;;  %v17397_v60 = vld [vmem:[#allocation81_spill] sm:$0xff]  ;;  %v17399_v14 = vld [vmem:[#allocation83_spill] sm:$0xff] }
 0x3d4   : > { %v12643_v62 = vpop.f32.mrf.mxu1  ;;  %v12773_v27 = vpop.f32.mrf.mxu0  ;;  %v11186_v54 = vld [vmem:[%s13172_s23 + $0x1d2] sm:$0xff] }
 0x3d5   : > { %17392 = vst [vmem:[#allocation67_spill] sm:$0xff] %v15884_v1  ;;  %v15887_v35 = vadd.f32 %v7001_v48, %v6266_v19  ;;  %v6269_v42 = vadd.f32 %v12643_v62, %v17395_v63  ;;  %v10995_v62 = vld [vmem:[%s13172_s23 + $0x1e9] sm:$0xff] }
 0x3d6   : > { %v5938_v30 = vpop.f32.mrf.mxu1  ;;  %v7004_v57 = vpop.f32.mrf.mxu0 }
 0x3d7   : > { %17394 = vst [vmem:[#allocation69_spill] sm:$0xff] %v15887_v35  ;;  %v15890_v34 = vadd.f32 %v12773_v27, %v6269_v42  ;;  %v6267_v25 = vadd.f32 %v5938_v30, %v17397_v60  ;;  %v11185_v30 = vld [vmem:[%s13172_s23 + $0x1ca] sm:$0xff]  ;;  %v11187_v27 = vld [vmem:[%s13172_s23 + $0x1e2] sm:$0xff] }
 0x3d8   : > { %v12646_v1 = vpop.f32.mrf.mxu1  ;;  %v12776_v20 = vpop.f32.mrf.mxu0  ;;  %12873 = vmatmul.mubr.msk.bf16.gmra.mxu1 %vm569_vm2, %v7545_v61  ;;  %13003 = vmatmul.mubr.msk.bf16.gmra.mxu0 %vm569_vm2, %v8617_v56  ;;  %v11188_v61 = vld [vmem:[%s13172_s23 + $0x1ea] sm:$0xff]  ;;  %v17401_v56 = vld [vmem:[#allocation85_spill] sm:$0xff] }
 0x3d9   : > { %17396 = vst [vmem:[#allocation71_spill] sm:$0xff] %v15890_v34  ;;  %v15897_v2 = vadd.f32 %v7004_v57, %v6267_v25  ;;  %v6272_v48 = vadd.f32 %v12646_v1, %v17399_v14  ;;  %12876 = vmatprep.mubr.msk.bf16.mxu1 %vm569_vm2, %v7546_v37  ;;  %13006 = vmatprep.mubr.msk.bf16.mxu0 %vm569_vm2, %v8618_v22  ;;  %v17403_v22 = vld [vmem:[#allocation87_spill] sm:$0xff] }
 0x3da   : > { %v5951_v44 = vpop.f32.mrf.mxu1  ;;  %v7017_v19 = vpop.f32.mrf.mxu0  ;;  %v7547_v1 = vpack.c.bf16 %v10993_v32, %v10992_v41  ;;  %v8619_v37 = vpack.c.bf16 %v11186_v54, %v11185_v30  ;;  %v8620_v34 = vpack.c.bf16 %v11188_v61, %v11187_v27  ;;  %v10996_v32 = vld [vmem:[%s13172_s23 + $0x1f1] sm:$0xff]  ;;  %v10997_v30 = vld [vmem:[%s13172_s23 + $0x1f9] sm:$0xff]  ;;  %v10998_v27 = vld [vmem:[%s13172_s23 + $0x209] sm:$0xff] }
 0x3db   : > { %17398 = vst [vmem:[#allocation73_spill] sm:$0xff] %v15897_v2  ;;  %v15908_v63 = vadd.f32 %v12776_v20, %v6272_v48  ;;  %v6270_v42 = vadd.f32 %v5951_v44, %v17401_v56  ;;  %v7548_v2 = vpack.c.bf16 %v10995_v62, %v10994_v3  ;;  %v17405_v44 = vld [vmem:[#allocation89_spill] sm:$0xff]  ;;  %v17407_v3 = vld [vmem:[#allocation3_spill] sm:$0xff] }
 0x3dc   : > { %v12647_v57 = vpop.f32.mrf.mxu1  ;;  %v12777_v60 = vpop.f32.mrf.mxu0  ;;  %v11190_v62 = vld [vmem:[%s13172_s23 + $0x1fa] sm:$0xff] }
 0x3dd   : > { %17400 = vst [vmem:[#allocation75_spill] sm:$0xff] %v15908_v63  ;;  %v15911_v25 = vadd.f32 %v7017_v19, %v6270_v42  ;;  %v6273_v14 = vadd.f32 %v12647_v57, %v17403_v22  ;;  %v10999_v57 = vld [vmem:[%s13172_s23 + $0x211] sm:$0xff] }
 0x3de   : > { %v5954_v35 = vpop.f32.mrf.mxu1  ;;  %v7020_v20 = vpop.f32.mrf.mxu0 }
 0x3df   : > { %17402 = vst [vmem:[#allocation77_spill] sm:$0xff] %v15911_v25  ;;  %v15914_v48 = vadd.f32 %v12777_v60, %v6273_v14  ;;  %v6271_v56 = vadd.f32 %v5954_v35, %v17405_v44  ;;  %v11189_v35 = vld [vmem:[%s13172_s23 + $0x1f2] sm:$0xff]  ;;  %v11191_v60 = vld [vmem:[%s13172_s23 + $0x20a] sm:$0xff] }
 0x3e0   : > { %v12650_v63 = vpop.f32.mrf.mxu1  ;;  %v12780_v41 = vpop.f32.mrf.mxu0  ;;  %12877 = vmatmul.mubr.msk.bf16.gmra.mxu1 %vm569_vm2, %v7547_v1  ;;  %13007 = vmatmul.mubr.msk.bf16.gmra.mxu0 %vm569_vm2, %v8619_v37  ;;  %v11192_v1 = vld [vmem:[%s13172_s23 + $0x212] sm:$0xff] }
 0x3e1   : > { %17404 = vst [vmem:[#allocation79_spill] sm:$0xff] %v15914_v48  ;;  %v15921_v54 = vadd.f32 %v7020_v20, %v6271_v56  ;;  %v6276_v19 = vadd.f32 %v12650_v63, %v17407_v3  ;;  %12880 = vmatprep.mubr.msk.bf16.mxu1 %vm569_vm2, %v7548_v2  ;;  %13010 = vmatprep.mubr.msk.bf16.mxu0 %vm569_vm2, %v8620_v34  ;;  %v17409_v37 = vld [vmem:[#allocation4_spill] sm:$0xff]  ;;  %v17411_v34 = vld [vmem:[#allocation5_spill] sm:$0xff] }
 0x3e2   : > { %v5967_v61 = vpop.f32.mrf.mxu1  ;;  %v7033_v42 = vpop.f32.mrf.mxu0  ;;  %v7549_v63 = vpack.c.bf16 %v10997_v30, %v10996_v32  ;;  %v8621_v2 = vpack.c.bf16 %v11190_v62, %v11189_v35  ;;  %v8622_v48 = vpack.c.bf16 %v11192_v1, %v11191_v60  ;;  %v11000_v30 = vld [vmem:[%s13172_s23 + $0x219] sm:$0xff]  ;;  %v11001_v35 = vld [vmem:[%s13172_s23 + $0x221] sm:$0xff]  ;;  %v11002_v60 = vld [vmem:[%s13172_s23 + $0x231] sm:$0xff] }
 0x3e3   : > { %17406 = vst [vmem:[#allocation81_spill] sm:$0xff] %v15921_v54  ;;  %v15932_v22 = vadd.f32 %v12780_v41, %v6276_v19  ;;  %v6274_v14 = vadd.f32 %v5967_v61, %v17409_v37  ;;  %v7550_v54 = vpack.c.bf16 %v10999_v57, %v10998_v27  ;;  %v17413_v61 = vld [vmem:[#allocation6_spill] sm:$0xff]  ;;  %v17415_v27 = vld [vmem:[#allocation7_spill] sm:$0xff] }
 0x3e4   : > { %v12651_v20 = vpop.f32.mrf.mxu1  ;;  %v12781_v44 = vpop.f32.mrf.mxu0  ;;  %v11194_v57 = vld [vmem:[%s13172_s23 + $0x222] sm:$0xff] }
 0x3e5   : > { %17408 = vst [vmem:[#allocation83_spill] sm:$0xff] %v15932_v22  ;;  %v15935_v56 = vadd.f32 %v7033_v42, %v6274_v14  ;;  %v6277_v3 = vadd.f32 %v12651_v20, %v17411_v34  ;;  %v11003_v20 = vld [vmem:[%s13172_s23 + $0x239] sm:$0xff] }
 0x3e6   : > { %v5970_v25 = vpop.f32.mrf.mxu1  ;;  %v7036_v41 = vpop.f32.mrf.mxu0 }
 0x3e7   : > { %17410 = vst [vmem:[#allocation85_spill] sm:$0xff] %v15935_v56  ;;  %v15938_v19 = vadd.f32 %v12781_v44, %v6277_v3  ;;  %v6275_v37 = vadd.f32 %v5970_v25, %v17413_v61  ;;  %v11193_v25 = vld [vmem:[%s13172_s23 + $0x21a] sm:$0xff]  ;;  %v11195_v44 = vld [vmem:[%s13172_s23 + $0x232] sm:$0xff] }
 0x3e8   : > { %v12654_v22 = vpop.f32.mrf.mxu1  ;;  %v12784_v32 = vpop.f32.mrf.mxu0  ;;  %12881 = vmatmul.mubr.msk.bf16.gmra.mxu1 %vm569_vm2, %v7549_v63  ;;  %13011 = vmatmul.mubr.msk.bf16.gmra.mxu0 %vm569_vm2, %v8621_v2  ;;  %v11196_v63 = vld [vmem:[%s13172_s23 + $0x23a] sm:$0xff]  ;;  %v17417_v2 = vld [vmem:[#allocation8_spill] sm:$0xff] }
 0x3e9   : > { %17412 = vst [vmem:[#allocation87_spill] sm:$0xff] %v15938_v19  ;;  %v15945_v62 = vadd.f32 %v7036_v41, %v6275_v37  ;;  %v6280_v42 = vadd.f32 %v12654_v22, %v17415_v27  ;;  %12884 = vmatprep.mubr.msk.bf16.mxu1 %vm569_vm2, %v7550_v54  ;;  %13014 = vmatprep.mubr.msk.bf16.mxu0 %vm569_vm2, %v8622_v48  ;;  %v17419_v48 = vld [vmem:[#allocation9_spill] sm:$0xff] }
 0x3ea   : > { %v5983_v1 = vpop.f32.mrf.mxu1  ;;  %v7049_v14 = vpop.f32.mrf.mxu0  ;;  %v7551_v22 = vpack.c.bf16 %v11001_v35, %v11000_v30  ;;  %v8623_v54 = vpack.c.bf16 %v11194_v57, %v11193_v25  ;;  %v8624_v19 = vpack.c.bf16 %v11196_v63, %v11195_v44  ;;  %v11004_v35 = vld [vmem:[%s13172_s23 + $0x241] sm:$0xff]  ;;  %v11005_v25 = vld [vmem:[%s13172_s23 + $0x249] sm:$0xff]  ;;  %v11006_v44 = vld [vmem:[%s13172_s23 + $0x259] sm:$0xff] }
 0x3eb   : > { %17414 = vst [vmem:[#allocation89_spill] sm:$0xff] %v15945_v62  ;;  %v15956_v34 = vadd.f32 %v12784_v32, %v6280_v42  ;;  %v6278_v3 = vadd.f32 %v5983_v1, %v17417_v2  ;;  %v7552_v62 = vpack.c.bf16 %v11003_v20, %v11002_v60  ;;  %v17421_v1 = vld [vmem:[#allocation10_spill] sm:$0xff]  ;;  %v17423_v60 = vld [vmem:[#allocation11_spill] sm:$0xff] }
 0x3ec   : > { %v12655_v41 = vpop.f32.mrf.mxu1  ;;  %v12785_v61 = vpop.f32.mrf.mxu0  ;;  %v11198_v20 = vld [vmem:[%s13172_s23 + $0x24a] sm:$0xff] }
 0x3ed   : > { %17416 = vst [vmem:[#allocation3_spill] sm:$0xff] %v15956_v34  ;;  %v15959_v37 = vadd.f32 %v7049_v14, %v6278_v3  ;;  %v6281_v27 = vadd.f32 %v12655_v41, %v17419_v48  ;;  %v11007_v41 = vld [vmem:[%s13172_s23 + $0x261] sm:$0xff] }
 0x3ee   : > { %v5986_v56 = vpop.f32.mrf.mxu1  ;;  %v7052_v32 = vpop.f32.mrf.mxu0 }
 0x3ef   : > { %17418 = vst [vmem:[#allocation4_spill] sm:$0xff] %v15959_v37  ;;  %v15962_v42 = vadd.f32 %v12785_v61, %v6281_v27  ;;  %v6279_v2 = vadd.f32 %v5986_v56, %v17421_v1  ;;  %v11197_v56 = vld [vmem:[%s13172_s23 + $0x242] sm:$0xff]  ;;  %v11199_v61 = vld [vmem:[%s13172_s23 + $0x25a] sm:$0xff] }
 0x3f0   : > { %v12658_v34 = vpop.f32.mrf.mxu1  ;;  %v12788_v30 = vpop.f32.mrf.mxu0  ;;  %12885 = vmatmul.mubr.msk.bf16.gmra.mxu1 %vm569_vm2, %v7551_v22  ;;  %13015 = vmatmul.mubr.msk.bf16.gmra.mxu0 %vm569_vm2, %v8623_v54  ;;  %v11200_v22 = vld [vmem:[%s13172_s23 + $0x262] sm:$0xff]  ;;  %v17425_v54 = vld [vmem:[#allocation12_spill] sm:$0xff] }
 0x3f1   : > { %17420 = vst [vmem:[#allocation5_spill] sm:$0xff] %v15962_v42  ;;  %v15969_v57 = vadd.f32 %v7052_v32, %v6279_v2  ;;  %v6284_v14 = vadd.f32 %v12658_v34, %v17423_v60  ;;  %12888 = vmatprep.mubr.msk.bf16.mxu1 %vm569_vm2, %v7552_v62  ;;  %13018 = vmatprep.mubr.msk.bf16.mxu0 %vm569_vm2, %v8624_v19  ;;  %v17427_v19 = vld [vmem:[#allocation13_spill] sm:$0xff] }
 0x3f2   : > { %v5999_v63 = vpop.f32.mrf.mxu1  ;;  %v7065_v3 = vpop.f32.mrf.mxu0  ;;  %v7553_v34 = vpack.c.bf16 %v11005_v25, %v11004_v35  ;;  %v8625_v62 = vpack.c.bf16 %v11198_v20, %v11197_v56  ;;  %v8626_v42 = vpack.c.bf16 %v11200_v22, %v11199_v61  ;;  %v11008_v25 = vld [vmem:[%s13172_s23 + $0x269] sm:$0xff]  ;;  %v11009_v56 = vld [vmem:[%s13172_s23 + $0x271] sm:$0xff]  ;;  %v11010_v61 = vld [vmem:[%s13172_s23 + $0x281] sm:$0xff] }
 0x3f3   : > { %17422 = vst [vmem:[#allocation6_spill] sm:$0xff] %v15969_v57  ;;  %v15980_v48 = vadd.f32 %v12788_v30, %v6284_v14  ;;  %v6282_v27 = vadd.f32 %v5999_v63, %v17425_v54  ;;  %v7554_v57 = vpack.c.bf16 %v11007_v41, %v11006_v44  ;;  %v17429_v63 = vld [vmem:[#allocation14_spill] sm:$0xff]  ;;  %v17431_v44 = vld [vmem:[#allocation15_spill] sm:$0xff]  ;;  %v11202_v41 = vld [vmem:[%s13172_s23 + $0x272] sm:$0xff] }
 0x3f4   : > { %v12659_v32 = vpop.f32.mrf.mxu1  ;;  %v12789_v1 = vpop.f32.mrf.mxu0 }
 0x3f5   : > { %17424 = vst [vmem:[#allocation7_spill] sm:$0xff] %v15980_v48  ;;  %v15983_v2 = vadd.f32 %v7065_v3, %v6282_v27  ;;  %v6285_v60 = vadd.f32 %v12659_v32, %v17427_v19  ;;  %v11011_v32 = vld [vmem:[%s13172_s23 + $0x289] sm:$0xff] }
 0x3f6   : > { %v6002_v37 = vpop.f32.mrf.mxu1  ;;  %v7068_v30 = vpop.f32.mrf.mxu0 }
 0x3f7   : > { %17426 = vst [vmem:[#allocation8_spill] sm:$0xff] %v15983_v2  ;;  %v15986_v14 = vadd.f32 %v12789_v1, %v6285_v60  ;;  %v6283_v54 = vadd.f32 %v6002_v37, %v17429_v63  ;;  %v11201_v37 = vld [vmem:[%s13172_s23 + $0x26a] sm:$0xff]  ;;  %v11203_v1 = vld [vmem:[%s13172_s23 + $0x282] sm:$0xff] }
 0x3f8   : > { %v12662_v48 = vpop.f32.mrf.mxu1  ;;  %v12792_v35 = vpop.f32.mrf.mxu0  ;;  %12889 = vmatmul.mubr.msk.bf16.gmra.mxu1 %vm569_vm2, %v7553_v34  ;;  %13019 = vmatmul.mubr.msk.bf16.gmra.mxu0 %vm569_vm2, %v8625_v62  ;;  %v11204_v34 = vld [vmem:[%s13172_s23 + $0x28a] sm:$0xff] }
 0x3f9   : > { %17428 = vst [vmem:[#allocation9_spill] sm:$0xff] %v15986_v14  ;;  %v15993_v20 = vadd.f32 %v7068_v30, %v6283_v54  ;;  %v6288_v3 = vadd.f32 %v12662_v48, %v17431_v44  ;;  %12892 = vmatprep.mubr.msk.bf16.mxu1 %vm569_vm2, %v7554_v57  ;;  %13022 = vmatprep.mubr.msk.bf16.mxu0 %vm569_vm2, %v8626_v42  ;;  %v17433_v62 = vld [vmem:[#allocation16_spill] sm:$0xff]  ;;  %v17435_v42 = vld [vmem:[#allocation17_spill] sm:$0xff] }
 0x3fa   : > { %v6015_v22 = vpop.f32.mrf.mxu1  ;;  %v7081_v27 = vpop.f32.mrf.mxu0  ;;  %v7555_v48 = vpack.c.bf16 %v11009_v56, %v11008_v25  ;;  %v8627_v57 = vpack.c.bf16 %v11202_v41, %v11201_v37  ;;  %v8628_v14 = vpack.c.bf16 %v11204_v34, %v11203_v1  ;;  %v11012_v56 = vld [vmem:[%s13172_s23 + $0x291] sm:$0xff]  ;;  %v11013_v37 = vld [vmem:[%s13172_s23 + $0x299] sm:$0xff]  ;;  %v11014_v1 = vld [vmem:[%s13172_s23 + $0x2a9] sm:$0xff] }
 0x3fb   : > { %17430 = vst [vmem:[#allocation10_spill] sm:$0xff] %v15993_v20  ;;  %v16004_v19 = vadd.f32 %v12792_v35, %v6288_v3  ;;  %v6286_v60 = vadd.f32 %v6015_v22, %v17433_v62  ;;  %v7556_v20 = vpack.c.bf16 %v11011_v32, %v11010_v61  ;;  %v17437_v22 = vld [vmem:[#allocation18_spill] sm:$0xff]  ;;  %v17439_v61 = vld [vmem:[#allocation19_spill] sm:$0xff] }
 0x3fc   : > { %v12663_v30 = vpop.f32.mrf.mxu1  ;;  %v12793_v63 = vpop.f32.mrf.mxu0  ;;  %v11206_v32 = vld [vmem:[%s13172_s23 + $0x29a] sm:$0xff] }
 0x3fd   : > { %17432 = vst [vmem:[#allocation11_spill] sm:$0xff] %v16004_v19  ;;  %v16007_v54 = vadd.f32 %v7081_v27, %v6286_v60  ;;  %v6289_v44 = vadd.f32 %v12663_v30, %v17435_v42  ;;  %v11015_v30 = vld [vmem:[%s13172_s23 + $0x2b1] sm:$0xff] }
 0x3fe   : > { %v6018_v2 = vpop.f32.mrf.mxu1  ;;  %v7084_v35 = vpop.f32.mrf.mxu0 }
 0x3ff   : > { %17434 = vst [vmem:[#allocation12_spill] sm:$0xff] %v16007_v54  ;;  %v16010_v3 = vadd.f32 %v12793_v63, %v6289_v44  ;;  %v6287_v62 = vadd.f32 %v6018_v2, %v17437_v22  ;;  %v11205_v2 = vld [vmem:[%s13172_s23 + $0x292] sm:$0xff]  ;;  %v11207_v63 = vld [vmem:[%s13172_s23 + $0x2aa] sm:$0xff] }
 0x400   : > { %v12666_v19 = vpop.f32.mrf.mxu1  ;;  %v12796_v25 = vpop.f32.mrf.mxu0  ;;  %12893 = vmatmul.mubr.msk.bf16.gmra.mxu1 %vm569_vm2, %v7555_v48  ;;  %13023 = vmatmul.mubr.msk.bf16.gmra.mxu0 %vm569_vm2, %v8627_v57  ;;  %v11208_v48 = vld [vmem:[%s13172_s23 + $0x2b2] sm:$0xff] }
 0x401   : > { %17436 = vst [vmem:[#allocation13_spill] sm:$0xff] %v16010_v3  ;;  %v16017_v41 = vadd.f32 %v7084_v35, %v6287_v62  ;;  %v6292_v27 = vadd.f32 %v12666_v19, %v17439_v61  ;;  %12896 = vmatprep.mubr.msk.bf16.mxu1 %vm569_vm2, %v7556_v20  ;;  %13026 = vmatprep.mubr.msk.bf16.mxu0 %vm569_vm2, %v8628_v14  ;;  %v17441_v57 = vld [vmem:[#allocation20_spill] sm:$0xff]  ;;  %v17443_v14 = vld [vmem:[#allocation21_spill] sm:$0xff] }
 0x402   : > { %v6031_v34 = vpop.f32.mrf.mxu1  ;;  %v7097_v60 = vpop.f32.mrf.mxu0  ;;  %v7557_v19 = vpack.c.bf16 %v11013_v37, %v11012_v56  ;;  %v8629_v20 = vpack.c.bf16 %v11206_v32, %v11205_v2  ;;  %v8630_v3 = vpack.c.bf16 %v11208_v48, %v11207_v63  ;;  %v11016_v37 = vld [vmem:[%s13172_s23 + $0x2b9] sm:$0xff]  ;;  %v11017_v2 = vld [vmem:[%s13172_s23 + $0x2c1] sm:$0xff]  ;;  %v11018_v63 = vld [vmem:[%s13172_s23 + $0x2d1] sm:$0xff] }
 0x403   : > { %17438 = vst [vmem:[#allocation14_spill] sm:$0xff] %v16017_v41  ;;  %v16028_v42 = vadd.f32 %v12796_v25, %v6292_v27  ;;  %v6290_v44 = vadd.f32 %v6031_v34, %v17441_v57  ;;  %v7558_v41 = vpack.c.bf16 %v11015_v30, %v11014_v1  ;;  %v17445_v34 = vld [vmem:[#allocation22_spill] sm:$0xff]  ;;  %v17447_v1 = vld [vmem:[#allocation23_spill] sm:$0xff] }
 0x404   : > { %v12667_v35 = vpop.f32.mrf.mxu1  ;;  %v12797_v22 = vpop.f32.mrf.mxu0  ;;  %v11210_v30 = vld [vmem:[%s13172_s23 + $0x2c2] sm:$0xff] }
 0x405   : > { %17440 = vst [vmem:[#allocation15_spill] sm:$0xff] %v16028_v42  ;;  %v16031_v62 = vadd.f32 %v7097_v60, %v6290_v44  ;;  %v6293_v61 = vadd.f32 %v12667_v35, %v17443_v14  ;;  %v11019_v35 = vld [vmem:[%s13172_s23 + $0x2d9] sm:$0xff] }
 0x406   : > { %v6034_v54 = vpop.f32.mrf.mxu1  ;;  %v7100_v25 = vpop.f32.mrf.mxu0 }
 0x407   : > { %17442 = vst [vmem:[#allocation16_spill] sm:$0xff] %v16031_v62  ;;  %v16034_v27 = vadd.f32 %v12797_v22, %v6293_v61  ;;  %v6291_v57 = vadd.f32 %v6034_v54, %v17445_v34  ;;  %v11209_v54 = vld [vmem:[%s13172_s23 + $0x2ba] sm:$0xff]  ;;  %v11211_v22 = vld [vmem:[%s13172_s23 + $0x2d2] sm:$0xff] }
 0x408   : > { %v12670_v42 = vpop.f32.mrf.mxu1  ;;  %v12800_v56 = vpop.f32.mrf.mxu0  ;;  %12897 = vmatmul.mubr.msk.bf16.gmra.mxu1 %vm569_vm2, %v7557_v19  ;;  %13027 = vmatmul.mubr.msk.bf16.gmra.mxu0 %vm569_vm2, %v8629_v20  ;;  %v11212_v19 = vld [vmem:[%s13172_s23 + $0x2da] sm:$0xff]  ;;  %v17449_v20 = vld [vmem:[#allocation24_spill] sm:$0xff] }
 0x409   : > { %17444 = vst [vmem:[#allocation17_spill] sm:$0xff] %v16034_v27  ;;  %v16041_v32 = vadd.f32 %v7100_v25, %v6291_v57  ;;  %v6296_v60 = vadd.f32 %v12670_v42, %v17447_v1  ;;  %12900 = vmatprep.mubr.msk.bf16.mxu1 %vm569_vm2, %v7558_v41  ;;  %13030 = vmatprep.mubr.msk.bf16.mxu0 %vm569_vm2, %v8630_v3  ;;  %v17451_v3 = vld [vmem:[#allocation25_spill] sm:$0xff] }
 0x40a   : > { %v6047_v48 = vpop.f32.mrf.mxu1  ;;  %v7113_v44 = vpop.f32.mrf.mxu0  ;;  %v7559_v42 = vpack.c.bf16 %v11017_v2, %v11016_v37  ;;  %v8631_v41 = vpack.c.bf16 %v11210_v30, %v11209_v54  ;;  %v8632_v27 = vpack.c.bf16 %v11212_v19, %v11211_v22  ;;  %v11020_v2 = vld [vmem:[%s13172_s23 + $0x2e1] sm:$0xff]  ;;  %v11021_v54 = vld [vmem:[%s13172_s23 + $0x2e9] sm:$0xff]  ;;  %v11022_v22 = vld [vmem:[%s13172_s23 + $0x2f9] sm:$0xff] }
 0x40b   : > { %17446 = vst [vmem:[#allocation18_spill] sm:$0xff] %v16041_v32  ;;  %v16052_v14 = vadd.f32 %v12800_v56, %v6296_v60  ;;  %v6294_v61 = vadd.f32 %v6047_v48, %v17449_v20  ;;  %v7560_v32 = vpack.c.bf16 %v11019_v35, %v11018_v63  ;;  %v17453_v48 = vld [vmem:[#allocation26_spill] sm:$0xff]  ;;  %v17455_v63 = vld [vmem:[#allocation27_spill] sm:$0xff] }
 0x40c   : > { %v12671_v25 = vpop.f32.mrf.mxu1  ;;  %v12801_v34 = vpop.f32.mrf.mxu0  ;;  %v11214_v35 = vld [vmem:[%s13172_s23 + $0x2ea] sm:$0xff] }
 0x40d   : > { %17448 = vst [vmem:[#allocation19_spill] sm:$0xff] %v16052_v14  ;;  %v16055_v57 = vadd.f32 %v7113_v44, %v6294_v61  ;;  %v6297_v1 = vadd.f32 %v12671_v25, %v17451_v3  ;;  %v11023_v25 = vld [vmem:[%s13172_s23 + $0x301] sm:$0xff] }
 0x40e   : > { %v6050_v62 = vpop.f32.mrf.mxu1  ;;  %v7116_v56 = vpop.f32.mrf.mxu0 }
 0x40f   : > { %17450 = vst [vmem:[#allocation20_spill] sm:$0xff] %v16055_v57  ;;  %v16058_v60 = vadd.f32 %v12801_v34, %v6297_v1  ;;  %v6295_v20 = vadd.f32 %v6050_v62, %v17453_v48  ;;  %v11213_v62 = vld [vmem:[%s13172_s23 + $0x2e2] sm:$0xff]  ;;  %v11215_v34 = vld [vmem:[%s13172_s23 + $0x2fa] sm:$0xff] }
 0x410   : > { %v12674_v14 = vpop.f32.mrf.mxu1  ;;  %v12804_v37 = vpop.f32.mrf.mxu0  ;;  %12901 = vmatmul.mubr.msk.bf16.gmra.mxu1 %vm569_vm2, %v7559_v42  ;;  %13031 = vmatmul.mubr.msk.bf16.gmra.mxu0 %vm569_vm2, %v8631_v41  ;;  %v11216_v42 = vld [vmem:[%s13172_s23 + $0x302] sm:$0xff]  ;;  %v17457_v41 = vld [vmem:[#allocation28_spill] sm:$0xff] }
 0x411   : > { %17452 = vst [vmem:[#allocation21_spill] sm:$0xff] %v16058_v60  ;;  %v16065_v30 = vadd.f32 %v7116_v56, %v6295_v20  ;;  %v6300_v44 = vadd.f32 %v12674_v14, %v17455_v63  ;;  %12904 = vmatprep.mubr.msk.bf16.mxu1 %vm569_vm2, %v7560_v32  ;;  %13034 = vmatprep.mubr.msk.bf16.mxu0 %vm569_vm2, %v8632_v27  ;;  %v17458_v27 = vld [vmem:[#allocation29_spill] sm:$0xff] }
 0x412   : > { %v6063_v19 = vpop.f32.mrf.mxu1  ;;  %v7129_v61 = vpop.f32.mrf.mxu0  ;;  %v7561_v14 = vpack.c.bf16 %v11021_v54, %v11020_v2  ;;  %v8633_v32 = vpack.c.bf16 %v11214_v35, %v11213_v62  ;;  %v8634_v60 = vpack.c.bf16 %v11216_v42, %v11215_v34  ;;  %v11024_v54 = vld [vmem:[%s13172_s23 + $0x309] sm:$0xff]  ;;  %v11025_v62 = vld [vmem:[%s13172_s23 + $0x311] sm:$0xff]  ;;  %v11026_v34 = vld [vmem:[%s13172_s23 + $0x321] sm:$0xff] }
 0x413   : > { %17454 = vst [vmem:[#allocation22_spill] sm:$0xff] %v16065_v30  ;;  %v16076_v3 = vadd.f32 %v12804_v37, %v6300_v44  ;;  %v6298_v1 = vadd.f32 %v6063_v19, %v17457_v41  ;;  %v7562_v30 = vpack.c.bf16 %v11023_v25, %v11022_v22  ;;  %v17460_v19 = vld [vmem:[#allocation30_spill] sm:$0xff]  ;;  %v17462_v22 = vld [vmem:[#allocation31_spill] sm:$0xff]  ;;  %v11218_v25 = vld [vmem:[%s13172_s23 + $0x312] sm:$0xff] }
 0x414   : > { %v12675_v56 = vpop.f32.mrf.mxu1  ;;  %v12805_v48 = vpop.f32.mrf.mxu0 }
 0x415   : > { %17456 = vst [vmem:[#allocation23_spill] sm:$0xff] %v16076_v3  ;;  %v16079_v20 = vadd.f32 %v7129_v61, %v6298_v1  ;;  %v6301_v63 = vadd.f32 %v12675_v56, %v17458_v27  ;;  %v11027_v56 = vld [vmem:[%s13172_s23 + $0x329] sm:$0xff] }
 0x416   : > { %v6066_v57 = vpop.f32.mrf.mxu1  ;;  %v7132_v37 = vpop.f32.mrf.mxu0 }
 0x417   : > { %v16082_v44 = vadd.f32 %v12805_v48, %v6301_v63  ;;  %v6299_v41 = vadd.f32 %v6066_v57, %v17460_v19  ;;  %v11217_v57 = vld [vmem:[%s13172_s23 + $0x30a] sm:$0xff]  ;;  %v11219_v48 = vld [vmem:[%s13172_s23 + $0x322] sm:$0xff] }
 0x418   : > { %v12678_v3 = vpop.f32.mrf.mxu1  ;;  %v12808_v2 = vpop.f32.mrf.mxu0  ;;  %12905 = vmatmul.mubr.msk.bf16.gmra.mxu1 %vm569_vm2, %v7561_v14  ;;  %13035 = vmatmul.mubr.msk.bf16.gmra.mxu0 %vm569_vm2, %v8633_v32  ;;  %v11220_v14 = vld [vmem:[%s13172_s23 + $0x32a] sm:$0xff] }
 0x419   : > { %17459 = vst [vmem:[#allocation24_spill] sm:$0xff] %v16082_v44  ;;  %v16089_v35 = vadd.f32 %v7132_v37, %v6299_v41  ;;  %v6304_v61 = vadd.f32 %v12678_v3, %v17462_v22  ;;  %12908 = vmatprep.mubr.msk.bf16.mxu1 %vm569_vm2, %v7562_v30  ;;  %13038 = vmatprep.mubr.msk.bf16.mxu0 %vm569_vm2, %v8634_v60  ;;  %v17465_v60 = vld [vmem:[#allocation32_spill] sm:$0xff] }
 0x41a   : > { %v6079_v42 = vpop.f32.mrf.mxu1  ;;  %v7145_v1 = vpop.f32.mrf.mxu0  ;;  %v7563_v3 = vpack.c.bf16 %v11025_v62, %v11024_v54  ;;  %v8635_v30 = vpack.c.bf16 %v11218_v25, %v11217_v57  ;;  %v7564_v22 = vpack.c.bf16 %v11027_v56, %v11026_v34  ;;  %v11028_v62 = vld [vmem:[%s13172_s23 + $0x331] sm:$0xff]  ;;  %v11029_v57 = vld [vmem:[%s13172_s23 + $0x339] sm:$0xff] }
 0x41b   : > { %17461 = vst [vmem:[#allocation25_spill] sm:$0xff] %v16089_v35  ;;  %v16100_v27 = vadd.f32 %v12808_v2, %v6304_v61  ;;  %v6302_v32 = vadd.f32 %v6079_v42, %v15335_v6  ;;  %v8636_v35 = vpack.c.bf16 %v11220_v14, %v11219_v48  ;;  %v17467_v6 = vld [vmem:[#allocation33_spill] sm:$0xff]  ;;  %v17469_v34 = vld [vmem:[#allocation34_spill] sm:$0xff]  ;;  %v11030_v48 = vld [vmem:[%s13172_s23 + $0x349] sm:$0xff] }
 0x41c   : > { %v12679_v63 = vpop.f32.mrf.mxu1  ;;  %v12809_v37 = vpop.f32.mrf.mxu0  ;;  %v11222_v56 = vld [vmem:[%s13172_s23 + $0x33a] sm:$0xff] }
 0x41d   : > { %17463 = vst [vmem:[#allocation26_spill] sm:$0xff] %v16100_v27  ;;  %v16103_v19 = vadd.f32 %v7145_v1, %v6302_v32  ;;  %v6305_v41 = vadd.f32 %v12679_v63, %v17465_v60  ;;  %v11031_v63 = vld [vmem:[%s13172_s23 + $0x351] sm:$0xff] }
 0x41e   : > { %v6082_v44 = vpop.f32.mrf.mxu1  ;;  %v7148_v2 = vpop.f32.mrf.mxu0 }
 0x41f   : > { %17464 = vst [vmem:[#allocation27_spill] sm:$0xff] %v16103_v19  ;;  %v16106_v61 = vadd.f32 %v12809_v37, %v6305_v41  ;;  %v6303_v42 = vadd.f32 %v6082_v44, %v17467_v6  ;;  %v11221_v44 = vld [vmem:[%s13172_s23 + $0x332] sm:$0xff]  ;;  %v11223_v37 = vld [vmem:[%s13172_s23 + $0x34a] sm:$0xff] }
 0x420   : > { %v12682_v27 = vpop.f32.mrf.mxu1  ;;  %v12812_v54 = vpop.f32.mrf.mxu0  ;;  %12909 = vmatmul.mubr.msk.bf16.gmra.mxu1 %vm569_vm2, %v7563_v3  ;;  %13039 = vmatmul.mubr.msk.bf16.gmra.mxu0 %vm569_vm2, %v8635_v30  ;;  %v11224_v3 = vld [vmem:[%s13172_s23 + $0x352] sm:$0xff]  ;;  %v17471_v30 = vld [vmem:[#allocation35_spill] sm:$0xff] }
 0x421   : > { %17466 = vst [vmem:[#allocation28_spill] sm:$0xff] %v16106_v61  ;;  %v16113_v25 = vadd.f32 %v7148_v2, %v6303_v42  ;;  %v6308_v1 = vadd.f32 %v12682_v27, %v17469_v34  ;;  %12912 = vmatprep.mubr.msk.bf16.mxu1 %vm569_vm2, %v7564_v22  ;;  %13042 = vmatprep.mubr.msk.bf16.mxu0 %vm569_vm2, %v8636_v35  ;;  %v17473_v35 = vld [vmem:[#allocation36_spill] sm:$0xff] }
 0x422   : > { %v6095_v14 = vpop.f32.mrf.mxu1  ;;  %v7161_v32 = vpop.f32.mrf.mxu0  ;;  %v7565_v27 = vpack.c.bf16 %v11029_v57, %v11028_v62  ;;  %v8637_v22 = vpack.c.bf16 %v11222_v56, %v11221_v44  ;;  %v8638_v61 = vpack.c.bf16 %v11224_v3, %v11223_v37  ;;  %v11032_v57 = vld [vmem:[%s13172_s23 + $0x359] sm:$0xff]  ;;  %v11033_v44 = vld [vmem:[%s13172_s23 + $0x361] sm:$0xff]  ;;  %v11034_v37 = vld [vmem:[%s13172_s23 + $0x371] sm:$0xff] }
 0x423   : > { %17468 = vst [vmem:[#allocation29_spill] sm:$0xff] %v16113_v25  ;;  %v16124_v60 = vadd.f32 %v12812_v54, %v6308_v1  ;;  %v6306_v41 = vadd.f32 %v6095_v14, %v17471_v30  ;;  %v7566_v25 = vpack.c.bf16 %v11031_v63, %v11030_v48  ;;  %v17475_v14 = vld [vmem:[#allocation37_spill] sm:$0xff]  ;;  %v17477_v48 = vld [vmem:[#allocation2_spill] sm:$0xff] }
 0x424   : > { %v12683_v2 = vpop.f32.mrf.mxu1  ;;  %v12813_v6 = vpop.f32.mrf.mxu0  ;;  %v11226_v63 = vld [vmem:[%s13172_s23 + $0x362] sm:$0xff] }
 0x425   : > { %17470 = vst [vmem:[#allocation30_spill] sm:$0xff] %v16124_v60  ;;  %v16127_v42 = vadd.f32 %v7161_v32, %v6306_v41  ;;  %v6309_v34 = vadd.f32 %v12683_v2, %v17473_v35  ;;  %v11035_v2 = vld [vmem:[%s13172_s23 + $0x379] sm:$0xff] }
 0x426   : > { %v6098_v19 = vpop.f32.mrf.mxu1  ;;  %v7164_v54 = vpop.f32.mrf.mxu0 }
 0x427   : > { %17472 = vst [vmem:[#allocation31_spill] sm:$0xff] %v16127_v42  ;;  %v16130_v1 = vadd.f32 %v12813_v6, %v6309_v34  ;;  %v6307_v30 = vadd.f32 %v6098_v19, %v17475_v14  ;;  %v11225_v19 = vld [vmem:[%s13172_s23 + $0x35a] sm:$0xff]  ;;  %v11227_v6 = vld [vmem:[%s13172_s23 + $0x372] sm:$0xff] }
 0x428   : > { %v12686_v60 = vpop.f32.mrf.mxu1  ;;  %v12816_v62 = vpop.f32.mrf.mxu0  ;;  %12913 = vmatmul.mubr.msk.bf16.gmra.mxu1 %vm569_vm2, %v7565_v27  ;;  %13043 = vmatmul.mubr.msk.bf16.gmra.mxu0 %vm569_vm2, %v8637_v22  ;;  %v11228_v27 = vld [vmem:[%s13172_s23 + $0x37a] sm:$0xff] }
 0x429   : > { %17474 = vst [vmem:[#allocation32_spill] sm:$0xff] %v16130_v1  ;;  %v16137_v56 = vadd.f32 %v7164_v54, %v6307_v30  ;;  %v6312_v32 = vadd.f32 %v12686_v60, %v17477_v48  ;;  %12916 = vmatprep.mubr.msk.bf16.mxu1 %vm569_vm2, %v7566_v25  ;;  %13046 = vmatprep.mubr.msk.bf16.mxu0 %vm569_vm2, %v8638_v61  ;;  %v17479_v22 = vld [vmem:[#allocation38_spill] sm:$0xff]  ;;  %v17481_v61 = vld [vmem:[#allocation39_spill] sm:$0xff] }
 0x42a   : > { %v6111_v3 = vpop.f32.mrf.mxu1  ;;  %v7177_v41 = vpop.f32.mrf.mxu0  ;;  %v7567_v60 = vpack.c.bf16 %v11033_v44, %v11032_v57  ;;  %v8639_v25 = vpack.c.bf16 %v11226_v63, %v11225_v19  ;;  %v8640_v1 = vpack.c.bf16 %v11228_v27, %v11227_v6  ;;  %v11036_v44 = vld [vmem:[%s13172_s23 + $0x381] sm:$0xff]  ;;  %v11037_v19 = vld [vmem:[%s13172_s23 + $0x389] sm:$0xff]  ;;  %v11038_v6 = vld [vmem:[%s13172_s23 + $0x399] sm:$0xff] }
 0x42b   : > { %17476 = vst [vmem:[#allocation33_spill] sm:$0xff] %v16137_v56  ;;  %v16148_v35 = vadd.f32 %v12816_v62, %v6312_v32  ;;  %v6310_v34 = vadd.f32 %v6111_v3, %v17479_v22  ;;  %v7568_v56 = vpack.c.bf16 %v11035_v2, %v11034_v37  ;;  %v17483_v3 = vld [vmem:[#allocation40_spill] sm:$0xff]  ;;  %v17485_v37 = vld [vmem:[#allocation41_spill] sm:$0xff] }
 0x42c   : > { %v12687_v54 = vpop.f32.mrf.mxu1  ;;  %v12817_v14 = vpop.f32.mrf.mxu0  ;;  %v11230_v2 = vld [vmem:[%s13172_s23 + $0x38a] sm:$0xff] }
 0x42d   : > { %17478 = vst [vmem:[#allocation34_spill] sm:$0xff] %v16148_v35  ;;  %v16151_v30 = vadd.f32 %v7177_v41, %v6310_v34  ;;  %v6313_v48 = vadd.f32 %v12687_v54, %v17481_v61  ;;  %v11039_v54 = vld [vmem:[%s13172_s23 + $0x3a1] sm:$0xff] }
 0x42e   : > { %v6114_v42 = vpop.f32.mrf.mxu1  ;;  %v7180_v62 = vpop.f32.mrf.mxu0 }
 0x42f   : > { %17480 = vst [vmem:[#allocation35_spill] sm:$0xff] %v16151_v30  ;;  %v16154_v32 = vadd.f32 %v12817_v14, %v6313_v48  ;;  %v6311_v22 = vadd.f32 %v6114_v42, %v17483_v3  ;;  %v11229_v42 = vld [vmem:[%s13172_s23 + $0x382] sm:$0xff]  ;;  %v11231_v14 = vld [vmem:[%s13172_s23 + $0x39a] sm:$0xff] }
 0x430   : > { %v12690_v35 = vpop.f32.mrf.mxu1  ;;  %v12820_v57 = vpop.f32.mrf.mxu0  ;;  %12917 = vmatmul.mubr.msk.bf16.gmra.mxu1 %vm569_vm2, %v7567_v60  ;;  %13047 = vmatmul.mubr.msk.bf16.gmra.mxu0 %vm569_vm2, %v8639_v25  ;;  %v11232_v60 = vld [vmem:[%s13172_s23 + $0x3a2] sm:$0xff] }
 0x431   : > { %17482 = vst [vmem:[#allocation36_spill] sm:$0xff] %v16154_v32  ;;  %v16161_v63 = vadd.f32 %v7180_v62, %v6311_v22  ;;  %v6316_v41 = vadd.f32 %v12690_v35, %v17485_v37  ;;  %12920 = vmatprep.mubr.msk.bf16.mxu1 %vm569_vm2, %v7568_v56  ;;  %13050 = vmatprep.mubr.msk.bf16.mxu0 %vm569_vm2, %v8640_v1  ;;  %v17487_v25 = vld [vmem:[#allocation42_spill] sm:$0xff]  ;;  %v17489_v1 = vld [vmem:[#allocation44_spill] sm:$0xff] }
 0x432   : > { %v6127_v27 = vpop.f32.mrf.mxu1  ;;  %v7193_v34 = vpop.f32.mrf.mxu0  ;;  %v7569_v35 = vpack.c.bf16 %v11037_v19, %v11036_v44  ;;  %v8641_v56 = vpack.c.bf16 %v11230_v2, %v11229_v42  ;;  %v8642_v32 = vpack.c.bf16 %v11232_v60, %v11231_v14  ;;  %v11040_v19 = vld [vmem:[%s13172_s23 + $0x3a9] sm:$0xff]  ;;  %v11041_v42 = vld [vmem:[%s13172_s23 + $0x3b1] sm:$0xff]  ;;  %v11042_v14 = vld [vmem:[%s13172_s23 + $0x3c1] sm:$0xff] }
 0x433   : > { %17484 = vst [vmem:[#allocation37_spill] sm:$0xff] %v16161_v63  ;;  %v16172_v61 = vadd.f32 %v12820_v57, %v6316_v41  ;;  %v6314_v48 = vadd.f32 %v6127_v27, %v17487_v25  ;;  %v7570_v63 = vpack.c.bf16 %v11039_v54, %v11038_v6  ;;  %v17491_v27 = vld [vmem:[#allocation46_spill] sm:$0xff]  ;;  %v17493_v6 = vld [vmem:[#allocation48_spill] sm:$0xff] }
 0x434   : > { %v12691_v62 = vpop.f32.mrf.mxu1  ;;  %v12821_v3 = vpop.f32.mrf.mxu0  ;;  %v11234_v54 = vld [vmem:[%s13172_s23 + $0x3b2] sm:$0xff] }
 0x435   : > { %17486 = vst [vmem:[#allocation2_spill] sm:$0xff] %v16172_v61  ;;  %v16175_v22 = vadd.f32 %v7193_v34, %v6314_v48  ;;  %v6317_v37 = vadd.f32 %v12691_v62, %v17489_v1  ;;  %v11043_v62 = vld [vmem:[%s13172_s23 + $0x3c9] sm:$0xff] }
 0x436   : > { %v6130_v30 = vpop.f32.mrf.mxu1  ;;  %v7196_v57 = vpop.f32.mrf.mxu0 }
 0x437   : > { %17488 = vst [vmem:[#allocation38_spill] sm:$0xff] %v16175_v22  ;;  %v16178_v41 = vadd.f32 %v12821_v3, %v6317_v37  ;;  %v6315_v25 = vadd.f32 %v6130_v30, %v17491_v27  ;;  %v11233_v30 = vld [vmem:[%s13172_s23 + $0x3aa] sm:$0xff]  ;;  %v11235_v3 = vld [vmem:[%s13172_s23 + $0x3c2] sm:$0xff] }
 0x438   : > { %v12694_v61 = vpop.f32.mrf.mxu1  ;;  %v12824_v44 = vpop.f32.mrf.mxu0  ;;  %12921 = vmatmul.mubr.msk.bf16.gmra.mxu1 %vm569_vm2, %v7569_v35  ;;  %13051 = vmatmul.mubr.msk.bf16.gmra.mxu0 %vm569_vm2, %v8641_v56  ;;  %v11236_v35 = vld [vmem:[%s13172_s23 + $0x3ca] sm:$0xff]  ;;  %v17495_v56 = vld [vmem:[#allocation50_spill] sm:$0xff] }
 0x439   : > { %17490 = vst [vmem:[#allocation39_spill] sm:$0xff] %v16178_v41  ;;  %v16185_v2 = vadd.f32 %v7196_v57, %v6315_v25  ;;  %v6320_v34 = vadd.f32 %v12694_v61, %v17493_v6  ;;  %12924 = vmatprep.mubr.msk.bf16.mxu1 %vm569_vm2, %v7570_v63  ;;  %13054 = vmatprep.mubr.msk.bf16.mxu0 %vm569_vm2, %v8642_v32  ;;  %v17497_v32 = vld [vmem:[#allocation52_spill] sm:$0xff] }
 0x43a   : > { %v6143_v60 = vpop.f32.mrf.mxu1  ;;  %v7209_v48 = vpop.f32.mrf.mxu0  ;;  %v7571_v61 = vpack.c.bf16 %v11041_v42, %v11040_v19  ;;  %v8643_v63 = vpack.c.bf16 %v11234_v54, %v11233_v30  ;;  %v8644_v41 = vpack.c.bf16 %v11236_v35, %v11235_v3  ;;  %v11044_v42 = vld [vmem:[%s13172_s23 + $0x3d1] sm:$0xff]  ;;  %v11045_v30 = vld [vmem:[%s13172_s23 + $0x3d9] sm:$0xff]  ;;  %v11046_v3 = vld [vmem:[%s13172_s23 + $0x3e9] sm:$0xff] }
 0x43b   : > { %17492 = vst [vmem:[#allocation40_spill] sm:$0xff] %v16185_v2  ;;  %v16196_v1 = vadd.f32 %v12824_v44, %v6320_v34  ;;  %v6318_v37 = vadd.f32 %v6143_v60, %v17495_v56  ;;  %v7572_v2 = vpack.c.bf16 %v11043_v62, %v11042_v14  ;;  %v17499_v60 = vld [vmem:[#allocation54_spill] sm:$0xff]  ;;  %v17501_v14 = vld [vmem:[#allocation56_spill] sm:$0xff] }
 0x43c   : > { %v12695_v57 = vpop.f32.mrf.mxu1  ;;  %v12825_v27 = vpop.f32.mrf.mxu0  ;;  %v11238_v62 = vld [vmem:[%s13172_s23 + $0x3da] sm:$0xff] }
 0x43d   : > { %17494 = vst [vmem:[#allocation41_spill] sm:$0xff] %v16196_v1  ;;  %v16199_v25 = vadd.f32 %v7209_v48, %v6318_v37  ;;  %v6321_v6 = vadd.f32 %v12695_v57, %v17497_v32  ;;  %v11047_v57 = vld [vmem:[%s13172_s23 + $0x3f1] sm:$0xff] }
 0x43e   : > { %v6146_v22 = vpop.f32.mrf.mxu1  ;;  %v7212_v44 = vpop.f32.mrf.mxu0 }
 0x43f   : > { %17496 = vst [vmem:[#allocation42_spill] sm:$0xff] %v16199_v25  ;;  %v16202_v34 = vadd.f32 %v12825_v27, %v6321_v6  ;;  %v6319_v56 = vadd.f32 %v6146_v22, %v17499_v60  ;;  %v11237_v22 = vld [vmem:[%s13172_s23 + $0x3d2] sm:$0xff]  ;;  %v11239_v27 = vld [vmem:[%s13172_s23 + $0x3ea] sm:$0xff] }
 0x440   : > { %v12698_v1 = vpop.f32.mrf.mxu1  ;;  %v12828_v19 = vpop.f32.mrf.mxu0  ;;  %12925 = vmatmul.mubr.msk.bf16.gmra.mxu1 %vm569_vm2, %v7571_v61  ;;  %13055 = vmatmul.mubr.msk.bf16.gmra.mxu0 %vm569_vm2, %v8643_v63  ;;  %v11240_v61 = vld [vmem:[%s13172_s23 + $0x3f2] sm:$0xff]  ;;  %v17503_v63 = vld [vmem:[#allocation58_spill] sm:$0xff] }
 0x441   : > { %17498 = vst [vmem:[#allocation44_spill] sm:$0xff] %v16202_v34  ;;  %v16209_v54 = vadd.f32 %v7212_v44, %v6319_v56  ;;  %v6324_v48 = vadd.f32 %v12698_v1, %v17501_v14  ;;  %12928 = vmatprep.mubr.msk.bf16.mxu1 %vm569_vm2, %v7572_v2  ;;  %13058 = vmatprep.mubr.msk.bf16.mxu0 %vm569_vm2, %v8644_v41  ;;  %v17504_v41 = vld [vmem:[#allocation60_spill] sm:$0xff] }
 0x442   : > { %v6159_v35 = vpop.f32.mrf.mxu1  ;;  %v7225_v37 = vpop.f32.mrf.mxu0  ;;  %v7573_v1 = vpack.c.bf16 %v11045_v30, %v11044_v42  ;;  %v8645_v2 = vpack.c.bf16 %v11238_v62, %v11237_v22  ;;  %v8646_v34 = vpack.c.bf16 %v11240_v61, %v11239_v27  ;;  %v11048_v30 = vld [vmem:[%s13172_s23 + $0x3f9] sm:$0xff]  ;;  %v11049_v22 = vld [vmem:[%s13172_s23 + $0x401] sm:$0xff]  ;;  %v11050_v27 = vld [vmem:[%s13172_s23 + $0x411] sm:$0xff] }
 0x443   : > { %17500 = vst [vmem:[#allocation46_spill] sm:$0xff] %v16209_v54  ;;  %v16220_v32 = vadd.f32 %v12828_v19, %v6324_v48  ;;  %v6322_v6 = vadd.f32 %v6159_v35, %v17503_v63  ;;  %v7574_v54 = vpack.c.bf16 %v11047_v57, %v11046_v3  ;;  %v17505_v35 = vld [vmem:[#allocation62_spill] sm:$0xff]  ;;  %v17507_v3 = vld [vmem:[#allocation64_spill] sm:$0xff] }
 0x444   : > { %v12699_v44 = vpop.f32.mrf.mxu1  ;;  %v12829_v60 = vpop.f32.mrf.mxu0  ;;  %v11242_v57 = vld [vmem:[%s13172_s23 + $0x402] sm:$0xff] }
 0x445   : > { %17502 = vst [vmem:[#allocation48_spill] sm:$0xff] %v16220_v32  ;;  %v16223_v56 = vadd.f32 %v7225_v37, %v6322_v6  ;;  %v6325_v14 = vadd.f32 %v12699_v44, %v17504_v41  ;;  %v11051_v44 = vld [vmem:[%s13172_s23 + $0x419] sm:$0xff] }
 0x446   : > { %v6162_v25 = vpop.f32.mrf.mxu1  ;;  %v7228_v19 = vpop.f32.mrf.mxu0 }
 0x447   : > { %v16226_v48 = vadd.f32 %v12829_v60, %v6325_v14  ;;  %v6323_v63 = vadd.f32 %v6162_v25, %v17505_v35  ;;  %v11241_v25 = vld [vmem:[%s13172_s23 + $0x3fa] sm:$0xff]  ;;  %v11243_v60 = vld [vmem:[%s13172_s23 + $0x412] sm:$0xff] }
 0x448   : > { %v12702_v32 = vpop.f32.mrf.mxu1  ;;  %v12832_v42 = vpop.f32.mrf.mxu0  ;;  %12929 = vmatmul.mubr.msk.bf16.gmra.mxu1 %vm569_vm2, %v7573_v1  ;;  %13059 = vmatmul.mubr.msk.bf16.gmra.mxu0 %vm569_vm2, %v8645_v2  ;;  %v11244_v1 = vld [vmem:[%s13172_s23 + $0x41a] sm:$0xff] }
 0x449   : > { %v16233_v62 = vadd.f32 %v7228_v19, %v6323_v63  ;;  %v6328_v37 = vadd.f32 %v12702_v32, %v17507_v3  ;;  %12932 = vmatprep.mubr.msk.bf16.mxu1 %vm569_vm2, %v7574_v54  ;;  %13062 = vmatprep.mubr.msk.bf16.mxu0 %vm569_vm2, %v8646_v34  ;;  %v7575_v32 = vpack.c.bf16 %v11049_v22, %v11048_v30  ;;  %v11053_v22 = vld [vmem:[%s13172_s23 + $0x429] sm:$0xff] }
 0x44a   : > { %v6175_v61 = vpop.f32.mrf.mxu1  ;;  %v7241_v6 = vpop.f32.mrf.mxu0  ;;  %v8647_v54 = vpack.c.bf16 %v11242_v57, %v11241_v25  ;;  %v7576_v63 = vpack.c.bf16 %v11051_v44, %v11050_v27  ;;  %v8648_v3 = vpack.c.bf16 %v11244_v1, %v11243_v60  ;;  %v11246_v27 = vld [vmem:[%s13172_s23 + $0x42a] sm:$0xff]  ;;  %v11055_v1 = vld [vmem:[%s13172_s23 + $0x441] sm:$0xff] }
 0x44b   : > { %17506 = vst [vmem:[#allocation50_spill] sm:$0xff] %v16233_v62  ;;  %v16244_v41 = vadd.f32 %v12832_v42, %v6328_v37  ;;  %v6326_v2 = vadd.f32 %v6175_v61, %v15479_v26  ;;  %v17509_v26 = vld [vmem:[#allocation66_spill] sm:$0xff] }
 0x44c   : > { %v12703_v14 = vpop.f32.mrf.mxu1  ;;  %v12833_v19 = vpop.f32.mrf.mxu0 }
 0x44d   : > { %17508 = vst [vmem:[#allocation52_spill] sm:$0xff] %v16244_v41  ;;  %v16247_v35 = vadd.f32 %v7241_v6, %v6326_v2  ;;  %v6329_v34 = vadd.f32 %v12703_v14, %v15482_v15  ;;  %v11052_v15 = vld [vmem:[%s13172_s23 + $0x421] sm:$0xff]  ;;  %v11054_v6 = vld [vmem:[%s13172_s23 + $0x439] sm:$0xff] }
 0x44e   : > { %v6178_v62 = vpop.f32.mrf.mxu1  ;;  %v7244_v42 = vpop.f32.mrf.mxu0  ;;  %v11247_v2 = vld [vmem:[%s13172_s23 + $0x43a] sm:$0xff]  ;;  %v11248_v14 = vld [vmem:[%s13172_s23 + $0x442] sm:$0xff] }
 0x44f   : > { %v16250_v37 = vadd.f32 %v12833_v19, %v6329_v34  ;;  %v6327_v61 = vadd.f32 %v6178_v62, %v17509_v26  ;;  %v11245_v62 = vld [vmem:[%s13172_s23 + $0x422] sm:$0xff]  ;;  %v8650_v26 = vpack.c.bf16 %v11248_v14, %v11247_v2  ;;  %v16293_v2 = vld [vmem:[%s16894_s2] ss:$0 sm:$0xff] }
 0x450   : > { %v12706_v41 = vpop.f32.mrf.mxu1  ;;  %v12836_v30 = vpop.f32.mrf.mxu0  ;;  %12933 = vmatmul.mubr.msk.bf16.gmra.mxu1 %vm569_vm2, %v7575_v32  ;;  %13063 = vmatmul.mubr.msk.bf16.gmra.mxu0 %vm569_vm2, %v8647_v54 }
 0x451   : > { %v16257_v25 = vadd.f32 %v7244_v42, %v6327_v61  ;;  %v6332_v57 = vadd.f32 %v12706_v41, %v15500_v11  ;;  %12936 = vmatprep.mubr.msk.bf16.mxu1 %vm569_vm2, %v7576_v63  ;;  %13066 = vmatprep.mubr.msk.bf16.mxu0 %vm569_vm2, %v8648_v3  ;;  %v7577_v11 = vpack.c.bf16 %v11053_v22, %v11052_v15  ;;  %v11057_v22 = vld [vmem:[%s13172_s23 + $0x451] sm:$0xff] }
 0x452   : > { %v6191_v44 = vpop.f32.mrf.mxu1  ;;  %v7257_v60 = vpop.f32.mrf.mxu0  ;;  %v8649_v41 = vpack.c.bf16 %v11246_v27, %v11245_v62  ;;  %v7578_v42 = vpack.c.bf16 %v11055_v1, %v11054_v6  ;;  %v11249_v62 = vld [vmem:[%s13172_s23 + $0x44a] sm:$0xff] }
 0x453   : > { %v16268_v19 = vadd.f32 %v12836_v30, %v6332_v57  ;;  %v6330_v32 = vadd.f32 %v6191_v44, %v15503_v45  ;;  %v11059_v1 = vld [vmem:[%s13172_s23 + $0x469] sm:$0xff] }
 0x454   : > { %v12707_v54 = vpop.f32.mrf.mxu1  ;;  %v12837_v34 = vpop.f32.mrf.mxu0 }
 0x455   : > { %v16271_v63 = vadd.f32 %v7257_v60, %v6330_v32  ;;  %v6333_v3 = vadd.f32 %v12707_v54, %v15506_v9  ;;  %v11056_v9 = vld [vmem:[%s13172_s23 + $0x449] sm:$0xff]  ;;  %v11058_v60 = vld [vmem:[%s13172_s23 + $0x461] sm:$0xff] }
 0x456   : > { %v6194_v61 = vpop.f32.mrf.mxu1  ;;  %v7260_v30 = vpop.f32.mrf.mxu0  ;;  %v11251_v54 = vld [vmem:[%s13172_s23 + $0x462] sm:$0xff] }
 0x457   : > { %v16274_v57 = vadd.f32 %v12837_v34, %v6333_v3  ;;  %v6331_v45 = vadd.f32 %v6194_v61, %v15513_v17  ;;  %v11250_v17 = vld [vmem:[%s13172_s23 + $0x452] sm:$0xff]  ;;  %v11252_v34 = vld [vmem:[%s13172_s23 + $0x46a] sm:$0xff]  ;;  %v7580_v61 = vpack.c.bf16 %v11059_v1, %v11058_v60 }
 0x458   : > { %v12842_v44 = vpop.f32.mrf.mxu1  ;;  %12937 = vmatmul.mubr.msk.bf16.gmra.mxu1 %vm569_vm2, %v7577_v11  ;;  %v12972_v15 = vpop.f32.mrf.mxu0  ;;  %13067 = vmatmul.mubr.msk.bf16.gmra.mxu0 %vm569_vm2, %v8649_v41 }
 0x459   : > { %v16282_v27 = vadd.f32 %v7260_v30, %v6331_v45  ;;  %v8346_v6 = vadd.f32 %v12842_v44, %v15524_v47  ;;  %12940 = vmatprep.mubr.msk.bf16.mxu1 %vm569_vm2, %v7578_v42  ;;  %13070 = vmatprep.mubr.msk.bf16.mxu0 %vm569_vm2, %v8650_v26  ;;  %v7579_v42 = vpack.c.bf16 %v11057_v22, %v11056_v9 }
 0x45a   : > { %v7833_v14 = vpop.f32.mrf.mxu1  ;;  %v8894_v32 = vpop.f32.mrf.mxu0  ;;  %v8651_v26 = vpack.c.bf16 %v11250_v17, %v11249_v62  ;;  %v11061_v17 = vld [vmem:[%s13172_s23 + $0x479] sm:$0xff] }
 0x45b   : > { %17510 = vst [vmem:[#allocation54_spill] sm:$0xff] %v16282_v27  ;;  %v9407_v11 = vadd.f32 %v12972_v15, %v8346_v6  ;;  %v8344_v47 = vadd.f32 %v7833_v14, %v15527_v49  ;;  %v8652_v27 = vpack.c.bf16 %v11252_v34, %v11251_v54  ;;  %v11253_v14 = vld [vmem:[%s13172_s23 + $0x472] sm:$0xff]  ;;  %v11062_v54 = vld [vmem:[%s13172_s23 + $0x489] sm:$0xff] }
 0x45c   : > { %v12843_v41 = vpop.f32.mrf.mxu1  ;;  %v12973_v3 = vpop.f32.mrf.mxu0 }
 0x45d   : > { %v9542_v30 = vadd.f32 %v16293_v2, %v9407_v11  ;;  %v9405_v45 = vadd.f32 %v8894_v32, %v8344_v47  ;;  %v8347_v44 = vadd.f32 %v12843_v41, %v15530_v0  ;;  %v11060_v0 = vld [vmem:[%s13172_s23 + $0x471] sm:$0xff]  ;;  %v11254_v32 = vld [vmem:[%s13172_s23 + $0x47a] sm:$0xff] }
 0x45e   : > { %v7836_v49 = vpop.f32.mrf.mxu1  ;;  %v8897_v15 = vpop.f32.mrf.mxu0  ;;  %v11063_v41 = vld [vmem:[%s13172_s23 + $0x491] sm:$0xff] }
 0x45f   : > { %v9670_v9 = vmax.f32 %v9542_v30, 0.0  ;;  %v9540_v22 = vadd.f32 %v16293_v2, %v9405_v45  ;;  %v9408_v62 = vadd.f32 %v12973_v3, %v8347_v44  ;;  %v8345_v6 = vadd.f32 %v7836_v49, %v15537_v4  ;;  %v11255_v3 = vld [vmem:[%s13172_s23 + $0x48a] sm:$0xff] }
 0x460   : > { %v12846_v60 = vpop.f32.mrf.mxu1  ;;  %12941 = vmatmul.mubr.msk.bf16.gmra.mxu1 %vm569_vm2, %v7579_v42  ;;  %v12976_v1 = vpop.f32.mrf.mxu0  ;;  %13071 = vmatmul.mubr.msk.bf16.gmra.mxu0 %vm569_vm2, %v8651_v26  ;;  %v11256_v42 = vld [vmem:[%s13172_s23 + $0x492] sm:$0xff] }
 0x461   : > { %9799 = vst.msk [vmem:[%s16304_s13 + $0x10] sm:$0xff] %vm9796_vm3, %v9670_v9  ;;  %v9668_v34 = vmax.f32 %v9540_v22, 0.0  ;;  %v9543_v4 = vadd.f32 %v16293_v2, %v9408_v62  ;;  %v9406_v11 = vadd.f32 %v8897_v15, %v8345_v6  ;;  %v8350_v47 = vadd.f32 %v12846_v60, %v15548_v38  ;;  %12944 = vmatprep.mubr.msk.bf16.mxu1 %vm569_vm2, %v7580_v61 }
 0x462   : > { %13074 = vmatprep.mubr.msk.bf16.mxu0 %vm569_vm2, %v8652_v27  ;;  %v7849_v26 = vpop.f32.mrf.mxu1  ;;  %v8910_v30 = vpop.f32.mrf.mxu0  ;;  %v7581_v61 = vpack.c.bf16 %v11061_v17, %v11060_v0  ;;  %v8653_v27 = vpack.c.bf16 %v11254_v32, %v11253_v14  ;;  %v7582_v22 = vpack.c.bf16 %v11063_v41, %v11062_v54  ;;  %v8654_v62 = vpack.c.bf16 %v11256_v42, %v11255_v3  ;;  %v11064_v54 = vld [vmem:[%s13172_s23 + $0x499] sm:$0xff]  ;;  %v11258_v3 = vld [vmem:[%s13172_s23 + $0x4a2] sm:$0xff]  ;;  %v11066_v42 = vld [vmem:[%s13172_s23 + $0x4b1] sm:$0xff] }
 0x463   : > { %9797 = vst.msk [vmem:[%s16304_s13] sm:$0xff] %vm9796_vm3, %v9668_v34  ;;  %v9671_v45 = vmax.f32 %v9543_v4, 0.0  ;;  %v9541_v44 = vadd.f32 %v16293_v2, %v9406_v11  ;;  %v9411_v49 = vadd.f32 %v12976_v1, %v8350_v47  ;;  %v8348_v15 = vadd.f32 %v7849_v26, %v15551_v43  ;;  %v11065_v11 = vld [vmem:[%s13172_s23 + $0x4a1] sm:$0xff] }
 0x464   : > { %v12847_v38 = vpop.f32.mrf.mxu1  ;;  %v12977_v9 = vpop.f32.mrf.mxu0  ;;  %v11257_v41 = vld [vmem:[%s13172_s23 + $0x49a] sm:$0xff] }
 0x465   : > { %9800 = vst.msk [vmem:[%s16304_s13 + $0x18] sm:$0xff] %vm9796_vm3, %v9671_v45  ;;  %v9669_v6 = vmax.f32 %v9541_v44, 0.0  ;;  %v9546_v60 = vadd.f32 %v16293_v2, %v9411_v49  ;;  %v9409_v34 = vadd.f32 %v8910_v30, %v8348_v15  ;;  %v8351_v1 = vadd.f32 %v12847_v38, %v15554_v23  ;;  %v11067_v44 = vld [vmem:[%s13172_s23 + $0x4b9] sm:$0xff] }
 0x466   : > { %v7852_v43 = vpop.f32.mrf.mxu1  ;;  %v8913_v4 = vpop.f32.mrf.mxu0  ;;  %v11259_v49 = vld [vmem:[%s13172_s23 + $0x4b2] sm:$0xff]  ;;  %v11260_v15 = vld [vmem:[%s13172_s23 + $0x4ba] sm:$0xff] }
 0x467   : > { %9798 = vst.msk [vmem:[%s16304_s13 + $0x8] sm:$0xff] %vm9796_vm3, %v9669_v6  ;;  %v9674_v0 = vmax.f32 %v9546_v60, 0.0  ;;  %v9544_v17 = vadd.f32 %v16293_v2, %v9409_v34  ;;  %v9412_v14 = vadd.f32 %v12977_v9, %v8351_v1  ;;  %v8349_v32 = vadd.f32 %v7852_v43, %v15561_v55 }
 0x468   : > { %v12850_v47 = vpop.f32.mrf.mxu1  ;;  %12945 = vmatmul.mubr.msk.bf16.gmra.mxu1 %vm569_vm2, %v7581_v61  ;;  %v12980_v23 = vpop.f32.mrf.mxu0  ;;  %13075 = vmatmul.mubr.msk.bf16.gmra.mxu0 %vm569_vm2, %v8653_v27  ;;  %v7584_v1 = vpack.c.bf16 %v11067_v44, %v11066_v42  ;;  %v8656_v43 = vpack.c.bf16 %v11260_v15, %v11259_v49  ;;  %v11071_v15 = vld [vmem:[%s13172_s23 + $0x4e1] sm:$0xff] }
 0x469   : > { %9803 = vst.msk [vmem:[%s16304_s13 + $0x30] sm:$0xff] %vm9796_vm3, %v9674_v0  ;;  %v9672_v26 = vmax.f32 %v9544_v17, 0.0  ;;  %v9547_v55 = vadd.f32 %v16293_v2, %v9412_v14  ;;  %v9410_v30 = vadd.f32 %v8913_v4, %v8349_v32  ;;  %v8354_v45 = vadd.f32 %v12850_v47, %v15572_v58  ;;  %12948 = vmatprep.mubr.msk.bf16.mxu1 %vm569_vm2, %v7582_v22 }
 0x46a   : > { %13078 = vmatprep.mubr.msk.bf16.mxu0 %vm569_vm2, %v8654_v62  ;;  %v7865_v38 = vpop.f32.mrf.mxu1  ;;  %v8926_v9 = vpop.f32.mrf.mxu0  ;;  %v7583_v22 = vpack.c.bf16 %v11065_v11, %v11064_v54  ;;  %v8655_v62 = vpack.c.bf16 %v11258_v3, %v11257_v41  ;;  %v11068_v41 = vld [vmem:[%s13172_s23 + $0x4c1] sm:$0xff]  ;;  %v11069_v3 = vld [vmem:[%s13172_s23 + $0x4c9] sm:$0xff] }
 0x46b   : > { %9801 = vst.msk [vmem:[%s16304_s13 + $0x20] sm:$0xff] %vm9796_vm3, %v9672_v26  ;;  %v9675_v61 = vmax.f32 %v9547_v55, 0.0  ;;  %v9545_v27 = vadd.f32 %v16293_v2, %v9410_v30  ;;  %v9415_v6 = vadd.f32 %v12980_v23, %v8354_v45  ;;  %v8352_v60 = vadd.f32 %v7865_v38, %v15575_v21  ;;  %v11261_v26 = vld [vmem:[%s13172_s23 + $0x4c2] sm:$0xff]  ;;  %v11262_v55 = vld [vmem:[%s13172_s23 + $0x4ca] sm:$0xff]  ;;  %v11070_v30 = vld [vmem:[%s13172_s23 + $0x4d9] sm:$0xff] }
 0x46c   : > { %v12851_v58 = vpop.f32.mrf.mxu1  ;;  %v12981_v34 = vpop.f32.mrf.mxu0  ;;  %v11263_v38 = vld [vmem:[%s13172_s23 + $0x4da] sm:$0xff] }
 0x46d   : > { %9804 = vst.msk [vmem:[%s16304_s13 + $0x38] sm:$0xff] %vm9796_vm3, %v9675_v61  ;;  %v9673_v4 = vmax.f32 %v9545_v27, 0.0  ;;  %v9550_v0 = vadd.f32 %v16293_v2, %v9415_v6  ;;  %v9413_v17 = vadd.f32 %v8926_v9, %v8352_v60  ;;  %v8355_v14 = vadd.f32 %v12851_v58, %v15578_v33  ;;  %v11264_v9 = vld [vmem:[%s13172_s23 + $0x4e2] sm:$0xff] }
 0x46e   : > { %v7868_v21 = vpop.f32.mrf.mxu1  ;;  %v8929_v32 = vpop.f32.mrf.mxu0 }
 0x46f   : > { %9802 = vst.msk [vmem:[%s16304_s13 + $0x28] sm:$0xff] %vm9796_vm3, %v9673_v4  ;;  %v9678_v54 = vmax.f32 %v9550_v0, 0.0  ;;  %v9548_v11 = vadd.f32 %v16293_v2, %v9413_v17  ;;  %v9416_v47 = vadd.f32 %v12981_v34, %v8355_v14  ;;  %v8353_v23 = vadd.f32 %v7868_v21, %v15585_v52 }
 0x470   : > { %v12854_v42 = vpop.f32.mrf.mxu1  ;;  %12949 = vmatmul.mubr.msk.bf16.gmra.mxu1 %vm569_vm2, %v7583_v22  ;;  %v12984_v33 = vpop.f32.mrf.mxu0  ;;  %13079 = vmatmul.mubr.msk.bf16.gmra.mxu0 %vm569_vm2, %v8655_v62  ;;  %v7585_v62 = vpack.c.bf16 %v11069_v3, %v11068_v41  ;;  %v8658_v4 = vpack.c.bf16 %v11264_v9, %v11263_v38  ;;  %v11072_v41 = vld [vmem:[%s13172_s23 + $0x4e9] sm:$0xff]  ;;  %v11073_v3 = vld [vmem:[%s13172_s23 + $0x4f1] sm:$0xff] }
 0x471   : > { %9807 = vst.msk [vmem:[%s16304_s13 + $0x50] sm:$0xff] %vm9796_vm3, %v9678_v54  ;;  %v9676_v45 = vmax.f32 %v9548_v11, 0.0  ;;  %v9551_v52 = vadd.f32 %v16293_v2, %v9416_v47  ;;  %v9414_v44 = vadd.f32 %v8929_v32, %v8353_v23  ;;  %v8358_v49 = vadd.f32 %v12854_v42, %v15596_v46  ;;  %12952 = vmatprep.mubr.msk.bf16.mxu1 %vm569_vm2, %v7584_v1 }
 0x472   : > { %13082 = vmatprep.mubr.msk.bf16.mxu0 %vm569_vm2, %v8656_v43  ;;  %v7881_v61 = vpop.f32.mrf.mxu1  ;;  %v8942_v27 = vpop.f32.mrf.mxu0  ;;  %v8657_v1 = vpack.c.bf16 %v11262_v55, %v11261_v26  ;;  %v7586_v43 = vpack.c.bf16 %v11071_v15, %v11070_v30  ;;  %v11266_v26 = vld [vmem:[%s13172_s23 + $0x4f2] sm:$0xff]  ;;  %v11074_v55 = vld [vmem:[%s13172_s23 + $0x501] sm:$0xff]  ;;  %v11268_v15 = vld [vmem:[%s13172_s23 + $0x50a] sm:$0xff] }
 0x473   : > { %9805 = vst.msk [vmem:[%s16304_s13 + $0x40] sm:$0xff] %vm9796_vm3, %v9676_v45  ;;  %v9679_v6 = vmax.f32 %v9551_v52, 0.0  ;;  %v9549_v60 = vadd.f32 %v16293_v2, %v9414_v44  ;;  %v9419_v58 = vadd.f32 %v12984_v33, %v8358_v49  ;;  %v8356_v34 = vadd.f32 %v7881_v61, %v15599_v24  ;;  %v11265_v33 = vld [vmem:[%s13172_s23 + $0x4ea] sm:$0xff]  ;;  %v11267_v49 = vld [vmem:[%s13172_s23 + $0x502] sm:$0xff] }
 0x474   : > { %v12855_v46 = vpop.f32.mrf.mxu1  ;;  %v12985_v22 = vpop.f32.mrf.mxu0  ;;  %v11075_v44 = vld [vmem:[%s13172_s23 + $0x509] sm:$0xff] }
 0x475   : > { %9808 = vst.msk [vmem:[%s16304_s13 + $0x58] sm:$0xff] %vm9796_vm3, %v9679_v6  ;;  %v9677_v0 = vmax.f32 %v9549_v60, 0.0  ;;  %v9554_v17 = vadd.f32 %v16293_v2, %v9419_v58  ;;  %v9417_v14 = vadd.f32 %v8942_v27, %v8356_v34  ;;  %v8359_v21 = vadd.f32 %v12855_v46, %v15602_v31 }
 0x476   : > { %v7884_v24 = vpop.f32.mrf.mxu1  ;;  %v8945_v32 = vpop.f32.mrf.mxu0  ;;  %v7587_v34 = vpack.c.bf16 %v11073_v3, %v11072_v41  ;;  %v8659_v46 = vpack.c.bf16 %v11266_v26, %v11265_v33  ;;  %v11269_v41 = vld [vmem:[%s13172_s23 + $0x512] sm:$0xff]  ;;  %v11270_v3 = vld [vmem:[%s13172_s23 + $0x51a] sm:$0xff] }
 0x477   : > { %9806 = vst.msk [vmem:[%s16304_s13 + $0x48] sm:$0xff] %vm9796_vm3, %v9677_v0  ;;  %v9682_v54 = vmax.f32 %v9554_v17, 0.0  ;;  %v9552_v11 = vadd.f32 %v16293_v2, %v9417_v14  ;;  %v9420_v47 = vadd.f32 %v12985_v22, %v8359_v21  ;;  %v8357_v23 = vadd.f32 %v7884_v24, %v15609_v5 }
 0x478   : > { %v12858_v42 = vpop.f32.mrf.mxu1  ;;  %12953 = vmatmul.mubr.msk.bf16.gmra.mxu1 %vm569_vm2, %v7585_v62  ;;  %v12988_v31 = vpop.f32.mrf.mxu0  ;;  %13083 = vmatmul.mubr.msk.bf16.gmra.mxu0 %vm569_vm2, %v8657_v1  ;;  %v7588_v22 = vpack.c.bf16 %v11075_v44, %v11074_v55  ;;  %v8660_v62 = vpack.c.bf16 %v11268_v15, %v11267_v49  ;;  %v17512_v55 = vld [vmem:[#allocation70_spill] sm:$0xff] }
 0x479   : > { %9811 = vst.msk [vmem:[%s16304_s13 + $0x70] sm:$0xff] %vm9796_vm3, %v9682_v54  ;;  %v9680_v30 = vmax.f32 %v9552_v11, 0.0  ;;  %v9555_v5 = vadd.f32 %v16293_v2, %v9420_v47  ;;  %v9418_v45 = vadd.f32 %v8945_v32, %v8357_v23  ;;  %v8362_v52 = vadd.f32 %v12858_v42, %v15620_v16  ;;  %12956 = vmatprep.mubr.msk.bf16.mxu1 %vm569_vm2, %v7586_v43  ;;  %v17511_v32 = vld [vmem:[#allocation68_spill] sm:$0xff]  ;;  %v11077_v47 = vld [vmem:[%s13172_s23 + $0x519] sm:$0xff] }
 0x47a   : > { %13086 = vmatprep.mubr.msk.bf16.mxu0 %vm569_vm2, %v8658_v4  ;;  %v7897_v38 = vpop.f32.mrf.mxu1  ;;  %v8958_v9 = vpop.f32.mrf.mxu0  ;;  %v11076_v11 = vld [vmem:[%s13172_s23 + $0x511] sm:$0xff]  ;;  %v11078_v42 = vld [vmem:[%s13172_s23 + $0x529] sm:$0xff] }
 0x47b   : > { %9809 = vst.msk [vmem:[%s16304_s13 + $0x60] sm:$0xff] %vm9796_vm3, %v9680_v30  ;;  %v9683_v61 = vmax.f32 %v9555_v5, 0.0  ;;  %v9553_v27 = vadd.f32 %v16293_v2, %v9418_v45  ;;  %v9423_v6 = vadd.f32 %v12988_v31, %v8362_v52  ;;  %v8360_v60 = vadd.f32 %v7897_v38, %v15623_v36  ;;  %v11079_v5 = vld [vmem:[%s13172_s23 + $0x531] sm:$0xff] }
 0x47c   : > { %v12859_v16 = vpop.f32.mrf.mxu1  ;;  %v12989_v58 = vpop.f32.mrf.mxu0  ;;  %v11271_v45 = vld [vmem:[%s13172_s23 + $0x52a] sm:$0xff]  ;;  %v11272_v52 = vld [vmem:[%s13172_s23 + $0x532] sm:$0xff] }
 0x47d   : > { %9812 = vst.msk [vmem:[%s16304_s13 + $0x78] sm:$0xff] %vm9796_vm3, %v9683_v61  ;;  %v9681_v1 = vmax.f32 %v9553_v27, 0.0  ;;  %v9558_v43 = vadd.f32 %v16293_v2, %v9423_v6  ;;  %v9421_v4 = vadd.f32 %v8958_v9, %v8360_v60  ;;  %v8363_v0 = vadd.f32 %v12859_v16, %v15626_v28 }
 0x47e   : > { %v7900_v36 = vpop.f32.mrf.mxu1  ;;  %v8961_v17 = vpop.f32.mrf.mxu0  ;;  %v7589_v60 = vpack.c.bf16 %v11077_v47, %v11076_v11  ;;  %v8661_v16 = vpack.c.bf16 %v11270_v3, %v11269_v41  ;;  %v11273_v47 = vld [vmem:[%s13172_s23 + $0x53a] sm:$0xff] }
 0x47f   : > { %9810 = vst.msk [vmem:[%s16304_s13 + $0x68] sm:$0xff] %vm9796_vm3, %v9681_v1  ;;  %v9686_v14 = vmax.f32 %v9558_v43, 0.0  ;;  %v9556_v21 = vadd.f32 %v16293_v2, %v9421_v4  ;;  %v9424_v24 = vadd.f32 %v12989_v58, %v8363_v0  ;;  %v8361_v54 = vadd.f32 %v7900_v36, %v17511_v32 }
 0x480   : > { %v12862_v23 = vpop.f32.mrf.mxu1  ;;  %12957 = vmatmul.mubr.msk.bf16.gmra.mxu1 %vm569_vm2, %v7587_v34  ;;  %v12992_v28 = vpop.f32.mrf.mxu0  ;;  %13087 = vmatmul.mubr.msk.bf16.gmra.mxu0 %vm569_vm2, %v8659_v46  ;;  %v7590_v58 = vpack.c.bf16 %v11079_v5, %v11078_v42  ;;  %v8662_v34 = vpack.c.bf16 %v11272_v52, %v11271_v45 }
 0x481   : > { %9815 = vst.msk [vmem:[%s16304_s13 + $0x90] sm:$0xff] %vm9796_vm3, %v9686_v14  ;;  %v9684_v31 = vmax.f32 %v9556_v21, 0.0  ;;  %v9559_v33 = vadd.f32 %v16293_v2, %v9424_v24  ;;  %v9422_v26 = vadd.f32 %v8961_v17, %v8361_v54  ;;  %v8366_v30 = vadd.f32 %v12862_v23, %v17512_v55  ;;  %12960 = vmatprep.mubr.msk.bf16.mxu1 %vm569_vm2, %v7588_v22  ;;  %v11274_v23 = vld [vmem:[%s13172_s23 + $0x542] sm:$0xff] }
 0x482   : > { %13090 = vmatprep.mubr.msk.bf16.mxu0 %vm569_vm2, %v8660_v62  ;;  %v7913_v44 = vpop.f32.mrf.mxu1  ;;  %v8974_v49 = vpop.f32.mrf.mxu0 }
 0x483   : > { %9813 = vst.msk [vmem:[%s16304_s13 + $0x80] sm:$0xff] %vm9796_vm3, %v9684_v31  ;;  %v9687_v15 = vmax.f32 %v9559_v33, 0.0  ;;  %v9557_v38 = vadd.f32 %v16293_v2, %v9422_v26  ;;  %v9427_v9 = vadd.f32 %v12992_v28, %v8366_v30  ;;  %v8364_v61 = vadd.f32 %v7913_v44, %v15647_v8 }
 0x484   : > { %v12863_v27 = vpop.f32.mrf.mxu1  ;;  %v12993_v6 = vpop.f32.mrf.mxu0  ;;  %v8663_v30 = vpack.c.bf16 %v11274_v23, %v11273_v47 }
 0x485   : > { %9816 = vst.msk [vmem:[%s16304_s13 + $0x98] sm:$0xff] %vm9796_vm3, %v9687_v15  ;;  %v9685_v46 = vmax.f32 %v9557_v38, 0.0  ;;  %v9562_v22 = vadd.f32 %v16293_v2, %v9427_v9  ;;  %v9425_v62 = vadd.f32 %v8974_v49, %v8364_v61  ;;  %v8367_v1 = vadd.f32 %v12863_v27, %v15650_v39  ;;  %v11080_v39 = vld [vmem:[%s13172_s23 + $0x539] sm:$0xff] }
 0x486   : > { %v7916_v43 = vpop.f32.mrf.mxu1  ;;  %v8977_v4 = vpop.f32.mrf.mxu0 }
 0x487   : > { %9814 = vst.msk [vmem:[%s16304_s13 + $0x88] sm:$0xff] %vm9796_vm3, %v9685_v46  ;;  %v9690_v8 = vmax.f32 %v9562_v22, 0.0  ;;  %v9560_v0 = vadd.f32 %v16293_v2, %v9425_v62  ;;  %v9428_v36 = vadd.f32 %v12993_v6, %v8367_v1  ;;  %v8365_v17 = vadd.f32 %v7916_v43, %v15657_v12  ;;  %v11081_v12 = vld [vmem:[%s13172_s23 + $0x541] sm:$0xff] }
 0x488   : > { %v12866_v14 = vpop.f32.mrf.mxu1  ;;  %12961 = vmatmul.mubr.msk.bf16.gmra.mxu1 %vm569_vm2, %v7589_v60  ;;  %v12996_v21 = vpop.f32.mrf.mxu0  ;;  %13091 = vmatmul.mubr.msk.bf16.gmra.mxu0 %vm569_vm2, %v8661_v16  ;;  %v7591_v55 = vpack.c.bf16 %v11081_v12, %v11080_v39 }
 0x489   : > { %9819 = vst.msk [vmem:[%s16304_s13 + $0xb0] sm:$0xff] %vm9796_vm3, %v9690_v8  ;;  %v9688_v24 = vmax.f32 %v9560_v0, 0.0  ;;  %v9563_v32 = vadd.f32 %v16293_v2, %v9428_v36  ;;  %v9426_v54 = vadd.f32 %v8977_v4, %v8365_v17  ;;  %v8370_v11 = vadd.f32 %v12866_v14, %v15668_v13  ;;  %12964 = vmatprep.mubr.msk.bf16.mxu1 %vm569_vm2, %v7590_v58 }
 0x48a   : > { %13094 = vmatprep.mubr.msk.bf16.mxu0 %vm569_vm2, %v8662_v34  ;;  %v7929_v28 = vpop.f32.mrf.mxu1  ;;  %v8990_v41 = vpop.f32.mrf.mxu0 }
 0x48b   : > { %9817 = vst.msk [vmem:[%s16304_s13 + $0xa0] sm:$0xff] %vm9796_vm3, %v9688_v24  ;;  %v9691_v3 = vmax.f32 %v9563_v32, 0.0  ;;  %v9561_v42 = vadd.f32 %v16293_v2, %v9426_v54  ;;  %v9431_v31 = vadd.f32 %v12996_v21, %v8370_v11  ;;  %v8368_v33 = vadd.f32 %v7929_v28, %v15671_v53 }
 0x48c   : > { %v12867_v13 = vpop.f32.mrf.mxu1  ;;  %v12997_v26 = vpop.f32.mrf.mxu0 }
 0x48d   : > { %9820 = vst.msk [vmem:[%s16304_s13 + $0xb8] sm:$0xff] %vm9796_vm3, %v9691_v3  ;;  %v9689_v5 = vmax.f32 %v9561_v42, 0.0  ;;  %v9566_v45 = vadd.f32 %v16293_v2, %v9431_v31  ;;  %v9429_v52 = vadd.f32 %v8990_v41, %v8368_v33  ;;  %v8371_v44 = vadd.f32 %v12867_v13, %v15674_v51 }
 0x48e   : > { %v7932_v49 = vpop.f32.mrf.mxu1  ;;  %v8993_v15 = vpop.f32.mrf.mxu0 }
 0x48f   : > { %9818 = vst.msk [vmem:[%s16304_s13 + $0xa8] sm:$0xff] %vm9796_vm3, %v9689_v5  ;;  %v9694_v38 = vmax.f32 %v9566_v45, 0.0  ;;  %v9564_v53 = vadd.f32 %v16293_v2, %v9429_v52  ;;  %v9432_v9 = vadd.f32 %v12997_v26, %v8371_v44  ;;  %v8369_v61 = vadd.f32 %v7932_v49, %v15681_v50  ;;  %v17514_v49 = vld [vmem:[#allocation74_spill] sm:$0xff] }
 0x490   : > { %v12870_v27 = vpop.f32.mrf.mxu1  ;;  %12965 = vmatmul.mubr.msk.bf16.gmra.mxu1 %vm569_vm2, %v7591_v55  ;;  %v13000_v6 = vpop.f32.mrf.mxu0  ;;  %13095 = vmatmul.mubr.msk.bf16.gmra.mxu0 %vm569_vm2, %v8663_v30  ;;  %v17513_v55 = vld [vmem:[#allocation72_spill] sm:$0xff] }
 0x491   : > { %9823 = vst.msk [vmem:[%s16304_s13 + $0xd0] sm:$0xff] %vm9796_vm3, %v9694_v38  ;;  %v9692_v51 = vmax.f32 %v9564_v53, 0.0  ;;  %v9567_v60 = vadd.f32 %v16293_v2, %v9432_v9  ;;  %v9430_v16 = vadd.f32 %v8993_v15, %v8369_v61  ;;  %v8374_v58 = vadd.f32 %v12870_v27, %v15692_v18 }
 0x492   : > { %v7945_v34 = vpop.f32.mrf.mxu1  ;;  %v9006_v46 = vpop.f32.mrf.mxu0 }
 0x493   : > { %9821 = vst.msk [vmem:[%s16304_s13 + $0xc0] sm:$0xff] %vm9796_vm3, %v9692_v51  ;;  %v9695_v50 = vmax.f32 %v9567_v60, 0.0  ;;  %v9565_v22 = vadd.f32 %v16293_v2, %v9430_v16  ;;  %v9435_v62 = vadd.f32 %v13000_v6, %v8374_v58  ;;  %v8372_v1 = vadd.f32 %v7945_v34, %v15695_v29  ;;  %v17515_v6 = vld [vmem:[#allocation76_spill] sm:$0xff] }
 0x494   : > { %v12871_v43 = vpop.f32.mrf.mxu1  ;;  %v13001_v4 = vpop.f32.mrf.mxu0 }
 0x495   : > { %9824 = vst.msk [vmem:[%s16304_s13 + $0xd8] sm:$0xff] %vm9796_vm3, %v9695_v50  ;;  %v9693_v8 = vmax.f32 %v9565_v22, 0.0  ;;  %v9570_v0 = vadd.f32 %v16293_v2, %v9435_v62  ;;  %v9433_v18 = vadd.f32 %v9006_v46, %v8372_v1  ;;  %v8375_v36 = vadd.f32 %v12871_v43, %v15698_v10  ;;  %v17516_v50 = vld [vmem:[#allocation78_spill] sm:$0xff] }
 0x496   : > { %v7948_v17 = vpop.f32.mrf.mxu1  ;;  %v9009_v14 = vpop.f32.mrf.mxu0 }
 0x497   : > { %9822 = vst.msk [vmem:[%s16304_s13 + $0xc8] sm:$0xff] %vm9796_vm3, %v9693_v8  ;;  %v9698_v21 = vmax.f32 %v9570_v0, 0.0  ;;  %v9568_v39 = vadd.f32 %v16293_v2, %v9433_v18  ;;  %v9436_v29 = vadd.f32 %v13001_v4, %v8375_v36  ;;  %v8373_v24 = vadd.f32 %v7948_v17, %v15705_v7  ;;  %v17517_v0 = vld [vmem:[#allocation80_spill] sm:$0xff] }
 0x498   : > { %v12874_v32 = vpop.f32.mrf.mxu1  ;;  %v13004_v54 = vpop.f32.mrf.mxu0 }
 0x499   : > { %9827 = vst.msk [vmem:[%s16304_s13 + $0xf0] sm:$0xff] %vm9796_vm3, %v9698_v21  ;;  %v9696_v11 = vmax.f32 %v9568_v39, 0.0  ;;  %v9571_v12 = vadd.f32 %v16293_v2, %v9436_v29  ;;  %v9434_v10 = vadd.f32 %v9009_v14, %v8373_v24  ;;  %v8378_v47 = vadd.f32 %v12874_v32, %v15716_v59  ;;  %v17518_v29 = vld [vmem:[#allocation82_spill] sm:$0xff] }
 0x49a   : > { %v7961_v23 = vpop.f32.mrf.mxu1  ;;  %v9022_v28 = vpop.f32.mrf.mxu0 }
 0x49b   : > { %9825 = vst.msk [vmem:[%s16304_s13 + $0xe0] sm:$0xff] %vm9796_vm3, %v9696_v11  ;;  %v9699_v41 = vmax.f32 %v9571_v12, 0.0  ;;  %v9569_v3 = vadd.f32 %v16293_v2, %v9434_v10  ;;  %v9439_v7 = vadd.f32 %v13004_v54, %v8378_v47  ;;  %v8376_v42 = vadd.f32 %v7961_v23, %v15719_v40  ;;  %v17519_v47 = vld [vmem:[#allocation84_spill] sm:$0xff] }
 0x49c   : > { %v12875_v31 = vpop.f32.mrf.mxu1  ;;  %v13005_v33 = vpop.f32.mrf.mxu0 }
 0x49d   : > { %9828 = vst.msk [vmem:[%s16304_s13 + $0xf8] sm:$0xff] %vm9796_vm3, %v9699_v41  ;;  %v9697_v13 = vmax.f32 %v9569_v3, 0.0  ;;  %v9574_v26 = vadd.f32 %v16293_v2, %v9439_v7  ;;  %v9437_v59 = vadd.f32 %v9022_v28, %v8376_v42  ;;  %v8379_v30 = vadd.f32 %v12875_v31, %v17513_v55  ;;  %v17520_v31 = vld [vmem:[#allocation86_spill] sm:$0xff] }
 0x49e   : > { %v7964_v5 = vpop.f32.mrf.mxu1  ;;  %v9025_v45 = vpop.f32.mrf.mxu0 }
 0x49f   : > { %9826 = vst.msk [vmem:[%s16304_s13 + $0xe8] sm:$0xff] %vm9796_vm3, %v9697_v13  ;;  %v9702_v52 = vmax.f32 %v9574_v26, 0.0  ;;  %v9572_v44 = vadd.f32 %v16293_v2, %v9437_v59  ;;  %v9440_v40 = vadd.f32 %v13005_v33, %v8379_v30  ;;  %v8377_v15 = vadd.f32 %v7964_v5, %v17514_v49  ;;  %v17521_v5 = vld [vmem:[#allocation88_spill] sm:$0xff] }
 0x4a0   : > { %v12878_v38 = vpop.f32.mrf.mxu1  ;;  %v13008_v53 = vpop.f32.mrf.mxu0 }
 0x4a1   : > { %9831 = vst.msk [vmem:[%s16304_s13 + $0x110] sm:$0xff] %vm9796_vm3, %v9702_v52  ;;  %v9700_v9 = vmax.f32 %v9572_v44, 0.0  ;;  %v9575_v61 = vadd.f32 %v16293_v2, %v9440_v40  ;;  %v9438_v27 = vadd.f32 %v9025_v45, %v8377_v15  ;;  %v8382_v51 = vadd.f32 %v12878_v38, %v17515_v6  ;;  %v17522_v38 = vld [vmem:[#allocation90_spill] sm:$0xff] }
 0x4a2   : > { %v7977_v60 = vpop.f32.mrf.mxu1  ;;  %v9038_v16 = vpop.f32.mrf.mxu0 }
 0x4a3   : > { %9829 = vst.msk [vmem:[%s16304_s13 + $0x100] sm:$0xff] %vm9796_vm3, %v9700_v9  ;;  %v9703_v58 = vmax.f32 %v9575_v61, 0.0  ;;  %v9573_v34 = vadd.f32 %v16293_v2, %v9438_v27  ;;  %v9443_v46 = vadd.f32 %v13008_v53, %v8382_v51  ;;  %v8380_v22 = vadd.f32 %v7977_v60, %v17516_v50  ;;  %v17523_v60 = vld [vmem:[#allocation91_spill] sm:$0xff] }
 0x4a4   : > { %v12879_v62 = vpop.f32.mrf.mxu1  ;;  %v13009_v1 = vpop.f32.mrf.mxu0 }
 0x4a5   : > { %9832 = vst.msk [vmem:[%s16304_s13 + $0x118] sm:$0xff] %vm9796_vm3, %v9703_v58  ;;  %v9701_v43 = vmax.f32 %v9573_v34, 0.0  ;;  %v9578_v4 = vadd.f32 %v16293_v2, %v9443_v46  ;;  %v9441_v8 = vadd.f32 %v9038_v16, %v8380_v22  ;;  %v8383_v18 = vadd.f32 %v12879_v62, %v17517_v0  ;;  %v17524_v62 = vld [vmem:[#allocation92_spill] sm:$0xff] }
 0x4a6   : > { %v7980_v36 = vpop.f32.mrf.mxu1  ;;  %v9041_v17 = vpop.f32.mrf.mxu0 }
 0x4a7   : > { %9830 = vst.msk [vmem:[%s16304_s13 + $0x108] sm:$0xff] %vm9796_vm3, %v9701_v43  ;;  %v9706_v14 = vmax.f32 %v9578_v4, 0.0  ;;  %v9576_v21 = vadd.f32 %v16293_v2, %v9441_v8  ;;  %v9444_v39 = vadd.f32 %v13009_v1, %v8383_v18  ;;  %v8381_v24 = vadd.f32 %v7980_v36, %v17518_v29  ;;  %v17525_v36 = vld [vmem:[#allocation93_spill] sm:$0xff] }
 0x4a8   : > { %v12882_v32 = vpop.f32.mrf.mxu1  ;;  %v13012_v54 = vpop.f32.mrf.mxu0 }
 0x4a9   : > { %9835 = vst.msk [vmem:[%s16304_s13 + $0x130] sm:$0xff] %vm9796_vm3, %v9706_v14  ;;  %v9704_v11 = vmax.f32 %v9576_v21, 0.0  ;;  %v9579_v12 = vadd.f32 %v16293_v2, %v9444_v39  ;;  %v9442_v10 = vadd.f32 %v9041_v17, %v8381_v24  ;;  %v8386_v23 = vadd.f32 %v12882_v32, %v17519_v47  ;;  %v17526_v32 = vld [vmem:[#allocation94_spill] sm:$0xff] }
 0x4aa   : > { %v7993_v28 = vpop.f32.mrf.mxu1  ;;  %v9054_v41 = vpop.f32.mrf.mxu0 }
 0x4ab   : > { %9833 = vst.msk [vmem:[%s16304_s13 + $0x120] sm:$0xff] %vm9796_vm3, %v9704_v11  ;;  %v9707_v3 = vmax.f32 %v9579_v12, 0.0  ;;  %v9577_v7 = vadd.f32 %v16293_v2, %v9442_v10  ;;  %v9447_v42 = vadd.f32 %v13012_v54, %v8386_v23  ;;  %v8384_v33 = vadd.f32 %v7993_v28, %v17520_v31  ;;  %v17527_v28 = vld [vmem:[#allocation43_spill] sm:$0xff] }
 0x4ac   : > { %v12883_v13 = vpop.f32.mrf.mxu1  ;;  %v13013_v26 = vpop.f32.mrf.mxu0 }
 0x4ad   : > { %9836 = vst.msk [vmem:[%s16304_s13 + $0x138] sm:$0xff] %vm9796_vm3, %v9707_v3  ;;  %v9705_v59 = vmax.f32 %v9577_v7, 0.0  ;;  %v9582_v55 = vadd.f32 %v16293_v2, %v9447_v42  ;;  %v9445_v30 = vadd.f32 %v9054_v41, %v8384_v33  ;;  %v8387_v45 = vadd.f32 %v12883_v13, %v17521_v5  ;;  %v17528_v13 = vld [vmem:[#allocation45_spill] sm:$0xff] }
 0x4ae   : > { %v7996_v52 = vpop.f32.mrf.mxu1  ;;  %v9057_v44 = vpop.f32.mrf.mxu0 }
 0x4af   : > { %9834 = vst.msk [vmem:[%s16304_s13 + $0x128] sm:$0xff] %vm9796_vm3, %v9705_v59  ;;  %v9710_v40 = vmax.f32 %v9582_v55, 0.0  ;;  %v9580_v49 = vadd.f32 %v16293_v2, %v9445_v30  ;;  %v9448_v15 = vadd.f32 %v13013_v26, %v8387_v45  ;;  %v8385_v53 = vadd.f32 %v7996_v52, %v17522_v38  ;;  %v17529_v52 = vld [vmem:[#allocation47_spill] sm:$0xff] }
 0x4b0   : > { %v12886_v9 = vpop.f32.mrf.mxu1  ;;  %v13016_v61 = vpop.f32.mrf.mxu0 }
 0x4b1   : > { %9839 = vst.msk [vmem:[%s16304_s13 + $0x150] sm:$0xff] %vm9796_vm3, %v9710_v40  ;;  %v9708_v27 = vmax.f32 %v9580_v49, 0.0  ;;  %v9583_v6 = vadd.f32 %v16293_v2, %v9448_v15  ;;  %v9446_v51 = vadd.f32 %v9057_v44, %v8385_v53  ;;  %v8390_v16 = vadd.f32 %v12886_v9, %v17523_v60  ;;  %v17530_v9 = vld [vmem:[#allocation49_spill] sm:$0xff] }
 0x4b2   : > { %v8009_v58 = vpop.f32.mrf.mxu1  ;;  %v9070_v34 = vpop.f32.mrf.mxu0 }
 0x4b3   : > { %9837 = vst.msk [vmem:[%s16304_s13 + $0x140] sm:$0xff] %vm9796_vm3, %v9708_v27  ;;  %v9711_v46 = vmax.f32 %v9583_v6, 0.0  ;;  %v9581_v50 = vadd.f32 %v16293_v2, %v9446_v51  ;;  %v9451_v22 = vadd.f32 %v13016_v61, %v8390_v16  ;;  %v8388_v1 = vadd.f32 %v8009_v58, %v17524_v62  ;;  %v17531_v58 = vld [vmem:[#allocation51_spill] sm:$0xff] }
 0x4b4   : > { %v12887_v43 = vpop.f32.mrf.mxu1  ;;  %v13017_v4 = vpop.f32.mrf.mxu0 }
 0x4b5   : > { %9840 = vst.msk [vmem:[%s16304_s13 + $0x158] sm:$0xff] %vm9796_vm3, %v9711_v46  ;;  %v9709_v8 = vmax.f32 %v9581_v50, 0.0  ;;  %v9586_v0 = vadd.f32 %v16293_v2, %v9451_v22  ;;  %v9449_v18 = vadd.f32 %v9070_v34, %v8388_v1  ;;  %v8391_v17 = vadd.f32 %v12887_v43, %v17525_v36  ;;  %v17532_v43 = vld [vmem:[#allocation53_spill] sm:$0xff] }
 0x4b6   : > { %v8012_v14 = vpop.f32.mrf.mxu1  ;;  %v9073_v21 = vpop.f32.mrf.mxu0 }
 0x4b7   : > { %9838 = vst.msk [vmem:[%s16304_s13 + $0x148] sm:$0xff] %vm9796_vm3, %v9709_v8  ;;  %v9714_v39 = vmax.f32 %v9586_v0, 0.0  ;;  %v9584_v29 = vadd.f32 %v16293_v2, %v9449_v18  ;;  %v9452_v24 = vadd.f32 %v13017_v4, %v8391_v17  ;;  %v8389_v54 = vadd.f32 %v8012_v14, %v17526_v32  ;;  %v17533_v14 = vld [vmem:[#allocation55_spill] sm:$0xff] }
 0x4b8   : > { %v12890_v11 = vpop.f32.mrf.mxu1  ;;  %v13020_v12 = vpop.f32.mrf.mxu0 }
 0x4b9   : > { %9843 = vst.msk [vmem:[%s16304_s13 + $0x170] sm:$0xff] %vm9796_vm3, %v9714_v39  ;;  %v9712_v10 = vmax.f32 %v9584_v29, 0.0  ;;  %v9587_v47 = vadd.f32 %v16293_v2, %v9452_v24  ;;  %v9450_v23 = vadd.f32 %v9073_v21, %v8389_v54  ;;  %v8394_v41 = vadd.f32 %v12890_v11, %v17527_v28  ;;  %v17534_v11 = vld [vmem:[#allocation57_spill] sm:$0xff] }
 0x4ba   : > { %v8025_v3 = vpop.f32.mrf.mxu1  ;;  %v9086_v7 = vpop.f32.mrf.mxu0 }
 0x4bb   : > { %9841 = vst.msk [vmem:[%s16304_s13 + $0x160] sm:$0xff] %vm9796_vm3, %v9712_v10  ;;  %v9715_v42 = vmax.f32 %v9587_v47, 0.0  ;;  %v9585_v31 = vadd.f32 %v16293_v2, %v9450_v23  ;;  %v9455_v33 = vadd.f32 %v13020_v12, %v8394_v41  ;;  %v8392_v26 = vadd.f32 %v8025_v3, %v17528_v13  ;;  %v17535_v3 = vld [vmem:[#allocation59_spill] sm:$0xff] }
 0x4bc   : > { %v12891_v59 = vpop.f32.mrf.mxu1  ;;  %v13021_v55 = vpop.f32.mrf.mxu0 }
 0x4bd   : > { %9844 = vst.msk [vmem:[%s16304_s13 + $0x178] sm:$0xff] %vm9796_vm3, %v9715_v42  ;;  %v9713_v30 = vmax.f32 %v9585_v31, 0.0  ;;  %v9590_v5 = vadd.f32 %v16293_v2, %v9455_v33  ;;  %v9453_v45 = vadd.f32 %v9086_v7, %v8392_v26  ;;  %v8395_v44 = vadd.f32 %v12891_v59, %v17529_v52  ;;  %v17536_v59 = vld [vmem:[#allocation61_spill] sm:$0xff] }
 0x4be   : > { %v8028_v40 = vpop.f32.mrf.mxu1  ;;  %v9089_v49 = vpop.f32.mrf.mxu0 }
 0x4bf   : > { %9842 = vst.msk [vmem:[%s16304_s13 + $0x168] sm:$0xff] %vm9796_vm3, %v9713_v30  ;;  %v9718_v15 = vmax.f32 %v9590_v5, 0.0  ;;  %v9588_v38 = vadd.f32 %v16293_v2, %v9453_v45  ;;  %v9456_v53 = vadd.f32 %v13021_v55, %v8395_v44  ;;  %v8393_v61 = vadd.f32 %v8028_v40, %v17530_v9  ;;  %v17537_v40 = vld [vmem:[#allocation63_spill] sm:$0xff] }
 0x4c0   : > { %v12894_v27 = vpop.f32.mrf.mxu1  ;;  %v13024_v6 = vpop.f32.mrf.mxu0 }
 0x4c1   : > { %9847 = vst.msk [vmem:[%s16304_s13 + $0x190] sm:$0xff] %vm9796_vm3, %v9718_v15  ;;  %v9716_v51 = vmax.f32 %v9588_v38, 0.0  ;;  %v9591_v60 = vadd.f32 %v16293_v2, %v9456_v53  ;;  %v9454_v16 = vadd.f32 %v9089_v49, %v8393_v61  ;;  %v8398_v34 = vadd.f32 %v12894_v27, %v17531_v58  ;;  %v17538_v27 = vld [vmem:[#allocation65_spill] sm:$0xff]  ;;  %v16607_v58 = vld [vmem:[%s16894_s2] ss:$0 sm:$0xff] }
 0x4c2   : > { %v8041_v46 = vpop.f32.mrf.mxu1  ;;  %v9102_v50 = vpop.f32.mrf.mxu0 }
 0x4c3   : > { %9845 = vst.msk [vmem:[%s16304_s13 + $0x180] sm:$0xff] %vm9796_vm3, %v9716_v51  ;;  %v9719_v22 = vmax.f32 %v9591_v60, 0.0  ;;  %v9589_v62 = vadd.f32 %v16293_v2, %v9454_v16  ;;  %v9459_v1 = vadd.f32 %v13024_v6, %v8398_v34  ;;  %v8396_v4 = vadd.f32 %v8041_v46, %v17532_v43 }
 0x4c4   : > { %v12895_v8 = vpop.f32.mrf.mxu1  ;;  %v13025_v0 = vpop.f32.mrf.mxu0 }
 0x4c5   : > { %9848 = vst.msk [vmem:[%s16304_s13 + $0x198] sm:$0xff] %vm9796_vm3, %v9719_v22  ;;  %v9717_v18 = vmax.f32 %v9589_v62, 0.0  ;;  %v9594_v36 = vadd.f32 %v16293_v2, %v9459_v1  ;;  %v9457_v17 = vadd.f32 %v9102_v50, %v8396_v4  ;;  %v8399_v21 = vadd.f32 %v12895_v8, %v17533_v14  ;;  %v17539_v50 = vld [vmem:[#allocation67_spill] sm:$0xff]  ;;  %v17540_v8 = vld [vmem:[#allocation69_spill] sm:$0xff] }
 0x4c6   : > { %v8044_v39 = vpop.f32.mrf.mxu1  ;;  %v9105_v29 = vpop.f32.mrf.mxu0 }
 0x4c7   : > { %9846 = vst.msk [vmem:[%s16304_s13 + $0x188] sm:$0xff] %vm9796_vm3, %v9717_v18  ;;  %v9722_v24 = vmax.f32 %v9594_v36, 0.0  ;;  %v9592_v32 = vadd.f32 %v16293_v2, %v9457_v17  ;;  %v9460_v54 = vadd.f32 %v13025_v0, %v8399_v21  ;;  %v8397_v12 = vadd.f32 %v8044_v39, %v17534_v11  ;;  %v17541_v39 = vld [vmem:[#allocation71_spill] sm:$0xff] }
 0x4c8   : > { %v12898_v10 = vpop.f32.mrf.mxu1  ;;  %v13028_v47 = vpop.f32.mrf.mxu0 }
 0x4c9   : > { %9851 = vst.msk [vmem:[%s16304_s13 + $0x1b0] sm:$0xff] %vm9796_vm3, %v9722_v24  ;;  %v9720_v23 = vmax.f32 %v9592_v32, 0.0  ;;  %v9595_v28 = vadd.f32 %v16293_v2, %v9460_v54  ;;  %v9458_v41 = vadd.f32 %v9105_v29, %v8397_v12  ;;  %v8402_v7 = vadd.f32 %v12898_v10, %v17535_v3  ;;  %v17542_v10 = vld [vmem:[#allocation73_spill] sm:$0xff] }
 0x4ca   : > { %v8057_v42 = vpop.f32.mrf.mxu1  ;;  %v9118_v31 = vpop.f32.mrf.mxu0 }
 0x4cb   : > { %9849 = vst.msk [vmem:[%s16304_s13 + $0x1a0] sm:$0xff] %vm9796_vm3, %v9720_v23  ;;  %v9723_v33 = vmax.f32 %v9595_v28, 0.0  ;;  %v9593_v13 = vadd.f32 %v16293_v2, %v9458_v41  ;;  %v9463_v26 = vadd.f32 %v13028_v47, %v8402_v7  ;;  %v8400_v55 = vadd.f32 %v8057_v42, %v17536_v59  ;;  %v17543_v42 = vld [vmem:[#allocation75_spill] sm:$0xff] }
 0x4cc   : > { %v12899_v30 = vpop.f32.mrf.mxu1  ;;  %v13029_v5 = vpop.f32.mrf.mxu0 }
 0x4cd   : > { %9852 = vst.msk [vmem:[%s16304_s13 + $0x1b8] sm:$0xff] %vm9796_vm3, %v9723_v33  ;;  %v9721_v45 = vmax.f32 %v9593_v13, 0.0  ;;  %v9598_v52 = vadd.f32 %v16293_v2, %v9463_v26  ;;  %v9461_v44 = vadd.f32 %v9118_v31, %v8400_v55  ;;  %v8403_v49 = vadd.f32 %v12899_v30, %v17537_v40  ;;  %v17544_v30 = vld [vmem:[#allocation77_spill] sm:$0xff] }
 0x4ce   : > { %v8060_v15 = vpop.f32.mrf.mxu1  ;;  %v9121_v38 = vpop.f32.mrf.mxu0 }
 0x4cf   : > { %9850 = vst.msk [vmem:[%s16304_s13 + $0x1a8] sm:$0xff] %vm9796_vm3, %v9721_v45  ;;  %v9726_v53 = vmax.f32 %v9598_v52, 0.0  ;;  %v9596_v9 = vadd.f32 %v16293_v2, %v9461_v44  ;;  %v9464_v61 = vadd.f32 %v13029_v5, %v8403_v49  ;;  %v8401_v6 = vadd.f32 %v8060_v15, %v17538_v27  ;;  %v17545_v15 = vld [vmem:[#allocation79_spill] sm:$0xff] }
 0x4d0   : > { %v12902_v51 = vpop.f32.mrf.mxu1  ;;  %v13032_v60 = vpop.f32.mrf.mxu0 }
 0x4d1   : > { %9855 = vst.msk [vmem:[%s16304_s13 + $0x1d0] sm:$0xff] %vm9796_vm3, %v9726_v53  ;;  %v9724_v16 = vmax.f32 %v9596_v9, 0.0  ;;  %v9599_v34 = vadd.f32 %v16607_v58, %v9464_v61  ;;  %v9462_v46 = vadd.f32 %v9121_v38, %v8401_v6  ;;  %v8406_v22 = vadd.f32 %v12902_v51, %v17539_v50  ;;  %v17546_v51 = vld [vmem:[#allocation81_spill] sm:$0xff] }
 0x4d2   : > { %v8073_v2 = vpop.f32.mrf.mxu1  ;;  %v9134_v62 = vpop.f32.mrf.mxu0 }
 0x4d3   : > { %9853 = vst.msk [vmem:[%s16304_s13 + $0x1c0] sm:$0xff] %vm9796_vm3, %v9724_v16  ;;  %v9727_v1 = vmax.f32 %v9599_v34, 0.0  ;;  %v9597_v43 = vadd.f32 %v16607_v58, %v9462_v46  ;;  %v9467_v4 = vadd.f32 %v13032_v60, %v8406_v22  ;;  %v8404_v0 = vadd.f32 %v8073_v2, %v17540_v8  ;;  %v17547_v2 = vld [vmem:[#allocation83_spill] sm:$0xff] }
 0x4d4   : > { %v12903_v18 = vpop.f32.mrf.mxu1  ;;  %v13033_v36 = vpop.f32.mrf.mxu0 }
 0x4d5   : > { %9856 = vst.msk [vmem:[%s16304_s13 + $0x1d8] sm:$0xff] %vm9796_vm3, %v9727_v1  ;;  %v9725_v17 = vmax.f32 %v9597_v43, 0.0  ;;  %v9602_v14 = vadd.f32 %v16607_v58, %v9467_v4  ;;  %v9465_v21 = vadd.f32 %v9134_v62, %v8404_v0  ;;  %v8407_v29 = vadd.f32 %v12903_v18, %v17541_v39  ;;  %v17548_v18 = vld [vmem:[#allocation85_spill] sm:$0xff] }
 0x4d6   : > { %v8076_v24 = vpop.f32.mrf.mxu1  ;;  %v9137_v32 = vpop.f32.mrf.mxu0 }
 0x4d7   : > { %9854 = vst.msk [vmem:[%s16304_s13 + $0x1c8] sm:$0xff] %vm9796_vm3, %v9725_v17  ;;  %v9730_v54 = vmax.f32 %v9602_v14, 0.0  ;;  %v9600_v11 = vadd.f32 %v16607_v58, %v9465_v21  ;;  %v9468_v12 = vadd.f32 %v13033_v36, %v8407_v29  ;;  %v8405_v47 = vadd.f32 %v8076_v24, %v17542_v10  ;;  %v17549_v24 = vld [vmem:[#allocation87_spill] sm:$0xff] }
 0x4d8   : > { %v12906_v23 = vpop.f32.mrf.mxu1  ;;  %v13036_v28 = vpop.f32.mrf.mxu0 }
 0x4d9   : > { %9859 = vst.msk [vmem:[%s16304_s13 + $0x1f0] sm:$0xff] %vm9796_vm3, %v9730_v54  ;;  %v9728_v41 = vmax.f32 %v9600_v11, 0.0  ;;  %v9603_v3 = vadd.f32 %v16607_v58, %v9468_v12  ;;  %v9466_v7 = vadd.f32 %v9137_v32, %v8405_v47  ;;  %v8410_v31 = vadd.f32 %v12906_v23, %v17543_v42  ;;  %v17550_v23 = vld [vmem:[#allocation89_spill] sm:$0xff] }
 0x4da   : > { %v8089_v33 = vpop.f32.mrf.mxu1  ;;  %v9150_v13 = vpop.f32.mrf.mxu0 }
 0x4db   : > { %9857 = vst.msk [vmem:[%s16304_s13 + $0x1e0] sm:$0xff] %vm9796_vm3, %v9728_v41  ;;  %v9731_v26 = vmax.f32 %v9603_v3, 0.0  ;;  %v9601_v59 = vadd.f32 %v16607_v58, %v9466_v7  ;;  %v9471_v55 = vadd.f32 %v13036_v28, %v8410_v31  ;;  %v8408_v5 = vadd.f32 %v8089_v33, %v17544_v30  ;;  %v17551_v33 = vld [vmem:[#allocation3_spill] sm:$0xff] }
 0x4dc   : > { %v12907_v45 = vpop.f32.mrf.mxu1  ;;  %v13037_v52 = vpop.f32.mrf.mxu0 }
 0x4dd   : > { %9860 = vst.msk [vmem:[%s16304_s13 + $0x1f8] sm:$0xff] %vm9796_vm3, %v9731_v26  ;;  %v9729_v44 = vmax.f32 %v9601_v59, 0.0  ;;  %v9606_v40 = vadd.f32 %v16607_v58, %v9471_v55  ;;  %v9469_v49 = vadd.f32 %v9150_v13, %v8408_v5  ;;  %v8411_v38 = vadd.f32 %v12907_v45, %v17545_v15  ;;  %v17552_v45 = vld [vmem:[#allocation4_spill] sm:$0xff] }
 0x4de   : > { %v8092_v53 = vpop.f32.mrf.mxu1  ;;  %v9153_v9 = vpop.f32.mrf.mxu0 }
 0x4df   : > { %9858 = vst.msk [vmem:[%s16304_s13 + $0x1e8] sm:$0xff] %vm9796_vm3, %v9729_v44  ;;  %v9734_v61 = vmax.f32 %v9606_v40, 0.0  ;;  %v9604_v27 = vadd.f32 %v16607_v58, %v9469_v49  ;;  %v9472_v6 = vadd.f32 %v13037_v52, %v8411_v38  ;;  %v8409_v60 = vadd.f32 %v8092_v53, %v17546_v51  ;;  %v17553_v53 = vld [vmem:[#allocation5_spill] sm:$0xff] }
 0x4e0   : > { %v12910_v16 = vpop.f32.mrf.mxu1  ;;  %v13040_v34 = vpop.f32.mrf.mxu0 }
 0x4e1   : > { %9863 = vst.msk [vmem:[%s16304_s13 + $0x210] sm:$0xff] %vm9796_vm3, %v9734_v61  ;;  %v9732_v46 = vmax.f32 %v9604_v27, 0.0  ;;  %v9607_v50 = vadd.f32 %v16607_v58, %v9472_v6  ;;  %v9470_v22 = vadd.f32 %v9153_v9, %v8409_v60  ;;  %v8414_v62 = vadd.f32 %v12910_v16, %v17547_v2  ;;  %v17554_v16 = vld [vmem:[#allocation6_spill] sm:$0xff] }
 0x4e2   : > { %v8105_v1 = vpop.f32.mrf.mxu1  ;;  %v9166_v43 = vpop.f32.mrf.mxu0 }
 0x4e3   : > { %9861 = vst.msk [vmem:[%s16304_s13 + $0x200] sm:$0xff] %vm9796_vm3, %v9732_v46  ;;  %v9735_v4 = vmax.f32 %v9607_v50, 0.0  ;;  %v9605_v8 = vadd.f32 %v16607_v58, %v9470_v22  ;;  %v9475_v0 = vadd.f32 %v13040_v34, %v8414_v62  ;;  %v8412_v36 = vadd.f32 %v8105_v1, %v17548_v18  ;;  %v17555_v1 = vld [vmem:[#allocation7_spill] sm:$0xff] }
 0x4e4   : > { %v12911_v17 = vpop.f32.mrf.mxu1  ;;  %v13041_v14 = vpop.f32.mrf.mxu0 }
 0x4e5   : > { %9864 = vst.msk [vmem:[%s16304_s13 + $0x218] sm:$0xff] %vm9796_vm3, %v9735_v4  ;;  %v9733_v21 = vmax.f32 %v9605_v8, 0.0  ;;  %v9610_v39 = vadd.f32 %v16607_v58, %v9475_v0  ;;  %v9473_v29 = vadd.f32 %v9166_v43, %v8412_v36  ;;  %v8415_v32 = vadd.f32 %v12911_v17, %v17549_v24  ;;  %v17556_v17 = vld [vmem:[#allocation8_spill] sm:$0xff] }
 0x4e6   : > { %v8108_v54 = vpop.f32.mrf.mxu1  ;;  %v9169_v11 = vpop.f32.mrf.mxu0 }
 0x4e7   : > { %9862 = vst.msk [vmem:[%s16304_s13 + $0x208] sm:$0xff] %vm9796_vm3, %v9733_v21  ;;  %v9738_v12 = vmax.f32 %v9610_v39, 0.0  ;;  %v9608_v10 = vadd.f32 %v16607_v58, %v9473_v29  ;;  %v9476_v47 = vadd.f32 %v13041_v14, %v8415_v32  ;;  %v8413_v28 = vadd.f32 %v8108_v54, %v17550_v23  ;;  %v17557_v54 = vld [vmem:[#allocation9_spill] sm:$0xff] }
 0x4e8   : > { %v12914_v41 = vpop.f32.mrf.mxu1  ;;  %v13044_v3 = vpop.f32.mrf.mxu0 }
 0x4e9   : > { %9867 = vst.msk [vmem:[%s16304_s13 + $0x230] sm:$0xff] %vm9796_vm3, %v9738_v12  ;;  %v9736_v7 = vmax.f32 %v9608_v10, 0.0  ;;  %v9611_v42 = vadd.f32 %v16607_v58, %v9476_v47  ;;  %v9474_v31 = vadd.f32 %v9169_v11, %v8413_v28  ;;  %v8418_v13 = vadd.f32 %v12914_v41, %v17551_v33  ;;  %v17558_v41 = vld [vmem:[#allocation10_spill] sm:$0xff] }
 0x4ea   : > { %v8121_v26 = vpop.f32.mrf.mxu1  ;;  %v9182_v59 = vpop.f32.mrf.mxu0 }
 0x4eb   : > { %9865 = vst.msk [vmem:[%s16304_s13 + $0x220] sm:$0xff] %vm9796_vm3, %v9736_v7  ;;  %v9739_v55 = vmax.f32 %v9611_v42, 0.0  ;;  %v9609_v30 = vadd.f32 %v16607_v58, %v9474_v31  ;;  %v9479_v5 = vadd.f32 %v13044_v3, %v8418_v13  ;;  %v8416_v52 = vadd.f32 %v8121_v26, %v17552_v45  ;;  %v17559_v26 = vld [vmem:[#allocation11_spill] sm:$0xff] }
 0x4ec   : > { %v12915_v44 = vpop.f32.mrf.mxu1  ;;  %v13045_v40 = vpop.f32.mrf.mxu0 }
 0x4ed   : > { %9868 = vst.msk [vmem:[%s16304_s13 + $0x238] sm:$0xff] %vm9796_vm3, %v9739_v55  ;;  %v9737_v49 = vmax.f32 %v9609_v30, 0.0  ;;  %v9614_v15 = vadd.f32 %v16607_v58, %v9479_v5  ;;  %v9477_v38 = vadd.f32 %v9182_v59, %v8416_v52  ;;  %v8419_v9 = vadd.f32 %v12915_v44, %v17553_v53  ;;  %v17560_v44 = vld [vmem:[#allocation12_spill] sm:$0xff] }
 0x4ee   : > { %v8124_v61 = vpop.f32.mrf.mxu1  ;;  %v9185_v27 = vpop.f32.mrf.mxu0 }
 0x4ef   : > { %9866 = vst.msk [vmem:[%s16304_s13 + $0x228] sm:$0xff] %vm9796_vm3, %v9737_v49  ;;  %v9742_v6 = vmax.f32 %v9614_v15, 0.0  ;;  %v9612_v51 = vadd.f32 %v16607_v58, %v9477_v38  ;;  %v9480_v60 = vadd.f32 %v13045_v40, %v8419_v9  ;;  %v8417_v34 = vadd.f32 %v8124_v61, %v17554_v16  ;;  %v17561_v61 = vld [vmem:[#allocation13_spill] sm:$0xff] }
 0x4f0   : > { %v12918_v46 = vpop.f32.mrf.mxu1  ;;  %v13048_v50 = vpop.f32.mrf.mxu0 }
 0x4f1   : > { %9871 = vst.msk [vmem:[%s16304_s13 + $0x250] sm:$0xff] %vm9796_vm3, %v9742_v6  ;;  %v9740_v22 = vmax.f32 %v9612_v51, 0.0  ;;  %v9615_v2 = vadd.f32 %v16607_v58, %v9480_v60  ;;  %v9478_v62 = vadd.f32 %v9185_v27, %v8417_v34  ;;  %v8422_v43 = vadd.f32 %v12918_v46, %v17555_v1  ;;  %v17562_v46 = vld [vmem:[#allocation14_spill] sm:$0xff] }
 0x4f2   : > { %v8137_v4 = vpop.f32.mrf.mxu1  ;;  %v9198_v8 = vpop.f32.mrf.mxu0 }
 0x4f3   : > { %9869 = vst.msk [vmem:[%s16304_s13 + $0x240] sm:$0xff] %vm9796_vm3, %v9740_v22  ;;  %v9743_v0 = vmax.f32 %v9615_v2, 0.0  ;;  %v9613_v18 = vadd.f32 %v16607_v58, %v9478_v62  ;;  %v9483_v36 = vadd.f32 %v13048_v50, %v8422_v43  ;;  %v8420_v14 = vadd.f32 %v8137_v4, %v17556_v17  ;;  %v17563_v4 = vld [vmem:[#allocation15_spill] sm:$0xff] }
 0x4f4   : > { %v12919_v21 = vpop.f32.mrf.mxu1  ;;  %v13049_v39 = vpop.f32.mrf.mxu0 }
 0x4f5   : > { %9872 = vst.msk [vmem:[%s16304_s13 + $0x258] sm:$0xff] %vm9796_vm3, %v9743_v0  ;;  %v9741_v29 = vmax.f32 %v9613_v18, 0.0  ;;  %v9618_v24 = vadd.f32 %v16607_v58, %v9483_v36  ;;  %v9481_v32 = vadd.f32 %v9198_v8, %v8420_v14  ;;  %v8423_v11 = vadd.f32 %v12919_v21, %v17557_v54  ;;  %v17564_v21 = vld [vmem:[#allocation16_spill] sm:$0xff] }
 0x4f6   : > { %v8140_v12 = vpop.f32.mrf.mxu1  ;;  %v9201_v10 = vpop.f32.mrf.mxu0 }
 0x4f7   : > { %9870 = vst.msk [vmem:[%s16304_s13 + $0x248] sm:$0xff] %vm9796_vm3, %v9741_v29  ;;  %v9746_v47 = vmax.f32 %v9618_v24, 0.0  ;;  %v9616_v23 = vadd.f32 %v16607_v58, %v9481_v32  ;;  %v9484_v28 = vadd.f32 %v13049_v39, %v8423_v11  ;;  %v8421_v3 = vadd.f32 %v8140_v12, %v17558_v41  ;;  %v17565_v12 = vld [vmem:[#allocation17_spill] sm:$0xff] }
 0x4f8   : > { %v12922_v7 = vpop.f32.mrf.mxu1  ;;  %v13052_v42 = vpop.f32.mrf.mxu0 }
 0x4f9   : > { %9875 = vst.msk [vmem:[%s16304_s13 + $0x270] sm:$0xff] %vm9796_vm3, %v9746_v47  ;;  %v9744_v31 = vmax.f32 %v9616_v23, 0.0  ;;  %v9619_v33 = vadd.f32 %v16607_v58, %v9484_v28  ;;  %v9482_v13 = vadd.f32 %v9201_v10, %v8421_v3  ;;  %v8426_v59 = vadd.f32 %v12922_v7, %v17559_v26  ;;  %v17566_v7 = vld [vmem:[#allocation18_spill] sm:$0xff] }
 0x4fa   : > { %v8153_v55 = vpop.f32.mrf.mxu1  ;;  %v9214_v30 = vpop.f32.mrf.mxu0 }
 0x4fb   : > { %9873 = vst.msk [vmem:[%s16304_s13 + $0x260] sm:$0xff] %vm9796_vm3, %v9744_v31  ;;  %v9747_v5 = vmax.f32 %v9619_v33, 0.0  ;;  %v9617_v45 = vadd.f32 %v16607_v58, %v9482_v13  ;;  %v9487_v52 = vadd.f32 %v13052_v42, %v8426_v59  ;;  %v8424_v40 = vadd.f32 %v8153_v55, %v17560_v44  ;;  %v17567_v55 = vld [vmem:[#allocation19_spill] sm:$0xff] }
 0x4fc   : > { %v12923_v49 = vpop.f32.mrf.mxu1  ;;  %v13053_v15 = vpop.f32.mrf.mxu0 }
 0x4fd   : > { %9876 = vst.msk [vmem:[%s16304_s13 + $0x278] sm:$0xff] %vm9796_vm3, %v9747_v5  ;;  %v9745_v38 = vmax.f32 %v9617_v45, 0.0  ;;  %v9622_v53 = vadd.f32 %v16607_v58, %v9487_v52  ;;  %v9485_v9 = vadd.f32 %v9214_v30, %v8424_v40  ;;  %v8427_v27 = vadd.f32 %v12923_v49, %v17561_v61  ;;  %v17568_v49 = vld [vmem:[#allocation20_spill] sm:$0xff] }
 0x4fe   : > { %v8156_v6 = vpop.f32.mrf.mxu1  ;;  %v9217_v51 = vpop.f32.mrf.mxu0 }
 0x4ff   : > { %9874 = vst.msk [vmem:[%s16304_s13 + $0x268] sm:$0xff] %vm9796_vm3, %v9745_v38  ;;  %v9750_v60 = vmax.f32 %v9622_v53, 0.0  ;;  %v9620_v16 = vadd.f32 %v16607_v58, %v9485_v9  ;;  %v9488_v34 = vadd.f32 %v13053_v15, %v8427_v27  ;;  %v8425_v50 = vadd.f32 %v8156_v6, %v17562_v46  ;;  %v17569_v6 = vld [vmem:[#allocation21_spill] sm:$0xff] }
 0x500   : > { %v12926_v22 = vpop.f32.mrf.mxu1  ;;  %v13056_v2 = vpop.f32.mrf.mxu0 }
 0x501   : > { %9879 = vst.msk [vmem:[%s16304_s13 + $0x290] sm:$0xff] %vm9796_vm3, %v9750_v60  ;;  %v9748_v62 = vmax.f32 %v9620_v16, 0.0  ;;  %v9623_v1 = vadd.f32 %v16607_v58, %v9488_v34  ;;  %v9486_v43 = vadd.f32 %v9217_v51, %v8425_v50  ;;  %v8430_v8 = vadd.f32 %v12926_v22, %v17563_v4  ;;  %v17570_v22 = vld [vmem:[#allocation22_spill] sm:$0xff] }
 0x502   : > { %v8169_v0 = vpop.f32.mrf.mxu1  ;;  %v9230_v18 = vpop.f32.mrf.mxu0 }
 0x503   : > { %9877 = vst.msk [vmem:[%s16304_s13 + $0x280] sm:$0xff] %vm9796_vm3, %v9748_v62  ;;  %v9751_v36 = vmax.f32 %v9623_v1, 0.0  ;;  %v9621_v17 = vadd.f32 %v16607_v58, %v9486_v43  ;;  %v9491_v14 = vadd.f32 %v13056_v2, %v8430_v8  ;;  %v8428_v39 = vadd.f32 %v8169_v0, %v17564_v21  ;;  %v17571_v0 = vld [vmem:[#allocation23_spill] sm:$0xff] }
 0x504   : > { %v12927_v29 = vpop.f32.mrf.mxu1  ;;  %v13057_v24 = vpop.f32.mrf.mxu0 }
 0x505   : > { %9880 = vst.msk [vmem:[%s16304_s13 + $0x298] sm:$0xff] %vm9796_vm3, %v9751_v36  ;;  %v9749_v32 = vmax.f32 %v9621_v17, 0.0  ;;  %v9626_v54 = vadd.f32 %v16607_v58, %v9491_v14  ;;  %v9489_v11 = vadd.f32 %v9230_v18, %v8428_v39  ;;  %v8431_v10 = vadd.f32 %v12927_v29, %v17565_v12 }
 0x506   : > { %v8172_v47 = vpop.f32.mrf.mxu1  ;;  %v9233_v23 = vpop.f32.mrf.mxu0 }
 0x507   : > { %9878 = vst.msk [vmem:[%s16304_s13 + $0x288] sm:$0xff] %vm9796_vm3, %v9749_v32  ;;  %v9754_v28 = vmax.f32 %v9626_v54, 0.0  ;;  %v9624_v41 = vadd.f32 %v16607_v58, %v9489_v11  ;;  %v9492_v3 = vadd.f32 %v13057_v24, %v8431_v10  ;;  %v8429_v42 = vadd.f32 %v8172_v47, %v17566_v7  ;;  %v17572_v10 = vld [vmem:[#allocation24_spill] sm:$0xff]  ;;  %v17573_v7 = vld [vmem:[#allocation25_spill] sm:$0xff] }
 0x508   : > { %v12930_v31 = vpop.f32.mrf.mxu1  ;;  %v13060_v33 = vpop.f32.mrf.mxu0 }
 0x509   : > { %9883 = vst.msk [vmem:[%s16304_s13 + $0x2b0] sm:$0xff] %vm9796_vm3, %v9754_v28  ;;  %v9752_v13 = vmax.f32 %v9624_v41, 0.0  ;;  %v9627_v26 = vadd.f32 %v16607_v58, %v9492_v3  ;;  %v9490_v59 = vadd.f32 %v9233_v23, %v8429_v42  ;;  %v8434_v30 = vadd.f32 %v12930_v31, %v17567_v55  ;;  %v17574_v55 = vld [vmem:[#allocation26_spill] sm:$0xff] }
 0x50a   : > { %v8185_v5 = vpop.f32.mrf.mxu1  ;;  %v9246_v45 = vpop.f32.mrf.mxu0 }
 0x50b   : > { %9881 = vst.msk [vmem:[%s16304_s13 + $0x2a0] sm:$0xff] %vm9796_vm3, %v9752_v13  ;;  %v9755_v52 = vmax.f32 %v9627_v26, 0.0  ;;  %v9625_v44 = vadd.f32 %v16607_v58, %v9490_v59  ;;  %v9495_v40 = vadd.f32 %v13060_v33, %v8434_v30  ;;  %v8432_v15 = vadd.f32 %v8185_v5, %v17568_v49  ;;  %v17575_v49 = vld [vmem:[#allocation27_spill] sm:$0xff] }
 0x50c   : > { %v12931_v38 = vpop.f32.mrf.mxu1  ;;  %v13061_v53 = vpop.f32.mrf.mxu0 }
 0x50d   : > { %9884 = vst.msk [vmem:[%s16304_s13 + $0x2b8] sm:$0xff] %vm9796_vm3, %v9755_v52  ;;  %v9753_v9 = vmax.f32 %v9625_v44, 0.0  ;;  %v9630_v61 = vadd.f32 %v16607_v58, %v9495_v40  ;;  %v9493_v27 = vadd.f32 %v9246_v45, %v8432_v15  ;;  %v8435_v51 = vadd.f32 %v12931_v38, %v17569_v6  ;;  %v17576_v6 = vld [vmem:[#allocation28_spill] sm:$0xff] }
 0x50e   : > { %v8188_v60 = vpop.f32.mrf.mxu1  ;;  %v9249_v16 = vpop.f32.mrf.mxu0 }
 0x50f   : > { %9882 = vst.msk [vmem:[%s16304_s13 + $0x2a8] sm:$0xff] %vm9796_vm3, %v9753_v9  ;;  %v9758_v34 = vmax.f32 %v9630_v61, 0.0  ;;  %v9628_v46 = vadd.f32 %v16607_v58, %v9493_v27  ;;  %v9496_v50 = vadd.f32 %v13061_v53, %v8435_v51  ;;  %v8433_v2 = vadd.f32 %v8188_v60, %v17570_v22  ;;  %v17577_v22 = vld [vmem:[#allocation29_spill] sm:$0xff] }
 0x510   : > { %v12934_v62 = vpop.f32.mrf.mxu1  ;;  %v13064_v1 = vpop.f32.mrf.mxu0 }
 0x511   : > { %9887 = vst.msk [vmem:[%s16304_s13 + $0x2d0] sm:$0xff] %vm9796_vm3, %v9758_v34  ;;  %v9756_v43 = vmax.f32 %v9628_v46, 0.0  ;;  %v9631_v4 = vadd.f32 %v16607_v58, %v9496_v50  ;;  %v9494_v8 = vadd.f32 %v9249_v16, %v8433_v2  ;;  %v8438_v18 = vadd.f32 %v12934_v62, %v17571_v0  ;;  %v17578_v0 = vld [vmem:[#allocation30_spill] sm:$0xff] }
 0x512   : > { %v8201_v36 = vpop.f32.mrf.mxu1  ;;  %v9262_v17 = vpop.f32.mrf.mxu0 }
 0x513   : > { %9885 = vst.msk [vmem:[%s16304_s13 + $0x2c0] sm:$0xff] %vm9796_vm3, %v9756_v43  ;;  %v9759_v14 = vmax.f32 %v9631_v4, 0.0  ;;  %v9629_v21 = vadd.f32 %v16607_v58, %v9494_v8  ;;  %v9499_v39 = vadd.f32 %v13064_v1, %v8438_v18  ;;  %v8436_v29 = vadd.f32 %v8201_v36, %v16079_v20 }
 0x514   : > { %v12935_v24 = vpop.f32.mrf.mxu1  ;;  %v13065_v32 = vpop.f32.mrf.mxu0 }
 0x515   : > { %9888 = vst.msk [vmem:[%s16304_s13 + $0x2d8] sm:$0xff] %vm9796_vm3, %v9759_v14  ;;  %v9757_v54 = vmax.f32 %v9629_v21, 0.0  ;;  %v9634_v11 = vadd.f32 %v16607_v58, %v9499_v39  ;;  %v9497_v12 = vadd.f32 %v9262_v17, %v8436_v29  ;;  %v8439_v47 = vadd.f32 %v12935_v24, %v17572_v10  ;;  %v17579_v29 = vld [vmem:[#allocation31_spill] sm:$0xff] }
 0x516   : > { %v8204_v23 = vpop.f32.mrf.mxu1  ;;  %v9265_v28 = vpop.f32.mrf.mxu0 }
 0x517   : > { %9886 = vst.msk [vmem:[%s16304_s13 + $0x2c8] sm:$0xff] %vm9796_vm3, %v9757_v54  ;;  %v9762_v41 = vmax.f32 %v9634_v11, 0.0  ;;  %v9632_v3 = vadd.f32 %v16607_v58, %v9497_v12  ;;  %v9500_v20 = vadd.f32 %v13065_v32, %v8439_v47  ;;  %v8437_v42 = vadd.f32 %v8204_v23, %v17573_v7  ;;  %v17580_v47 = vld [vmem:[#allocation32_spill] sm:$0xff] }
 0x518   : > { %v12938_v31 = vpop.f32.mrf.mxu1  ;;  %v13068_v33 = vpop.f32.mrf.mxu0 }
 0x519   : > { %9891 = vst.msk [vmem:[%s16304_s13 + $0x2f0] sm:$0xff] %vm9796_vm3, %v9762_v41  ;;  %v9760_v13 = vmax.f32 %v9632_v3, 0.0  ;;  %v9635_v26 = vadd.f32 %v16607_v58, %v9500_v20  ;;  %v9498_v59 = vadd.f32 %v9265_v28, %v8437_v42  ;;  %v8442_v30 = vadd.f32 %v12938_v31, %v17574_v55  ;;  %v17581_v42 = vld [vmem:[#allocation33_spill] sm:$0xff] }
 0x51a   : > { %v8217_v5 = vpop.f32.mrf.mxu1  ;;  %v9278_v45 = vpop.f32.mrf.mxu0 }
 0x51b   : > { %9889 = vst.msk [vmem:[%s16304_s13 + $0x2e0] sm:$0xff] %vm9796_vm3, %v9760_v13  ;;  %v9763_v52 = vmax.f32 %v9635_v26, 0.0  ;;  %v9633_v44 = vadd.f32 %v16607_v58, %v9498_v59  ;;  %v9503_v40 = vadd.f32 %v13068_v33, %v8442_v30  ;;  %v8440_v15 = vadd.f32 %v8217_v5, %v17575_v49  ;;  %v17582_v30 = vld [vmem:[#allocation34_spill] sm:$0xff] }
 0x51c   : > { %v12939_v38 = vpop.f32.mrf.mxu1  ;;  %v13069_v53 = vpop.f32.mrf.mxu0 }
 0x51d   : > { %9892 = vst.msk [vmem:[%s16304_s13 + $0x2f8] sm:$0xff] %vm9796_vm3, %v9763_v52  ;;  %v9761_v9 = vmax.f32 %v9633_v44, 0.0  ;;  %v9638_v61 = vadd.f32 %v16607_v58, %v9503_v40  ;;  %v9501_v27 = vadd.f32 %v9278_v45, %v8440_v15  ;;  %v8443_v51 = vadd.f32 %v12939_v38, %v17576_v6  ;;  %v17583_v15 = vld [vmem:[#allocation35_spill] sm:$0xff] }
 0x51e   : > { %v8220_v60 = vpop.f32.mrf.mxu1  ;;  %v9281_v16 = vpop.f32.mrf.mxu0 }
 0x51f   : > { %9890 = vst.msk [vmem:[%s16304_s13 + $0x2e8] sm:$0xff] %vm9796_vm3, %v9761_v9  ;;  %v9766_v34 = vmax.f32 %v9638_v61, 0.0  ;;  %v9636_v46 = vadd.f32 %v16607_v58, %v9501_v27  ;;  %v9504_v50 = vadd.f32 %v13069_v53, %v8443_v51  ;;  %v8441_v2 = vadd.f32 %v8220_v60, %v17577_v22  ;;  %v17584_v51 = vld [vmem:[#allocation36_spill] sm:$0xff] }
 0x520   : > { %v12942_v62 = vpop.f32.mrf.mxu1  ;;  %v13072_v1 = vpop.f32.mrf.mxu0 }
 0x521   : > { %9895 = vst.msk [vmem:[%s16304_s13 + $0x310] sm:$0xff] %vm9796_vm3, %v9766_v34  ;;  %v9764_v43 = vmax.f32 %v9636_v46, 0.0  ;;  %v9639_v4 = vadd.f32 %v16607_v58, %v9504_v50  ;;  %v9502_v8 = vadd.f32 %v9281_v16, %v8441_v2  ;;  %v8446_v18 = vadd.f32 %v12942_v62, %v17578_v0  ;;  %v17585_v2 = vld [vmem:[#allocation37_spill] sm:$0xff] }
 0x522   : > { %v8233_v36 = vpop.f32.mrf.mxu1  ;;  %v9294_v17 = vpop.f32.mrf.mxu0 }
 0x523   : > { %9893 = vst.msk [vmem:[%s16304_s13 + $0x300] sm:$0xff] %vm9796_vm3, %v9764_v43  ;;  %v9767_v14 = vmax.f32 %v9639_v4, 0.0  ;;  %v9637_v21 = vadd.f32 %v16607_v58, %v9502_v8  ;;  %v9507_v39 = vadd.f32 %v13072_v1, %v8446_v18  ;;  %v8444_v24 = vadd.f32 %v8233_v36, %v17579_v29  ;;  %v17586_v18 = vld [vmem:[#allocation2_spill] sm:$0xff] }
 0x524   : > { %v12943_v32 = vpop.f32.mrf.mxu1  ;;  %v13073_v54 = vpop.f32.mrf.mxu0 }
 0x525   : > { %9896 = vst.msk [vmem:[%s16304_s13 + $0x318] sm:$0xff] %vm9796_vm3, %v9767_v14  ;;  %v9765_v11 = vmax.f32 %v9637_v21, 0.0  ;;  %v9642_v12 = vadd.f32 %v16607_v58, %v9507_v39  ;;  %v9505_v10 = vadd.f32 %v9294_v17, %v8444_v24  ;;  %v8447_v23 = vadd.f32 %v12943_v32, %v17580_v47  ;;  %v17587_v24 = vld [vmem:[#allocation38_spill] sm:$0xff] }
 0x526   : > { %v8236_v28 = vpop.f32.mrf.mxu1  ;;  %v9297_v41 = vpop.f32.mrf.mxu0 }
 0x527   : > { %9894 = vst.msk [vmem:[%s16304_s13 + $0x308] sm:$0xff] %vm9796_vm3, %v9765_v11  ;;  %v9770_v3 = vmax.f32 %v9642_v12, 0.0  ;;  %v9640_v20 = vadd.f32 %v16607_v58, %v9505_v10  ;;  %v9508_v7 = vadd.f32 %v13073_v54, %v8447_v23  ;;  %v8445_v31 = vadd.f32 %v8236_v28, %v17581_v42  ;;  %v17588_v23 = vld [vmem:[#allocation39_spill] sm:$0xff] }
 0x528   : > { %v12946_v33 = vpop.f32.mrf.mxu1  ;;  %v13076_v13 = vpop.f32.mrf.mxu0 }
 0x529   : > { %9899 = vst.msk [vmem:[%s16304_s13 + $0x330] sm:$0xff] %vm9796_vm3, %v9770_v3  ;;  %v9768_v26 = vmax.f32 %v9640_v20, 0.0  ;;  %v9643_v59 = vadd.f32 %v16607_v58, %v9508_v7  ;;  %v9506_v55 = vadd.f32 %v9297_v41, %v8445_v31  ;;  %v8450_v5 = vadd.f32 %v12946_v33, %v17582_v30  ;;  %v17589_v31 = vld [vmem:[#allocation40_spill] sm:$0xff] }
 0x52a   : > { %v8249_v45 = vpop.f32.mrf.mxu1  ;;  %v9310_v52 = vpop.f32.mrf.mxu0 }
 0x52b   : > { %9897 = vst.msk [vmem:[%s16304_s13 + $0x320] sm:$0xff] %vm9796_vm3, %v9768_v26  ;;  %v9771_v44 = vmax.f32 %v9643_v59, 0.0  ;;  %v9641_v40 = vadd.f32 %v16607_v58, %v9506_v55  ;;  %v9511_v49 = vadd.f32 %v13076_v13, %v8450_v5  ;;  %v8448_v38 = vadd.f32 %v8249_v45, %v17583_v15  ;;  %v17590_v5 = vld [vmem:[#allocation41_spill] sm:$0xff] }
 0x52c   : > { %v12947_v53 = vpop.f32.mrf.mxu1  ;;  %v13077_v9 = vpop.f32.mrf.mxu0 }
 0x52d   : > { %9900 = vst.msk [vmem:[%s16304_s13 + $0x338] sm:$0xff] %vm9796_vm3, %v9771_v44  ;;  %v9769_v61 = vmax.f32 %v9641_v40, 0.0  ;;  %v9646_v27 = vadd.f32 %v16607_v58, %v9511_v49  ;;  %v9509_v6 = vadd.f32 %v9310_v52, %v8448_v38  ;;  %v8451_v60 = vadd.f32 %v12947_v53, %v17584_v51  ;;  %v17591_v38 = vld [vmem:[#allocation42_spill] sm:$0xff] }
 0x52e   : > { %v8252_v16 = vpop.f32.mrf.mxu1  ;;  %v9313_v34 = vpop.f32.mrf.mxu0 }
 0x52f   : > { %9898 = vst.msk [vmem:[%s16304_s13 + $0x328] sm:$0xff] %vm9796_vm3, %v9769_v61  ;;  %v9774_v46 = vmax.f32 %v9646_v27, 0.0  ;;  %v9644_v50 = vadd.f32 %v16607_v58, %v9509_v6  ;;  %v9512_v22 = vadd.f32 %v13077_v9, %v8451_v60  ;;  %v8449_v62 = vadd.f32 %v8252_v16, %v17585_v2  ;;  %v17592_v60 = vld [vmem:[#allocation44_spill] sm:$0xff] }
 0x530   : > { %v12950_v1 = vpop.f32.mrf.mxu1  ;;  %v13080_v43 = vpop.f32.mrf.mxu0 }
 0x531   : > { %9903 = vst.msk [vmem:[%s16304_s13 + $0x350] sm:$0xff] %vm9796_vm3, %v9774_v46  ;;  %v9772_v4 = vmax.f32 %v9644_v50, 0.0  ;;  %v9647_v8 = vadd.f32 %v16607_v58, %v9512_v22  ;;  %v9510_v0 = vadd.f32 %v9313_v34, %v8449_v62  ;;  %v8454_v36 = vadd.f32 %v12950_v1, %v17586_v18  ;;  %v17593_v62 = vld [vmem:[#allocation46_spill] sm:$0xff] }
 0x532   : > { %v8265_v17 = vpop.f32.mrf.mxu1  ;;  %v9326_v14 = vpop.f32.mrf.mxu0 }
 0x533   : > { %9901 = vst.msk [vmem:[%s16304_s13 + $0x340] sm:$0xff] %vm9796_vm3, %v9772_v4  ;;  %v9775_v21 = vmax.f32 %v9647_v8, 0.0  ;;  %v9645_v39 = vadd.f32 %v16607_v58, %v9510_v0  ;;  %v9515_v29 = vadd.f32 %v13080_v43, %v8454_v36  ;;  %v8452_v32 = vadd.f32 %v8265_v17, %v17587_v24  ;;  %v17594_v36 = vld [vmem:[#allocation48_spill] sm:$0xff] }
 0x534   : > { %v12951_v54 = vpop.f32.mrf.mxu1  ;;  %v13081_v11 = vpop.f32.mrf.mxu0 }
 0x535   : > { %9904 = vst.msk [vmem:[%s16304_s13 + $0x358] sm:$0xff] %vm9796_vm3, %v9775_v21  ;;  %v9773_v12 = vmax.f32 %v9645_v39, 0.0  ;;  %v9650_v10 = vadd.f32 %v16607_v58, %v9515_v29  ;;  %v9513_v47 = vadd.f32 %v9326_v14, %v8452_v32  ;;  %v8455_v28 = vadd.f32 %v12951_v54, %v17588_v23 }
 0x536   : > { %v8268_v41 = vpop.f32.mrf.mxu1  ;;  %v9329_v3 = vpop.f32.mrf.mxu0 }
 0x537   : > { %9902 = vst.msk [vmem:[%s16304_s13 + $0x348] sm:$0xff] %vm9796_vm3, %v9773_v12  ;;  %v9778_v20 = vmax.f32 %v9650_v10, 0.0  ;;  %v9648_v7 = vadd.f32 %v16607_v58, %v9513_v47  ;;  %v9516_v42 = vadd.f32 %v13081_v11, %v8455_v28  ;;  %v8453_v33 = vadd.f32 %v8268_v41, %v17589_v31 }
 0x538   : > { %v12954_v13 = vpop.f32.mrf.mxu1  ;;  %v13084_v26 = vpop.f32.mrf.mxu0 }
 0x539   : > { %9907 = vst.msk [vmem:[%s16304_s13 + $0x370] sm:$0xff] %vm9796_vm3, %v9778_v20  ;;  %v9776_v59 = vmax.f32 %v9648_v7, 0.0  ;;  %v9651_v55 = vadd.f32 %v16607_v58, %v9516_v42  ;;  %v9514_v30 = vadd.f32 %v9329_v3, %v8453_v33  ;;  %v8458_v45 = vadd.f32 %v12954_v13, %v17590_v5  ;;  %v17595_v7 = vld [vmem:[#allocation50_spill] sm:$0xff] }
 0x53a   : > { %v8281_v52 = vpop.f32.mrf.mxu1  ;;  %v9342_v44 = vpop.f32.mrf.mxu0 }
 0x53b   : > { %9905 = vst.msk [vmem:[%s16304_s13 + $0x360] sm:$0xff] %vm9796_vm3, %v9776_v59  ;;  %v9779_v40 = vmax.f32 %v9651_v55, 0.0  ;;  %v9649_v49 = vadd.f32 %v16607_v58, %v9514_v30  ;;  %v9519_v15 = vadd.f32 %v13084_v26, %v8458_v45  ;;  %v8456_v53 = vadd.f32 %v8281_v52, %v17591_v38  ;;  %v17596_v59 = vld [vmem:[#allocation52_spill] sm:$0xff] }
 0x53c   : > { %v12955_v9 = vpop.f32.mrf.mxu1  ;;  %v13085_v61 = vpop.f32.mrf.mxu0 }
 0x53d   : > { %9908 = vst.msk [vmem:[%s16304_s13 + $0x378] sm:$0xff] %vm9796_vm3, %v9779_v40  ;;  %v9777_v27 = vmax.f32 %v9649_v49, 0.0  ;;  %v9654_v6 = vadd.f32 %v16607_v58, %v9519_v15  ;;  %v9517_v51 = vadd.f32 %v9342_v44, %v8456_v53  ;;  %v8459_v16 = vadd.f32 %v12955_v9, %v17592_v60 }
 0x53e   : > { %v8284_v34 = vpop.f32.mrf.mxu1  ;;  %v9345_v46 = vpop.f32.mrf.mxu0 }
 0x53f   : > { %9906 = vst.msk [vmem:[%s16304_s13 + $0x368] sm:$0xff] %vm9796_vm3, %v9777_v27  ;;  %v9782_v50 = vmax.f32 %v9654_v6, 0.0  ;;  %v9652_v22 = vadd.f32 %v16607_v58, %v9517_v51  ;;  %v9520_v2 = vadd.f32 %v13085_v61, %v8459_v16  ;;  %v8457_v1 = vadd.f32 %v8284_v34, %v17593_v62 }
 0x540   : > { %v12958_v43 = vpop.f32.mrf.mxu1  ;;  %v13088_v4 = vpop.f32.mrf.mxu0 }
 0x541   : > { %9911 = vst.msk [vmem:[%s16304_s13 + $0x390] sm:$0xff] %vm9796_vm3, %v9782_v50  ;;  %v9780_v8 = vmax.f32 %v9652_v22, 0.0  ;;  %v9655_v0 = vadd.f32 %v16607_v58, %v9520_v2  ;;  %v9518_v18 = vadd.f32 %v9345_v46, %v8457_v1  ;;  %v8462_v17 = vadd.f32 %v12958_v43, %v17594_v36 }
 0x542   : > { %v8297_v14 = vpop.f32.mrf.mxu1  ;;  %v9358_v21 = vpop.f32.mrf.mxu0 }
 0x543   : > { %9909 = vst.msk [vmem:[%s16304_s13 + $0x380] sm:$0xff] %vm9796_vm3, %v9780_v8  ;;  %v9783_v39 = vmax.f32 %v9655_v0, 0.0  ;;  %v9653_v29 = vadd.f32 %v16607_v58, %v9518_v18  ;;  %v9523_v24 = vadd.f32 %v13088_v4, %v8462_v17  ;;  %v8460_v32 = vadd.f32 %v8297_v14, %v16223_v56 }
 0x544   : > { %v12959_v54 = vpop.f32.mrf.mxu1  ;;  %v13089_v11 = vpop.f32.mrf.mxu0 }
 0x545   : > { %9912 = vst.msk [vmem:[%s16304_s13 + $0x398] sm:$0xff] %vm9796_vm3, %v9783_v39  ;;  %v9781_v12 = vmax.f32 %v9653_v29, 0.0  ;;  %v9658_v10 = vadd.f32 %v16607_v58, %v9523_v24  ;;  %v9521_v47 = vadd.f32 %v9358_v21, %v8460_v32  ;;  %v8463_v23 = vadd.f32 %v12959_v54, %v16226_v48  ;;  %v17597_v24 = vld [vmem:[#allocation54_spill] sm:$0xff] }
 0x546   : > { %v8300_v28 = vpop.f32.mrf.mxu1  ;;  %v9361_v41 = vpop.f32.mrf.mxu0 }
 0x547   : > { %9910 = vst.msk [vmem:[%s16304_s13 + $0x388] sm:$0xff] %vm9796_vm3, %v9781_v12  ;;  %v9786_v3 = vmax.f32 %v9658_v10, 0.0  ;;  %v9656_v20 = vadd.f32 %v16607_v58, %v9521_v47  ;;  %v9524_v56 = vadd.f32 %v13089_v11, %v8463_v23  ;;  %v8461_v42 = vadd.f32 %v8300_v28, %v17595_v7 }
 0x548   : > { %v12962_v31 = vpop.f32.mrf.mxu1  ;;  %v13092_v33 = vpop.f32.mrf.mxu0 }
 0x549   : > { %9915 = vst.msk [vmem:[%s16304_s13 + $0x3b0] sm:$0xff] %vm9796_vm3, %v9786_v3  ;;  %v9784_v13 = vmax.f32 %v9656_v20, 0.0  ;;  %v9659_v26 = vadd.f32 %v16607_v58, %v9524_v56  ;;  %v9522_v48 = vadd.f32 %v9361_v41, %v8461_v42  ;;  %v8466_v55 = vadd.f32 %v12962_v31, %v17596_v59 }
 0x54a   : > { %v8313_v30 = vpop.f32.mrf.mxu1  ;;  %v9374_v5 = vpop.f32.mrf.mxu0 }
 0x54b   : > { %9913 = vst.msk [vmem:[%s16304_s13 + $0x3a0] sm:$0xff] %vm9796_vm3, %v9784_v13  ;;  %v9787_v45 = vmax.f32 %v9659_v26, 0.0  ;;  %v9657_v52 = vadd.f32 %v16607_v58, %v9522_v48  ;;  %v9527_v44 = vadd.f32 %v13092_v33, %v8466_v55  ;;  %v8464_v40 = vadd.f32 %v8313_v30, %v16247_v35 }
 0x54c   : > { %v12963_v49 = vpop.f32.mrf.mxu1  ;;  %v13093_v15 = vpop.f32.mrf.mxu0 }
 0x54d   : > { %9916 = vst.msk [vmem:[%s16304_s13 + $0x3b8] sm:$0xff] %vm9796_vm3, %v9787_v45  ;;  %v9785_v38 = vmax.f32 %v9657_v52, 0.0  ;;  %v9662_v53 = vadd.f32 %v16607_v58, %v9527_v44  ;;  %v9525_v9 = vadd.f32 %v9374_v5, %v8464_v40  ;;  %v8467_v61 = vadd.f32 %v12963_v49, %v16250_v37 }
 0x54e   : > { %v8316_v27 = vpop.f32.mrf.mxu1  ;;  %v9377_v6 = vpop.f32.mrf.mxu0 }
 0x54f   : > { %9914 = vst.msk [vmem:[%s16304_s13 + $0x3a8] sm:$0xff] %vm9796_vm3, %v9785_v38  ;;  %v9790_v51 = vmax.f32 %v9662_v53, 0.0  ;;  %v9660_v60 = vadd.f32 %v16607_v58, %v9525_v9  ;;  %v9528_v35 = vadd.f32 %v13093_v15, %v8467_v61  ;;  %v8465_v16 = vadd.f32 %v8316_v27, %v16257_v25 }
 0x550   : > { %v12966_v34 = vpop.f32.mrf.mxu1  ;;  %v13096_v46 = vpop.f32.mrf.mxu0 }
 0x551   : > { %9919 = vst.msk [vmem:[%s16304_s13 + $0x3d0] sm:$0xff] %vm9796_vm3, %v9790_v51  ;;  %v9788_v50 = vmax.f32 %v9660_v60, 0.0  ;;  %v9663_v22 = vadd.f32 %v16607_v58, %v9528_v35  ;;  %v9526_v37 = vadd.f32 %v9377_v6, %v8465_v16  ;;  %v8470_v2 = vadd.f32 %v12966_v34, %v16268_v19 }
 0x552   : > { %v8329_v62 = vpop.f32.mrf.mxu1  ;;  %v9390_v1 = vpop.f32.mrf.mxu0 }
 0x553   : > { %9917 = vst.msk [vmem:[%s16304_s13 + $0x3c0] sm:$0xff] %vm9796_vm3, %v9788_v50  ;;  %v9791_v43 = vmax.f32 %v9663_v22, 0.0  ;;  %v9661_v4 = vadd.f32 %v16607_v58, %v9526_v37  ;;  %v9531_v25 = vadd.f32 %v13096_v46, %v8470_v2  ;;  %v8468_v8 = vadd.f32 %v8329_v62, %v16271_v63 }
 0x554   : > { %v12967_v0 = vpop.f32.mrf.mxu1  ;;  %v13097_v18 = vpop.f32.mrf.mxu0 }
 0x555   : > { %9920 = vst.msk [vmem:[%s16304_s13 + $0x3d8] sm:$0xff] %vm9796_vm3, %v9791_v43  ;;  %v9789_v36 = vmax.f32 %v9661_v4, 0.0  ;;  %v9666_v19 = vadd.f32 %v16607_v58, %v9531_v25  ;;  %v9529_v17 = vadd.f32 %v9390_v1, %v8468_v8  ;;  %v8471_v14 = vadd.f32 %v12967_v0, %v16274_v57 }
 0x556   : > { %v8332_v21 = vpop.f32.mrf.mxu1  ;;  %v9393_v54 = vpop.f32.mrf.mxu0 }
 0x557   : > { %9918 = vst.msk [vmem:[%s16304_s13 + $0x3c8] sm:$0xff] %vm9796_vm3, %v9789_v36  ;;  %v9794_v39 = vmax.f32 %v9666_v19, 0.0  ;;  %v9664_v29 = vadd.f32 %v16607_v58, %v9529_v17  ;;  %v9532_v63 = vadd.f32 %v13097_v18, %v8471_v14  ;;  %v8469_v32 = vadd.f32 %v8332_v21, %v17597_v24 }
 0x559   : > { %9923 = vst.msk [vmem:[%s16304_s13 + $0x3f0] sm:$0xff] %vm9796_vm3, %v9794_v39  ;;  %v9792_v11 = vmax.f32 %v9664_v29, 0.0  ;;  %v9667_v12 = vadd.f32 %v16607_v58, %v9532_v63  ;;  %v9530_v10 = vadd.f32 %v9393_v54, %v8469_v32 }
 0x55b   : > { %9921 = vst.msk [vmem:[%s16304_s13 + $0x3e0] sm:$0xff] %vm9796_vm3, %v9792_v11  ;;  %v9795_v57 = vmax.f32 %v9667_v12, 0.0  ;;  %v9665_v47 = vadd.f32 %v16607_v58, %v9530_v10 }
 0x55d   : > { %9924 = vst.msk [vmem:[%s16304_s13 + $0x3f8] sm:$0xff] %vm9796_vm3, %v9795_v57  ;;  %v9793_v23 = vmax.f32 %v9665_v47, 0.0 }
 0x55f   : > { %9922 = vst.msk [vmem:[%s16304_s13 + $0x3e8] sm:$0xff] %vm9796_vm3, %v9793_v23 }
 0x560 PF: > { %s13_s12 = sadd.s32 1, %s13124_s12  }
 0x561   : > { %p10_p4 = scmp.ge.s32.totalorder %s13_s12, 4  }
 0x563   :  { %12 = sbr.rel (!%p10_p4) target bundleno = 1 (0x1), region = 64 }

</bundles_post_ra>
